<compile_context>
chip_gen: v5e
topology: v5e:2x2
jax: 0.10.0
libtpu: 0.0.40
codegen_flags: <defaults>
</compile_context>

<pallas_src>
import functools

import jax
import jax.numpy as jnp
from jax.experimental import pallas as pl
from jax.experimental.pallas import tpu as pltpu

GATE = 128        # lane-padded width of one GRU gate block (r | z | n)
BATCH_TILE = 8    # sublane tile; batch is padded to a multiple of 8


# ---------------------------------------------------------------------------
# Fused kernel: all GRU layers + FC head, one batch tile per grid step.
# Inputs: x (T, 8, I) time-major, then per layer
#   wi (in_rows, 3*G), wh (G, 3*G), bi (1, 3*G), bhn (1, G),
# then fcw (T, G, Cp), fcb (1, Cp).  Output: logits (8, Cp).
# ---------------------------------------------------------------------------
def make_fused_kernel(num_layers, seq_len):
    T, L, G = seq_len, num_layers, GATE

    def kernel(*args):
        x_ref = args[0]
        lrefs = args[1:1 + 4 * L]
        fcw_ref = args[1 + 4 * L]
        fcb_ref = args[2 + 4 * L]
        o_ref = args[3 + 4 * L]

        BT = x_ref.shape[1]
        Cp = fcb_ref.shape[-1]

        def gru_step(l, x_in, h_prev):
            wi_ref, wh_ref, bi_ref, bhn_ref = lrefs[4 * l:4 * l + 4]
            # Input projection: independent of h_prev -> off the serial chain,
            # scheduler overlaps it with the other layers' recurrences.
            gi = jnp.dot(x_in, wi_ref[...],
                         preferred_element_type=jnp.float32) + bi_ref[...]
            gh = jnp.dot(h_prev, wh_ref[...],
                         preferred_element_type=jnp.float32)
            # One 2*G-wide sigmoid covers both r and z (single EUP push).
            rz = jax.nn.sigmoid(gi[:, :2 * G] + gh[:, :2 * G])
            r = rz[:, :G]
            z = rz[:, G:]
            n = jnp.tanh(gi[:, 2 * G:] + r * (gh[:, 2 * G:] + bhn_ref[...]))
            return n + z * (h_prev - n)          # == (1-z)*n + z*h_prev

        h = [jnp.zeros((BT, G), jnp.float32) for _ in range(L)]
        acc = jnp.zeros((BT, Cp), jnp.float32)   # fused FC accumulator
        out_h = {}                               # (layer, t) -> hidden (handoff)

        # Wavefront schedule: at wave w, layer l processes t = w - l, so the L
        # strictly dependent per-layer chains interleave (hides MXU/EUP latency).
        # T and L are small -> static unroll (keeps full LLO scheduler visibility);
        # for large T switch this to lax.fori_loop(..., unroll=True) over waves.
        for w in range(T + L - 1):
            for l in range(L):
                t = w - l
                if 0 <= t < T:
                    if l == 0:
                        x_in = x_ref[t].astype(jnp.float32)
                    else:
                        x_in = out_h[(l - 1, t)]
                    h[l] = gru_step(l, x_in, h[l])
                    if l == L - 1:
                        # FC head fused in: logits += h_t @ W_fc[t]
                        acc = acc + jnp.dot(h[l], fcw_ref[t],
                                            preferred_element_type=jnp.float32)
                    else:
                        out_h[(l, t)] = h[l]

        o_ref[...] = (acc + fcb_ref[...]).astype(o_ref.dtype)

    return kernel


# ---------------------------------------------------------------------------
# One-time parameter repacking (hoisted out of the forward pass).
# Gate g occupies lanes [g*GATE, g*GATE + H); unused lanes/rows are zero, which
# keeps the padded hidden lanes exactly 0 throughout the recurrence.
# ---------------------------------------------------------------------------
def pack_params(gru_params, fc_w, fc_b, seq_len):
    G = GATE
    H = gru_params[0][1].shape[1]
    assert H <= G, "hidden_size > 128 needs multi-tile gate blocks"
    C = fc_w.shape[0]
    Cp = ((C + G - 1) // G) * G

    packed_layers = []
    for l, (w_ih, w_hh, b_ih, b_hh) in enumerate(gru_params):
        in_dim = w_ih.shape[1]
        in_rows = in_dim if l == 0 else G       # layers >= 1 consume lane-padded h
        wi = jnp.zeros((in_rows, 3 * G), jnp.float32)
        wh = jnp.zeros((G, 3 * G), jnp.float32)
        bi = jnp.zeros((1, 3 * G), jnp.float32)
        bhn = jnp.zeros((1, G), jnp.float32)
        b_i3 = jnp.split(b_ih, 3)
        b_h3 = jnp.split(b_hh, 3)
        for g in range(3):
            wi = wi.at[:in_dim, g * G:g * G + H].set(w_ih[g * H:(g + 1) * H, :].T)
            wh = wh.at[:H, g * G:g * G + H].set(w_hh[g * H:(g + 1) * H, :].T)
        bi = bi.at[0, 0 * G:0 * G + H].set(b_i3[0] + b_h3[0])   # r: b_ir + b_hr
        bi = bi.at[0, 1 * G:1 * G + H].set(b_i3[1] + b_h3[1])   # z: b_iz + b_hz
        bi = bi.at[0, 2 * G:2 * G + H].set(b_i3[2])             # n: b_in
        bhn = bhn.at[0, :H].set(b_h3[2])                        # n: b_hn (inside r*(.))
        packed_layers.append((wi, wh, bi, bhn))

    # fc_w: (C, T*H), flat index t*H + j  ->  fcw[t, j, c] so logits = sum_t h_t @ fcw[t]
    fcw = jnp.zeros((seq_len, G, Cp), jnp.float32)
    fcw = fcw.at[:, :H, :C].set(jnp.transpose(fc_w.reshape(C, seq_len, H), (1, 2, 0)))
    fcb = jnp.zeros((1, Cp), jnp.float32).at[0, :C].set(fc_b)
    return packed_layers, fcw, fcb


# ---------------------------------------------------------------------------
# Forward: single pallas_call, grid over 8-row batch tiles ("parallel" for v7x).
# ---------------------------------------------------------------------------
@jax.jit
def _rnn_gru_forward_padded(x, packed_layers, fcw, fcb):
    B, T, I = x.shape
    num_layers = len(packed_layers)
    Cp = fcb.shape[-1]
    BT = BATCH_TILE
    Bp = ((B + BT - 1) // BT) * BT

    # Time-major + batch padded to a full sublane tile.
    x_tm = jnp.transpose(x, (1, 0, 2))
    x_tm = jnp.pad(x_tm, ((0, 0), (0, Bp - B), (0, 0)))

    flat_inputs = [x_tm]
    in_specs = [pl.BlockSpec((T, BT, I), lambda b: (0, b, 0))]
    for (wi, wh, bi, bhn) in packed_layers:
        for w in (wi, wh, bi, bhn):
            flat_inputs.append(w)
            in_specs.append(pl.BlockSpec(w.shape, lambda b: (0, 0)))
    flat_inputs += [fcw, fcb]
    in_specs += [pl.BlockSpec(fcw.shape, lambda b: (0, 0, 0)),
                 pl.BlockSpec(fcb.shape, lambda b: (0, 0))]

    kernel = make_fused_kernel(num_layers, T)
    return pl.pallas_call(
        kernel,
        out_shape=jax.ShapeDtypeStruct((Bp, Cp), x.dtype),
        grid=(Bp // BT,),
        in_specs=in_specs,
        out_specs=pl.BlockSpec((BT, Cp), lambda b: (b, 0)),
        compiler_params=pltpu.CompilerParams(
            dimension_semantics=("parallel",),
            vmem_limit_bytes=32 * 1024 * 1024,
        ),
    )(*flat_inputs)


def rnn_gru_forward(x, packed_layers, fcw, fcb, num_classes):
    out = _rnn_gru_forward_padded(x, packed_layers, fcw, fcb)
    return out[:x.shape[0], :num_classes]


# ---------------------------------------------------------------------------
# Pure-JAX reference (mirrors torch.nn.GRU + Linear) for correctness check.
# ---------------------------------------------------------------------------
def rnn_gru_reference(x, gru_params, fc_w, fc_b):
    B, T, _ = x.shape
    h_seq = x
    for (w_ih, w_hh, b_ih, b_hh) in gru_params:
        H = w_hh.shape[1]
        w_ir, w_iz, w_in = jnp.split(w_ih, 3, axis=0)
        w_hr, w_hz, w_hn = jnp.split(w_hh, 3, axis=0)
        b_ir, b_iz, b_in = jnp.split(b_ih, 3)
        b_hr, b_hz, b_hn = jnp.split(b_hh, 3)
        h = jnp.zeros((B, H), x.dtype)
        outs = []
        for t in range(T):
            x_t = h_seq[:, t]
            r = jax.nn.sigmoid(x_t @ w_ir.T + b_ir + h @ w_hr.T + b_hr)
            z = jax.nn.sigmoid(x_t @ w_iz.T + b_iz + h @ w_hz.T + b_hz)
            n = jnp.tanh(x_t @ w_in.T + b_in + r * (h @ w_hn.T + b_hn))
            h = (1.0 - z) * n + z * h
            outs.append(h)
        h_seq = jnp.stack(outs, axis=1)
    return h_seq.reshape(B, -1) @ fc_w.T + fc_b


# ---------------------------------------------------------------------------
# Deterministic parameter init (PyTorch-style uniform(-1/sqrt(H), 1/sqrt(H))).
# ---------------------------------------------------------------------------
def init_params(key, input_size, hidden_size, num_layers, num_classes, seq_len):
    def uniform(k, shape, bound):
        return jax.random.uniform(k, shape, jnp.float32, -bound, bound)

    gru_params = []
    bound = 1.0 / jnp.sqrt(hidden_size)
    for layer in range(num_layers):
        in_size = input_size if layer == 0 else hidden_size
        key, k1, k2, k3, k4 = jax.random.split(key, 5)
        gru_params.append((
            uniform(k1, (3 * hidden_size, in_size), bound),      # weight_ih_l{k}
            uniform(k2, (3 * hidden_size, hidden_size), bound),  # weight_hh_l{k}
            uniform(k3, (3 * hidden_size,), bound),              # bias_ih_l{k}
            uniform(k4, (3 * hidden_size,), bound),              # bias_hh_l{k}
        ))
    fc_in = hidden_size * seq_len
    fc_bound = 1.0 / jnp.sqrt(fc_in)
    key, k1, k2 = jax.random.split(key, 3)
    fc_w = uniform(k1, (num_classes, fc_in), fc_bound)
    fc_b = uniform(k2, (num_classes,), fc_bound)
    return gru_params, fc_w, fc_b


if __name__ == "__main__":
    batch, seq_len, input_size = 2, 8, 16
    hidden_size, num_layers, num_classes = 32, 2, 10

    key = jax.random.PRNGKey(0)
    key, kx, kp = jax.random.split(key, 3)
    x = jax.random.normal(kx, (batch, seq_len, input_size), jnp.float32)
    gru_params, fc_w, fc_b = init_params(
        kp, input_size, hidden_size, num_layers, num_classes, seq_len)

    # One-time packing (hoisted off the inference path).
    packed_layers, fcw, fcb = pack_params(gru_params, fc_w, fc_b, seq_len)

    out = rnn_gru_forward(x, packed_layers, fcw, fcb, num_classes)
    out = jax.block_until_ready(out)

    ref = rnn_gru_reference(x, gru_params, fc_w, fc_b)
    assert out.shape == (batch, num_classes)
    assert jnp.allclose(out, ref, atol=5e-4, rtol=5e-4), (out, ref)

    print("KERNEL_OK")
</pallas_src>

<mosaic_0001>
module attributes {stable_mosaic.version = 11 : i64} {
  func.func @kernel(%arg0: i32, %arg1: memref<8x8x16xf32, #tpu.memory_space<vmem>>, %arg2: memref<16x384xf32, #tpu.memory_space<vmem>>, %arg3: memref<128x384xf32, #tpu.memory_space<vmem>>, %arg4: memref<1x384xf32, #tpu.memory_space<vmem>>, %arg5: memref<1x128xf32, #tpu.memory_space<vmem>>, %arg6: memref<128x384xf32, #tpu.memory_space<vmem>>, %arg7: memref<128x384xf32, #tpu.memory_space<vmem>>, %arg8: memref<1x384xf32, #tpu.memory_space<vmem>>, %arg9: memref<1x128xf32, #tpu.memory_space<vmem>>, %arg10: memref<8x128x128xf32, #tpu.memory_space<vmem>>, %arg11: memref<1x128xf32, #tpu.memory_space<vmem>>, %arg12: memref<8x128xf32, #tpu.memory_space<vmem>>) attributes {dimension_semantics = [#tpu.dimension_semantics<parallel>], iteration_bounds = array<i64: 1>, scalar_prefetch = 0 : i64, scratch_operands = 0 : i64, tpu.core_type = #tpu.core_type<tc>, window_params = [{transform_indices = @transform_0, window_bounds = array<i64: 8, 8, 16>}, {pipeline_mode = #tpu.pipeline_mode<synchronous>, transform_indices = @transform_1, window_bounds = array<i64: 16, 384>}, {pipeline_mode = #tpu.pipeline_mode<synchronous>, transform_indices = @transform_2, window_bounds = array<i64: 128, 384>}, {pipeline_mode = #tpu.pipeline_mode<synchronous>, transform_indices = @transform_3, window_bounds = array<i64: 1, 384>}, {pipeline_mode = #tpu.pipeline_mode<synchronous>, transform_indices = @transform_4, window_bounds = array<i64: 1, 128>}, {pipeline_mode = #tpu.pipeline_mode<synchronous>, transform_indices = @transform_5, window_bounds = array<i64: 128, 384>}, {pipeline_mode = #tpu.pipeline_mode<synchronous>, transform_indices = @transform_6, window_bounds = array<i64: 128, 384>}, {pipeline_mode = #tpu.pipeline_mode<synchronous>, transform_indices = @transform_7, window_bounds = array<i64: 1, 384>}, {pipeline_mode = #tpu.pipeline_mode<synchronous>, transform_indices = @transform_8, window_bounds = array<i64: 1, 128>}, {pipeline_mode = #tpu.pipeline_mode<synchronous>, transform_indices = @transform_9, window_bounds = array<i64: 8, 128, 128>}, {pipeline_mode = #tpu.pipeline_mode<synchronous>, transform_indices = @transform_10, window_bounds = array<i64: 1, 128>}, {transform_indices = @transform_11, window_bounds = array<i64: 8, 128>}]} {
    %cst = arith.constant 0.000000e+00 : f32
    %0 = vector.broadcast %cst : f32 to vector<8x128xf32>
    %cst_0 = arith.constant 0.000000e+00 : f32
    %1 = vector.broadcast %cst_0 : f32 to vector<8x128xf32>
    %cst_1 = arith.constant 0.000000e+00 : f32
    %2 = vector.broadcast %cst_1 : f32 to vector<8x128xf32>
    %c0 = arith.constant 0 : index
    %c0_2 = arith.constant 0 : index
    %c0_3 = arith.constant 0 : index
    %3 = vector.load %arg1[%c0, %c0_2, %c0_3] : memref<8x8x16xf32, #tpu.memory_space<vmem>>, vector<1x8x16xf32>
    %4 = vector.shape_cast %3 : vector<1x8x16xf32> to vector<8x16xf32>
    %c0_4 = arith.constant 0 : index
    %c0_5 = arith.constant 0 : index
    %5 = vector.load %arg2[%c0_4, %c0_5] : memref<16x384xf32, #tpu.memory_space<vmem>>, vector<16x384xf32>
    %cst_6 = arith.constant dense<0.000000e+00> : vector<8x384xf32>
    %6 = tpu.matmul %4, %5, %cst_6 {dimension_numbers = #tpu.dot_dimension_numbers<[1], [0], [0], [1], [0, 0, 1, 1], [], []>} : vector<8x16xf32>, vector<16x384xf32>, vector<8x384xf32> -> vector<8x384xf32>
    %c0_7 = arith.constant 0 : index
    %c0_8 = arith.constant 0 : index
    %7 = vector.load %arg4[%c0_7, %c0_8] : memref<1x384xf32, #tpu.memory_space<vmem>>, vector<1x384xf32>
    %8 = vector.broadcast %7 : vector<1x384xf32> to vector<8x384xf32>
    %9 = arith.addf %6, %8 : vector<8x384xf32>
    %c0_9 = arith.constant 0 : index
    %c0_10 = arith.constant 0 : index
    %10 = vector.load %arg3[%c0_9, %c0_10] : memref<128x384xf32, #tpu.memory_space<vmem>>, vector<128x384xf32>
    %cst_11 = arith.constant dense<0.000000e+00> : vector<8x384xf32>
    %11 = tpu.matmul %0, %10, %cst_11 {dimension_numbers = #tpu.dot_dimension_numbers<[1], [0], [0], [1], [0, 0, 1, 1], [], []>} : vector<8x128xf32>, vector<128x384xf32>, vector<8x384xf32> -> vector<8x384xf32>
    %12 = vector.extract_strided_slice %9 {offsets = [0, 0], sizes = [8, 256], strides = [1, 1]} : vector<8x384xf32> to vector<8x256xf32>
    %13 = vector.extract_strided_slice %11 {offsets = [0, 0], sizes = [8, 256], strides = [1, 1]} : vector<8x384xf32> to vector<8x256xf32>
    %14 = arith.addf %12, %13 : vector<8x256xf32>
    %15 = arith.negf %14 : vector<8x256xf32>
    %16 = math.exp %15 : vector<8x256xf32>
    %cst_12 = arith.constant 1.000000e+00 : f32
    %17 = vector.broadcast %cst_12 : f32 to vector<8x256xf32>
    %18 = arith.addf %17, %16 : vector<8x256xf32>
    %19 = arith.divf %17, %18 : vector<8x256xf32>
    %20 = vector.extract_strided_slice %19 {offsets = [0, 0], sizes = [8, 128], strides = [1, 1]} : vector<8x256xf32> to vector<8x128xf32>
    %21 = vector.extract_strided_slice %19 {offsets = [0, 128], sizes = [8, 128], strides = [1, 1]} : vector<8x256xf32> to vector<8x128xf32>
    %22 = vector.extract_strided_slice %9 {offsets = [0, 256], sizes = [8, 128], strides = [1, 1]} : vector<8x384xf32> to vector<8x128xf32>
    %23 = vector.extract_strided_slice %11 {offsets = [0, 256], sizes = [8, 128], strides = [1, 1]} : vector<8x384xf32> to vector<8x128xf32>
    %c0_13 = arith.constant 0 : index
    %c0_14 = arith.constant 0 : index
    %24 = vector.load %arg5[%c0_13, %c0_14] : memref<1x128xf32, #tpu.memory_space<vmem>>, vector<1x128xf32>
    %25 = vector.broadcast %24 : vector<1x128xf32> to vector<8x128xf32>
    %26 = arith.addf %23, %25 : vector<8x128xf32>
    %27 = arith.mulf %20, %26 : vector<8x128xf32>
    %28 = arith.addf %22, %27 : vector<8x128xf32>
    %29 = math.tanh %28 : vector<8x128xf32>
    %30 = arith.subf %0, %29 : vector<8x128xf32>
    %31 = arith.mulf %21, %30 : vector<8x128xf32>
    %32 = arith.addf %29, %31 : vector<8x128xf32>
    %c1 = arith.constant 1 : index
    %c0_15 = arith.constant 0 : index
    %c0_16 = arith.constant 0 : index
    %33 = vector.load %arg1[%c1, %c0_15, %c0_16] : memref<8x8x16xf32, #tpu.memory_space<vmem>>, vector<1x8x16xf32>
    %34 = vector.shape_cast %33 : vector<1x8x16xf32> to vector<8x16xf32>
    %c0_17 = arith.constant 0 : index
    %c0_18 = arith.constant 0 : index
    %35 = vector.load %arg2[%c0_17, %c0_18] : memref<16x384xf32, #tpu.memory_space<vmem>>, vector<16x384xf32>
    %cst_19 = arith.constant dense<0.000000e+00> : vector<8x384xf32>
    %36 = tpu.matmul %34, %35, %cst_19 {dimension_numbers = #tpu.dot_dimension_numbers<[1], [0], [0], [1], [0, 0, 1, 1], [], []>} : vector<8x16xf32>, vector<16x384xf32>, vector<8x384xf32> -> vector<8x384xf32>
    %c0_20 = arith.constant 0 : index
    %c0_21 = arith.constant 0 : index
    %37 = vector.load %arg4[%c0_20, %c0_21] : memref<1x384xf32, #tpu.memory_space<vmem>>, vector<1x384xf32>
    %38 = vector.broadcast %37 : vector<1x384xf32> to vector<8x384xf32>
    %39 = arith.addf %36, %38 : vector<8x384xf32>
    %c0_22 = arith.constant 0 : index
    %c0_23 = arith.constant 0 : index
    %40 = vector.load %arg3[%c0_22, %c0_23] : memref<128x384xf32, #tpu.memory_space<vmem>>, vector<128x384xf32>
    %cst_24 = arith.constant dense<0.000000e+00> : vector<8x384xf32>
    %41 = tpu.matmul %32, %40, %cst_24 {dimension_numbers = #tpu.dot_dimension_numbers<[1], [0], [0], [1], [0, 0, 1, 1], [], []>} : vector<8x128xf32>, vector<128x384xf32>, vector<8x384xf32> -> vector<8x384xf32>
    %42 = vector.extract_strided_slice %39 {offsets = [0, 0], sizes = [8, 256], strides = [1, 1]} : vector<8x384xf32> to vector<8x256xf32>
    %43 = vector.extract_strided_slice %41 {offsets = [0, 0], sizes = [8, 256], strides = [1, 1]} : vector<8x384xf32> to vector<8x256xf32>
    %44 = arith.addf %42, %43 : vector<8x256xf32>
    %45 = arith.negf %44 : vector<8x256xf32>
    %46 = math.exp %45 : vector<8x256xf32>
    %cst_25 = arith.constant 1.000000e+00 : f32
    %47 = vector.broadcast %cst_25 : f32 to vector<8x256xf32>
    %48 = arith.addf %47, %46 : vector<8x256xf32>
    %49 = arith.divf %47, %48 : vector<8x256xf32>
    %50 = vector.extract_strided_slice %49 {offsets = [0, 0], sizes = [8, 128], strides = [1, 1]} : vector<8x256xf32> to vector<8x128xf32>
    %51 = vector.extract_strided_slice %49 {offsets = [0, 128], sizes = [8, 128], strides = [1, 1]} : vector<8x256xf32> to vector<8x128xf32>
    %52 = vector.extract_strided_slice %39 {offsets = [0, 256], sizes = [8, 128], strides = [1, 1]} : vector<8x384xf32> to vector<8x128xf32>
    %53 = vector.extract_strided_slice %41 {offsets = [0, 256], sizes = [8, 128], strides = [1, 1]} : vector<8x384xf32> to vector<8x128xf32>
    %c0_26 = arith.constant 0 : index
    %c0_27 = arith.constant 0 : index
    %54 = vector.load %arg5[%c0_26, %c0_27] : memref<1x128xf32, #tpu.memory_space<vmem>>, vector<1x128xf32>
    %55 = vector.broadcast %54 : vector<1x128xf32> to vector<8x128xf32>
    %56 = arith.addf %53, %55 : vector<8x128xf32>
    %57 = arith.mulf %50, %56 : vector<8x128xf32>
    %58 = arith.addf %52, %57 : vector<8x128xf32>
    %59 = math.tanh %58 : vector<8x128xf32>
    %60 = arith.subf %32, %59 : vector<8x128xf32>
    %61 = arith.mulf %51, %60 : vector<8x128xf32>
    %62 = arith.addf %59, %61 : vector<8x128xf32>
    %c0_28 = arith.constant 0 : index
    %c0_29 = arith.constant 0 : index
    %63 = vector.load %arg6[%c0_28, %c0_29] : memref<128x384xf32, #tpu.memory_space<vmem>>, vector<128x384xf32>
    %cst_30 = arith.constant dense<0.000000e+00> : vector<8x384xf32>
    %64 = tpu.matmul %32, %63, %cst_30 {dimension_numbers = #tpu.dot_dimension_numbers<[1], [0], [0], [1], [0, 0, 1, 1], [], []>} : vector<8x128xf32>, vector<128x384xf32>, vector<8x384xf32> -> vector<8x384xf32>
    %c0_31 = arith.constant 0 : index
    %c0_32 = arith.constant 0 : index
    %65 = vector.load %arg8[%c0_31, %c0_32] : memref<1x384xf32, #tpu.memory_space<vmem>>, vector<1x384xf32>
    %66 = vector.broadcast %65 : vector<1x384xf32> to vector<8x384xf32>
    %67 = arith.addf %64, %66 : vector<8x384xf32>
    %c0_33 = arith.constant 0 : index
    %c0_34 = arith.constant 0 : index
    %68 = vector.load %arg7[%c0_33, %c0_34] : memref<128x384xf32, #tpu.memory_space<vmem>>, vector<128x384xf32>
    %cst_35 = arith.constant dense<0.000000e+00> : vector<8x384xf32>
    %69 = tpu.matmul %1, %68, %cst_35 {dimension_numbers = #tpu.dot_dimension_numbers<[1], [0], [0], [1], [0, 0, 1, 1], [], []>} : vector<8x128xf32>, vector<128x384xf32>, vector<8x384xf32> -> vector<8x384xf32>
    %70 = vector.extract_strided_slice %67 {offsets = [0, 0], sizes = [8, 256], strides = [1, 1]} : vector<8x384xf32> to vector<8x256xf32>
    %71 = vector.extract_strided_slice %69 {offsets = [0, 0], sizes = [8, 256], strides = [1, 1]} : vector<8x384xf32> to vector<8x256xf32>
    %72 = arith.addf %70, %71 : vector<8x256xf32>
    %73 = arith.negf %72 : vector<8x256xf32>
    %74 = math.exp %73 : vector<8x256xf32>
    %cst_36 = arith.constant 1.000000e+00 : f32
    %75 = vector.broadcast %cst_36 : f32 to vector<8x256xf32>
    %76 = arith.addf %75, %74 : vector<8x256xf32>
    %77 = arith.divf %75, %76 : vector<8x256xf32>
    %78 = vector.extract_strided_slice %77 {offsets = [0, 0], sizes = [8, 128], strides = [1, 1]} : vector<8x256xf32> to vector<8x128xf32>
    %79 = vector.extract_strided_slice %77 {offsets = [0, 128], sizes = [8, 128], strides = [1, 1]} : vector<8x256xf32> to vector<8x128xf32>
    %80 = vector.extract_strided_slice %67 {offsets = [0, 256], sizes = [8, 128], strides = [1, 1]} : vector<8x384xf32> to vector<8x128xf32>
    %81 = vector.extract_strided_slice %69 {offsets = [0, 256], sizes = [8, 128], strides = [1, 1]} : vector<8x384xf32> to vector<8x128xf32>
    %c0_37 = arith.constant 0 : index
    %c0_38 = arith.constant 0 : index
    %82 = vector.load %arg9[%c0_37, %c0_38] : memref<1x128xf32, #tpu.memory_space<vmem>>, vector<1x128xf32>
    %83 = vector.broadcast %82 : vector<1x128xf32> to vector<8x128xf32>
    %84 = arith.addf %81, %83 : vector<8x128xf32>
    %85 = arith.mulf %78, %84 : vector<8x128xf32>
    %86 = arith.addf %80, %85 : vector<8x128xf32>
    %87 = math.tanh %86 : vector<8x128xf32>
    %88 = arith.subf %1, %87 : vector<8x128xf32>
    %89 = arith.mulf %79, %88 : vector<8x128xf32>
    %90 = arith.addf %87, %89 : vector<8x128xf32>
    %c0_39 = arith.constant 0 : index
    %c0_40 = arith.constant 0 : index
    %c0_41 = arith.constant 0 : index
    %91 = vector.load %arg10[%c0_39, %c0_40, %c0_41] : memref<8x128x128xf32, #tpu.memory_space<vmem>>, vector<1x128x128xf32>
    %92 = vector.shape_cast %91 : vector<1x128x128xf32> to vector<128x128xf32>
    %cst_42 = arith.constant dense<0.000000e+00> : vector<8x128xf32>
    %93 = tpu.matmul %90, %92, %cst_42 {dimension_numbers = #tpu.dot_dimension_numbers<[1], [0], [0], [1], [0, 0, 1, 1], [], []>} : vector<8x128xf32>, vector<128x128xf32>, vector<8x128xf32> -> vector<8x128xf32>
    %94 = arith.addf %2, %93 : vector<8x128xf32>
    %c2 = arith.constant 2 : index
    %c0_43 = arith.constant 0 : index
    %c0_44 = arith.constant 0 : index
    %95 = vector.load %arg1[%c2, %c0_43, %c0_44] : memref<8x8x16xf32, #tpu.memory_space<vmem>>, vector<1x8x16xf32>
    %96 = vector.shape_cast %95 : vector<1x8x16xf32> to vector<8x16xf32>
    %c0_45 = arith.constant 0 : index
    %c0_46 = arith.constant 0 : index
    %97 = vector.load %arg2[%c0_45, %c0_46] : memref<16x384xf32, #tpu.memory_space<vmem>>, vector<16x384xf32>
    %cst_47 = arith.constant dense<0.000000e+00> : vector<8x384xf32>
    %98 = tpu.matmul %96, %97, %cst_47 {dimension_numbers = #tpu.dot_dimension_numbers<[1], [0], [0], [1], [0, 0, 1, 1], [], []>} : vector<8x16xf32>, vector<16x384xf32>, vector<8x384xf32> -> vector<8x384xf32>
    %c0_48 = arith.constant 0 : index
    %c0_49 = arith.constant 0 : index
    %99 = vector.load %arg4[%c0_48, %c0_49] : memref<1x384xf32, #tpu.memory_space<vmem>>, vector<1x384xf32>
    %100 = vector.broadcast %99 : vector<1x384xf32> to vector<8x384xf32>
    %101 = arith.addf %98, %100 : vector<8x384xf32>
    %c0_50 = arith.constant 0 : index
    %c0_51 = arith.constant 0 : index
    %102 = vector.load %arg3[%c0_50, %c0_51] : memref<128x384xf32, #tpu.memory_space<vmem>>, vector<128x384xf32>
    %cst_52 = arith.constant dense<0.000000e+00> : vector<8x384xf32>
    %103 = tpu.matmul %62, %102, %cst_52 {dimension_numbers = #tpu.dot_dimension_numbers<[1], [0], [0], [1], [0, 0, 1, 1], [], []>} : vector<8x128xf32>, vector<128x384xf32>, vector<8x384xf32> -> vector<8x384xf32>
    %104 = vector.extract_strided_slice %101 {offsets = [0, 0], sizes = [8, 256], strides = [1, 1]} : vector<8x384xf32> to vector<8x256xf32>
    %105 = vector.extract_strided_slice %103 {offsets = [0, 0], sizes = [8, 256], strides = [1, 1]} : vector<8x384xf32> to vector<8x256xf32>
    %106 = arith.addf %104, %105 : vector<8x256xf32>
    %107 = arith.negf %106 : vector<8x256xf32>
    %108 = math.exp %107 : vector<8x256xf32>
    %cst_53 = arith.constant 1.000000e+00 : f32
    %109 = vector.broadcast %cst_53 : f32 to vector<8x256xf32>
    %110 = arith.addf %109, %108 : vector<8x256xf32>
    %111 = arith.divf %109, %110 : vector<8x256xf32>
    %112 = vector.extract_strided_slice %111 {offsets = [0, 0], sizes = [8, 128], strides = [1, 1]} : vector<8x256xf32> to vector<8x128xf32>
    %113 = vector.extract_strided_slice %111 {offsets = [0, 128], sizes = [8, 128], strides = [1, 1]} : vector<8x256xf32> to vector<8x128xf32>
    %114 = vector.extract_strided_slice %101 {offsets = [0, 256], sizes = [8, 128], strides = [1, 1]} : vector<8x384xf32> to vector<8x128xf32>
    %115 = vector.extract_strided_slice %103 {offsets = [0, 256], sizes = [8, 128], strides = [1, 1]} : vector<8x384xf32> to vector<8x128xf32>
    %c0_54 = arith.constant 0 : index
    %c0_55 = arith.constant 0 : index
    %116 = vector.load %arg5[%c0_54, %c0_55] : memref<1x128xf32, #tpu.memory_space<vmem>>, vector<1x128xf32>
    %117 = vector.broadcast %116 : vector<1x128xf32> to vector<8x128xf32>
    %118 = arith.addf %115, %117 : vector<8x128xf32>
    %119 = arith.mulf %112, %118 : vector<8x128xf32>
    %120 = arith.addf %114, %119 : vector<8x128xf32>
    %121 = math.tanh %120 : vector<8x128xf32>
    %122 = arith.subf %62, %121 : vector<8x128xf32>
    %123 = arith.mulf %113, %122 : vector<8x128xf32>
    %124 = arith.addf %121, %123 : vector<8x128xf32>
    %c0_56 = arith.constant 0 : index
    %c0_57 = arith.constant 0 : index
    %125 = vector.load %arg6[%c0_56, %c0_57] : memref<128x384xf32, #tpu.memory_space<vmem>>, vector<128x384xf32>
    %cst_58 = arith.constant dense<0.000000e+00> : vector<8x384xf32>
    %126 = tpu.matmul %62, %125, %cst_58 {dimension_numbers = #tpu.dot_dimension_numbers<[1], [0], [0], [1], [0, 0, 1, 1], [], []>} : vector<8x128xf32>, vector<128x384xf32>, vector<8x384xf32> -> vector<8x384xf32>
    %c0_59 = arith.constant 0 : index
    %c0_60 = arith.constant 0 : index
    %127 = vector.load %arg8[%c0_59, %c0_60] : memref<1x384xf32, #tpu.memory_space<vmem>>, vector<1x384xf32>
    %128 = vector.broadcast %127 : vector<1x384xf32> to vector<8x384xf32>
    %129 = arith.addf %126, %128 : vector<8x384xf32>
    %c0_61 = arith.constant 0 : index
    %c0_62 = arith.constant 0 : index
    %130 = vector.load %arg7[%c0_61, %c0_62] : memref<128x384xf32, #tpu.memory_space<vmem>>, vector<128x384xf32>
    %cst_63 = arith.constant dense<0.000000e+00> : vector<8x384xf32>
    %131 = tpu.matmul %90, %130, %cst_63 {dimension_numbers = #tpu.dot_dimension_numbers<[1], [0], [0], [1], [0, 0, 1, 1], [], []>} : vector<8x128xf32>, vector<128x384xf32>, vector<8x384xf32> -> vector<8x384xf32>
    %132 = vector.extract_strided_slice %129 {offsets = [0, 0], sizes = [8, 256], strides = [1, 1]} : vector<8x384xf32> to vector<8x256xf32>
    %133 = vector.extract_strided_slice %131 {offsets = [0, 0], sizes = [8, 256], strides = [1, 1]} : vector<8x384xf32> to vector<8x256xf32>
    %134 = arith.addf %132, %133 : vector<8x256xf32>
    %135 = arith.negf %134 : vector<8x256xf32>
    %136 = math.exp %135 : vector<8x256xf32>
    %cst_64 = arith.constant 1.000000e+00 : f32
    %137 = vector.broadcast %cst_64 : f32 to vector<8x256xf32>
    %138 = arith.addf %137, %136 : vector<8x256xf32>
    %139 = arith.divf %137, %138 : vector<8x256xf32>
    %140 = vector.extract_strided_slice %139 {offsets = [0, 0], sizes = [8, 128], strides = [1, 1]} : vector<8x256xf32> to vector<8x128xf32>
    %141 = vector.extract_strided_slice %139 {offsets = [0, 128], sizes = [8, 128], strides = [1, 1]} : vector<8x256xf32> to vector<8x128xf32>
    %142 = vector.extract_strided_slice %129 {offsets = [0, 256], sizes = [8, 128], strides = [1, 1]} : vector<8x384xf32> to vector<8x128xf32>
    %143 = vector.extract_strided_slice %131 {offsets = [0, 256], sizes = [8, 128], strides = [1, 1]} : vector<8x384xf32> to vector<8x128xf32>
    %c0_65 = arith.constant 0 : index
    %c0_66 = arith.constant 0 : index
    %144 = vector.load %arg9[%c0_65, %c0_66] : memref<1x128xf32, #tpu.memory_space<vmem>>, vector<1x128xf32>
    %145 = vector.broadcast %144 : vector<1x128xf32> to vector<8x128xf32>
    %146 = arith.addf %143, %145 : vector<8x128xf32>
    %147 = arith.mulf %140, %146 : vector<8x128xf32>
    %148 = arith.addf %142, %147 : vector<8x128xf32>
    %149 = math.tanh %148 : vector<8x128xf32>
    %150 = arith.subf %90, %149 : vector<8x128xf32>
    %151 = arith.mulf %141, %150 : vector<8x128xf32>
    %152 = arith.addf %149, %151 : vector<8x128xf32>
    %c1_67 = arith.constant 1 : index
    %c0_68 = arith.constant 0 : index
    %c0_69 = arith.constant 0 : index
    %153 = vector.load %arg10[%c1_67, %c0_68, %c0_69] : memref<8x128x128xf32, #tpu.memory_space<vmem>>, vector<1x128x128xf32>
    %154 = vector.shape_cast %153 : vector<1x128x128xf32> to vector<128x128xf32>
    %cst_70 = arith.constant dense<0.000000e+00> : vector<8x128xf32>
    %155 = tpu.matmul %152, %154, %cst_70 {dimension_numbers = #tpu.dot_dimension_numbers<[1], [0], [0], [1], [0, 0, 1, 1], [], []>} : vector<8x128xf32>, vector<128x128xf32>, vector<8x128xf32> -> vector<8x128xf32>
    %156 = arith.addf %94, %155 : vector<8x128xf32>
    %c3 = arith.constant 3 : index
    %c0_71 = arith.constant 0 : index
    %c0_72 = arith.constant 0 : index
    %157 = vector.load %arg1[%c3, %c0_71, %c0_72] : memref<8x8x16xf32, #tpu.memory_space<vmem>>, vector<1x8x16xf32>
    %158 = vector.shape_cast %157 : vector<1x8x16xf32> to vector<8x16xf32>
    %c0_73 = arith.constant 0 : index
    %c0_74 = arith.constant 0 : index
    %159 = vector.load %arg2[%c0_73, %c0_74] : memref<16x384xf32, #tpu.memory_space<vmem>>, vector<16x384xf32>
    %cst_75 = arith.constant dense<0.000000e+00> : vector<8x384xf32>
    %160 = tpu.matmul %158, %159, %cst_75 {dimension_numbers = #tpu.dot_dimension_numbers<[1], [0], [0], [1], [0, 0, 1, 1], [], []>} : vector<8x16xf32>, vector<16x384xf32>, vector<8x384xf32> -> vector<8x384xf32>
    %c0_76 = arith.constant 0 : index
    %c0_77 = arith.constant 0 : index
    %161 = vector.load %arg4[%c0_76, %c0_77] : memref<1x384xf32, #tpu.memory_space<vmem>>, vector<1x384xf32>
    %162 = vector.broadcast %161 : vector<1x384xf32> to vector<8x384xf32>
    %163 = arith.addf %160, %162 : vector<8x384xf32>
    %c0_78 = arith.constant 0 : index
    %c0_79 = arith.constant 0 : index
    %164 = vector.load %arg3[%c0_78, %c0_79] : memref<128x384xf32, #tpu.memory_space<vmem>>, vector<128x384xf32>
    %cst_80 = arith.constant dense<0.000000e+00> : vector<8x384xf32>
    %165 = tpu.matmul %124, %164, %cst_80 {dimension_numbers = #tpu.dot_dimension_numbers<[1], [0], [0], [1], [0, 0, 1, 1], [], []>} : vector<8x128xf32>, vector<128x384xf32>, vector<8x384xf32> -> vector<8x384xf32>
    %166 = vector.extract_strided_slice %163 {offsets = [0, 0], sizes = [8, 256], strides = [1, 1]} : vector<8x384xf32> to vector<8x256xf32>
    %167 = vector.extract_strided_slice %165 {offsets = [0, 0], sizes = [8, 256], strides = [1, 1]} : vector<8x384xf32> to vector<8x256xf32>
    %168 = arith.addf %166, %167 : vector<8x256xf32>
    %169 = arith.negf %168 : vector<8x256xf32>
    %170 = math.exp %169 : vector<8x256xf32>
    %cst_81 = arith.constant 1.000000e+00 : f32
    %171 = vector.broadcast %cst_81 : f32 to vector<8x256xf32>
    %172 = arith.addf %171, %170 : vector<8x256xf32>
    %173 = arith.divf %171, %172 : vector<8x256xf32>
    %174 = vector.extract_strided_slice %173 {offsets = [0, 0], sizes = [8, 128], strides = [1, 1]} : vector<8x256xf32> to vector<8x128xf32>
    %175 = vector.extract_strided_slice %173 {offsets = [0, 128], sizes = [8, 128], strides = [1, 1]} : vector<8x256xf32> to vector<8x128xf32>
    %176 = vector.extract_strided_slice %163 {offsets = [0, 256], sizes = [8, 128], strides = [1, 1]} : vector<8x384xf32> to vector<8x128xf32>
    %177 = vector.extract_strided_slice %165 {offsets = [0, 256], sizes = [8, 128], strides = [1, 1]} : vector<8x384xf32> to vector<8x128xf32>
    %c0_82 = arith.constant 0 : index
    %c0_83 = arith.constant 0 : index
    %178 = vector.load %arg5[%c0_82, %c0_83] : memref<1x128xf32, #tpu.memory_space<vmem>>, vector<1x128xf32>
    %179 = vector.broadcast %178 : vector<1x128xf32> to vector<8x128xf32>
    %180 = arith.addf %177, %179 : vector<8x128xf32>
    %181 = arith.mulf %174, %180 : vector<8x128xf32>
    %182 = arith.addf %176, %181 : vector<8x128xf32>
    %183 = math.tanh %182 : vector<8x128xf32>
    %184 = arith.subf %124, %183 : vector<8x128xf32>
    %185 = arith.mulf %175, %184 : vector<8x128xf32>
    %186 = arith.addf %183, %185 : vector<8x128xf32>
    %c0_84 = arith.constant 0 : index
    %c0_85 = arith.constant 0 : index
    %187 = vector.load %arg6[%c0_84, %c0_85] : memref<128x384xf32, #tpu.memory_space<vmem>>, vector<128x384xf32>
    %cst_86 = arith.constant dense<0.000000e+00> : vector<8x384xf32>
    %188 = tpu.matmul %124, %187, %cst_86 {dimension_numbers = #tpu.dot_dimension_numbers<[1], [0], [0], [1], [0, 0, 1, 1], [], []>} : vector<8x128xf32>, vector<128x384xf32>, vector<8x384xf32> -> vector<8x384xf32>
    %c0_87 = arith.constant 0 : index
    %c0_88 = arith.constant 0 : index
    %189 = vector.load %arg8[%c0_87, %c0_88] : memref<1x384xf32, #tpu.memory_space<vmem>>, vector<1x384xf32>
    %190 = vector.broadcast %189 : vector<1x384xf32> to vector<8x384xf32>
    %191 = arith.addf %188, %190 : vector<8x384xf32>
    %c0_89 = arith.constant 0 : index
    %c0_90 = arith.constant 0 : index
    %192 = vector.load %arg7[%c0_89, %c0_90] : memref<128x384xf32, #tpu.memory_space<vmem>>, vector<128x384xf32>
    %cst_91 = arith.constant dense<0.000000e+00> : vector<8x384xf32>
    %193 = tpu.matmul %152, %192, %cst_91 {dimension_numbers = #tpu.dot_dimension_numbers<[1], [0], [0], [1], [0, 0, 1, 1], [], []>} : vector<8x128xf32>, vector<128x384xf32>, vector<8x384xf32> -> vector<8x384xf32>
    %194 = vector.extract_strided_slice %191 {offsets = [0, 0], sizes = [8, 256], strides = [1, 1]} : vector<8x384xf32> to vector<8x256xf32>
    %195 = vector.extract_strided_slice %193 {offsets = [0, 0], sizes = [8, 256], strides = [1, 1]} : vector<8x384xf32> to vector<8x256xf32>
    %196 = arith.addf %194, %195 : vector<8x256xf32>
    %197 = arith.negf %196 : vector<8x256xf32>
    %198 = math.exp %197 : vector<8x256xf32>
    %cst_92 = arith.constant 1.000000e+00 : f32
    %199 = vector.broadcast %cst_92 : f32 to vector<8x256xf32>
    %200 = arith.addf %199, %198 : vector<8x256xf32>
    %201 = arith.divf %199, %200 : vector<8x256xf32>
    %202 = vector.extract_strided_slice %201 {offsets = [0, 0], sizes = [8, 128], strides = [1, 1]} : vector<8x256xf32> to vector<8x128xf32>
    %203 = vector.extract_strided_slice %201 {offsets = [0, 128], sizes = [8, 128], strides = [1, 1]} : vector<8x256xf32> to vector<8x128xf32>
    %204 = vector.extract_strided_slice %191 {offsets = [0, 256], sizes = [8, 128], strides = [1, 1]} : vector<8x384xf32> to vector<8x128xf32>
    %205 = vector.extract_strided_slice %193 {offsets = [0, 256], sizes = [8, 128], strides = [1, 1]} : vector<8x384xf32> to vector<8x128xf32>
    %c0_93 = arith.constant 0 : index
    %c0_94 = arith.constant 0 : index
    %206 = vector.load %arg9[%c0_93, %c0_94] : memref<1x128xf32, #tpu.memory_space<vmem>>, vector<1x128xf32>
    %207 = vector.broadcast %206 : vector<1x128xf32> to vector<8x128xf32>
    %208 = arith.addf %205, %207 : vector<8x128xf32>
    %209 = arith.mulf %202, %208 : vector<8x128xf32>
    %210 = arith.addf %204, %209 : vector<8x128xf32>
    %211 = math.tanh %210 : vector<8x128xf32>
    %212 = arith.subf %152, %211 : vector<8x128xf32>
    %213 = arith.mulf %203, %212 : vector<8x128xf32>
    %214 = arith.addf %211, %213 : vector<8x128xf32>
    %c2_95 = arith.constant 2 : index
    %c0_96 = arith.constant 0 : index
    %c0_97 = arith.constant 0 : index
    %215 = vector.load %arg10[%c2_95, %c0_96, %c0_97] : memref<8x128x128xf32, #tpu.memory_space<vmem>>, vector<1x128x128xf32>
    %216 = vector.shape_cast %215 : vector<1x128x128xf32> to vector<128x128xf32>
    %cst_98 = arith.constant dense<0.000000e+00> : vector<8x128xf32>
    %217 = tpu.matmul %214, %216, %cst_98 {dimension_numbers = #tpu.dot_dimension_numbers<[1], [0], [0], [1], [0, 0, 1, 1], [], []>} : vector<8x128xf32>, vector<128x128xf32>, vector<8x128xf32> -> vector<8x128xf32>
    %218 = arith.addf %156, %217 : vector<8x128xf32>
    %c4 = arith.constant 4 : index
    %c0_99 = arith.constant 0 : index
    %c0_100 = arith.constant 0 : index
    %219 = vector.load %arg1[%c4, %c0_99, %c0_100] : memref<8x8x16xf32, #tpu.memory_space<vmem>>, vector<1x8x16xf32>
    %220 = vector.shape_cast %219 : vector<1x8x16xf32> to vector<8x16xf32>
    %c0_101 = arith.constant 0 : index
    %c0_102 = arith.constant 0 : index
    %221 = vector.load %arg2[%c0_101, %c0_102] : memref<16x384xf32, #tpu.memory_space<vmem>>, vector<16x384xf32>
    %cst_103 = arith.constant dense<0.000000e+00> : vector<8x384xf32>
    %222 = tpu.matmul %220, %221, %cst_103 {dimension_numbers = #tpu.dot_dimension_numbers<[1], [0], [0], [1], [0, 0, 1, 1], [], []>} : vector<8x16xf32>, vector<16x384xf32>, vector<8x384xf32> -> vector<8x384xf32>
    %c0_104 = arith.constant 0 : index
    %c0_105 = arith.constant 0 : index
    %223 = vector.load %arg4[%c0_104, %c0_105] : memref<1x384xf32, #tpu.memory_space<vmem>>, vector<1x384xf32>
    %224 = vector.broadcast %223 : vector<1x384xf32> to vector<8x384xf32>
    %225 = arith.addf %222, %224 : vector<8x384xf32>
    %c0_106 = arith.constant 0 : index
    %c0_107 = arith.constant 0 : index
    %226 = vector.load %arg3[%c0_106, %c0_107] : memref<128x384xf32, #tpu.memory_space<vmem>>, vector<128x384xf32>
    %cst_108 = arith.constant dense<0.000000e+00> : vector<8x384xf32>
    %227 = tpu.matmul %186, %226, %cst_108 {dimension_numbers = #tpu.dot_dimension_numbers<[1], [0], [0], [1], [0, 0, 1, 1], [], []>} : vector<8x128xf32>, vector<128x384xf32>, vector<8x384xf32> -> vector<8x384xf32>
    %228 = vector.extract_strided_slice %225 {offsets = [0, 0], sizes = [8, 256], strides = [1, 1]} : vector<8x384xf32> to vector<8x256xf32>
    %229 = vector.extract_strided_slice %227 {offsets = [0, 0], sizes = [8, 256], strides = [1, 1]} : vector<8x384xf32> to vector<8x256xf32>
    %230 = arith.addf %228, %229 : vector<8x256xf32>
    %231 = arith.negf %230 : vector<8x256xf32>
    %232 = math.exp %231 : vector<8x256xf32>
    %cst_109 = arith.constant 1.000000e+00 : f32
    %233 = vector.broadcast %cst_109 : f32 to vector<8x256xf32>
    %234 = arith.addf %233, %232 : vector<8x256xf32>
    %235 = arith.divf %233, %234 : vector<8x256xf32>
    %236 = vector.extract_strided_slice %235 {offsets = [0, 0], sizes = [8, 128], strides = [1, 1]} : vector<8x256xf32> to vector<8x128xf32>
    %237 = vector.extract_strided_slice %235 {offsets = [0, 128], sizes = [8, 128], strides = [1, 1]} : vector<8x256xf32> to vector<8x128xf32>
    %238 = vector.extract_strided_slice %225 {offsets = [0, 256], sizes = [8, 128], strides = [1, 1]} : vector<8x384xf32> to vector<8x128xf32>
    %239 = vector.extract_strided_slice %227 {offsets = [0, 256], sizes = [8, 128], strides = [1, 1]} : vector<8x384xf32> to vector<8x128xf32>
    %c0_110 = arith.constant 0 : index
    %c0_111 = arith.constant 0 : index
    %240 = vector.load %arg5[%c0_110, %c0_111] : memref<1x128xf32, #tpu.memory_space<vmem>>, vector<1x128xf32>
    %241 = vector.broadcast %240 : vector<1x128xf32> to vector<8x128xf32>
    %242 = arith.addf %239, %241 : vector<8x128xf32>
    %243 = arith.mulf %236, %242 : vector<8x128xf32>
    %244 = arith.addf %238, %243 : vector<8x128xf32>
    %245 = math.tanh %244 : vector<8x128xf32>
    %246 = arith.subf %186, %245 : vector<8x128xf32>
    %247 = arith.mulf %237, %246 : vector<8x128xf32>
    %248 = arith.addf %245, %247 : vector<8x128xf32>
    %c0_112 = arith.constant 0 : index
    %c0_113 = arith.constant 0 : index
    %249 = vector.load %arg6[%c0_112, %c0_113] : memref<128x384xf32, #tpu.memory_space<vmem>>, vector<128x384xf32>
    %cst_114 = arith.constant dense<0.000000e+00> : vector<8x384xf32>
    %250 = tpu.matmul %186, %249, %cst_114 {dimension_numbers = #tpu.dot_dimension_numbers<[1], [0], [0], [1], [0, 0, 1, 1], [], []>} : vector<8x128xf32>, vector<128x384xf32>, vector<8x384xf32> -> vector<8x384xf32>
    %c0_115 = arith.constant 0 : index
    %c0_116 = arith.constant 0 : index
    %251 = vector.load %arg8[%c0_115, %c0_116] : memref<1x384xf32, #tpu.memory_space<vmem>>, vector<1x384xf32>
    %252 = vector.broadcast %251 : vector<1x384xf32> to vector<8x384xf32>
    %253 = arith.addf %250, %252 : vector<8x384xf32>
    %c0_117 = arith.constant 0 : index
    %c0_118 = arith.constant 0 : index
    %254 = vector.load %arg7[%c0_117, %c0_118] : memref<128x384xf32, #tpu.memory_space<vmem>>, vector<128x384xf32>
    %cst_119 = arith.constant dense<0.000000e+00> : vector<8x384xf32>
    %255 = tpu.matmul %214, %254, %cst_119 {dimension_numbers = #tpu.dot_dimension_numbers<[1], [0], [0], [1], [0, 0, 1, 1], [], []>} : vector<8x128xf32>, vector<128x384xf32>, vector<8x384xf32> -> vector<8x384xf32>
    %256 = vector.extract_strided_slice %253 {offsets = [0, 0], sizes = [8, 256], strides = [1, 1]} : vector<8x384xf32> to vector<8x256xf32>
    %257 = vector.extract_strided_slice %255 {offsets = [0, 0], sizes = [8, 256], strides = [1, 1]} : vector<8x384xf32> to vector<8x256xf32>
    %258 = arith.addf %256, %257 : vector<8x256xf32>
    %259 = arith.negf %258 : vector<8x256xf32>
    %260 = math.exp %259 : vector<8x256xf32>
    %cst_120 = arith.constant 1.000000e+00 : f32
    %261 = vector.broadcast %cst_120 : f32 to vector<8x256xf32>
    %262 = arith.addf %261, %260 : vector<8x256xf32>
    %263 = arith.divf %261, %262 : vector<8x256xf32>
    %264 = vector.extract_strided_slice %263 {offsets = [0, 0], sizes = [8, 128], strides = [1, 1]} : vector<8x256xf32> to vector<8x128xf32>
    %265 = vector.extract_strided_slice %263 {offsets = [0, 128], sizes = [8, 128], strides = [1, 1]} : vector<8x256xf32> to vector<8x128xf32>
    %266 = vector.extract_strided_slice %253 {offsets = [0, 256], sizes = [8, 128], strides = [1, 1]} : vector<8x384xf32> to vector<8x128xf32>
    %267 = vector.extract_strided_slice %255 {offsets = [0, 256], sizes = [8, 128], strides = [1, 1]} : vector<8x384xf32> to vector<8x128xf32>
    %c0_121 = arith.constant 0 : index
    %c0_122 = arith.constant 0 : index
    %268 = vector.load %arg9[%c0_121, %c0_122] : memref<1x128xf32, #tpu.memory_space<vmem>>, vector<1x128xf32>
    %269 = vector.broadcast %268 : vector<1x128xf32> to vector<8x128xf32>
    %270 = arith.addf %267, %269 : vector<8x128xf32>
    %271 = arith.mulf %264, %270 : vector<8x128xf32>
    %272 = arith.addf %266, %271 : vector<8x128xf32>
    %273 = math.tanh %272 : vector<8x128xf32>
    %274 = arith.subf %214, %273 : vector<8x128xf32>
    %275 = arith.mulf %265, %274 : vector<8x128xf32>
    %276 = arith.addf %273, %275 : vector<8x128xf32>
    %c3_123 = arith.constant 3 : index
    %c0_124 = arith.constant 0 : index
    %c0_125 = arith.constant 0 : index
    %277 = vector.load %arg10[%c3_123, %c0_124, %c0_125] : memref<8x128x128xf32, #tpu.memory_space<vmem>>, vector<1x128x128xf32>
    %278 = vector.shape_cast %277 : vector<1x128x128xf32> to vector<128x128xf32>
    %cst_126 = arith.constant dense<0.000000e+00> : vector<8x128xf32>
    %279 = tpu.matmul %276, %278, %cst_126 {dimension_numbers = #tpu.dot_dimension_numbers<[1], [0], [0], [1], [0, 0, 1, 1], [], []>} : vector<8x128xf32>, vector<128x128xf32>, vector<8x128xf32> -> vector<8x128xf32>
    %280 = arith.addf %218, %279 : vector<8x128xf32>
    %c5 = arith.constant 5 : index
    %c0_127 = arith.constant 0 : index
    %c0_128 = arith.constant 0 : index
    %281 = vector.load %arg1[%c5, %c0_127, %c0_128] : memref<8x8x16xf32, #tpu.memory_space<vmem>>, vector<1x8x16xf32>
    %282 = vector.shape_cast %281 : vector<1x8x16xf32> to vector<8x16xf32>
    %c0_129 = arith.constant 0 : index
    %c0_130 = arith.constant 0 : index
    %283 = vector.load %arg2[%c0_129, %c0_130] : memref<16x384xf32, #tpu.memory_space<vmem>>, vector<16x384xf32>
    %cst_131 = arith.constant dense<0.000000e+00> : vector<8x384xf32>
    %284 = tpu.matmul %282, %283, %cst_131 {dimension_numbers = #tpu.dot_dimension_numbers<[1], [0], [0], [1], [0, 0, 1, 1], [], []>} : vector<8x16xf32>, vector<16x384xf32>, vector<8x384xf32> -> vector<8x384xf32>
    %c0_132 = arith.constant 0 : index
    %c0_133 = arith.constant 0 : index
    %285 = vector.load %arg4[%c0_132, %c0_133] : memref<1x384xf32, #tpu.memory_space<vmem>>, vector<1x384xf32>
    %286 = vector.broadcast %285 : vector<1x384xf32> to vector<8x384xf32>
    %287 = arith.addf %284, %286 : vector<8x384xf32>
    %c0_134 = arith.constant 0 : index
    %c0_135 = arith.constant 0 : index
    %288 = vector.load %arg3[%c0_134, %c0_135] : memref<128x384xf32, #tpu.memory_space<vmem>>, vector<128x384xf32>
    %cst_136 = arith.constant dense<0.000000e+00> : vector<8x384xf32>
    %289 = tpu.matmul %248, %288, %cst_136 {dimension_numbers = #tpu.dot_dimension_numbers<[1], [0], [0], [1], [0, 0, 1, 1], [], []>} : vector<8x128xf32>, vector<128x384xf32>, vector<8x384xf32> -> vector<8x384xf32>
    %290 = vector.extract_strided_slice %287 {offsets = [0, 0], sizes = [8, 256], strides = [1, 1]} : vector<8x384xf32> to vector<8x256xf32>
    %291 = vector.extract_strided_slice %289 {offsets = [0, 0], sizes = [8, 256], strides = [1, 1]} : vector<8x384xf32> to vector<8x256xf32>
    %292 = arith.addf %290, %291 : vector<8x256xf32>
    %293 = arith.negf %292 : vector<8x256xf32>
    %294 = math.exp %293 : vector<8x256xf32>
    %cst_137 = arith.constant 1.000000e+00 : f32
    %295 = vector.broadcast %cst_137 : f32 to vector<8x256xf32>
    %296 = arith.addf %295, %294 : vector<8x256xf32>
    %297 = arith.divf %295, %296 : vector<8x256xf32>
    %298 = vector.extract_strided_slice %297 {offsets = [0, 0], sizes = [8, 128], strides = [1, 1]} : vector<8x256xf32> to vector<8x128xf32>
    %299 = vector.extract_strided_slice %297 {offsets = [0, 128], sizes = [8, 128], strides = [1, 1]} : vector<8x256xf32> to vector<8x128xf32>
    %300 = vector.extract_strided_slice %287 {offsets = [0, 256], sizes = [8, 128], strides = [1, 1]} : vector<8x384xf32> to vector<8x128xf32>
    %301 = vector.extract_strided_slice %289 {offsets = [0, 256], sizes = [8, 128], strides = [1, 1]} : vector<8x384xf32> to vector<8x128xf32>
    %c0_138 = arith.constant 0 : index
    %c0_139 = arith.constant 0 : index
    %302 = vector.load %arg5[%c0_138, %c0_139] : memref<1x128xf32, #tpu.memory_space<vmem>>, vector<1x128xf32>
    %303 = vector.broadcast %302 : vector<1x128xf32> to vector<8x128xf32>
    %304 = arith.addf %301, %303 : vector<8x128xf32>
    %305 = arith.mulf %298, %304 : vector<8x128xf32>
    %306 = arith.addf %300, %305 : vector<8x128xf32>
    %307 = math.tanh %306 : vector<8x128xf32>
    %308 = arith.subf %248, %307 : vector<8x128xf32>
    %309 = arith.mulf %299, %308 : vector<8x128xf32>
    %310 = arith.addf %307, %309 : vector<8x128xf32>
    %c0_140 = arith.constant 0 : index
    %c0_141 = arith.constant 0 : index
    %311 = vector.load %arg6[%c0_140, %c0_141] : memref<128x384xf32, #tpu.memory_space<vmem>>, vector<128x384xf32>
    %cst_142 = arith.constant dense<0.000000e+00> : vector<8x384xf32>
    %312 = tpu.matmul %248, %311, %cst_142 {dimension_numbers = #tpu.dot_dimension_numbers<[1], [0], [0], [1], [0, 0, 1, 1], [], []>} : vector<8x128xf32>, vector<128x384xf32>, vector<8x384xf32> -> vector<8x384xf32>
    %c0_143 = arith.constant 0 : index
    %c0_144 = arith.constant 0 : index
    %313 = vector.load %arg8[%c0_143, %c0_144] : memref<1x384xf32, #tpu.memory_space<vmem>>, vector<1x384xf32>
    %314 = vector.broadcast %313 : vector<1x384xf32> to vector<8x384xf32>
    %315 = arith.addf %312, %314 : vector<8x384xf32>
    %c0_145 = arith.constant 0 : index
    %c0_146 = arith.constant 0 : index
    %316 = vector.load %arg7[%c0_145, %c0_146] : memref<128x384xf32, #tpu.memory_space<vmem>>, vector<128x384xf32>
    %cst_147 = arith.constant dense<0.000000e+00> : vector<8x384xf32>
    %317 = tpu.matmul %276, %316, %cst_147 {dimension_numbers = #tpu.dot_dimension_numbers<[1], [0], [0], [1], [0, 0, 1, 1], [], []>} : vector<8x128xf32>, vector<128x384xf32>, vector<8x384xf32> -> vector<8x384xf32>
    %318 = vector.extract_strided_slice %315 {offsets = [0, 0], sizes = [8, 256], strides = [1, 1]} : vector<8x384xf32> to vector<8x256xf32>
    %319 = vector.extract_strided_slice %317 {offsets = [0, 0], sizes = [8, 256], strides = [1, 1]} : vector<8x384xf32> to vector<8x256xf32>
    %320 = arith.addf %318, %319 : vector<8x256xf32>
    %321 = arith.negf %320 : vector<8x256xf32>
    %322 = math.exp %321 : vector<8x256xf32>
    %cst_148 = arith.constant 1.000000e+00 : f32
    %323 = vector.broadcast %cst_148 : f32 to vector<8x256xf32>
    %324 = arith.addf %323, %322 : vector<8x256xf32>
    %325 = arith.divf %323, %324 : vector<8x256xf32>
    %326 = vector.extract_strided_slice %325 {offsets = [0, 0], sizes = [8, 128], strides = [1, 1]} : vector<8x256xf32> to vector<8x128xf32>
    %327 = vector.extract_strided_slice %325 {offsets = [0, 128], sizes = [8, 128], strides = [1, 1]} : vector<8x256xf32> to vector<8x128xf32>
    %328 = vector.extract_strided_slice %315 {offsets = [0, 256], sizes = [8, 128], strides = [1, 1]} : vector<8x384xf32> to vector<8x128xf32>
    %329 = vector.extract_strided_slice %317 {offsets = [0, 256], sizes = [8, 128], strides = [1, 1]} : vector<8x384xf32> to vector<8x128xf32>
    %c0_149 = arith.constant 0 : index
    %c0_150 = arith.constant 0 : index
    %330 = vector.load %arg9[%c0_149, %c0_150] : memref<1x128xf32, #tpu.memory_space<vmem>>, vector<1x128xf32>
    %331 = vector.broadcast %330 : vector<1x128xf32> to vector<8x128xf32>
    %332 = arith.addf %329, %331 : vector<8x128xf32>
    %333 = arith.mulf %326, %332 : vector<8x128xf32>
    %334 = arith.addf %328, %333 : vector<8x128xf32>
    %335 = math.tanh %334 : vector<8x128xf32>
    %336 = arith.subf %276, %335 : vector<8x128xf32>
    %337 = arith.mulf %327, %336 : vector<8x128xf32>
    %338 = arith.addf %335, %337 : vector<8x128xf32>
    %c4_151 = arith.constant 4 : index
    %c0_152 = arith.constant 0 : index
    %c0_153 = arith.constant 0 : index
    %339 = vector.load %arg10[%c4_151, %c0_152, %c0_153] : memref<8x128x128xf32, #tpu.memory_space<vmem>>, vector<1x128x128xf32>
    %340 = vector.shape_cast %339 : vector<1x128x128xf32> to vector<128x128xf32>
    %cst_154 = arith.constant dense<0.000000e+00> : vector<8x128xf32>
    %341 = tpu.matmul %338, %340, %cst_154 {dimension_numbers = #tpu.dot_dimension_numbers<[1], [0], [0], [1], [0, 0, 1, 1], [], []>} : vector<8x128xf32>, vector<128x128xf32>, vector<8x128xf32> -> vector<8x128xf32>
    %342 = arith.addf %280, %341 : vector<8x128xf32>
    %c6 = arith.constant 6 : index
    %c0_155 = arith.constant 0 : index
    %c0_156 = arith.constant 0 : index
    %343 = vector.load %arg1[%c6, %c0_155, %c0_156] : memref<8x8x16xf32, #tpu.memory_space<vmem>>, vector<1x8x16xf32>
    %344 = vector.shape_cast %343 : vector<1x8x16xf32> to vector<8x16xf32>
    %c0_157 = arith.constant 0 : index
    %c0_158 = arith.constant 0 : index
    %345 = vector.load %arg2[%c0_157, %c0_158] : memref<16x384xf32, #tpu.memory_space<vmem>>, vector<16x384xf32>
    %cst_159 = arith.constant dense<0.000000e+00> : vector<8x384xf32>
    %346 = tpu.matmul %344, %345, %cst_159 {dimension_numbers = #tpu.dot_dimension_numbers<[1], [0], [0], [1], [0, 0, 1, 1], [], []>} : vector<8x16xf32>, vector<16x384xf32>, vector<8x384xf32> -> vector<8x384xf32>
    %c0_160 = arith.constant 0 : index
    %c0_161 = arith.constant 0 : index
    %347 = vector.load %arg4[%c0_160, %c0_161] : memref<1x384xf32, #tpu.memory_space<vmem>>, vector<1x384xf32>
    %348 = vector.broadcast %347 : vector<1x384xf32> to vector<8x384xf32>
    %349 = arith.addf %346, %348 : vector<8x384xf32>
    %c0_162 = arith.constant 0 : index
    %c0_163 = arith.constant 0 : index
    %350 = vector.load %arg3[%c0_162, %c0_163] : memref<128x384xf32, #tpu.memory_space<vmem>>, vector<128x384xf32>
    %cst_164 = arith.constant dense<0.000000e+00> : vector<8x384xf32>
    %351 = tpu.matmul %310, %350, %cst_164 {dimension_numbers = #tpu.dot_dimension_numbers<[1], [0], [0], [1], [0, 0, 1, 1], [], []>} : vector<8x128xf32>, vector<128x384xf32>, vector<8x384xf32> -> vector<8x384xf32>
    %352 = vector.extract_strided_slice %349 {offsets = [0, 0], sizes = [8, 256], strides = [1, 1]} : vector<8x384xf32> to vector<8x256xf32>
    %353 = vector.extract_strided_slice %351 {offsets = [0, 0], sizes = [8, 256], strides = [1, 1]} : vector<8x384xf32> to vector<8x256xf32>
    %354 = arith.addf %352, %353 : vector<8x256xf32>
    %355 = arith.negf %354 : vector<8x256xf32>
    %356 = math.exp %355 : vector<8x256xf32>
    %cst_165 = arith.constant 1.000000e+00 : f32
    %357 = vector.broadcast %cst_165 : f32 to vector<8x256xf32>
    %358 = arith.addf %357, %356 : vector<8x256xf32>
    %359 = arith.divf %357, %358 : vector<8x256xf32>
    %360 = vector.extract_strided_slice %359 {offsets = [0, 0], sizes = [8, 128], strides = [1, 1]} : vector<8x256xf32> to vector<8x128xf32>
    %361 = vector.extract_strided_slice %359 {offsets = [0, 128], sizes = [8, 128], strides = [1, 1]} : vector<8x256xf32> to vector<8x128xf32>
    %362 = vector.extract_strided_slice %349 {offsets = [0, 256], sizes = [8, 128], strides = [1, 1]} : vector<8x384xf32> to vector<8x128xf32>
    %363 = vector.extract_strided_slice %351 {offsets = [0, 256], sizes = [8, 128], strides = [1, 1]} : vector<8x384xf32> to vector<8x128xf32>
    %c0_166 = arith.constant 0 : index
    %c0_167 = arith.constant 0 : index
    %364 = vector.load %arg5[%c0_166, %c0_167] : memref<1x128xf32, #tpu.memory_space<vmem>>, vector<1x128xf32>
    %365 = vector.broadcast %364 : vector<1x128xf32> to vector<8x128xf32>
    %366 = arith.addf %363, %365 : vector<8x128xf32>
    %367 = arith.mulf %360, %366 : vector<8x128xf32>
    %368 = arith.addf %362, %367 : vector<8x128xf32>
    %369 = math.tanh %368 : vector<8x128xf32>
    %370 = arith.subf %310, %369 : vector<8x128xf32>
    %371 = arith.mulf %361, %370 : vector<8x128xf32>
    %372 = arith.addf %369, %371 : vector<8x128xf32>
    %c0_168 = arith.constant 0 : index
    %c0_169 = arith.constant 0 : index
    %373 = vector.load %arg6[%c0_168, %c0_169] : memref<128x384xf32, #tpu.memory_space<vmem>>, vector<128x384xf32>
    %cst_170 = arith.constant dense<0.000000e+00> : vector<8x384xf32>
    %374 = tpu.matmul %310, %373, %cst_170 {dimension_numbers = #tpu.dot_dimension_numbers<[1], [0], [0], [1], [0, 0, 1, 1], [], []>} : vector<8x128xf32>, vector<128x384xf32>, vector<8x384xf32> -> vector<8x384xf32>
    %c0_171 = arith.constant 0 : index
    %c0_172 = arith.constant 0 : index
    %375 = vector.load %arg8[%c0_171, %c0_172] : memref<1x384xf32, #tpu.memory_space<vmem>>, vector<1x384xf32>
    %376 = vector.broadcast %375 : vector<1x384xf32> to vector<8x384xf32>
    %377 = arith.addf %374, %376 : vector<8x384xf32>
    %c0_173 = arith.constant 0 : index
    %c0_174 = arith.constant 0 : index
    %378 = vector.load %arg7[%c0_173, %c0_174] : memref<128x384xf32, #tpu.memory_space<vmem>>, vector<128x384xf32>
    %cst_175 = arith.constant dense<0.000000e+00> : vector<8x384xf32>
    %379 = tpu.matmul %338, %378, %cst_175 {dimension_numbers = #tpu.dot_dimension_numbers<[1], [0], [0], [1], [0, 0, 1, 1], [], []>} : vector<8x128xf32>, vector<128x384xf32>, vector<8x384xf32> -> vector<8x384xf32>
    %380 = vector.extract_strided_slice %377 {offsets = [0, 0], sizes = [8, 256], strides = [1, 1]} : vector<8x384xf32> to vector<8x256xf32>
    %381 = vector.extract_strided_slice %379 {offsets = [0, 0], sizes = [8, 256], strides = [1, 1]} : vector<8x384xf32> to vector<8x256xf32>
    %382 = arith.addf %380, %381 : vector<8x256xf32>
    %383 = arith.negf %382 : vector<8x256xf32>
    %384 = math.exp %383 : vector<8x256xf32>
    %cst_176 = arith.constant 1.000000e+00 : f32
    %385 = vector.broadcast %cst_176 : f32 to vector<8x256xf32>
    %386 = arith.addf %385, %384 : vector<8x256xf32>
    %387 = arith.divf %385, %386 : vector<8x256xf32>
    %388 = vector.extract_strided_slice %387 {offsets = [0, 0], sizes = [8, 128], strides = [1, 1]} : vector<8x256xf32> to vector<8x128xf32>
    %389 = vector.extract_strided_slice %387 {offsets = [0, 128], sizes = [8, 128], strides = [1, 1]} : vector<8x256xf32> to vector<8x128xf32>
    %390 = vector.extract_strided_slice %377 {offsets = [0, 256], sizes = [8, 128], strides = [1, 1]} : vector<8x384xf32> to vector<8x128xf32>
    %391 = vector.extract_strided_slice %379 {offsets = [0, 256], sizes = [8, 128], strides = [1, 1]} : vector<8x384xf32> to vector<8x128xf32>
    %c0_177 = arith.constant 0 : index
    %c0_178 = arith.constant 0 : index
    %392 = vector.load %arg9[%c0_177, %c0_178] : memref<1x128xf32, #tpu.memory_space<vmem>>, vector<1x128xf32>
    %393 = vector.broadcast %392 : vector<1x128xf32> to vector<8x128xf32>
    %394 = arith.addf %391, %393 : vector<8x128xf32>
    %395 = arith.mulf %388, %394 : vector<8x128xf32>
    %396 = arith.addf %390, %395 : vector<8x128xf32>
    %397 = math.tanh %396 : vector<8x128xf32>
    %398 = arith.subf %338, %397 : vector<8x128xf32>
    %399 = arith.mulf %389, %398 : vector<8x128xf32>
    %400 = arith.addf %397, %399 : vector<8x128xf32>
    %c5_179 = arith.constant 5 : index
    %c0_180 = arith.constant 0 : index
    %c0_181 = arith.constant 0 : index
    %401 = vector.load %arg10[%c5_179, %c0_180, %c0_181] : memref<8x128x128xf32, #tpu.memory_space<vmem>>, vector<1x128x128xf32>
    %402 = vector.shape_cast %401 : vector<1x128x128xf32> to vector<128x128xf32>
    %cst_182 = arith.constant dense<0.000000e+00> : vector<8x128xf32>
    %403 = tpu.matmul %400, %402, %cst_182 {dimension_numbers = #tpu.dot_dimension_numbers<[1], [0], [0], [1], [0, 0, 1, 1], [], []>} : vector<8x128xf32>, vector<128x128xf32>, vector<8x128xf32> -> vector<8x128xf32>
    %404 = arith.addf %342, %403 : vector<8x128xf32>
    %c7 = arith.constant 7 : index
    %c0_183 = arith.constant 0 : index
    %c0_184 = arith.constant 0 : index
    %405 = vector.load %arg1[%c7, %c0_183, %c0_184] : memref<8x8x16xf32, #tpu.memory_space<vmem>>, vector<1x8x16xf32>
    %406 = vector.shape_cast %405 : vector<1x8x16xf32> to vector<8x16xf32>
    %c0_185 = arith.constant 0 : index
    %c0_186 = arith.constant 0 : index
    %407 = vector.load %arg2[%c0_185, %c0_186] : memref<16x384xf32, #tpu.memory_space<vmem>>, vector<16x384xf32>
    %cst_187 = arith.constant dense<0.000000e+00> : vector<8x384xf32>
    %408 = tpu.matmul %406, %407, %cst_187 {dimension_numbers = #tpu.dot_dimension_numbers<[1], [0], [0], [1], [0, 0, 1, 1], [], []>} : vector<8x16xf32>, vector<16x384xf32>, vector<8x384xf32> -> vector<8x384xf32>
    %c0_188 = arith.constant 0 : index
    %c0_189 = arith.constant 0 : index
    %409 = vector.load %arg4[%c0_188, %c0_189] : memref<1x384xf32, #tpu.memory_space<vmem>>, vector<1x384xf32>
    %410 = vector.broadcast %409 : vector<1x384xf32> to vector<8x384xf32>
    %411 = arith.addf %408, %410 : vector<8x384xf32>
    %c0_190 = arith.constant 0 : index
    %c0_191 = arith.constant 0 : index
    %412 = vector.load %arg3[%c0_190, %c0_191] : memref<128x384xf32, #tpu.memory_space<vmem>>, vector<128x384xf32>
    %cst_192 = arith.constant dense<0.000000e+00> : vector<8x384xf32>
    %413 = tpu.matmul %372, %412, %cst_192 {dimension_numbers = #tpu.dot_dimension_numbers<[1], [0], [0], [1], [0, 0, 1, 1], [], []>} : vector<8x128xf32>, vector<128x384xf32>, vector<8x384xf32> -> vector<8x384xf32>
    %414 = vector.extract_strided_slice %411 {offsets = [0, 0], sizes = [8, 256], strides = [1, 1]} : vector<8x384xf32> to vector<8x256xf32>
    %415 = vector.extract_strided_slice %413 {offsets = [0, 0], sizes = [8, 256], strides = [1, 1]} : vector<8x384xf32> to vector<8x256xf32>
    %416 = arith.addf %414, %415 : vector<8x256xf32>
    %417 = arith.negf %416 : vector<8x256xf32>
    %418 = math.exp %417 : vector<8x256xf32>
    %cst_193 = arith.constant 1.000000e+00 : f32
    %419 = vector.broadcast %cst_193 : f32 to vector<8x256xf32>
    %420 = arith.addf %419, %418 : vector<8x256xf32>
    %421 = arith.divf %419, %420 : vector<8x256xf32>
    %422 = vector.extract_strided_slice %421 {offsets = [0, 0], sizes = [8, 128], strides = [1, 1]} : vector<8x256xf32> to vector<8x128xf32>
    %423 = vector.extract_strided_slice %421 {offsets = [0, 128], sizes = [8, 128], strides = [1, 1]} : vector<8x256xf32> to vector<8x128xf32>
    %424 = vector.extract_strided_slice %411 {offsets = [0, 256], sizes = [8, 128], strides = [1, 1]} : vector<8x384xf32> to vector<8x128xf32>
    %425 = vector.extract_strided_slice %413 {offsets = [0, 256], sizes = [8, 128], strides = [1, 1]} : vector<8x384xf32> to vector<8x128xf32>
    %c0_194 = arith.constant 0 : index
    %c0_195 = arith.constant 0 : index
    %426 = vector.load %arg5[%c0_194, %c0_195] : memref<1x128xf32, #tpu.memory_space<vmem>>, vector<1x128xf32>
    %427 = vector.broadcast %426 : vector<1x128xf32> to vector<8x128xf32>
    %428 = arith.addf %425, %427 : vector<8x128xf32>
    %429 = arith.mulf %422, %428 : vector<8x128xf32>
    %430 = arith.addf %424, %429 : vector<8x128xf32>
    %431 = math.tanh %430 : vector<8x128xf32>
    %432 = arith.subf %372, %431 : vector<8x128xf32>
    %433 = arith.mulf %423, %432 : vector<8x128xf32>
    %434 = arith.addf %431, %433 : vector<8x128xf32>
    %c0_196 = arith.constant 0 : index
    %c0_197 = arith.constant 0 : index
    %435 = vector.load %arg6[%c0_196, %c0_197] : memref<128x384xf32, #tpu.memory_space<vmem>>, vector<128x384xf32>
    %cst_198 = arith.constant dense<0.000000e+00> : vector<8x384xf32>
    %436 = tpu.matmul %372, %435, %cst_198 {dimension_numbers = #tpu.dot_dimension_numbers<[1], [0], [0], [1], [0, 0, 1, 1], [], []>} : vector<8x128xf32>, vector<128x384xf32>, vector<8x384xf32> -> vector<8x384xf32>
    %c0_199 = arith.constant 0 : index
    %c0_200 = arith.constant 0 : index
    %437 = vector.load %arg8[%c0_199, %c0_200] : memref<1x384xf32, #tpu.memory_space<vmem>>, vector<1x384xf32>
    %438 = vector.broadcast %437 : vector<1x384xf32> to vector<8x384xf32>
    %439 = arith.addf %436, %438 : vector<8x384xf32>
    %c0_201 = arith.constant 0 : index
    %c0_202 = arith.constant 0 : index
    %440 = vector.load %arg7[%c0_201, %c0_202] : memref<128x384xf32, #tpu.memory_space<vmem>>, vector<128x384xf32>
    %cst_203 = arith.constant dense<0.000000e+00> : vector<8x384xf32>
    %441 = tpu.matmul %400, %440, %cst_203 {dimension_numbers = #tpu.dot_dimension_numbers<[1], [0], [0], [1], [0, 0, 1, 1], [], []>} : vector<8x128xf32>, vector<128x384xf32>, vector<8x384xf32> -> vector<8x384xf32>
    %442 = vector.extract_strided_slice %439 {offsets = [0, 0], sizes = [8, 256], strides = [1, 1]} : vector<8x384xf32> to vector<8x256xf32>
    %443 = vector.extract_strided_slice %441 {offsets = [0, 0], sizes = [8, 256], strides = [1, 1]} : vector<8x384xf32> to vector<8x256xf32>
    %444 = arith.addf %442, %443 : vector<8x256xf32>
    %445 = arith.negf %444 : vector<8x256xf32>
    %446 = math.exp %445 : vector<8x256xf32>
    %cst_204 = arith.constant 1.000000e+00 : f32
    %447 = vector.broadcast %cst_204 : f32 to vector<8x256xf32>
    %448 = arith.addf %447, %446 : vector<8x256xf32>
    %449 = arith.divf %447, %448 : vector<8x256xf32>
    %450 = vector.extract_strided_slice %449 {offsets = [0, 0], sizes = [8, 128], strides = [1, 1]} : vector<8x256xf32> to vector<8x128xf32>
    %451 = vector.extract_strided_slice %449 {offsets = [0, 128], sizes = [8, 128], strides = [1, 1]} : vector<8x256xf32> to vector<8x128xf32>
    %452 = vector.extract_strided_slice %439 {offsets = [0, 256], sizes = [8, 128], strides = [1, 1]} : vector<8x384xf32> to vector<8x128xf32>
    %453 = vector.extract_strided_slice %441 {offsets = [0, 256], sizes = [8, 128], strides = [1, 1]} : vector<8x384xf32> to vector<8x128xf32>
    %c0_205 = arith.constant 0 : index
    %c0_206 = arith.constant 0 : index
    %454 = vector.load %arg9[%c0_205, %c0_206] : memref<1x128xf32, #tpu.memory_space<vmem>>, vector<1x128xf32>
    %455 = vector.broadcast %454 : vector<1x128xf32> to vector<8x128xf32>
    %456 = arith.addf %453, %455 : vector<8x128xf32>
    %457 = arith.mulf %450, %456 : vector<8x128xf32>
    %458 = arith.addf %452, %457 : vector<8x128xf32>
    %459 = math.tanh %458 : vector<8x128xf32>
    %460 = arith.subf %400, %459 : vector<8x128xf32>
    %461 = arith.mulf %451, %460 : vector<8x128xf32>
    %462 = arith.addf %459, %461 : vector<8x128xf32>
    %c6_207 = arith.constant 6 : index
    %c0_208 = arith.constant 0 : index
    %c0_209 = arith.constant 0 : index
    %463 = vector.load %arg10[%c6_207, %c0_208, %c0_209] : memref<8x128x128xf32, #tpu.memory_space<vmem>>, vector<1x128x128xf32>
    %464 = vector.shape_cast %463 : vector<1x128x128xf32> to vector<128x128xf32>
    %cst_210 = arith.constant dense<0.000000e+00> : vector<8x128xf32>
    %465 = tpu.matmul %462, %464, %cst_210 {dimension_numbers = #tpu.dot_dimension_numbers<[1], [0], [0], [1], [0, 0, 1, 1], [], []>} : vector<8x128xf32>, vector<128x128xf32>, vector<8x128xf32> -> vector<8x128xf32>
    %466 = arith.addf %404, %465 : vector<8x128xf32>
    %c0_211 = arith.constant 0 : index
    %c0_212 = arith.constant 0 : index
    %467 = vector.load %arg6[%c0_211, %c0_212] : memref<128x384xf32, #tpu.memory_space<vmem>>, vector<128x384xf32>
    %cst_213 = arith.constant dense<0.000000e+00> : vector<8x384xf32>
    %468 = tpu.matmul %434, %467, %cst_213 {dimension_numbers = #tpu.dot_dimension_numbers<[1], [0], [0], [1], [0, 0, 1, 1], [], []>} : vector<8x128xf32>, vector<128x384xf32>, vector<8x384xf32> -> vector<8x384xf32>
    %c0_214 = arith.constant 0 : index
    %c0_215 = arith.constant 0 : index
    %469 = vector.load %arg8[%c0_214, %c0_215] : memref<1x384xf32, #tpu.memory_space<vmem>>, vector<1x384xf32>
    %470 = vector.broadcast %469 : vector<1x384xf32> to vector<8x384xf32>
    %471 = arith.addf %468, %470 : vector<8x384xf32>
    %c0_216 = arith.constant 0 : index
    %c0_217 = arith.constant 0 : index
    %472 = vector.load %arg7[%c0_216, %c0_217] : memref<128x384xf32, #tpu.memory_space<vmem>>, vector<128x384xf32>
    %cst_218 = arith.constant dense<0.000000e+00> : vector<8x384xf32>
    %473 = tpu.matmul %462, %472, %cst_218 {dimension_numbers = #tpu.dot_dimension_numbers<[1], [0], [0], [1], [0, 0, 1, 1], [], []>} : vector<8x128xf32>, vector<128x384xf32>, vector<8x384xf32> -> vector<8x384xf32>
    %474 = vector.extract_strided_slice %471 {offsets = [0, 0], sizes = [8, 256], strides = [1, 1]} : vector<8x384xf32> to vector<8x256xf32>
    %475 = vector.extract_strided_slice %473 {offsets = [0, 0], sizes = [8, 256], strides = [1, 1]} : vector<8x384xf32> to vector<8x256xf32>
    %476 = arith.addf %474, %475 : vector<8x256xf32>
    %477 = arith.negf %476 : vector<8x256xf32>
    %478 = math.exp %477 : vector<8x256xf32>
    %cst_219 = arith.constant 1.000000e+00 : f32
    %479 = vector.broadcast %cst_219 : f32 to vector<8x256xf32>
    %480 = arith.addf %479, %478 : vector<8x256xf32>
    %481 = arith.divf %479, %480 : vector<8x256xf32>
    %482 = vector.extract_strided_slice %481 {offsets = [0, 0], sizes = [8, 128], strides = [1, 1]} : vector<8x256xf32> to vector<8x128xf32>
    %483 = vector.extract_strided_slice %481 {offsets = [0, 128], sizes = [8, 128], strides = [1, 1]} : vector<8x256xf32> to vector<8x128xf32>
    %484 = vector.extract_strided_slice %471 {offsets = [0, 256], sizes = [8, 128], strides = [1, 1]} : vector<8x384xf32> to vector<8x128xf32>
    %485 = vector.extract_strided_slice %473 {offsets = [0, 256], sizes = [8, 128], strides = [1, 1]} : vector<8x384xf32> to vector<8x128xf32>
    %c0_220 = arith.constant 0 : index
    %c0_221 = arith.constant 0 : index
    %486 = vector.load %arg9[%c0_220, %c0_221] : memref<1x128xf32, #tpu.memory_space<vmem>>, vector<1x128xf32>
    %487 = vector.broadcast %486 : vector<1x128xf32> to vector<8x128xf32>
    %488 = arith.addf %485, %487 : vector<8x128xf32>
    %489 = arith.mulf %482, %488 : vector<8x128xf32>
    %490 = arith.addf %484, %489 : vector<8x128xf32>
    %491 = math.tanh %490 : vector<8x128xf32>
    %492 = arith.subf %462, %491 : vector<8x128xf32>
    %493 = arith.mulf %483, %492 : vector<8x128xf32>
    %494 = arith.addf %491, %493 : vector<8x128xf32>
    %c7_222 = arith.constant 7 : index
    %c0_223 = arith.constant 0 : index
    %c0_224 = arith.constant 0 : index
    %495 = vector.load %arg10[%c7_222, %c0_223, %c0_224] : memref<8x128x128xf32, #tpu.memory_space<vmem>>, vector<1x128x128xf32>
    %496 = vector.shape_cast %495 : vector<1x128x128xf32> to vector<128x128xf32>
    %cst_225 = arith.constant dense<0.000000e+00> : vector<8x128xf32>
    %497 = tpu.matmul %494, %496, %cst_225 {dimension_numbers = #tpu.dot_dimension_numbers<[1], [0], [0], [1], [0, 0, 1, 1], [], []>} : vector<8x128xf32>, vector<128x128xf32>, vector<8x128xf32> -> vector<8x128xf32>
    %498 = arith.addf %466, %497 : vector<8x128xf32>
    %c0_226 = arith.constant 0 : index
    %c0_227 = arith.constant 0 : index
    %499 = vector.load %arg11[%c0_226, %c0_227] : memref<1x128xf32, #tpu.memory_space<vmem>>, vector<1x128xf32>
    %500 = vector.broadcast %499 : vector<1x128xf32> to vector<8x128xf32>
    %501 = arith.addf %498, %500 : vector<8x128xf32>
    %c0_228 = arith.constant 0 : index
    %c0_229 = arith.constant 0 : index
    %502 = vector.load %arg12[%c0_228, %c0_229] : memref<8x128xf32, #tpu.memory_space<vmem>>, vector<8x128xf32>
    tpu.vector_store %arg12[%c0_228, %c0_229], %501 {strides = array<i32>} : memref<8x128xf32, #tpu.memory_space<vmem>>, vector<8x128xf32>,
    return
  }
  func.func @transform_0(%arg0: i32) -> (i32, i32, i32) {
    %c0_i32 = arith.constant 0 : i32
    %c0_i32_0 = arith.constant 0 : i32
    %c0_i32_1 = arith.constant 0 : i32
    return %c0_i32, %arg0, %c0_i32_0 : i32, i32, i32
  }
  func.func @transform_1(%arg0: i32) -> (i32, i32) {
    %c0_i32 = arith.constant 0 : i32
    %c0_i32_0 = arith.constant 0 : i32
    %c0_i32_1 = arith.constant 0 : i32
    return %c0_i32, %c0_i32_0 : i32, i32
  }
  func.func @transform_2(%arg0: i32) -> (i32, i32) {
    %c0_i32 = arith.constant 0 : i32
    %c0_i32_0 = arith.constant 0 : i32
    %c0_i32_1 = arith.constant 0 : i32
    return %c0_i32, %c0_i32_0 : i32, i32
  }
  func.func @transform_3(%arg0: i32) -> (i32, i32) {
    %c0_i32 = arith.constant 0 : i32
    %c0_i32_0 = arith.constant 0 : i32
    %c0_i32_1 = arith.constant 0 : i32
    return %c0_i32, %c0_i32_0 : i32, i32
  }
  func.func @transform_4(%arg0: i32) -> (i32, i32) {
    %c0_i32 = arith.constant 0 : i32
    %c0_i32_0 = arith.constant 0 : i32
    %c0_i32_1 = arith.constant 0 : i32
    return %c0_i32, %c0_i32_0 : i32, i32
  }
  func.func @transform_5(%arg0: i32) -> (i32, i32) {
    %c0_i32 = arith.constant 0 : i32
    %c0_i32_0 = arith.constant 0 : i32
    %c0_i32_1 = arith.constant 0 : i32
    return %c0_i32, %c0_i32_0 : i32, i32
  }
  func.func @transform_6(%arg0: i32) -> (i32, i32) {
    %c0_i32 = arith.constant 0 : i32
    %c0_i32_0 = arith.constant 0 : i32
    %c0_i32_1 = arith.constant 0 : i32
    return %c0_i32, %c0_i32_0 : i32, i32
  }
  func.func @transform_7(%arg0: i32) -> (i32, i32) {
    %c0_i32 = arith.constant 0 : i32
    %c0_i32_0 = arith.constant 0 : i32
    %c0_i32_1 = arith.constant 0 : i32
    return %c0_i32, %c0_i32_0 : i32, i32
  }
  func.func @transform_8(%arg0: i32) -> (i32, i32) {
    %c0_i32 = arith.constant 0 : i32
    %c0_i32_0 = arith.constant 0 : i32
    %c0_i32_1 = arith.constant 0 : i32
    return %c0_i32, %c0_i32_0 : i32, i32
  }
  func.func @transform_9(%arg0: i32) -> (i32, i32, i32) {
    %c0_i32 = arith.constant 0 : i32
    %c0_i32_0 = arith.constant 0 : i32
    %c0_i32_1 = arith.constant 0 : i32
    %c0_i32_2 = arith.constant 0 : i32
    return %c0_i32, %c0_i32_0, %c0_i32_1 : i32, i32, i32
  }
  func.func @transform_10(%arg0: i32) -> (i32, i32) {
    %c0_i32 = arith.constant 0 : i32
    %c0_i32_0 = arith.constant 0 : i32
    %c0_i32_1 = arith.constant 0 : i32
    return %c0_i32, %c0_i32_0 : i32, i32
  }
  func.func @transform_11(%arg0: i32) -> (i32, i32) {
    %c0_i32 = arith.constant 0 : i32
    %c0_i32_0 = arith.constant 0 : i32
    return %arg0, %c0_i32 : i32, i32
  }
}

</mosaic_0001>

<bundles_post_ra>
// kernel: _rnn_gru_forward_padded.1
= control target key start
LH: loop header
LB: loop body
LE: loop exit
PB: predicated region body
PF: predicated region fallthrough
CT: control target
= control target key end

     0   :  { %16 = vsyncpa [#allocation3], 0  ;;  %s6797_s0 = inlined_call_operand.vmem [shape: f32[8,8,16], index: 0, kind: input, shape index: {}]   ;;  %s6798_s1 = inlined_call_operand.vmem [shape: f32[16,384], index: 1, kind: input, shape index: {}]   ;;  %s6799_s2 = inlined_call_operand.hbm [shape: f32[128,384], index: 2, kind: input, shape index: {}]   ;;  %s6800_s3 = inlined_call_operand.vmem [shape: f32[1,384], index: 3, kind: input, shape index: {}]   ;;  %s6801_s4 = inlined_call_operand.vmem [shape: f32[1,128], index: 4, kind: input, shape index: {}]   ;;  %s6802_s5 = inlined_call_operand.hbm [shape: f32[128,384], index: 5, kind: input, shape index: {}]   ;;  %s6803_s6 = inlined_call_operand.hbm [shape: f32[128,384], index: 6, kind: input, shape index: {}]   ;;  %s6804_s7 = inlined_call_operand.vmem [shape: f32[1,384], index: 7, kind: input, shape index: {}]   ;;  %s6805_s8 = inlined_call_operand.vmem [shape: f32[1,128], index: 8, kind: input, shape index: {}]   ;;  %s6806_s9 = inlined_call_operand.hbm [shape: f32[8,128,128], index: 9, kind: input, shape index: {}]   ;;  %s6807_s10 = inlined_call_operand.vmem [shape: f32[1,128], index: 10, kind: input, shape index: {}]   ;;  %s6808_s11 = inlined_call_operand.hbm [shape: f32[8,128], index: 11, kind: output, shape index: {}]  }
   0x1   :  { %17 = vsyncpa [#allocation6], 0 }
   0x2   :  { %18 = vsyncpa [#allocation9], 0 }
   0x3   :  { %19 = vsyncpa [#allocation4], 0  ;;  %s45_s19 = sshll.u32 %s6802_s5, 4  ;;  %s4098_s20 = smov [#allocation5]   ;;  %s46_s19 = int_to_ptr.hbm [resolvable:$true] %s45_s19 }
   0x4   :  { %s47_s21 = sshll.u32 %s4098_s20, 4  ;;  %s28_s24 = sshll.u32 %s6799_s2, 4  ;;  %s48_s21 = int_to_ptr.vmem [resolvable:$true] %s47_s21  ;;  %s29_s24 = int_to_ptr.hbm [resolvable:$true] %s28_s24 }
   0x5   :  { %s4099_s25 = smov 384   ;;  %s4100_s26 = smov 24  }
   0x6   :  { %53 = dma.hbm_to_vmem [thread:$0]  %s46_s19, 6144, %s48_s21, [#allocation6], %s4099_s25, %s4099_s25, %s4100_s26  }
   0x7   :  { %s4101_s27 = smov [#allocation2]   ;;  %s58_s12 = sshll.u32 %s6803_s6, 4  ;;  %s59_s12 = int_to_ptr.hbm [resolvable:$true] %s58_s12 }
   0x8   :  { %s30_s28 = sshll.u32 %s4101_s27, 4  ;;  %s75_s14 = sshll.u32 %s6806_s9, 4  ;;  %s31_s28 = int_to_ptr.vmem [resolvable:$true] %s30_s28  ;;  %s76_s14 = int_to_ptr.hbm [resolvable:$true] %s75_s14 }
   0x9   :  { %36 = dma.hbm_to_vmem [thread:$0]  %s29_s24, 6144, %s31_s28, [#allocation3], %s4099_s25, %s4099_s25, %s4100_s26  }
   0xa   :  { %s4102_s15 = smov [#allocation7]   ;;  %s4103_s2 = smov [#allocation8]  }
   0xb   :  { %s60_s16 = sshll.u32 %s4102_s15, 4  ;;  %s77_s17 = sshll.u32 %s4103_s2, 4  ;;  %s61_s16 = int_to_ptr.vmem [resolvable:$true] %s60_s16  ;;  %s78_s17 = int_to_ptr.vmem [resolvable:$true] %s77_s17 }
   0xc   :  { %66 = dma.hbm_to_vmem [thread:$0]  %s59_s12, 6144, %s61_s16, [#allocation6], %s4099_s25, %s4099_s25, %s4100_s26  }
   0xd   :  { %s4104_s18 = smov 128   ;;  %s4105_s19 = smov 8  }
   0xe   :  { %83 = dma.hbm_to_vmem [thread:$0]  %s76_s14, 16384, %s78_s17, [#allocation9], %s4104_s18, %s4104_s18, %s4105_s19  }
   0xf   :  { %4090 = dma.done.wait [#allocation3], 6144  }
  0x10   :  { %4091 = vsyncadd [#allocation3], 4294961152 }
  0x11   :  { %4092 = dma.done.wait [#allocation6], 12288  }
  0x12   :  { %4093 = vsyncadd [#allocation6], 4294955008 }
  0x13   :  { %4094 = dma.done.wait [#allocation9], 16384  }
  0x14   :  { %4095 = vsyncadd [#allocation9], 4294950912  ;;  %v4180_v0 = vld [vmem:[#allocation2 + $0x168] sm:$0xff]  ;;  %v4182_v1 = vld [vmem:[#allocation2 + $0x150] sm:$0xff]  ;;  %vm117_vm0 = vcmask 130048   ;;  %v6809_v50 = vmov 0.0  }
  0x15   :  { %v4187_v2 = vld [vmem:[%s6798_s1 + $0x18] sm:$0xff]  ;;  %229 = vmatpush.msra.mxu3 %v4180_v0  ;;  %v4194_v3 = vld [vmem:[%s6798_s1] sm:$0xff]  ;;  %v4198_v5 = vld [vmem:[#allocation2 + $0x170] sm:$0xff]  ;;  %s4107_s25 = smov [#allocation10]   ;;  %s3302_s29 = sshll.u32 %s6808_s11, 4  ;;  %s3303_s29 = int_to_ptr.hbm [resolvable:$true] %s3302_s29 }
  0x16   :  { %135 = vmatpush.msra.mxu0 %v4187_v2  ;;  %v4196_v4 = vld [vmem:[#allocation2 + $0x138] sm:$0xff]  ;;  %v4204_v7 = vld [vmem:[#allocation2 + $0x120] sm:$0xff]  ;;  %v4210_v9 = vld [vmem:[#allocation2 + $0x108] sm:$0xff]  ;;  %s3300_s26 = sshll.u32 %s4107_s25, 4  ;;  %s3301_s26 = int_to_ptr.vmem [resolvable:$true] %s3300_s26 }
  0x17   :  { %230 = vmatpush.msra.mxu3 %v4182_v1  ;;  %v4202_v6 = vld [vmem:[#allocation2 + $0x158] sm:$0xff]  ;;  %v4208_v8 = vld [vmem:[#allocation2 + $0x140] sm:$0xff]  ;;  %v4214_v10 = vld [vmem:[#allocation2 + $0x128] sm:$0xff] }
  0x18   :  { %136 = vmatpush.msra.mxu0 %v4194_v3  ;;  %v4216_v11 = vld [vmem:[#allocation2 + $0xf0] sm:$0xff]  ;;  %v102_v13 = vld [vmem:[%s6797_s0] sm:$0xff]  ;;  %v4225_v14 = vld [vmem:[#allocation2 + $0xd8] sm:$0xff] }
  0x19   :  { %231 = vmatpush.msra.mxu3 %v4196_v4  ;;  %v4220_v12 = vld [vmem:[#allocation2 + $0x110] sm:$0xff]  ;;  %v4231_v15 = vld [vmem:[%s6798_s1 + $0x20] sm:$0xff]  ;;  %v4234_v16 = vld [vmem:[#allocation2 + $0xf8] sm:$0xff]  ;;  %3314 = vmatmul.msk.f32.vlgmr.msra.gmra.mxu0 %vm117_vm0, %v102_v13 }
  0x1a   :  { %249 = vmatpush.msrb.mxu0 %v4198_v5  ;;  %v4240_v17 = vld [vmem:[%s6798_s1 + $0x8] sm:$0xff]  ;;  %v4242_v18 = vld [vmem:[#allocation2 + $0xc0] sm:$0xff]  ;;  %155 = vmatpush.msra.mxu1 %v4231_v15  ;;  %v4246_v19 = vld [vmem:[#allocation2 + $0x178] sm:$0xff] }
  0x1b   :  { %232 = vmatpush.msra.mxu3 %v4204_v7  ;;  %v4249_v20 = vld [vmem:[#allocation2 + $0xe0] sm:$0xff]  ;;  %v4251_v21 = vld [vmem:[#allocation2 + $0xa8] sm:$0xff]  ;;  %v4261_v24 = vld [vmem:[#allocation2 + $0x90] sm:$0xff] }
  0x1c   :  { %250 = vmatpush.msrb.mxu0 %v4202_v6  ;;  %156 = vmatpush.msra.mxu1 %v4240_v17  ;;  %v4255_v22 = vld [vmem:[#allocation2 + $0x160] sm:$0xff]  ;;  %v4258_v23 = vld [vmem:[#allocation2 + $0xc8] sm:$0xff]  ;;  %v4273_v27 = vld [vmem:[#allocation2 + $0xb0] sm:$0xff] }
  0x1d   :  { %233 = vmatpush.msra.mxu3 %v4210_v9  ;;  %3315 = vmatmul.msk.f32.vlgmr.msra.gmra.mxu1 %vm117_vm0, %v102_v13  ;;  %v4265_v25 = vld [vmem:[#allocation2 + $0x148] sm:$0xff]  ;;  %v4279_v28 = vld [vmem:[%s6798_s1 + $0x10] sm:$0xff]  ;;  %v4281_v29 = vld [vmem:[#allocation2 + $0x78] sm:$0xff] }
  0x1e   :  { %251 = vmatpush.msrb.mxu0 %v4208_v8  ;;  %269 = vmatpush.msrb.mxu1 %v4246_v19  ;;  %v4270_v26 = vld [vmem:[%s6798_s1 + $0x28] sm:$0xff]  ;;  %v4284_v30 = vld [vmem:[#allocation2 + $0x130] sm:$0xff]  ;;  %v4288_v31 = vld [vmem:[#allocation2 + $0x98] sm:$0xff] }
  0x1f   :  { %234 = vmatpush.msra.mxu3 %v4216_v11  ;;  %175 = vmatpush.msra.mxu2 %v4270_v26  ;;  %v4291_v32 = vld [vmem:[#allocation2 + $0x60] sm:$0xff]  ;;  %v4294_v33 = vld [vmem:[#allocation2 + $0x118] sm:$0xff]  ;;  %v4301_v35 = vld [vmem:[#allocation2 + $0x48] sm:$0xff] }
  0x20   :  { %252 = vmatpush.msrb.mxu0 %v4214_v10  ;;  %270 = vmatpush.msrb.mxu1 %v4255_v22  ;;  %v4298_v34 = vld [vmem:[#allocation2 + $0x80] sm:$0xff]  ;;  %v4308_v37 = vld [vmem:[#allocation2 + $0x68] sm:$0xff]  ;;  %v4311_v38 = vld [vmem:[#allocation2 + $0x30] sm:$0xff] }
  0x21   :  { %235 = vmatpush.msra.mxu3 %v4225_v14  ;;  %176 = vmatpush.msra.mxu2 %v4279_v28  ;;  %v4304_v36 = vld [vmem:[#allocation2 + $0x100] sm:$0xff]  ;;  %7111 = vst [vmem:[#allocation15_spill] sm:$0xff] %v4308_v37  ;;  %v4314_v39 = vld [vmem:[#allocation2 + $0xe8] sm:$0xff]  ;;  %v4318_v40 = vld [vmem:[#allocation2 + $0x50] sm:$0xff] }
  0x22   :  { %253 = vmatpush.msrb.mxu0 %v4220_v12  ;;  %271 = vmatpush.msrb.mxu1 %v4265_v25  ;;  %7112 = vst [vmem:[#allocation16_spill] sm:$0xff] %v4318_v40  ;;  %v4321_v41 = vld [vmem:[#allocation2 + $0x18] sm:$0xff]  ;;  %v4324_v42 = vld [vmem:[#allocation2 + $0xd0] sm:$0xff]  ;;  %v3319_v44 = vld [vmem:[%s6797_s0 + $0x8] sm:$0xff] }
  0x23   :  { %236 = vmatpush.msra.mxu3 %v4242_v18  ;;  %3316 = vmatmul.msk.f32.vlgmr.msra.gmra.mxu2 %vm117_vm0, %v102_v13  ;;  %v4328_v43 = vld [vmem:[#allocation2 + $0x38] sm:$0xff]  ;;  %v4334_v45 = vld [vmem:[#allocation2] sm:$0xff]  ;;  %v4349_v49 = vld [vmem:[#allocation2 + $0x8] sm:$0xff] }
  0x24   :  { %254 = vmatpush.msrb.mxu0 %v4234_v16  ;;  %272 = vmatpush.msrb.mxu1 %v4284_v30  ;;  %7113 = vst [vmem:[#allocation17_spill] sm:$0xff] %v4328_v43  ;;  %v4337_v46 = vld [vmem:[#allocation2 + $0xb8] sm:$0xff]  ;;  %v4341_v47 = vld [vmem:[#allocation2 + $0x20] sm:$0xff]  ;;  %v4354_v51 = vld [vmem:[#allocation2 + $0x88] sm:$0xff] }
  0x25   :  { %237 = vmatpush.msra.mxu3 %v4251_v21  ;;  %359 = vmatpush.msrb.mxu2 %v4187_v2  ;;  %7114 = vst [vmem:[#allocation18_spill] sm:$0xff] %v4334_v45  ;;  %v4345_v48 = vld [vmem:[#allocation2 + $0xa0] sm:$0xff]  ;;  %v4359_v52 = vld [vmem:[#allocation2 + $0x70] sm:$0xff]  ;;  %v4364_v53 = vld [vmem:[#allocation2 + $0x58] sm:$0xff] }
  0x26   :  { %255 = vmatpush.msrb.mxu0 %v4249_v20  ;;  %273 = vmatpush.msrb.mxu1 %v4294_v33  ;;  %7115 = vst [vmem:[#allocation19_spill] sm:$0xff] %v4341_v47  ;;  %v4370_v54 = vld [vmem:[#allocation2 + $0x40] sm:$0xff]  ;;  %v4376_v55 = vld [vmem:[#allocation2 + $0x28] sm:$0xff]  ;;  %v4382_v56 = vld [vmem:[#allocation2 + $0x10] sm:$0xff] }
  0x27   :  { %238 = vmatpush.msra.mxu3 %v4261_v24  ;;  %360 = vmatpush.msrb.mxu2 %v4194_v3  ;;  %7116 = vst [vmem:[#allocation20_spill] sm:$0xff] %v4345_v48  ;;  %v4429_v57 = vld [vmem:[#allocation5 + $0x168] sm:$0xff]  ;;  %v4432_v58 = vld [vmem:[#allocation5 + $0x150] sm:$0xff]  ;;  %v4435_v59 = vld [vmem:[#allocation5 + $0x138] sm:$0xff] }
  0x28   :  { %256 = vmatpush.msrb.mxu0 %v4258_v23  ;;  %274 = vmatpush.msrb.mxu1 %v4304_v36  ;;  %7117 = vst [vmem:[#allocation21_spill] sm:$0xff] %v4349_v49  ;;  %v4438_v60 = vld [vmem:[#allocation5 + $0x120] sm:$0xff]  ;;  %v4441_v61 = vld [vmem:[#allocation5 + $0x108] sm:$0xff]  ;;  %v4444_v62 = vld [vmem:[#allocation5 + $0xf0] sm:$0xff] }
  0x29   :  { %239 = vmatpush.msra.mxu3 %v4281_v29  ;;  %379 = vmatpush.msra.mxu2 %v4231_v15  ;;  %7118 = vst [vmem:[#allocation22_spill] sm:$0xff] %v4354_v51  ;;  %v4447_v63 = vld [vmem:[#allocation5 + $0xd8] sm:$0xff]  ;;  %v4450_v13 = vld [vmem:[#allocation5 + $0xc0] sm:$0xff] }
  0x2a   :  { %257 = vmatpush.msrb.mxu0 %v4273_v27  ;;  %275 = vmatpush.msrb.mxu1 %v4314_v39  ;;  %7119 = vst [vmem:[#allocation23_spill] sm:$0xff] %v4359_v52 }
  0x2b   :  { %240 = vmatpush.msra.mxu3 %v4291_v32  ;;  %3320 = vmatmul.msk.f32.vlgmr.msrb.gmra.mxu2 %vm117_vm0, %v3319_v44  ;;  %7120 = vst [vmem:[#allocation24_spill] sm:$0xff] %v4364_v53 }
  0x2c   :  { %258 = vmatpush.msrb.mxu0 %v4288_v31  ;;  %276 = vmatpush.msrb.mxu1 %v4324_v42  ;;  %7121 = vst [vmem:[#allocation25_spill] sm:$0xff] %v4370_v54 }
  0x2d   :  { %241 = vmatpush.msra.mxu3 %v4301_v35  ;;  %380 = vmatpush.msra.mxu2 %v4240_v17  ;;  %7122 = vst [vmem:[#allocation26_spill] sm:$0xff] %v4376_v55 }
  0x2e   :  { %259 = vmatpush.msrb.mxu0 %v4298_v34  ;;  %277 = vmatpush.msrb.mxu1 %v4337_v46  ;;  %7123 = vst [vmem:[#allocation27_spill] sm:$0xff] %v4382_v56 }
  0x2f   :  { %242 = vmatpush.msra.mxu3 %v4311_v38  ;;  %399 = vmatpush.msrb.mxu2 %v4270_v26  ;;  %7124 = vst [vmem:[#allocation28_spill] sm:$0xff] %v4432_v58 }
  0x30   :  { %260 = vmatpush.msrb.mxu0 %v4308_v37  ;;  %278 = vmatpush.msrb.mxu1 %v4345_v48  ;;  %7125 = vst [vmem:[#allocation29_spill] sm:$0xff] %v4435_v59 }
  0x31   :  { %243 = vmatpush.msra.mxu3 %v4321_v41  ;;  %400 = vmatpush.msrb.mxu2 %v4279_v28  ;;  %7126 = vst [vmem:[#allocation30_spill] sm:$0xff] %v4438_v60 }
  0x32   :  { %261 = vmatpush.msrb.mxu0 %v4318_v40  ;;  %279 = vmatpush.msrb.mxu1 %v4354_v51  ;;  %7127 = vst [vmem:[#allocation31_spill] sm:$0xff] %v4441_v61 }
  0x33   :  { %244 = vmatpush.msra.mxu3 %v4334_v45  ;;  %3321 = vmatmul.msk.f32.vlgmr.msra.gmra.mxu2 %vm117_vm0, %v3319_v44  ;;  %7128 = vst [vmem:[#allocation32_spill] sm:$0xff] %v4444_v62 }
  0x34   :  { %262 = vmatpush.msrb.mxu0 %v4328_v43  ;;  %245 = vmatmul.f32.vlgmr.msra.gmra.mxu3 %v6809_v50  ;;  %7129 = vst [vmem:[#allocation33_spill] sm:$0xff] %v4447_v63 }
  0x35   :  { %425 = vmatpush.msrb.mxu3 %v4198_v5  ;;  %280 = vmatpush.msrb.mxu1 %v4359_v52  ;;  %7130 = vst [vmem:[#allocation34_spill] sm:$0xff] %v4450_v13 }
  0x36   :  { %263 = vmatpush.msrb.mxu0 %v4341_v47  ;;  %405 = vmatpush.msra.mxu2 %v4180_v0 }
  0x37   :  { %426 = vmatpush.msrb.mxu3 %v4202_v6  ;;  %281 = vmatpush.msrb.mxu1 %v4364_v53 }
  0x38   :  { %264 = vmatpush.msrb.mxu0 %v4349_v49  ;;  %406 = vmatpush.msra.mxu2 %v4182_v1 }
  0x39   :  { %265 = vmatmul.f32.vlgmr.msrb.gmra.mxu0 %v6809_v50  ;;  %427 = vmatpush.msrb.mxu3 %v4208_v8 }
  0x3a   :  { %445 = vmatpush.msra.mxu0 %v4246_v19  ;;  %282 = vmatpush.msrb.mxu1 %v4370_v54 }
  0x3b   :  { %428 = vmatpush.msrb.mxu3 %v4214_v10  ;;  %407 = vmatpush.msra.mxu2 %v4196_v4 }
  0x3c   :  { %446 = vmatpush.msra.mxu0 %v4255_v22  ;;  %283 = vmatpush.msrb.mxu1 %v4376_v55 }
  0x3d   :  { %429 = vmatpush.msrb.mxu3 %v4220_v12  ;;  %408 = vmatpush.msra.mxu2 %v4204_v7 }
  0x3e   :  { %447 = vmatpush.msra.mxu0 %v4265_v25  ;;  %284 = vmatpush.msrb.mxu1 %v4382_v56 }
  0x3f   :  { %285 = vmatmul.f32.vlgmr.msrb.gmra.mxu1 %v6809_v50  ;;  %409 = vmatpush.msra.mxu2 %v4210_v9  ;;  %v4456_v50 = vld [vmem:[#allocation5 + $0xa8] sm:$0xff] }
  0x40   :  { %448 = vmatpush.msra.mxu0 %v4284_v30  ;;  %430 = vmatpush.msrb.mxu3 %v4234_v16  ;;  %7132 = vst [vmem:[#allocation36_spill] sm:$0xff] %v4456_v50 }
  0x41   :  { %3322 = vmatmul.msk.f32.vlgmr.msrb.gmra.mxu2 %vm117_vm0, %v3319_v44  ;;  %568 = vmatpush.msra.mxu1 %v4429_v57  ;;  %v4453_v44 = vld [vmem:[#allocation5 + $0x170] sm:$0xff] }
  0x42   :  { %449 = vmatpush.msra.mxu0 %v4294_v33  ;;  %410 = vmatpush.msra.mxu2 %v4216_v11  ;;  %7131 = vst [vmem:[#allocation35_spill] sm:$0xff] %v4453_v44 }
  0x43   :  { %431 = vmatpush.msrb.mxu3 %v4249_v20  ;;  %569 = vmatpush.msra.mxu1 %v4432_v58 }
  0x44   :  { %450 = vmatpush.msra.mxu0 %v4304_v36  ;;  %411 = vmatpush.msra.mxu2 %v4225_v14 }
  0x45   :  { %432 = vmatpush.msrb.mxu3 %v4258_v23  ;;  %570 = vmatpush.msra.mxu1 %v4435_v59 }
  0x46   :  { %451 = vmatpush.msra.mxu0 %v4314_v39  ;;  %412 = vmatpush.msra.mxu2 %v4242_v18 }
  0x47   :  { %433 = vmatpush.msrb.mxu3 %v4273_v27  ;;  %571 = vmatpush.msra.mxu1 %v4438_v60  ;;  %v4515_v60 = vld [vmem:[#allocation5 + $0x148] sm:$0xff] }
  0x48   :  { %452 = vmatpush.msra.mxu0 %v4324_v42  ;;  %413 = vmatpush.msra.mxu2 %v4251_v21  ;;  %7150 = vst [vmem:[#allocation54_spill] sm:$0xff] %v4515_v60 }
  0x49   :  { %434 = vmatpush.msrb.mxu3 %v4288_v31  ;;  %572 = vmatpush.msra.mxu1 %v4441_v61  ;;  %v4488_v61 = vld [vmem:[#allocation7 + $0x168] sm:$0xff] }
  0x4a   :  { %453 = vmatpush.msra.mxu0 %v4337_v46  ;;  %414 = vmatpush.msra.mxu2 %v4261_v24  ;;  %7142 = vst [vmem:[#allocation46_spill] sm:$0xff] %v4488_v61 }
  0x4b   :  { %435 = vmatpush.msrb.mxu3 %v4298_v34  ;;  %573 = vmatpush.msra.mxu1 %v4444_v62  ;;  %v4481_v62 = vld [vmem:[#allocation5 + $0x60] sm:$0xff] }
  0x4c   :  { %454 = vmatpush.msra.mxu0 %v4345_v48  ;;  %415 = vmatpush.msra.mxu2 %v4281_v29  ;;  %7139 = vst [vmem:[#allocation43_spill] sm:$0xff] %v4481_v62 }
  0x4d   :  { %436 = vmatpush.msrb.mxu3 %v4308_v37  ;;  %574 = vmatpush.msra.mxu1 %v4447_v63  ;;  %v4467_v63 = vld [vmem:[#allocation5 + $0x90] sm:$0xff] }
  0x4e   :  { %455 = vmatpush.msra.mxu0 %v4354_v51  ;;  %416 = vmatpush.msra.mxu2 %v4291_v32  ;;  %7134 = vst [vmem:[#allocation38_spill] sm:$0xff] %v4467_v63 }
  0x4f   :  { %437 = vmatpush.msrb.mxu3 %v4318_v40  ;;  %575 = vmatpush.msra.mxu1 %v4450_v13  ;;  %v4470_v13 = vld [vmem:[#allocation5 + $0x140] sm:$0xff] }
  0x50   :  { %456 = vmatpush.msra.mxu0 %v4359_v52  ;;  %417 = vmatpush.msra.mxu2 %v4301_v35  ;;  %7135 = vst [vmem:[#allocation39_spill] sm:$0xff] %v4470_v13  ;;  %v4498_v52 = vld [vmem:[#allocation7 + $0x150] sm:$0xff] }
  0x51   :  { %438 = vmatpush.msrb.mxu3 %v4328_v43  ;;  %576 = vmatpush.msra.mxu1 %v4456_v50  ;;  %7146 = vst [vmem:[#allocation50_spill] sm:$0xff] %v4498_v52 }
  0x52   :  { %457 = vmatpush.msra.mxu0 %v4364_v53  ;;  %418 = vmatpush.msra.mxu2 %v4311_v38  ;;  %v4483_v53 = vld [vmem:[#allocation5 + $0x110] sm:$0xff] }
  0x53   :  { %439 = vmatpush.msrb.mxu3 %v4341_v47  ;;  %577 = vmatpush.msra.mxu1 %v4467_v63  ;;  %v4479_v47 = vld [vmem:[#allocation5 + $0x128] sm:$0xff]  ;;  %7140 = vst [vmem:[#allocation44_spill] sm:$0xff] %v4483_v53  ;;  %v4486_v63 = vld [vmem:[#allocation5 + $0x178] sm:$0xff] }
  0x54   :  { %458 = vmatpush.msra.mxu0 %v4370_v54  ;;  %419 = vmatpush.msra.mxu2 %v4321_v41  ;;  %v4473_v54 = vld [vmem:[#allocation5 + $0x78] sm:$0xff]  ;;  %7138 = vst [vmem:[#allocation42_spill] sm:$0xff] %v4479_v47 }
  0x55   :  { %440 = vmatpush.msrb.mxu3 %v4349_v49  ;;  %7136 = vst [vmem:[#allocation40_spill] sm:$0xff] %v4473_v54  ;;  %578 = vmatpush.msra.mxu1 %v4473_v54  ;;  %v4494_v54 = vld [vmem:[#allocation5 + $0xf8] sm:$0xff] }
  0x56   :  { %459 = vmatpush.msra.mxu0 %v4376_v55  ;;  %420 = vmatpush.msra.mxu2 %v4334_v45  ;;  %v4464_v55 = vld [vmem:[%s6800_s3] sm:$0x7]  ;;  %7141 = vst [vmem:[#allocation45_spill] sm:$0xff] %v4486_v63 }
  0x57   :  { %v4476_v50 = vperm.slane %v4464_v55, 1  ;;  %579 = vmatpush.msra.mxu1 %v4481_v62  ;;  %608 = vmatpush.msra.mxu3 %v4486_v63  ;;  %7144 = vst [vmem:[#allocation48_spill] sm:$0xff] %v4494_v54  ;;  %v4501_v40 = vperm.slane %v4464_v55, 0  ;;  %v4510_v62 = vld [vmem:[#allocation5 + $0x30] sm:$0xff]  ;;  %v4513_v63 = vld [vmem:[#allocation5 + $0xe0] sm:$0xff] }
  0x58   :  { %460 = vmatpush.msra.mxu0 %v4382_v56  ;;  %588 = vmatpush.msrb.mxu2 %v4453_v44  ;;  %v4459_v56 = vld [vmem:[#allocation5 + $0x158] sm:$0xff]  ;;  %7148 = vst [vmem:[#allocation52_spill] sm:$0xff] %v4510_v62  ;;  %v4679_v44 = vld [vmem:[#allocation7 + $0x68] sm:$0xff] }
  0x59   :  { %7133 = vst [vmem:[#allocation37_spill] sm:$0xff] %v4459_v56 }
  0x5a   :  { %589 = vmatpush.msrb.mxu2 %v4459_v56  ;;  %7137 = vst [vmem:[#allocation41_spill] sm:$0xff] %v4476_v50  ;;  %v4496_v56 = vld [vmem:[#allocation5 + $0x160] sm:$0xff]  ;;  %676 = vmatpush.msrb.mxu0 %v4488_v61 }
  0x5b   :  { %7145 = vst [vmem:[#allocation49_spill] sm:$0xff] %v4496_v56  ;;  %609 = vmatpush.msra.mxu3 %v4496_v56  ;;  %v4528_v56 = vld [vmem:[#allocation5 + $0x130] sm:$0xff]  ;;  %v4530_v61 = vld [vmem:[#allocation7 + $0x120] sm:$0xff] }
  0x5c   :  { %590 = vmatpush.msrb.mxu2 %v4470_v13  ;;  %v4490_v13 = vld [vmem:[#allocation5 + $0x48] sm:$0xff]  ;;  %7147 = vst [vmem:[#allocation51_spill] sm:$0xff] %v4501_v40  ;;  %677 = vmatpush.msrb.mxu0 %v4498_v52 }
  0x5d   :  { %7143 = vst [vmem:[#allocation47_spill] sm:$0xff] %v4490_v13  ;;  %580 = vmatpush.msra.mxu1 %v4490_v13  ;;  %610 = vmatpush.msra.mxu3 %v4515_v60  ;;  %v4522_v13 = vld [vmem:[#allocation5 + $0x18] sm:$0xff] }
  0x5e   :  { %591 = vmatpush.msrb.mxu2 %v4479_v47  ;;  %7149 = vst [vmem:[#allocation53_spill] sm:$0xff] %v4513_v63 }
  0x5f   :  { %581 = vmatpush.msra.mxu1 %v4510_v62  ;;  %7152 = vst [vmem:[#allocation56_spill] sm:$0xff] %v4522_v13  ;;  %v4526_v62 = vld [vmem:[#allocation5 + $0xc8] sm:$0xff]  ;;  %611 = vmatpush.msra.mxu3 %v4528_v56 }
  0x60   :  { %592 = vmatpush.msrb.mxu2 %v4483_v53  ;;  %v4517_v53 = vld [vmem:[#allocation7 + $0x138] sm:$0xff]  ;;  %7153 = vst [vmem:[#allocation57_spill] sm:$0xff] %v4526_v62 }
  0x61   :  { %7151 = vst [vmem:[#allocation55_spill] sm:$0xff] %v4517_v53  ;;  %678 = vmatpush.msrb.mxu0 %v4517_v53  ;;  %582 = vmatpush.msra.mxu1 %v4522_v13  ;;  %v4542_v13 = vld [vmem:[#allocation7 + $0x108] sm:$0xff] }
  0x62   :  { %593 = vmatpush.msrb.mxu2 %v4494_v54  ;;  %7154 = vst [vmem:[#allocation58_spill] sm:$0xff] %v4528_v56  ;;  %v4546_v56 = vld [vmem:[#allocation7 + $0x170] sm:$0xff] }
  0x63   :  { %7155 = vst [vmem:[#allocation59_spill] sm:$0xff] %v4530_v61  ;;  %679 = vmatpush.msrb.mxu0 %v4530_v61  ;;  %v4554_v61 = vld [vmem:[#allocation7 + $0xf0] sm:$0xff] }
  0x64   :  { %594 = vmatpush.msrb.mxu2 %v4513_v63  ;;  %7159 = vst [vmem:[#allocation63_spill] sm:$0xff] %v4542_v13  ;;  %v4670_v63 = vld [vmem:[#allocation7 + $0x80] sm:$0xff]  ;;  %v4675_v54 = vld [vmem:[#allocation5 + $0x10] sm:$0xff] }
  0x65   :  { %7160 = vst [vmem:[#allocation64_spill] sm:$0xff] %v4546_v56  ;;  %680 = vmatpush.msrb.mxu0 %v4542_v13 }
  0x66   :  { %595 = vmatpush.msrb.mxu2 %v4526_v62  ;;  %7163 = vst [vmem:[#allocation67_spill] sm:$0xff] %v4554_v61 }
  0x67   :  { %681 = vmatpush.msrb.mxu0 %v4554_v61  ;;  %v4574_v61 = vld [vmem:[#allocation5 + $0x68] sm:$0xff]  ;;  %7197 = vst [vmem:[#allocation101_spill] sm:$0xff] %v4670_v63 }
  0x68   :  { %7169 = vst [vmem:[#allocation73_spill] sm:$0xff] %v4574_v61 }
  0x69   :  { %7198 = vst [vmem:[#allocation102_spill] sm:$0xff] %v4675_v54 }
  0x6a   :  { %7200 = vst [vmem:[#allocation104_spill] sm:$0xff] %v4679_v44 }
  0x96   :  { %v138_v49 = vpop.f32.mrf.mxu0 }
  0x9a   :  { %v158_v43 = vpop.f32.mrf.mxu1 }
  0x9b   :  { %v159_v47 = vadd.f32 %v158_v43, %v4476_v50  ;;  %v139_v43 = vadd.f32 %v138_v49, %v4501_v40  ;;  %v4534_v49 = vld [vmem:[#allocation5] sm:$0xff] }
  0x9c   :  { %7156 = vst [vmem:[#allocation60_spill] sm:$0xff] %v4534_v49  ;;  %583 = vmatpush.msra.mxu1 %v4534_v49  ;;  %v4552_v49 = vld [vmem:[#allocation5 + $0x100] sm:$0xff] }
  0x9d   :  { %7162 = vst [vmem:[#allocation66_spill] sm:$0xff] %v4552_v49 }
  0x9e   :  { %696 = vmatpush.msrb.mxu1 %v4546_v56  ;;  %v4566_v56 = vld [vmem:[#allocation7 + $0xd8] sm:$0xff] }
  0x9f   :  { %7167 = vst [vmem:[#allocation71_spill] sm:$0xff] %v4566_v56  ;;  %682 = vmatpush.msrb.mxu0 %v4566_v56  ;;  %v4586_v56 = vld [vmem:[#allocation5 + $0x50] sm:$0xff] }
  0xa0   :  { %7173 = vst [vmem:[#allocation77_spill] sm:$0xff] %v4586_v56 }
  0xa6   :  { %v178_v59 = vpop.f32.mrf.mxu2 }
  0xb6   :  { %v266_v50 = vpop.f32.mrf.mxu0 }
  0xb7   :  { %v290_v52 = vadd.f32 %v266_v50, %v159_v47  ;;  %v246_v40 = vpop.f32.mrf.mxu3  ;;  %v4538_v47 = vld [vmem:[#allocation5 + $0xb0] sm:$0xff]  ;;  %v4540_v50 = vld [vmem:[#allocation5 + $0x118] sm:$0xff] }
  0xb8   :  { %7157 = vst [vmem:[#allocation61_spill] sm:$0xff] %v4538_v47  ;;  %v289_v53 = vadd.f32 %v246_v40, %v139_v43  ;;  %596 = vmatpush.msrb.mxu2 %v4538_v47  ;;  %612 = vmatpush.msra.mxu3 %v4540_v50  ;;  %v4558_v40 = vld [vmem:[#allocation7 + $0x158] sm:$0xff]  ;;  %v4564_v43 = vld [vmem:[#allocation5 + $0xe8] sm:$0xff]  ;;  %v4666_v47 = vld [vmem:[%s6801_s4] ss:$0 sm:$0xff] }
  0xb9   :  { %v3318_v60 = vmul.f32 -1.442695, %v290_v52  ;;  %7158 = vst [vmem:[#allocation62_spill] sm:$0xff] %v4540_v50  ;;  %v4550_v52 = vld [vmem:[#allocation5 + $0x98] sm:$0xff]  ;;  %697 = vmatpush.msrb.mxu1 %v4558_v40 }
  0xba   :  { %7161 = vst [vmem:[#allocation65_spill] sm:$0xff] %v4550_v52  ;;  %v3317_v62 = vmul.f32 -1.442695, %v289_v53  ;;  %597 = vmatpush.msrb.mxu2 %v4550_v52  ;;  %613 = vmatpush.msra.mxu3 %v4552_v49  ;;  %v4570_v53 = vld [vmem:[#allocation7 + $0x140] sm:$0xff]  ;;  %v4618_v50 = vld [vmem:[#allocation7 + $0x78] sm:$0xff] }
  0xbb   :  { %3390 = vpow2.f32 %v3318_v60  ;;  %7164 = vst [vmem:[#allocation68_spill] sm:$0xff] %v4558_v40  ;;  %v4562_v60 = vld [vmem:[#allocation5 + $0x80] sm:$0xff]  ;;  %698 = vmatpush.msrb.mxu1 %v4570_v53  ;;  %v4576_v40 = vld [vmem:[#allocation5 + $0xd0] sm:$0xff] }
  0xbc   :  { %7165 = vst [vmem:[#allocation69_spill] sm:$0xff] %v4562_v60  ;;  %3392 = vpow2.f32 %v3317_v62  ;;  %598 = vmatpush.msrb.mxu2 %v4562_v60  ;;  %614 = vmatpush.msra.mxu3 %v4564_v43  ;;  %v4578_v49 = vld [vmem:[#allocation7 + $0xc0] sm:$0xff]  ;;  %v4582_v62 = vld [vmem:[#allocation7 + $0x128] sm:$0xff] }
  0xbd   :  { %7166 = vst [vmem:[#allocation70_spill] sm:$0xff] %v4564_v43  ;;  %683 = vmatpush.msrb.mxu0 %v4578_v49  ;;  %699 = vmatpush.msrb.mxu1 %v4582_v62  ;;  %v4590_v43 = vld [vmem:[#allocation7 + $0xa8] sm:$0xff] }
  0xbe   :  { %7168 = vst [vmem:[#allocation72_spill] sm:$0xff] %v4570_v53  ;;  %599 = vmatpush.msrb.mxu2 %v4574_v61  ;;  %615 = vmatpush.msra.mxu3 %v4576_v40  ;;  %v4588_v53 = vld [vmem:[#allocation5 + $0xb8] sm:$0xff]  ;;  %v4594_v61 = vld [vmem:[#allocation7 + $0x110] sm:$0xff] }
  0xbf   :  { %7170 = vst [vmem:[#allocation74_spill] sm:$0xff] %v4576_v40  ;;  %684 = vmatpush.msrb.mxu0 %v4590_v43  ;;  %700 = vmatpush.msrb.mxu1 %v4594_v61  ;;  %v4598_v40 = vld [vmem:[#allocation5 + $0x38] sm:$0xff] }
  0xc0   :  { %7171 = vst [vmem:[#allocation75_spill] sm:$0xff] %v4578_v49  ;;  %600 = vmatpush.msrb.mxu2 %v4586_v56  ;;  %616 = vmatpush.msra.mxu3 %v4588_v53  ;;  %v4600_v49 = vld [vmem:[#allocation5 + $0xa0] sm:$0xff] }
  0xc1   :  { %7172 = vst [vmem:[#allocation76_spill] sm:$0xff] %v4582_v62  ;;  %v3391_v60 = vpop.eup %3390  ;;  %v4602_v62 = vld [vmem:[#allocation7 + $0x90] sm:$0xff] }
  0xc2   :  { %7174 = vst [vmem:[#allocation78_spill] sm:$0xff] %v4588_v53  ;;  %v3393_v13 = vpop.eup %3392  ;;  %v4604_v52 = vadd.f32 1.0, %v3391_v60  ;;  %601 = vmatpush.msrb.mxu2 %v4598_v40  ;;  %617 = vmatpush.msra.mxu3 %v4600_v49  ;;  %v4608_v53 = vld [vmem:[#allocation7 + $0xf8] sm:$0xff]  ;;  %v4622_v60 = vld [vmem:[#allocation7 + $0xe0] sm:$0xff] }
  0xc3   :  { %7175 = vst [vmem:[#allocation79_spill] sm:$0xff] %v4590_v43  ;;  %v4610_v56 = vadd.f32 1.0, %v3393_v13  ;;  %685 = vmatpush.msrb.mxu0 %v4602_v62  ;;  %701 = vmatpush.msrb.mxu1 %v4608_v53  ;;  %v4616_v43 = vld [vmem:[#allocation5 + $0x88] sm:$0xff] }
  0xc4   :  { %7176 = vst [vmem:[#allocation80_spill] sm:$0xff] %v4594_v61  ;;  %v4614_v61 = vld [vmem:[#allocation5 + $0x20] sm:$0xff]  ;;  %618 = vmatpush.msra.mxu3 %v4616_v43  ;;  %v4627_v13 = vld [vmem:[#allocation5 + $0x8] sm:$0xff]  ;;  %vm319_vm5 = vweird.f32 %v4604_v52 }
  0xc5   :  { %7177 = vst [vmem:[#allocation81_spill] sm:$0xff] %v4598_v40  ;;  %602 = vmatpush.msrb.mxu2 %v4614_v61  ;;  %3394 = vrcp.f32 %v4610_v56  ;;  %686 = vmatpush.msrb.mxu0 %v4618_v50  ;;  %vm304_vm2 = vweird.f32 %v4610_v56 }
  0xc6   :  { %7178 = vst [vmem:[#allocation82_spill] sm:$0xff] %v4600_v49  ;;  %702 = vmatpush.msrb.mxu1 %v4622_v60  ;;  %3396 = vrcp.f32 %v4604_v52 }
  0xc7   :  { %7179 = vst [vmem:[#allocation83_spill] sm:$0xff] %v4602_v62  ;;  %v4631_v62 = vld [vmem:[#allocation7 + $0x60] sm:$0xff]  ;;  %603 = vmatpush.msrb.mxu2 %v4627_v13 }
  0xc8   :  { %7180 = vst [vmem:[#allocation84_spill] sm:$0xff] %v4608_v53  ;;  %v4629_v53 = vld [vmem:[#allocation5 + $0x70] sm:$0xff]  ;;  %687 = vmatpush.msrb.mxu0 %v4631_v62 }
  0xc9   :  { %7181 = vst [vmem:[#allocation85_spill] sm:$0xff] %v4614_v61  ;;  %619 = vmatpush.msra.mxu3 %v4629_v53  ;;  %v4644_v61 = vld [vmem:[#allocation7 + $0xb0] sm:$0xff] }
  0xca   :  { %7182 = vst [vmem:[#allocation86_spill] sm:$0xff] %v4616_v43  ;;  %v4636_v43 = vld [vmem:[#allocation7 + $0xc8] sm:$0xff] }
  0xcb   :  { %7183 = vst [vmem:[#allocation87_spill] sm:$0xff] %v4618_v50  ;;  %703 = vmatpush.msrb.mxu1 %v4636_v43  ;;  %v4640_v50 = vld [vmem:[#allocation5 + $0x58] sm:$0xff]  ;;  %v3395_v49 = vpop.eup %3394 }
  0xcc   :  { %7184 = vst [vmem:[#allocation88_spill] sm:$0xff] %v4622_v60  ;;  %v4642_v60 = vld [vmem:[#allocation7 + $0x48] sm:$0xff]  ;;  %620 = vmatpush.msra.mxu3 %v4640_v50  ;;  %v300_v40 = vmul.f32 %v3395_v49, %v4610_v56  ;;  %vm305_vm1 = vweird.f32 %v3395_v49 }
  0xcd   :  { %7185 = vst [vmem:[#allocation89_spill] sm:$0xff] %v4627_v13  ;;  %688 = vmatpush.msrb.mxu0 %v4642_v60  ;;  %704 = vmatpush.msrb.mxu1 %v4644_v61  ;;  %v4651_v13 = vld [vmem:[#allocation7 + $0x30] sm:$0xff]  ;;  %vm306_vm3 = vmor %vm304_vm2, %vm305_vm1 }
  0xce   :  { %7186 = vst [vmem:[#allocation90_spill] sm:$0xff] %v4629_v53  ;;  %v4649_v53 = vld [vmem:[#allocation5 + $0x40] sm:$0xff] }
  0xcf   :  { %7187 = vst [vmem:[#allocation91_spill] sm:$0xff] %v4631_v62  ;;  %v4653_v62 = vld [vmem:[#allocation7 + $0x98] sm:$0xff]  ;;  %621 = vmatpush.msra.mxu3 %v4649_v53  ;;  %689 = vmatpush.msrb.mxu0 %v4651_v13 }
  0xd0   :  { %7188 = vst [vmem:[#allocation92_spill] sm:$0xff] %v4636_v43  ;;  %v3397_v43 = vpop.eup %3396  ;;  %705 = vmatpush.msrb.mxu1 %v4653_v62 }
  0xd1   :  { %7189 = vst [vmem:[#allocation93_spill] sm:$0xff] %v4640_v50  ;;  %v4659_v50 = vld [vmem:[#allocation5 + $0x28] sm:$0xff]  ;;  %vm320_vm6 = vweird.f32 %v3397_v43 }
  0xd2   :  { %7190 = vst [vmem:[#allocation94_spill] sm:$0xff] %v4642_v60  ;;  %v4661_v60 = vld [vmem:[#allocation7 + $0x18] sm:$0xff]  ;;  %622 = vmatpush.msra.mxu3 %v4659_v50  ;;  %706 = vmatpush.msrb.mxu1 %v4670_v63  ;;  %v4688_v63 = vld [vmem:[#allocation7 + $0x50] sm:$0xff]  ;;  %vm321_vm7 = vmor %vm319_vm5, %vm320_vm6 }
  0xd3   :  { %7191 = vst [vmem:[#allocation95_spill] sm:$0xff] %v4644_v61  ;;  %v301_v61 = vsub.f32 1.0, %v300_v40  ;;  %690 = vmatpush.msrb.mxu0 %v4661_v60  ;;  %v4677_v40 = vld [vmem:[#allocation7] sm:$0xff] }
  0xd4   :  { %7192 = vst [vmem:[#allocation96_spill] sm:$0xff] %v4649_v53  ;;  %v286_v53 = vpop.f32.mrf.mxu1  ;;  %623 = vmatpush.msra.mxu3 %v4675_v54  ;;  %707 = vmatpush.msrb.mxu1 %v4679_v44  ;;  %v4697_v44 = vld [vmem:[#allocation7 + $0x20] sm:$0xff] }
  0xd5   :  { %7193 = vst [vmem:[#allocation97_spill] sm:$0xff] %v4651_v13  ;;  %v315_v13 = vmul.f32 %v3397_v43, %v4604_v52  ;;  %v302_v51 = vmul.f32 %v3395_v49, %v301_v61  ;;  %691 = vmatpush.msrb.mxu0 %v4677_v40  ;;  %v333_v61 = vadd.f32 %v4666_v47, %v286_v53  ;;  %v4700_v53 = vld [vmem:[#allocation7 + $0x8] sm:$0xff] }
  0xd6   :  { %7194 = vst [vmem:[#allocation98_spill] sm:$0xff] %v4653_v62  ;;  %v310_v62 = vand.u32 2147483648, %v4610_v56  ;;  %708 = vmatpush.msrb.mxu1 %v4688_v63 }
  0xd7   :  { %7195 = vst [vmem:[#allocation99_spill] sm:$0xff] %v4659_v50  ;;  %v308_v50 = vand.u32 2147483647, %v4610_v56  ;;  %v303_v37 = vadd.f32 %v3395_v49, %v302_v51  ;;  %v316_v48 = vsub.f32 1.0, %v315_v13 }
  0xd8   :  { %7196 = vst [vmem:[#allocation100_spill] sm:$0xff] %v4661_v60  ;;  %v4683_v60 = vperm.slane %v4464_v55, 2  ;;  %v311_v45 = vor.u32 1.1754944e-38, %v310_v62  ;;  %v4693_v55 = vld [vmem:[#allocation7 + $0x38] sm:$0xff] }
  0xd9   :  { %7199 = vst [vmem:[#allocation103_spill] sm:$0xff] %v4677_v40  ;;  %v307_v54 = vsel %vm306_vm3, %v3395_v49, %v303_v37  ;;  %vm309_vm4 = vcmp.eq.f32.partialorder %v308_v50, 8.507059e+37  ;;  %709 = vmatpush.msrb.mxu1 %v4693_v55  ;;  %v317_v56 = vmul.f32 %v3397_v43, %v316_v48  ;;  %v325_v37 = vand.u32 2147483648, %v4604_v52 }
  0xda   :  { %7201 = vst [vmem:[#allocation105_spill] sm:$0xff] %v4683_v60  ;;  %v179_v40 = vadd.f32 %v178_v59, %v4683_v60  ;;  %v312_v58 = vsel %vm309_vm4, %v311_v45, %v307_v54  ;;  %v323_v54 = vand.u32 2147483647, %v4604_v52  ;;  %v4714_v52 = vld [vmem:[#allocation7 + $0x160] sm:$0xff] }
  0xdb   :  { %v334_v51 = vmul.f32 %v333_v61, %v312_v58  ;;  %710 = vmatpush.msrb.mxu1 %v4697_v44  ;;  %v318_v45 = vadd.f32 %v3397_v43, %v317_v56  ;;  %v326_v59 = vor.u32 1.1754944e-38, %v325_v37  ;;  %v4708_v61 = vld [vmem:[#allocation7 + $0x178] sm:$0xff] }
  0xdc   :  { %vm324_vm8 = vcmp.eq.f32.partialorder %v323_v54, 8.507059e+37  ;;  %v4729_v56 = vld [vmem:[#allocation7 + $0x118] sm:$0xff]  ;;  %v7235_v54 = vld [vmem:[#allocation50_spill] sm:$0xff] }
  0xdd   :  { %v335_v62 = vadd.f32 %v334_v51, %v179_v40  ;;  %711 = vmatpush.msrb.mxu1 %v4700_v53  ;;  %v322_v58 = vsel %vm321_vm7, %v3397_v43, %v318_v45  ;;  %v4718_v43 = vld [vmem:[#allocation7 + $0x148] sm:$0xff]  ;;  %v4724_v51 = vld [vmem:[#allocation7 + $0x130] sm:$0xff]  ;;  %v7233_v37 = vld [vmem:[#allocation53_spill] sm:$0xff] }
  0xde   :  { %v327_v50 = vsel %vm324_vm8, %v326_v59, %v322_v58  ;;  %v7234_v45 = vld [vmem:[#allocation38_spill] sm:$0xff]  ;;  %v7237_v58 = vld [vmem:[#allocation57_spill] sm:$0xff] }
  0xdf   :  { %3398 = vtanh.f32 %v335_v62  ;;  %v7232_v62 = vld [vmem:[#allocation49_spill] sm:$0xff]  ;;  %v7236_v59 = vld [vmem:[#allocation54_spill] sm:$0xff] }
  0xe5   :  { %v3399_v48 = vpop.eup %3398 }
  0xe6   :  { %v337_v49 = vsub.f32 0.0, %v3399_v48 }
  0xe8   :  { %v338_v13 = vmul.f32 %v337_v49, %v327_v50  ;;  %v7239_v49 = vld [vmem:[#allocation55_spill] sm:$0xff]  ;;  %v7240_v50 = vld [vmem:[#allocation58_spill] sm:$0xff] }
  0xea   :  { %v4706_v40 = vadd.f32 %v3399_v48, %v338_v13  ;;  %v7238_v48 = vld [vmem:[#allocation40_spill] sm:$0xff]  ;;  %v7241_v13 = vld [vmem:[#allocation61_spill] sm:$0xff] }
  0xec   :  { %421 = vmatmul.f32.vlgmr.msra.gmra.mxu2 %v4706_v40  ;;  %441 = vmatmul.f32.vlgmr.msrb.gmra.mxu3 %v4706_v40 }
  0xed   :  { %461 = vmatmul.f32.vlgmr.msra.gmra.mxu0 %v4706_v40  ;;  %584 = vmatmul.f32.vlgmr.msra.gmra.mxu1 %v4706_v40 }
  0xee   :  { %716 = vmatpush.msra.mxu2 %v4708_v61  ;;  %822 = vmatpush.msra.mxu1 %v4187_v2  ;;  %v4736_v2 = vld [vmem:[#allocation7 + $0x100] sm:$0xff] }
  0xef   :  { %868 = vmatpush.msrb.mxu3 %v4180_v0  ;;  %842 = vmatpush.msra.mxu0 %v4231_v15  ;;  %v7202_v0 = vmov 0.0   ;;  %v7204_v15 = vld [vmem:[#allocation18_spill] sm:$0xff] }
  0xf0   :  { %717 = vmatpush.msra.mxu2 %v4714_v52  ;;  %823 = vmatpush.msra.mxu1 %v4194_v3  ;;  %v4746_v3 = vld [vmem:[#allocation7 + $0xd0] sm:$0xff] }
  0xf1   :  { %869 = vmatpush.msrb.mxu3 %v4182_v1  ;;  %843 = vmatpush.msra.mxu0 %v4240_v17  ;;  %v4740_v1 = vld [vmem:[#allocation7 + $0xe8] sm:$0xff] }
  0xf2   :  { %718 = vmatpush.msra.mxu2 %v4718_v43  ;;  %v7206_v17 = vld [vmem:[#allocation15_spill] sm:$0xff] }
  0xf3   :  { %870 = vmatpush.msrb.mxu3 %v4196_v4  ;;  %v4752_v4 = vld [vmem:[#allocation7 + $0xb8] sm:$0xff] }
  0xf4   :  { %719 = vmatpush.msra.mxu2 %v4724_v51  ;;  %624 = vmatmul.f32.vlgmr.msra.gmra.mxu3 %v4706_v40 }
  0xf5   :  { %604 = vmatmul.f32.vlgmr.msrb.gmra.mxu2 %v4706_v40  ;;  %692 = vmatmul.f32.vlgmr.msrb.gmra.mxu0 %v7202_v0 }
  0xf6   :  { %720 = vmatpush.msra.mxu2 %v4729_v56  ;;  %712 = vmatmul.f32.vlgmr.msrb.gmra.mxu1 %v7202_v0 }
  0xf7   :  { %862 = vmatpush.msrb.mxu1 %v4270_v26  ;;  %871 = vmatpush.msrb.mxu3 %v4204_v7  ;;  %v3327_v7 = vld [vmem:[%s6797_s0 + $0x10] sm:$0xff]  ;;  %v7215_v26 = vld [vmem:[#allocation17_spill] sm:$0xff] }
  0xf8   :  { %721 = vmatpush.msra.mxu2 %v4736_v2  ;;  %888 = vmatpush.msrb.mxu0 %v4198_v5  ;;  %v4760_v5 = vld [vmem:[#allocation7 + $0xa0] sm:$0xff] }
  0xf9   :  { %863 = vmatpush.msrb.mxu1 %v4279_v28  ;;  %872 = vmatpush.msrb.mxu3 %v4210_v9  ;;  %v4778_v9 = vld [vmem:[#allocation7 + $0x58] sm:$0xff]  ;;  %v7217_v28 = vld [vmem:[#allocation39_spill] sm:$0xff] }
  0xfa   :  { %722 = vmatpush.msra.mxu2 %v4740_v1  ;;  %889 = vmatpush.msrb.mxu0 %v4202_v6  ;;  %v4766_v6 = vld [vmem:[#allocation7 + $0x88] sm:$0xff] }
  0xfb   :  { %873 = vmatpush.msrb.mxu3 %v4216_v11  ;;  %v4790_v11 = vld [vmem:[#allocation7 + $0x28] sm:$0xff] }
  0xfc   :  { %723 = vmatpush.msra.mxu2 %v4746_v3  ;;  %890 = vmatpush.msrb.mxu0 %v4208_v8  ;;  %v4772_v8 = vld [vmem:[#allocation7 + $0x70] sm:$0xff] }
  0xfd   :  { %874 = vmatpush.msrb.mxu3 %v4225_v14  ;;  %3329 = vmatmul.msk.f32.vlgmr.msra.gmra.mxu0 %vm117_vm0, %v3327_v7  ;;  %v7203_v14 = vld [vmem:[#allocation28_spill] sm:$0xff] }
  0xfe   :  { %724 = vmatpush.msra.mxu2 %v4752_v4  ;;  %3328 = vmatmul.msk.f32.vlgmr.msra.gmra.mxu1 %vm117_vm0, %v3327_v7 }
  0xff   :  { %908 = vmatpush.msra.mxu1 %v4246_v19  ;;  %875 = vmatpush.msrb.mxu3 %v4242_v18  ;;  %v7207_v18 = vld [vmem:[#allocation29_spill] sm:$0xff]  ;;  %v7208_v19 = vld [vmem:[#allocation22_spill] sm:$0xff] }
 0x100   :  { %725 = vmatpush.msra.mxu2 %v4760_v5  ;;  %891 = vmatpush.msrb.mxu0 %v4214_v10  ;;  %v4784_v10 = vld [vmem:[#allocation7 + $0x40] sm:$0xff] }
 0x101   :  { %909 = vmatpush.msra.mxu1 %v4255_v22  ;;  %876 = vmatpush.msrb.mxu3 %v4251_v21  ;;  %v7210_v21 = vld [vmem:[#allocation30_spill] sm:$0xff]  ;;  %v7211_v22 = vld [vmem:[#allocation16_spill] sm:$0xff] }
 0x102   :  { %726 = vmatpush.msra.mxu2 %v4766_v6  ;;  %892 = vmatpush.msrb.mxu0 %v4220_v12  ;;  %v4796_v12 = vld [vmem:[#allocation7 + $0x10] sm:$0xff] }
 0x103   :  { %910 = vmatpush.msra.mxu1 %v4265_v25  ;;  %877 = vmatpush.msrb.mxu3 %v4261_v24  ;;  %v7213_v24 = vld [vmem:[#allocation37_spill] sm:$0xff]  ;;  %v7214_v25 = vld [vmem:[#allocation31_spill] sm:$0xff] }
 0x104   :  { %727 = vmatpush.msra.mxu2 %v4772_v8  ;;  %893 = vmatpush.msrb.mxu0 %v4234_v16  ;;  %v7205_v16 = vld [vmem:[#allocation20_spill] sm:$0xff] }
 0x105   :  { %911 = vmatpush.msra.mxu1 %v4284_v30  ;;  %878 = vmatpush.msrb.mxu3 %v4281_v29  ;;  %v7218_v29 = vld [vmem:[#allocation32_spill] sm:$0xff]  ;;  %v7219_v30 = vld [vmem:[#allocation19_spill] sm:$0xff] }
 0x106   :  { %728 = vmatpush.msra.mxu2 %v4778_v9  ;;  %894 = vmatpush.msrb.mxu0 %v4249_v20  ;;  %v7209_v20 = vld [vmem:[#allocation35_spill] sm:$0xff] }
 0x107   :  { %912 = vmatpush.msra.mxu1 %v4294_v33  ;;  %879 = vmatpush.msrb.mxu3 %v4291_v32  ;;  %v7221_v32 = vld [vmem:[#allocation42_spill] sm:$0xff]  ;;  %v7222_v33 = vld [vmem:[#allocation33_spill] sm:$0xff] }
 0x108   :  { %729 = vmatpush.msra.mxu2 %v4784_v10  ;;  %895 = vmatpush.msrb.mxu0 %v4258_v23  ;;  %v7212_v23 = vld [vmem:[#allocation23_spill] sm:$0xff] }
 0x109   :  { %913 = vmatpush.msra.mxu1 %v4304_v36  ;;  %880 = vmatpush.msrb.mxu3 %v4301_v35  ;;  %v7224_v35 = vld [vmem:[#allocation26_spill] sm:$0xff]  ;;  %v7225_v36 = vld [vmem:[#allocation44_spill] sm:$0xff] }
 0x10a   :  { %730 = vmatpush.msra.mxu2 %v4790_v11  ;;  %896 = vmatpush.msrb.mxu0 %v4273_v27  ;;  %v7216_v27 = vld [vmem:[#allocation24_spill] sm:$0xff] }
 0x10b   :  { %914 = vmatpush.msra.mxu1 %v4314_v39  ;;  %881 = vmatpush.msrb.mxu3 %v4311_v38  ;;  %v7226_v38 = vld [vmem:[#allocation34_spill] sm:$0xff]  ;;  %v7227_v39 = vld [vmem:[#allocation45_spill] sm:$0xff] }
 0x10c   :  { %731 = vmatpush.msra.mxu2 %v4796_v12  ;;  %897 = vmatpush.msrb.mxu0 %v4288_v31  ;;  %v7220_v31 = vld [vmem:[#allocation25_spill] sm:$0xff] }
 0x10d   :  { %732 = vmatmul.f32.vlgmr.msra.gmra.mxu2 %v7202_v0  ;;  %915 = vmatpush.msra.mxu1 %v4324_v42  ;;  %v7229_v42 = vld [vmem:[#allocation48_spill] sm:$0xff]  ;;  %v7242_v0 = vld [vmem:[#allocation43_spill] sm:$0xff] }
 0x10e   :  { %975 = vmatpush.msrb.mxu2 %v4429_v57  ;;  %882 = vmatpush.msrb.mxu3 %v4321_v41  ;;  %v7228_v41 = vld [vmem:[#allocation27_spill] sm:$0xff]  ;;  %v7231_v57 = vld [vmem:[#allocation46_spill] sm:$0xff] }
 0x10f   :  { %916 = vmatpush.msra.mxu1 %v4337_v46  ;;  %898 = vmatpush.msrb.mxu0 %v4298_v34  ;;  %v7223_v34 = vld [vmem:[#allocation21_spill] sm:$0xff]  ;;  %v7230_v46 = vld [vmem:[#allocation36_spill] sm:$0xff] }
 0x110   :  { %976 = vmatpush.msrb.mxu2 %v7203_v14  ;;  %883 = vmatpush.msrb.mxu3 %v7204_v15  ;;  %v7244_v14 = vld [vmem:[#allocation62_spill] sm:$0xff]  ;;  %v7245_v15 = vld [vmem:[#allocation65_spill] sm:$0xff] }
 0x111   :  { %917 = vmatpush.msra.mxu1 %v7205_v16  ;;  %899 = vmatpush.msrb.mxu0 %v7206_v17  ;;  %v7246_v16 = vld [vmem:[#allocation47_spill] sm:$0xff] }
 0x112   :  { %977 = vmatpush.msrb.mxu2 %v7207_v18  ;;  %3330 = vmatmul.msk.f32.vlgmr.msrb.gmra.mxu1 %vm117_vm0, %v3327_v7  ;;  %v7243_v7 = vld [vmem:[#allocation59_spill] sm:$0xff]  ;;  %v7248_v18 = vld [vmem:[#allocation66_spill] sm:$0xff] }
 0x113   :  { %918 = vmatpush.msra.mxu1 %v7208_v19  ;;  %995 = vmatpush.msra.mxu3 %v7209_v20  ;;  %v7247_v17 = vld [vmem:[#allocation63_spill] sm:$0xff]  ;;  %v7249_v19 = vld [vmem:[#allocation69_spill] sm:$0xff]  ;;  %v7250_v20 = vld [vmem:[#allocation52_spill] sm:$0xff] }
 0x114   :  { %978 = vmatpush.msrb.mxu2 %v7210_v21  ;;  %900 = vmatpush.msrb.mxu0 %v7211_v22  ;;  %v7251_v21 = vld [vmem:[#allocation67_spill] sm:$0xff]  ;;  %v7252_v22 = vld [vmem:[#allocation70_spill] sm:$0xff] }
 0x115   :  { %919 = vmatpush.msra.mxu1 %v7212_v23  ;;  %996 = vmatpush.msra.mxu3 %v7213_v24  ;;  %v7253_v23 = vld [vmem:[#allocation73_spill] sm:$0xff]  ;;  %v7254_v24 = vld [vmem:[#allocation56_spill] sm:$0xff] }
 0x116   :  { %979 = vmatpush.msrb.mxu2 %v7214_v25  ;;  %901 = vmatpush.msrb.mxu0 %v7215_v26  ;;  %v7255_v25 = vld [vmem:[#allocation71_spill] sm:$0xff]  ;;  %v7256_v26 = vld [vmem:[#allocation74_spill] sm:$0xff] }
 0x117   :  { %920 = vmatpush.msra.mxu1 %v7216_v27  ;;  %997 = vmatpush.msra.mxu3 %v7217_v28  ;;  %v7257_v27 = vld [vmem:[#allocation77_spill] sm:$0xff]  ;;  %v7258_v28 = vld [vmem:[#allocation60_spill] sm:$0xff] }
 0x118   :  { %980 = vmatpush.msrb.mxu2 %v7218_v29  ;;  %902 = vmatpush.msrb.mxu0 %v7219_v30  ;;  %v7259_v29 = vld [vmem:[#allocation75_spill] sm:$0xff]  ;;  %v7260_v30 = vld [vmem:[#allocation64_spill] sm:$0xff] }
 0x119   :  { %921 = vmatpush.msra.mxu1 %v7220_v31  ;;  %998 = vmatpush.msra.mxu3 %v7221_v32  ;;  %v7261_v31 = vld [vmem:[#allocation78_spill] sm:$0xff]  ;;  %v7262_v32 = vld [vmem:[#allocation79_spill] sm:$0xff] }
 0x11a   :  { %981 = vmatpush.msrb.mxu2 %v7222_v33  ;;  %903 = vmatpush.msrb.mxu0 %v7223_v34  ;;  %v7263_v33 = vld [vmem:[#allocation81_spill] sm:$0xff]  ;;  %v7264_v34 = vld [vmem:[#allocation68_spill] sm:$0xff] }
 0x11b   :  { %922 = vmatpush.msra.mxu1 %v7224_v35  ;;  %999 = vmatpush.msra.mxu3 %v7225_v36  ;;  %v7265_v35 = vld [vmem:[#allocation82_spill] sm:$0xff]  ;;  %v7266_v36 = vld [vmem:[#allocation83_spill] sm:$0xff] }
 0x11c   :  { %982 = vmatpush.msrb.mxu2 %v7226_v38  ;;  %1015 = vmatpush.msra.mxu0 %v7227_v39  ;;  %v7267_v38 = vld [vmem:[#allocation85_spill] sm:$0xff]  ;;  %v7268_v39 = vld [vmem:[#allocation72_spill] sm:$0xff] }
 0x11d   :  { %923 = vmatpush.msra.mxu1 %v7228_v41  ;;  %1000 = vmatpush.msra.mxu3 %v7229_v42  ;;  %v7269_v41 = vld [vmem:[#allocation86_spill] sm:$0xff]  ;;  %v7270_v42 = vld [vmem:[#allocation87_spill] sm:$0xff] }
 0x11e   :  { %983 = vmatpush.msrb.mxu2 %v7230_v46  ;;  %1016 = vmatpush.msra.mxu0 %v7232_v62  ;;  %v7271_v46 = vld [vmem:[#allocation89_spill] sm:$0xff]  ;;  %v7273_v62 = vld [vmem:[#allocation90_spill] sm:$0xff] }
 0x11f   :  { %1035 = vmatpush.msrb.mxu1 %v7231_v57  ;;  %1001 = vmatpush.msra.mxu3 %v7233_v37  ;;  %v7272_v57 = vld [vmem:[#allocation76_spill] sm:$0xff]  ;;  %v7274_v37 = vld [vmem:[#allocation91_spill] sm:$0xff] }
 0x120   :  { %984 = vmatpush.msrb.mxu2 %v7234_v45  ;;  %1017 = vmatpush.msra.mxu0 %v7236_v59  ;;  %v7275_v45 = vld [vmem:[#allocation80_spill] sm:$0xff]  ;;  %v7277_v59 = vld [vmem:[#allocation94_spill] sm:$0xff] }
 0x121   :  { %1036 = vmatpush.msrb.mxu1 %v7235_v54  ;;  %1002 = vmatpush.msra.mxu3 %v7237_v58  ;;  %v7276_v54 = vld [vmem:[#allocation93_spill] sm:$0xff]  ;;  %v7278_v58 = vld [vmem:[#allocation84_spill] sm:$0xff] }
 0x122   :  { %985 = vmatpush.msrb.mxu2 %v7238_v48  ;;  %1018 = vmatpush.msra.mxu0 %v7240_v50  ;;  %v7279_v48 = vld [vmem:[#allocation96_spill] sm:$0xff] }
 0x123   :  { %1037 = vmatpush.msrb.mxu1 %v7239_v49  ;;  %1003 = vmatpush.msra.mxu3 %v7241_v13  ;;  %v7280_v49 = vld [vmem:[#allocation97_spill] sm:$0xff]  ;;  %v7281_v50 = vld [vmem:[#allocation88_spill] sm:$0xff]  ;;  %v7282_v13 = vld [vmem:[#allocation99_spill] sm:$0xff] }
 0x124   :  { %986 = vmatpush.msrb.mxu2 %v7242_v0  ;;  %1019 = vmatpush.msra.mxu0 %v7244_v14  ;;  %v7283_v0 = vld [vmem:[#allocation100_spill] sm:$0xff]  ;;  %v7285_v14 = vld [vmem:[#allocation102_spill] sm:$0xff] }
 0x125   :  { %1038 = vmatpush.msrb.mxu1 %v7243_v7  ;;  %1004 = vmatpush.msra.mxu3 %v7245_v15  ;;  %v7284_v7 = vld [vmem:[#allocation92_spill] sm:$0xff]  ;;  %v7286_v15 = vld [vmem:[#allocation103_spill] sm:$0xff] }
 0x126   :  { %987 = vmatpush.msrb.mxu2 %v7246_v16  ;;  %1020 = vmatpush.msra.mxu0 %v7248_v18  ;;  %v7287_v16 = vld [vmem:[#allocation95_spill] sm:$0xff]  ;;  %v7289_v18 = vld [vmem:[#allocation101_spill] sm:$0xff] }
 0x127   :  { %1039 = vmatpush.msrb.mxu1 %v7247_v17  ;;  %1005 = vmatpush.msra.mxu3 %v7249_v19  ;;  %v7288_v17 = vld [vmem:[#allocation98_spill] sm:$0xff]  ;;  %v7290_v19 = vld [vmem:[#allocation104_spill] sm:$0xff] }
 0x128   :  { %988 = vmatpush.msrb.mxu2 %v7250_v20  ;;  %1021 = vmatpush.msra.mxu0 %v7252_v22  ;;  %v362_v20 = vpop.f32.mrf.mxu2 }
 0x129   :  { %1040 = vmatpush.msrb.mxu1 %v7251_v21  ;;  %1006 = vmatpush.msra.mxu3 %v7253_v23 }
 0x12a   :  { %989 = vmatpush.msrb.mxu2 %v7254_v24  ;;  %1022 = vmatpush.msra.mxu0 %v7256_v26  ;;  %v4910_v24 = vld [vmem:[%s6804_s7] sm:$0x7]  ;;  %v7292_v26 = vld [vmem:[#allocation51_spill] sm:$0xff] }
 0x12b   :  { %1041 = vmatpush.msrb.mxu1 %v7255_v25  ;;  %1007 = vmatpush.msra.mxu3 %v7257_v27  ;;  %v4913_v25 = vperm.slane %v4910_v24, 0  ;;  %v363_v27 = vadd.f32 %v362_v20, %v7292_v26 }
 0x12c   :  { %990 = vmatpush.msrb.mxu2 %v7258_v28  ;;  %1023 = vmatpush.msra.mxu0 %v7261_v31  ;;  %v7293_v28 = vld [vmem:[#allocation41_spill] sm:$0xff] }
 0x12d   :  { %1042 = vmatpush.msrb.mxu1 %v7259_v29  ;;  %1008 = vmatpush.msra.mxu3 %v7263_v33  ;;  %7291 = vst [vmem:[#allocation28_spill] sm:$0xff] %v4913_v25 }
 0x12e   :  { %1055 = vmatpush.msra.mxu2 %v7260_v30  ;;  %1024 = vmatpush.msra.mxu0 %v7265_v35 }
 0x12f   :  { %1043 = vmatpush.msrb.mxu1 %v7262_v32  ;;  %1009 = vmatpush.msra.mxu3 %v7267_v38 }
 0x130   :  { %1056 = vmatpush.msra.mxu2 %v7264_v34  ;;  %1025 = vmatpush.msra.mxu0 %v7269_v41  ;;  %v382_v21 = vpop.f32.mrf.mxu2 }
 0x131   :  { %1044 = vmatpush.msrb.mxu1 %v7266_v36  ;;  %1010 = vmatpush.msra.mxu3 %v7271_v46  ;;  %v383_v29 = vadd.f32 %v382_v21, %v7293_v28  ;;  %v4919_v46 = vperm.slane %v4910_v24, 1 }
 0x132   :  { %1057 = vmatpush.msra.mxu2 %v7268_v39  ;;  %1026 = vmatpush.msra.mxu0 %v7273_v62 }
 0x133   :  { %1045 = vmatpush.msrb.mxu1 %v7270_v42  ;;  %7294 = vst [vmem:[#allocation18_spill] sm:$0xff] %v4919_v46 }
 0x134   :  { %1058 = vmatpush.msra.mxu2 %v7272_v57  ;;  %1027 = vmatpush.msra.mxu0 %v7276_v54 }
 0x135   :  { %1046 = vmatpush.msrb.mxu1 %v7274_v37 }
 0x136   :  { %1059 = vmatpush.msra.mxu2 %v7275_v45  ;;  %1028 = vmatpush.msra.mxu0 %v7279_v48 }
 0x137   :  { %1047 = vmatpush.msrb.mxu1 %v7277_v59 }
 0x138   :  { %1060 = vmatpush.msra.mxu2 %v7278_v58  ;;  %1029 = vmatpush.msra.mxu0 %v7282_v13  ;;  %v4905_v22 = vpop.f32.mrf.mxu2 }
 0x139   :  { %1048 = vmatpush.msrb.mxu1 %v7280_v49 }
 0x13a   :  { %1061 = vmatpush.msra.mxu2 %v7281_v50  ;;  %1030 = vmatpush.msra.mxu0 %v7285_v14 }
 0x13b   :  { %1049 = vmatpush.msrb.mxu1 %v7283_v0 }
 0x13c   :  { %1062 = vmatpush.msra.mxu2 %v7284_v7 }
 0x13d   :  { %1050 = vmatpush.msrb.mxu1 %v7286_v15 }
 0x13e   :  { %1063 = vmatpush.msra.mxu2 %v7287_v16 }
 0x140   :  { %1064 = vmatpush.msra.mxu2 %v7288_v17 }
 0x142   :  { %1065 = vmatpush.msra.mxu2 %v7289_v18 }
 0x144   :  { %1066 = vmatpush.msra.mxu2 %v7290_v19 }
 0x146   :  { %1067 = vmatpush.msra.mxu2 %v4688_v63 }
 0x148   :  { %1068 = vmatpush.msra.mxu2 %v4693_v55 }
 0x14a   :  { %1069 = vmatpush.msra.mxu2 %v4697_v44 }
 0x14c   :  { %1070 = vmatpush.msra.mxu2 %v4700_v53 }
 0x16a   :  { %v462_v23 = vpop.f32.mrf.mxu0  ;;  %v585_v30 = vpop.f32.mrf.mxu1 }
 0x16b   :  { %v586_v35 = vadd.f32 %v585_v30, %v4913_v25 }
 0x16f   :  { %v422_v31 = vpop.f32.mrf.mxu2  ;;  %v442_v32 = vpop.f32.mrf.mxu3 }
 0x170   :  { %v465_v33 = vadd.f32 %v422_v31, %v363_v27  ;;  %v466_v34 = vadd.f32 %v442_v32, %v383_v29  ;;  %v505_v32 = vadd.f32 %v4666_v47, %v462_v23  ;;  %v4936_v47 = vld [vmem:[%s6805_s8] ss:$0 sm:$0xff]  ;;  %v403_v23 = vadd.f32 %v4905_v22, %v4683_v60 }
 0x172   :  { %v3323_v36 = vmul.f32 -1.442695, %v465_v33  ;;  %v3324_v38 = vmul.f32 -1.442695, %v466_v34  ;;  %v693_v39 = vpop.f32.mrf.mxu0 }
 0x173   :  { %v736_v41 = vadd.f32 %v693_v39, %v586_v35  ;;  %v713_v62 = vpop.f32.mrf.mxu1 }
 0x174   :  { %3400 = vpow2.f32 %v3323_v36 }
 0x175   :  { %3402 = vpow2.f32 %v3324_v38  ;;  %v3325_v42 = vmul.f32 -1.442695, %v736_v41 }
 0x177   :  { %3404 = vpow2.f32 %v3325_v42 }
 0x178   :  { %v605_v57 = vpop.f32.mrf.mxu2 }
 0x179   :  { %v606_v37 = vadd.f32 %v605_v57, %v4919_v46 }
 0x17a   :  { %v3401_v45 = vpop.eup %3400 }
 0x17b   :  { %v3403_v54 = vpop.eup %3402  ;;  %v473_v59 = vadd.f32 1.0, %v3401_v45  ;;  %v737_v58 = vadd.f32 %v713_v62, %v606_v37 }
 0x17c   :  { %v4922_v48 = vadd.f32 1.0, %v3403_v54 }
 0x17d   :  { %v3405_v49 = vpop.eup %3404  ;;  %3406 = vrcp.f32 %v473_v59  ;;  %v3326_v13 = vmul.f32 -1.442695, %v737_v58  ;;  %v484_v17 = vand.u32 2147483647, %v473_v59  ;;  %v486_v21 = vand.u32 2147483648, %v473_v59 }
 0x17e   :  { %3408 = vrcp.f32 %v4922_v48  ;;  %v744_v50 = vadd.f32 1.0, %v3405_v49  ;;  %vm480_vm10 = vweird.f32 %v473_v59  ;;  %vm495_vm3 = vweird.f32 %v4922_v48 }
 0x17f   :  { %vm485_vm11 = vcmp.eq.f32.partialorder %v484_v17, 8.507059e+37  ;;  %v487_v36 = vor.u32 1.1754944e-38, %v486_v21 }
 0x180   :  { %3410 = vrcp.f32 %v744_v50  ;;  %v757_v39 = vand.u32 2147483648, %v744_v50  ;;  %v755_v57 = vand.u32 2147483647, %v744_v50  ;;  %vm751_vm14 = vweird.f32 %v744_v50 }
 0x181   :  { %3412 = vpow2.f32 %v3326_v13  ;;  %v625_v13 = vpop.f32.mrf.mxu3 }
 0x182   :  { %v758_v58 = vor.u32 1.1754944e-38, %v757_v39  ;;  %vm756_vm1 = vcmp.eq.f32.partialorder %v755_v57, 8.507059e+37 }
 0x183   :  { %v3407_v0 = vpop.eup %3406 }
 0x184   :  { %v4925_v7 = vpop.eup %3408  ;;  %v476_v14 = vmul.f32 %v3407_v0, %v473_v59  ;;  %vm481_vm9 = vweird.f32 %v3407_v0  ;;  %v4942_v59 = vperm.slane %v4910_v24, 2 }
 0x185   :  { %v491_v27 = vmul.f32 %v4925_v7, %v4922_v48  ;;  %vm482_vm12 = vmor %vm480_vm10, %vm481_vm9  ;;  %vm496_vm2 = vweird.f32 %v4925_v7 }
 0x186   :  { %v477_v16 = vsub.f32 1.0, %v476_v14  ;;  %v3411_v20 = vpop.eup %3410  ;;  %7295 = vst [vmem:[#allocation20_spill] sm:$0xff] %v4942_v59  ;;  %v626_v24 = vadd.f32 %v625_v13, %v4942_v59  ;;  %vm497_vm4 = vmor %vm495_vm3, %vm496_vm2  ;;  %v800_v13 = vld [vmem:[#allocation8 + $0x68] sm:$0xff] }
 0x187   :  { %v3413_v29 = vpop.eup %3412  ;;  %v747_v31 = vmul.f32 %v3411_v20, %v744_v50  ;;  %v492_v38 = vsub.f32 1.0, %v491_v27  ;;  %vm752_vm13 = vweird.f32 %v3411_v20 }
 0x188   :  { %v478_v30 = vmul.f32 %v3407_v0, %v477_v16  ;;  %v4930_v33 = vadd.f32 1.0, %v3413_v29  ;;  %vm753_vm15 = vmor %vm751_vm14, %vm752_vm13  ;;  %v501_v29 = vand.u32 2147483648, %v4922_v48 }
 0x189   :  { %v748_v35 = vsub.f32 1.0, %v747_v31  ;;  %v493_v54 = vmul.f32 %v4925_v7, %v492_v38 }
 0x18a   :  { %v479_v34 = vadd.f32 %v3407_v0, %v478_v30  ;;  %3414 = vrcp.f32 %v4930_v33  ;;  %v772_v57 = vand.u32 2147483648, %v4930_v33  ;;  %vm766_vm7 = vweird.f32 %v4930_v33 }
 0x18b   :  { %v749_v42 = vmul.f32 %v3411_v20, %v748_v35  ;;  %v494_v50 = vadd.f32 %v4925_v7, %v493_v54 }
 0x18c   :  { %v483_v41 = vsel %vm482_vm12, %v3407_v0, %v479_v34  ;;  %v773_v54 = vor.u32 1.1754944e-38, %v772_v57  ;;  %v5077_v57 = vld [vmem:[#allocation5 + $0x120] sm:$0xff] }
 0x18d   :  { %v488_v62 = vsel %vm485_vm11, %v487_v36, %v483_v41  ;;  %v750_v45 = vadd.f32 %v3411_v20, %v749_v42  ;;  %v502_v36 = vor.u32 1.1754944e-38, %v501_v29  ;;  %v794_v29 = vld [vmem:[#allocation8 + $0x38] sm:$0xff]  ;;  %7305 = vst [vmem:[#allocation37_spill] sm:$0xff] %v5077_v57 }
 0x18e   :  { %v506_v37 = vmul.f32 %v505_v32, %v488_v62  ;;  %v498_v32 = vsel %vm497_vm4, %v4925_v7, %v494_v50  ;;  %v797_v50 = vld [vmem:[#allocation8 + $0x50] sm:$0xff]  ;;  %v5086_v7 = vld [vmem:[#allocation5 + $0x108] sm:$0xff] }
 0x18f   :  { %v754_v14 = vsel %vm753_vm15, %v3411_v20, %v750_v45  ;;  %v499_v20 = vand.u32 2147483647, %v4922_v48  ;;  %v770_v48 = vand.u32 2147483647, %v4930_v33  ;;  %7307 = vst [vmem:[#allocation17_spill] sm:$0xff] %v5086_v7 }
 0x190   :  { %v507_v49 = vadd.f32 %v506_v37, %v403_v23  ;;  %v733_v0 = vpop.f32.mrf.mxu2  ;;  %v3415_v16 = vpop.eup %3414  ;;  %v759_v17 = vsel %vm756_vm1, %v758_v58, %v754_v14  ;;  %v802_v37 = vld [vmem:[#allocation8 + $0x78] sm:$0xff]  ;;  %v801_v58 = vld [vmem:[#allocation8 + $0x70] sm:$0xff] }
 0x191   :  { %v780_v21 = vadd.f32 %v4936_v47, %v733_v0  ;;  %v762_v22 = vmul.f32 %v3415_v16, %v4930_v33  ;;  %vm500_vm5 = vcmp.eq.f32.partialorder %v499_v20, 8.507059e+37  ;;  %vm767_vm6 = vweird.f32 %v3415_v16  ;;  %v1158_v33 = vld [vmem:[#allocation8 + $0xf8] sm:$0xff]  ;;  %v5025_v20 = vld [vmem:[%s6798_s1 + $0x10] sm:$0xff] }
 0x192   :  { %3416 = vtanh.f32 %v507_v49  ;;  %v503_v39 = vsel %vm500_vm5, %v502_v36, %v498_v32  ;;  %vm4959_vm8 = vmor %vm766_vm7, %vm767_vm6  ;;  %vm771_vm9 = vcmp.eq.f32.partialorder %v770_v48, 8.507059e+37  ;;  %v1157_v49 = vld [vmem:[#allocation8 + $0xf0] sm:$0xff]  ;;  %v4973_v14 = vld [vmem:[%s6798_s1 + $0x18] sm:$0xff] }
 0x193   :  { %v781_v27 = vmul.f32 %v780_v21, %v759_v17  ;;  %v763_v30 = vsub.f32 1.0, %v762_v22  ;;  %v1156_v17 = vld [vmem:[#allocation8 + $0xe8] sm:$0xff]  ;;  %v799_v21 = vld [vmem:[#allocation8 + $0x60] sm:$0xff]  ;;  %v798_v22 = vld [vmem:[#allocation8 + $0x58] sm:$0xff] }
 0x194   :  { %v5033_v32 = vld [vmem:[#allocation2 + $0x178] sm:$0xff]  ;;  %v5083_v48 = vld [vmem:[#allocation2 + $0x110] sm:$0xff] }
 0x195   :  { %v782_v31 = vadd.f32 %v781_v27, %v626_v24  ;;  %v764_v34 = vmul.f32 %v3415_v16, %v763_v30  ;;  %v795_v24 = vld [vmem:[#allocation8 + $0x40] sm:$0xff]  ;;  %v5002_v27 = vld [vmem:[%s6798_s1 + $0x8] sm:$0xff]  ;;  %v5062_v36 = vld [vmem:[#allocation2 + $0x118] sm:$0xff]  ;;  %7306 = vst [vmem:[#allocation31_spill] sm:$0xff] %v5083_v48 }
 0x196   :  { %v792_v30 = vld [vmem:[#allocation8 + $0x28] sm:$0xff] }
 0x197   :  { %3418 = vtanh.f32 %v782_v31  ;;  %v765_v42 = vadd.f32 %v3415_v16, %v764_v34  ;;  %v789_v31 = vld [vmem:[#allocation8 + $0x10] sm:$0xff]  ;;  %v5037_v34 = vld [vmem:[#allocation2 + $0x160] sm:$0xff] }
 0x198   :  { %v3417_v35 = vpop.eup %3416 }
 0x199   :  { %v509_v38 = vsub.f32 %v4706_v40, %v3417_v35  ;;  %v769_v40 = vsel %vm4959_vm8, %v3415_v16, %v765_v42  ;;  %v5074_v42 = vld [vmem:[#allocation2 + $0x128] sm:$0xff] }
 0x19a   :  { %v774_v0 = vsel %vm771_vm9, %v773_v54, %v769_v40  ;;  %7304 = vst [vmem:[#allocation23_spill] sm:$0xff] %v5074_v42  ;;  %v5095_v40 = vld [vmem:[#allocation5 + $0xf0] sm:$0xff]  ;;  %v5098_v54 = vld [vmem:[#allocation2 + $0xb8] sm:$0xff] }
 0x19b   :  { %v510_v41 = vmul.f32 %v509_v38, %v503_v39  ;;  %v5065_v38 = vld [vmem:[#allocation2 + $0x140] sm:$0xff]  ;;  %v5068_v39 = vld [vmem:[#allocation5 + $0x138] sm:$0xff]  ;;  %7309 = vst [vmem:[#allocation39_spill] sm:$0xff] %v5095_v40 }
 0x19c   :  { %7302 = vst [vmem:[#allocation30_spill] sm:$0xff] %v5065_v38 }
 0x19d   :  { %v3419_v62 = vpop.eup %3418  ;;  %v4955_v23 = vadd.f32 %v3417_v35, %v510_v41  ;;  %v5056_v35 = vld [vmem:[#allocation2 + $0x158] sm:$0xff]  ;;  %7303 = vst [vmem:[#allocation16_spill] sm:$0xff] %v5068_v39  ;;  %v5071_v41 = vld [vmem:[#allocation2 + $0x100] sm:$0xff] }
 0x19e   :  { %v784_v45 = vsub.f32 0.0, %v3419_v62  ;;  %7300 = vst [vmem:[#allocation22_spill] sm:$0xff] %v5056_v35 }
 0x19f   :  { %884 = vmatmul.f32.vlgmr.msrb.gmra.mxu3 %v4955_v23  ;;  %904 = vmatmul.f32.vlgmr.msrb.gmra.mxu0 %v4955_v23 }
 0x1a0   :  { %924 = vmatmul.f32.vlgmr.msra.gmra.mxu1 %v4955_v23  ;;  %991 = vmatmul.f32.vlgmr.msrb.gmra.mxu2 %v4955_v23  ;;  %v785_v16 = vmul.f32 %v784_v45, %v774_v0  ;;  %v5092_v45 = vld [vmem:[#allocation2 + $0xf8] sm:$0xff]  ;;  %v5113_v0 = vld [vmem:[#allocation5 + $0xc0] sm:$0xff] }
 0x1a1   :  { %1075 = vmatpush.msrb.mxu3 %v4708_v61  ;;  %1179 = vmatpush.msra.mxu1 %v802_v37  ;;  %v4980_v61 = vld [vmem:[%s6798_s1] sm:$0xff]  ;;  %v5089_v37 = vld [vmem:[#allocation2 + $0xd0] sm:$0xff]  ;;  %7308 = vst [vmem:[#allocation24_spill] sm:$0xff] %v5092_v45 }
 0x1a2   :  { %1218 = vmatpush.msrb.mxu2 %v4973_v14  ;;  %1159 = vmatpush.msrb.mxu0 %v1158_v33  ;;  %v5104_v33 = vld [vmem:[#allocation5 + $0xd8] sm:$0xff]  ;;  %7314 = vst [vmem:[#allocation33_spill] sm:$0xff] %v5113_v0 }
 0x1a3   :  { %1076 = vmatpush.msrb.mxu3 %v4714_v52  ;;  %1180 = vmatpush.msra.mxu1 %v801_v58  ;;  %v4985_v52 = vadd.f32 %v3419_v62, %v785_v16  ;;  %v5080_v62 = vld [vmem:[#allocation2 + $0xe8] sm:$0xff]  ;;  %v5101_v58 = vld [vmem:[#allocation2 + $0xe0] sm:$0xff]  ;;  %7311 = vst [vmem:[#allocation19_spill] sm:$0xff] %v5104_v33 }
 0x1a4   :  { %1219 = vmatpush.msrb.mxu2 %v4980_v61  ;;  %1160 = vmatpush.msrb.mxu0 %v1157_v49  ;;  %7310 = vst [vmem:[#allocation32_spill] sm:$0xff] %v5101_v58  ;;  %v5107_v49 = vld [vmem:[#allocation2 + $0xa0] sm:$0xff]  ;;  %v5116_v16 = vld [vmem:[#allocation2 + $0x88] sm:$0xff] }
 0x1a5   :  { %1077 = vmatpush.msrb.mxu3 %v4718_v43  ;;  %1181 = vmatpush.msra.mxu1 %v800_v13  ;;  %v796_v43 = vld [vmem:[#allocation8 + $0x48] sm:$0xff]  ;;  %7312 = vst [vmem:[#allocation25_spill] sm:$0xff] %v5107_v49 }
 0x1a6   :  { %1161 = vmatpush.msrb.mxu0 %v1156_v17  ;;  %v5110_v13 = vld [vmem:[#allocation2 + $0xc8] sm:$0xff]  ;;  %7315 = vst [vmem:[#allocation21_spill] sm:$0xff] %v5116_v16  ;;  %v5119_v17 = vld [vmem:[#allocation2 + $0xb0] sm:$0xff] }
 0x1a7   :  { %1078 = vmatpush.msrb.mxu3 %v4724_v51  ;;  %1182 = vmatpush.msra.mxu1 %v799_v21  ;;  %v4995_v51 = vld [vmem:[%s6798_s1 + $0x20] sm:$0xff]  ;;  %7313 = vst [vmem:[#allocation42_spill] sm:$0xff] %v5110_v13  ;;  %v5122_v21 = vld [vmem:[#allocation5 + $0xa8] sm:$0xff] }
 0x1a8   :  { %1011 = vmatmul.f32.vlgmr.msra.gmra.mxu3 %v4955_v23  ;;  %1031 = vmatmul.f32.vlgmr.msra.gmra.mxu0 %v4955_v23  ;;  %7316 = vst [vmem:[#allocation26_spill] sm:$0xff] %v5119_v17 }
 0x1a9   :  { %1051 = vmatmul.f32.vlgmr.msrb.gmra.mxu1 %v4985_v52  ;;  %1071 = vmatmul.f32.vlgmr.msra.gmra.mxu2 %v4985_v52  ;;  %7317 = vst [vmem:[#allocation44_spill] sm:$0xff] %v5122_v21 }
 0x1aa   :  { %1079 = vmatpush.msrb.mxu3 %v4729_v56  ;;  %1183 = vmatpush.msra.mxu1 %v798_v22  ;;  %v5009_v56 = vld [vmem:[%s6797_s0 + $0x18] sm:$0xff]  ;;  %v5125_v22 = vld [vmem:[#allocation2 + $0x70] sm:$0xff] }
 0x1ab   :  { %1238 = vmatpush.msra.mxu2 %v4995_v51  ;;  %7318 = vst [vmem:[#allocation34_spill] sm:$0xff] %v5125_v22 }
 0x1ac   :  { %1080 = vmatpush.msrb.mxu3 %v4736_v2  ;;  %1184 = vmatpush.msra.mxu1 %v797_v50  ;;  %v793_v2 = vld [vmem:[#allocation8 + $0x30] sm:$0xff]  ;;  %v5128_v50 = vld [vmem:[#allocation2 + $0x98] sm:$0xff] }
 0x1ad   :  { %1239 = vmatpush.msra.mxu2 %v5002_v27  ;;  %7319 = vst [vmem:[#allocation45_spill] sm:$0xff] %v5128_v50 }
 0x1ae   :  { %1081 = vmatpush.msrb.mxu3 %v4740_v1  ;;  %1185 = vmatpush.msra.mxu1 %v796_v43  ;;  %v5018_v1 = vld [vmem:[%s6798_s1 + $0x28] sm:$0xff]  ;;  %v5131_v43 = vld [vmem:[#allocation5 + $0x90] sm:$0xff] }
 0x1af   :  { %7320 = vst [vmem:[#allocation27_spill] sm:$0xff] %v5131_v43 }
 0x1b0   :  { %1082 = vmatpush.msrb.mxu3 %v4746_v3  ;;  %1186 = vmatpush.msra.mxu1 %v795_v24  ;;  %v791_v3 = vld [vmem:[#allocation8 + $0x20] sm:$0xff]  ;;  %v5134_v24 = vld [vmem:[#allocation2 + $0x58] sm:$0xff] }
 0x1b1   :  { %3336 = vmatmul.msk.f32.vlgmr.msrb.gmra.mxu2 %vm117_vm0, %v5009_v56  ;;  %7321 = vst [vmem:[#allocation48_spill] sm:$0xff] %v5134_v24 }
 0x1b2   :  { %1083 = vmatpush.msrb.mxu3 %v4752_v4  ;;  %1187 = vmatpush.msra.mxu1 %v794_v29  ;;  %v790_v4 = vld [vmem:[#allocation8 + $0x18] sm:$0xff]  ;;  %v5137_v29 = vld [vmem:[#allocation2 + $0x80] sm:$0xff] }
 0x1b3   :  { %1258 = vmatpush.msrb.mxu2 %v5018_v1  ;;  %7322 = vst [vmem:[#allocation36_spill] sm:$0xff] %v5137_v29 }
 0x1b4   :  { %1084 = vmatpush.msrb.mxu3 %v4760_v5  ;;  %1188 = vmatpush.msra.mxu1 %v793_v2  ;;  %v788_v5 = vld [vmem:[#allocation8 + $0x8] sm:$0xff]  ;;  %v5140_v2 = vld [vmem:[#allocation5 + $0x78] sm:$0xff] }
 0x1b5   :  { %1259 = vmatpush.msrb.mxu2 %v5025_v20  ;;  %7323 = vst [vmem:[#allocation46_spill] sm:$0xff] %v5140_v2 }
 0x1b6   :  { %1085 = vmatpush.msrb.mxu3 %v4766_v6  ;;  %1189 = vmatpush.msra.mxu1 %v792_v30  ;;  %v787_v6 = vld [vmem:[#allocation8] sm:$0xff] }
 0x1b7   :  { %v5143_v30 = vld [vmem:[#allocation2 + $0x40] sm:$0xff] }
 0x1b8   :  { %1086 = vmatpush.msrb.mxu3 %v4772_v8  ;;  %1190 = vmatpush.msra.mxu1 %v791_v3  ;;  %v5041_v8 = vld [vmem:[#allocation2 + $0x148] sm:$0xff]  ;;  %7324 = vst [vmem:[#allocation49_spill] sm:$0xff] %v5143_v30 }
 0x1b9   :  { %3337 = vmatmul.msk.f32.vlgmr.msra.gmra.mxu2 %vm117_vm0, %v5009_v56  ;;  %v5146_v3 = vld [vmem:[#allocation2 + $0x68] sm:$0xff] }
 0x1ba   :  { %1087 = vmatpush.msrb.mxu3 %v4778_v9  ;;  %1191 = vmatpush.msra.mxu1 %v790_v4  ;;  %v5047_v9 = vld [vmem:[#allocation2 + $0x170] sm:$0xff]  ;;  %7325 = vst [vmem:[#allocation53_spill] sm:$0xff] %v5146_v3  ;;  %v5149_v4 = vld [vmem:[#allocation5 + $0x60] sm:$0xff] }
 0x1bb   :  { %1304 = vmatpush.msra.mxu2 %v5033_v32  ;;  %7298 = vst [vmem:[#allocation15_spill] sm:$0xff] %v5047_v9 }
 0x1bc   :  { %1088 = vmatpush.msrb.mxu3 %v4784_v10  ;;  %1192 = vmatpush.msra.mxu1 %v789_v31  ;;  %v5050_v10 = vld [vmem:[#allocation5 + $0x168] sm:$0xff]  ;;  %7326 = vst [vmem:[#allocation38_spill] sm:$0xff] %v5149_v4 }
 0x1bd   :  { %1305 = vmatpush.msra.mxu2 %v5037_v34  ;;  %7299 = vst [vmem:[#allocation29_spill] sm:$0xff] %v5050_v10  ;;  %v5152_v31 = vld [vmem:[#allocation2 + $0x28] sm:$0xff] }
 0x1be   :  { %1089 = vmatpush.msrb.mxu3 %v4790_v11  ;;  %1193 = vmatpush.msra.mxu1 %v788_v5  ;;  %v5053_v11 = vld [vmem:[#allocation2 + $0x130] sm:$0xff]  ;;  %7327 = vst [vmem:[#allocation50_spill] sm:$0xff] %v5152_v31 }
 0x1bf   :  { %1306 = vmatpush.msra.mxu2 %v5041_v8  ;;  %v5155_v5 = vld [vmem:[#allocation2 + $0x50] sm:$0xff] }
 0x1c0   :  { %1090 = vmatpush.msrb.mxu3 %v4796_v12  ;;  %1194 = vmatpush.msra.mxu1 %v787_v6  ;;  %v5059_v12 = vld [vmem:[#allocation5 + $0x150] sm:$0xff]  ;;  %7328 = vst [vmem:[#allocation54_spill] sm:$0xff] %v5155_v5  ;;  %v5158_v6 = vld [vmem:[#allocation5 + $0x48] sm:$0xff] }
 0x1c1   :  { %1091 = vmatmul.f32.vlgmr.msrb.gmra.mxu3 %v4985_v52  ;;  %1195 = vmatmul.f32.vlgmr.msra.gmra.mxu1 %v4985_v52  ;;  %7301 = vst [vmem:[#allocation35_spill] sm:$0xff] %v5059_v12 }
 0x1c2   :  { %1284 = vmatpush.msrb.mxu1 %v5047_v9  ;;  %1371 = vmatpush.msra.mxu3 %v5050_v10  ;;  %7329 = vst [vmem:[#allocation57_spill] sm:$0xff] %v5158_v6  ;;  %v5205_v10 = vld [vmem:[#allocation5 + $0x130] sm:$0xff] }
 0x1c3   :  { %1307 = vmatpush.msra.mxu2 %v5053_v11  ;;  %7344 = vst [vmem:[#allocation70_spill] sm:$0xff] %v5205_v10 }
 0x1c4   :  { %1285 = vmatpush.msrb.mxu1 %v5056_v35  ;;  %1372 = vmatpush.msra.mxu3 %v5059_v12  ;;  %v3612_v12 = vld [vmem:[#allocation7 + $0x140] sm:$0xff] }
 0x1c5   :  { %1308 = vmatpush.msra.mxu2 %v5062_v36 }
 0x1c6   :  { %1286 = vmatpush.msrb.mxu1 %v5065_v38  ;;  %1373 = vmatpush.msra.mxu3 %v5068_v39  ;;  %v5196_v39 = vld [vmem:[#allocation7 + $0x138] sm:$0xff] }
 0x1c7   :  { %1309 = vmatpush.msra.mxu2 %v5071_v41  ;;  %7341 = vst [vmem:[#allocation69_spill] sm:$0xff] %v5196_v39 }
 0x1c8   :  { %1287 = vmatpush.msrb.mxu1 %v5074_v42  ;;  %1374 = vmatpush.msra.mxu3 %v5077_v57  ;;  %v3609_v57 = vld [vmem:[#allocation7 + $0x158] sm:$0xff] }
 0x1c9   :  { %1310 = vmatpush.msra.mxu2 %v5080_v62 }
 0x1ca   :  { %1288 = vmatpush.msrb.mxu1 %v5083_v48  ;;  %1375 = vmatpush.msra.mxu3 %v5086_v7  ;;  %v5190_v7 = vld [vmem:[#allocation7 + $0x150] sm:$0xff] }
 0x1cb   :  { %1311 = vmatpush.msra.mxu2 %v5089_v37  ;;  %7339 = vst [vmem:[#allocation63_spill] sm:$0xff] %v5190_v7 }
 0x1cc   :  { %1289 = vmatpush.msrb.mxu1 %v5092_v45  ;;  %1376 = vmatpush.msra.mxu3 %v5095_v40  ;;  %v3606_v40 = vld [vmem:[#allocation7 + $0x170] sm:$0xff] }
 0x1cd   :  { %1312 = vmatpush.msra.mxu2 %v5098_v54 }
 0x1ce   :  { %1290 = vmatpush.msrb.mxu1 %v5101_v58  ;;  %1377 = vmatpush.msra.mxu3 %v5104_v33  ;;  %v5181_v33 = vld [vmem:[#allocation2 + $0x8] sm:$0xff] }
 0x1cf   :  { %1313 = vmatpush.msra.mxu2 %v5107_v49  ;;  %7336 = vst [vmem:[#allocation62_spill] sm:$0xff] %v5181_v33 }
 0x1d0   :  { %1291 = vmatpush.msrb.mxu1 %v5110_v13  ;;  %1378 = vmatpush.msra.mxu3 %v5113_v0  ;;  %v5178_v0 = vld [vmem:[#allocation7 + $0x168] sm:$0xff] }
 0x1d1   :  { %1314 = vmatpush.msra.mxu2 %v5116_v16  ;;  %7335 = vst [vmem:[#allocation59_spill] sm:$0xff] %v5178_v0 }
 0x1d2   :  { %1292 = vmatpush.msrb.mxu1 %v5119_v17  ;;  %1379 = vmatpush.msra.mxu3 %v5122_v21  ;;  %v5172_v21 = vld [vmem:[#allocation2 + $0x20] sm:$0xff]  ;;  %v5306_v17 = vld [vmem:[#allocation2 + $0xf0] sm:$0xff] }
 0x1d3   :  { %1315 = vmatpush.msra.mxu2 %v5125_v22  ;;  %7333 = vst [vmem:[#allocation61_spill] sm:$0xff] %v5172_v21 }
 0x1d4   :  { %1293 = vmatpush.msrb.mxu1 %v5128_v50  ;;  %1380 = vmatpush.msra.mxu3 %v5131_v43  ;;  %v5164_v43 = vld [vmem:[#allocation2 + $0x38] sm:$0xff] }
 0x1d5   :  { %1316 = vmatpush.msra.mxu2 %v5134_v24  ;;  %7331 = vst [vmem:[#allocation55_spill] sm:$0xff] %v5164_v43 }
 0x1d6   :  { %1294 = vmatpush.msrb.mxu1 %v5137_v29  ;;  %1381 = vmatpush.msra.mxu3 %v5140_v2  ;;  %v5161_v2 = vld [vmem:[#allocation2 + $0x10] sm:$0xff]  ;;  %v5247_v29 = vld [vmem:[#allocation5 + $0x88] sm:$0xff] }
 0x1d7   :  { %1317 = vmatpush.msra.mxu2 %v5143_v30  ;;  %7330 = vst [vmem:[#allocation40_spill] sm:$0xff] %v5161_v2 }
 0x1d8   :  { %1295 = vmatpush.msrb.mxu1 %v5146_v3  ;;  %1382 = vmatpush.msra.mxu3 %v5149_v4  ;;  %v5167_v4 = vld [vmem:[#allocation5 + $0x30] sm:$0xff]  ;;  %v5241_v3 = vld [vmem:[#allocation5 + $0xa0] sm:$0xff]  ;;  %7358 = vst [vmem:[#allocation83_spill] sm:$0xff] %v5247_v29 }
 0x1d9   :  { %1318 = vmatpush.msra.mxu2 %v5152_v31  ;;  %7332 = vst [vmem:[#allocation58_spill] sm:$0xff] %v5167_v4 }
 0x1da   :  { %1296 = vmatpush.msrb.mxu1 %v5155_v5  ;;  %1383 = vmatpush.msra.mxu3 %v5158_v6  ;;  %v5175_v6 = vld [vmem:[#allocation5 + $0x18] sm:$0xff]  ;;  %7356 = vst [vmem:[#allocation68_spill] sm:$0xff] %v5241_v3 }
 0x1db   :  { %1319 = vmatpush.msra.mxu2 %v5161_v2  ;;  %7334 = vst [vmem:[#allocation43_spill] sm:$0xff] %v5175_v6  ;;  %v5235_v5 = vld [vmem:[#allocation5 + $0xb8] sm:$0xff] }
 0x1dc   :  { %1297 = vmatpush.msrb.mxu1 %v5164_v43  ;;  %1384 = vmatpush.msra.mxu3 %v5167_v4  ;;  %v5184_v4 = vld [vmem:[#allocation5] sm:$0xff]  ;;  %v5229_v43 = vld [vmem:[#allocation5 + $0xd0] sm:$0xff]  ;;  %7354 = vst [vmem:[#allocation79_spill] sm:$0xff] %v5235_v5 }
 0x1dd   :  { %3338 = vmatmul.msk.f32.vlgmr.msrb.gmra.mxu2 %vm117_vm0, %v5009_v56  ;;  %7337 = vst [vmem:[#allocation65_spill] sm:$0xff] %v5184_v4  ;;  %v5187_v56 = vld [vmem:[#allocation5 + $0x178] sm:$0xff] }
 0x1de   :  { %1298 = vmatpush.msrb.mxu1 %v5172_v21  ;;  %1385 = vmatpush.msra.mxu3 %v5175_v6  ;;  %7338 = vst [vmem:[#allocation47_spill] sm:$0xff] %v5187_v56  ;;  %v5193_v6 = vld [vmem:[#allocation5 + $0x160] sm:$0xff]  ;;  %v5223_v21 = vld [vmem:[#allocation5 + $0xe8] sm:$0xff] }
 0x1df   :  { %1431 = vmatpush.msrb.mxu2 %v5178_v0  ;;  %7340 = vst [vmem:[#allocation66_spill] sm:$0xff] %v5193_v6 }
 0x1e0   :  { %1299 = vmatpush.msrb.mxu1 %v5181_v33  ;;  %1386 = vmatpush.msra.mxu3 %v5184_v4  ;;  %v5199_v4 = vld [vmem:[#allocation5 + $0x148] sm:$0xff]  ;;  %v5217_v33 = vld [vmem:[#allocation5 + $0x100] sm:$0xff]  ;;  %7350 = vst [vmem:[#allocation60_spill] sm:$0xff] %v5223_v21 }
 0x1e1   :  { %1432 = vmatpush.msrb.mxu2 %v5190_v7  ;;  %7342 = vst [vmem:[#allocation52_spill] sm:$0xff] %v5199_v4 }
 0x1e2   :  { %1411 = vmatpush.msra.mxu1 %v5187_v56  ;;  %1451 = vmatpush.msrb.mxu3 %v3606_v40  ;;  %v5202_v40 = vld [vmem:[#allocation7 + $0x120] sm:$0xff]  ;;  %v5211_v56 = vld [vmem:[#allocation5 + $0x118] sm:$0xff]  ;;  %7348 = vst [vmem:[#allocation74_spill] sm:$0xff] %v5217_v33 }
 0x1e3   :  { %1433 = vmatpush.msrb.mxu2 %v5196_v39  ;;  %7343 = vst [vmem:[#allocation67_spill] sm:$0xff] %v5202_v40 }
 0x1e4   :  { %1412 = vmatpush.msra.mxu1 %v5193_v6  ;;  %1452 = vmatpush.msrb.mxu3 %v3609_v57  ;;  %v3615_v6 = vld [vmem:[#allocation7 + $0x128] sm:$0xff]  ;;  %7346 = vst [vmem:[#allocation56_spill] sm:$0xff] %v5211_v56 }
 0x1e5   :  { %1434 = vmatpush.msrb.mxu2 %v5202_v40  ;;  %v5208_v57 = vld [vmem:[#allocation7 + $0x108] sm:$0xff]  ;;  %7352 = vst [vmem:[#allocation64_spill] sm:$0xff] %v5229_v43 }
 0x1e6   :  { %1413 = vmatpush.msra.mxu1 %v5199_v4  ;;  %1453 = vmatpush.msrb.mxu3 %v3612_v12  ;;  %7345 = vst [vmem:[#allocation73_spill] sm:$0xff] %v5208_v57  ;;  %v3618_v4 = vld [vmem:[#allocation7 + $0x110] sm:$0xff] }
 0x1e7   :  { %1435 = vmatpush.msrb.mxu2 %v5208_v57  ;;  %v5214_v12 = vld [vmem:[#allocation7 + $0xf0] sm:$0xff] }
 0x1e8   :  { %1414 = vmatpush.msra.mxu1 %v5205_v10  ;;  %1454 = vmatpush.msrb.mxu3 %v3615_v6  ;;  %7347 = vst [vmem:[#allocation71_spill] sm:$0xff] %v5214_v12  ;;  %v3621_v10 = vld [vmem:[#allocation7 + $0xf8] sm:$0xff] }
 0x1e9   :  { %1436 = vmatpush.msrb.mxu2 %v5214_v12  ;;  %v5220_v6 = vld [vmem:[#allocation7 + $0xd8] sm:$0xff] }
 0x1ea   :  { %1415 = vmatpush.msra.mxu1 %v5211_v56  ;;  %1455 = vmatpush.msrb.mxu3 %v3618_v4  ;;  %7349 = vst [vmem:[#allocation77_spill] sm:$0xff] %v5220_v6  ;;  %v3624_v56 = vld [vmem:[#allocation7 + $0xe0] sm:$0xff] }
 0x1eb   :  { %1437 = vmatpush.msrb.mxu2 %v5220_v6  ;;  %v5226_v4 = vld [vmem:[#allocation7 + $0xc0] sm:$0xff] }
 0x1ec   :  { %1416 = vmatpush.msra.mxu1 %v5217_v33  ;;  %1456 = vmatpush.msrb.mxu3 %v3621_v10  ;;  %7351 = vst [vmem:[#allocation75_spill] sm:$0xff] %v5226_v4  ;;  %v3627_v33 = vld [vmem:[#allocation7 + $0xc8] sm:$0xff] }
 0x1ed   :  { %1438 = vmatpush.msrb.mxu2 %v5226_v4  ;;  %v5232_v10 = vld [vmem:[#allocation7 + $0xa8] sm:$0xff]  ;;  %v5324_v4 = vld [vmem:[#allocation2 + $0x78] sm:$0xff] }
 0x1ee   :  { %1417 = vmatpush.msra.mxu1 %v5223_v21  ;;  %1457 = vmatpush.msrb.mxu3 %v3624_v56  ;;  %7353 = vst [vmem:[#allocation78_spill] sm:$0xff] %v5232_v10  ;;  %v3630_v21 = vld [vmem:[#allocation7 + $0xb0] sm:$0xff] }
 0x1ef   :  { %1439 = vmatpush.msrb.mxu2 %v5232_v10  ;;  %v5238_v56 = vld [vmem:[#allocation7 + $0x90] sm:$0xff] }
 0x1f0   :  { %1418 = vmatpush.msra.mxu1 %v5229_v43  ;;  %1458 = vmatpush.msrb.mxu3 %v3627_v33  ;;  %7355 = vst [vmem:[#allocation81_spill] sm:$0xff] %v5238_v56  ;;  %v3633_v43 = vld [vmem:[#allocation7 + $0x98] sm:$0xff]  ;;  %v5321_v10 = vld [vmem:[#allocation2 + $0x90] sm:$0xff] }
 0x1f1   :  { %1440 = vmatpush.msrb.mxu2 %v5238_v56  ;;  %v5244_v33 = vld [vmem:[#allocation7 + $0x78] sm:$0xff] }
 0x1f2   :  { %1419 = vmatpush.msra.mxu1 %v5235_v5  ;;  %1459 = vmatpush.msrb.mxu3 %v3630_v21  ;;  %7357 = vst [vmem:[#allocation82_spill] sm:$0xff] %v5244_v33  ;;  %v5251_v21 = vld [vmem:[#allocation7 + $0x60] sm:$0xff]  ;;  %v5254_v5 = vld [vmem:[#allocation5 + $0x70] sm:$0xff] }
 0x1f3   :  { %1441 = vmatpush.msrb.mxu2 %v5244_v33  ;;  %7359 = vst [vmem:[#allocation85_spill] sm:$0xff] %v5251_v21 }
 0x1f4   :  { %1420 = vmatpush.msra.mxu1 %v5241_v3  ;;  %1460 = vmatpush.msrb.mxu3 %v3633_v43  ;;  %7360 = vst [vmem:[#allocation72_spill] sm:$0xff] %v5254_v5  ;;  %v5258_v43 = vld [vmem:[#allocation7 + $0x48] sm:$0xff]  ;;  %v5261_v3 = vld [vmem:[#allocation5 + $0x58] sm:$0xff] }
 0x1f5   :  { %1442 = vmatpush.msrb.mxu2 %v5251_v21  ;;  %7361 = vst [vmem:[#allocation86_spill] sm:$0xff] %v5258_v43  ;;  %v845_v21 = vpop.f32.mrf.mxu0 }
 0x1f6   :  { %1421 = vmatpush.msra.mxu1 %v5247_v29  ;;  %1461 = vmatpush.msrb.mxu3 %v7289_v18  ;;  %7362 = vst [vmem:[#allocation87_spill] sm:$0xff] %v5261_v3  ;;  %v5265_v18 = vld [vmem:[#allocation7 + $0x30] sm:$0xff]  ;;  %v5268_v29 = vld [vmem:[#allocation5 + $0x40] sm:$0xff] }
 0x1f7   :  { %1443 = vmatpush.msrb.mxu2 %v5258_v43  ;;  %7363 = vst [vmem:[#allocation89_spill] sm:$0xff] %v5265_v18  ;;  %v1148_v43 = vld [vmem:[#allocation8 + $0xa8] sm:$0xff] }
 0x1f8   :  { %1422 = vmatpush.msra.mxu1 %v5254_v5  ;;  %1462 = vmatpush.msrb.mxu3 %v7290_v19  ;;  %7364 = vst [vmem:[#allocation76_spill] sm:$0xff] %v5268_v29  ;;  %v5272_v19 = vld [vmem:[#allocation7 + $0x18] sm:$0xff]  ;;  %v5275_v5 = vld [vmem:[#allocation5 + $0x28] sm:$0xff] }
 0x1f9   :  { %1444 = vmatpush.msrb.mxu2 %v5265_v18  ;;  %7365 = vst [vmem:[#allocation90_spill] sm:$0xff] %v5272_v19  ;;  %v1151_v18 = vld [vmem:[#allocation8 + $0xc0] sm:$0xff] }
 0x1fa   :  { %1423 = vmatpush.msra.mxu1 %v5261_v3  ;;  %1463 = vmatpush.msrb.mxu3 %v4688_v63  ;;  %7366 = vst [vmem:[#allocation91_spill] sm:$0xff] %v5275_v5  ;;  %v5280_v63 = vld [vmem:[#allocation5 + $0x10] sm:$0xff] }
 0x1fb   :  { %1445 = vmatpush.msrb.mxu2 %v5272_v19  ;;  %7367 = vst [vmem:[#allocation80_spill] sm:$0xff] %v5280_v63  ;;  %v1153_v3 = vld [vmem:[#allocation8 + $0xd0] sm:$0xff]  ;;  %v1152_v19 = vld [vmem:[#allocation8 + $0xc8] sm:$0xff] }
 0x1fc   :  { %1424 = vmatpush.msra.mxu1 %v5268_v29  ;;  %1464 = vmatpush.msrb.mxu3 %v4693_v55  ;;  %v1155_v29 = vld [vmem:[#allocation8 + $0xe0] sm:$0xff]  ;;  %v1154_v55 = vld [vmem:[#allocation8 + $0xd8] sm:$0xff] }
 0x1fd   :  { %1446 = vmatpush.msrb.mxu2 %v7286_v15  ;;  %1162 = vmatpush.msrb.mxu0 %v1155_v29  ;;  %v1149_v15 = vld [vmem:[#allocation8 + $0xb0] sm:$0xff] }
 0x1fe   :  { %1425 = vmatpush.msra.mxu1 %v5275_v5  ;;  %1465 = vmatpush.msrb.mxu3 %v4697_v44  ;;  %v1150_v5 = vld [vmem:[#allocation8 + $0xb8] sm:$0xff]  ;;  %v825_v44 = vpop.f32.mrf.mxu1 }
 0x1ff   :  { %1163 = vmatpush.msrb.mxu0 %v1154_v55  ;;  %v1145_v55 = vld [vmem:[#allocation8 + $0x90] sm:$0xff] }
 0x200   :  { %1426 = vmatpush.msra.mxu1 %v5280_v63  ;;  %1466 = vmatpush.msrb.mxu3 %v4700_v53  ;;  %v1147_v63 = vld [vmem:[#allocation8 + $0xa0] sm:$0xff]  ;;  %v1146_v53 = vld [vmem:[#allocation8 + $0x98] sm:$0xff] }
 0x201   :  { %1164 = vmatpush.msrb.mxu0 %v1153_v3  ;;  %v1144_v3 = vld [vmem:[#allocation8 + $0x88] sm:$0xff] }
 0x203   :  { %1165 = vmatpush.msrb.mxu0 %v1152_v19  ;;  %v1143_v19 = vld [vmem:[#allocation8 + $0x80] sm:$0xff] }
 0x205   :  { %1166 = vmatpush.msrb.mxu0 %v1151_v18  ;;  %v846_v18 = vadd.f32 %v845_v21, %v7293_v28  ;;  %v826_v21 = vadd.f32 %v825_v44, %v7292_v26  ;;  %v5309_v26 = vld [vmem:[#allocation2 + $0xd8] sm:$0xff] }
 0x206   :  { %v5284_v29 = vpop.f32.mrf.mxu1 }
 0x207   :  { %1167 = vmatpush.msrb.mxu0 %v1150_v5  ;;  %v5287_v5 = vld [vmem:[#allocation2 + $0x168] sm:$0xff]  ;;  %v866_v22 = vadd.f32 %v5284_v29, %v4683_v60 }
 0x209   :  { %1168 = vmatpush.msrb.mxu0 %v1149_v15 }
 0x20b   :  { %1169 = vmatpush.msrb.mxu0 %v1148_v43 }
 0x20d   :  { %1170 = vmatpush.msrb.mxu0 %v1147_v63  ;;  %v5292_v63 = vld [vmem:[#allocation2 + $0x150] sm:$0xff] }
 0x20f   :  { %1171 = vmatpush.msrb.mxu0 %v1146_v53  ;;  %v5295_v53 = vld [vmem:[#allocation2 + $0x138] sm:$0xff] }
 0x211   :  { %1172 = vmatpush.msrb.mxu0 %v1145_v55 }
 0x213   :  { %1173 = vmatpush.msrb.mxu0 %v1144_v3  ;;  %v5299_v3 = vld [vmem:[#allocation2 + $0x120] sm:$0xff] }
 0x215   :  { %1174 = vmatpush.msrb.mxu0 %v1143_v19 }
 0x217   :  { %1264 = vmatpush.msra.mxu0 %v5287_v5 }
 0x219   :  { %1265 = vmatpush.msra.mxu0 %v5292_v63 }
 0x21b   :  { %1266 = vmatpush.msra.mxu0 %v5295_v53 }
 0x21c   :  { %v905_v43 = vpop.f32.mrf.mxu0 }
 0x21d   :  { %v929_v15 = vadd.f32 %v905_v43, %v846_v18  ;;  %v5290_v33 = vpop.f32.mrf.mxu1  ;;  %1267 = vmatpush.msra.mxu0 %v5299_v3  ;;  %v5302_v43 = vld [vmem:[#allocation2 + $0x108] sm:$0xff] }
 0x21f   :  { %v3332_v55 = vmul.f32 -1.442695, %v929_v15  ;;  %1268 = vmatpush.msra.mxu0 %v5302_v43 }
 0x221   :  { %3420 = vpow2.f32 %v3332_v55  ;;  %1269 = vmatpush.msra.mxu0 %v5306_v17 }
 0x222   :  { %v885_v19 = vpop.f32.mrf.mxu3 }
 0x223   :  { %v928_v28 = vadd.f32 %v885_v19, %v826_v21  ;;  %v992_v18 = vpop.f32.mrf.mxu2  ;;  %1270 = vmatpush.msra.mxu0 %v5309_v26  ;;  %v5312_v19 = vld [vmem:[#allocation2 + $0xc0] sm:$0xff] }
 0x224   :  { %v993_v50 = vadd.f32 %v992_v18, %v4913_v25 }
 0x225   :  { %v3331_v56 = vmul.f32 -1.442695, %v928_v28  ;;  %1271 = vmatpush.msra.mxu0 %v5312_v19  ;;  %v5315_v28 = vld [vmem:[#allocation2 + $0xa8] sm:$0xff] }
 0x226   :  { %v1052_v44 = vpop.f32.mrf.mxu1 }
 0x227   :  { %3422 = vpow2.f32 %v3331_v56  ;;  %v1095_v15 = vadd.f32 %v1052_v44, %v993_v50  ;;  %v3421_v55 = vpop.eup %3420  ;;  %1272 = vmatpush.msra.mxu0 %v5315_v28 }
 0x228   :  { %v5319_v50 = vadd.f32 1.0, %v3421_v55 }
 0x229   :  { %v3333_v21 = vmul.f32 -1.442695, %v1095_v15  ;;  %1273 = vmatpush.msra.mxu0 %v5321_v10 }
 0x22a   :  { %vm958_vm4 = vweird.f32 %v5319_v50 }
 0x22b   :  { %3424 = vpow2.f32 %v3333_v21  ;;  %v1012_v18 = vpop.f32.mrf.mxu3  ;;  %1274 = vmatpush.msra.mxu0 %v5324_v4 }
 0x22c   :  { %v1013_v25 = vadd.f32 %v1012_v18, %v4919_v46  ;;  %v1072_v44 = vpop.f32.mrf.mxu2  ;;  %v5328_v18 = vld [vmem:[#allocation2 + $0x60] sm:$0xff]  ;;  %v5331_v46 = vld [vmem:[#allocation2 + $0x48] sm:$0xff] }
 0x22d   :  { %v3423_v56 = vpop.eup %3422  ;;  %1275 = vmatpush.msra.mxu0 %v5328_v18 }
 0x22e   :  { %v936_v15 = vadd.f32 1.0, %v3423_v56  ;;  %v1096_v13 = vadd.f32 %v1072_v44, %v1013_v25  ;;  %v5334_v25 = vld [vmem:[#allocation2 + $0x30] sm:$0xff] }
 0x22f   :  { %1276 = vmatpush.msra.mxu0 %v5331_v46 }
 0x230   :  { %3426 = vrcp.f32 %v936_v15  ;;  %v3334_v58 = vmul.f32 -1.442695, %v1096_v13  ;;  %v5339_v13 = vld [vmem:[#allocation2 + $0x18] sm:$0xff]  ;;  %v947_v57 = vand.u32 2147483647, %v936_v15  ;;  %v949_v42 = vand.u32 2147483648, %v936_v15 }
 0x231   :  { %v3425_v21 = vpop.eup %3424  ;;  %3428 = vrcp.f32 %v5319_v50  ;;  %1277 = vmatpush.msra.mxu0 %v5334_v25  ;;  %vm943_vm11 = vweird.f32 %v936_v15 }
 0x232   :  { %v1103_v55 = vadd.f32 1.0, %v3425_v21  ;;  %3430 = vpow2.f32 %v3334_v58  ;;  %v5342_v58 = vld [vmem:[#allocation2] sm:$0xff]  ;;  %vm948_vm13 = vcmp.eq.f32.partialorder %v947_v57, 8.507059e+37 }
 0x233   :  { %1278 = vmatpush.msra.mxu0 %v5339_v13 }
 0x234   :  { %3432 = vrcp.f32 %v1103_v55  ;;  %v1114_v30 = vand.u32 2147483647, %v1103_v55  ;;  %vm1110_vm15 = vweird.f32 %v1103_v55 }
 0x235   :  { %1279 = vmatpush.msra.mxu0 %v5342_v58 }
 0x236   :  { %v3427_v56 = vpop.eup %3426  ;;  %vm1115_vm2 = vcmp.eq.f32.partialorder %v1114_v30, 8.507059e+37 }
 0x237   :  { %v5337_v44 = vpop.eup %3428  ;;  %v939_v6 = vmul.f32 %v3427_v56, %v936_v15  ;;  %vm944_vm10 = vweird.f32 %v3427_v56 }
 0x238   :  { %v3431_v45 = vpop.eup %3430  ;;  %v954_v48 = vmul.f32 %v5337_v44, %v5319_v50  ;;  %vm945_vm12 = vmor %vm943_vm11, %vm944_vm10  ;;  %vm959_vm3 = vweird.f32 %v5337_v44 }
 0x239   :  { %v940_v21 = vsub.f32 1.0, %v939_v6  ;;  %v5347_v40 = vadd.f32 1.0, %v3431_v45  ;;  %v5353_v6 = vld [vmem:[%s6801_s4] ss:$0 sm:$0xff]  ;;  %v950_v45 = vor.u32 1.1754944e-38, %v949_v42  ;;  %vm960_vm5 = vmor %vm958_vm4, %vm959_vm3 }
 0x23a   :  { %v3433_v12 = vpop.eup %3432  ;;  %v968_v35 = vadd.f32 %v5353_v6, %v5290_v33  ;;  %v955_v0 = vsub.f32 1.0, %v954_v48 }
 0x23b   :  { %v941_v38 = vmul.f32 %v3427_v56, %v940_v21  ;;  %v1106_v39 = vmul.f32 %v3433_v12, %v1103_v55  ;;  %3434 = vrcp.f32 %v5347_v40  ;;  %v1116_v21 = vand.u32 2147483648, %v1103_v55 }
 0x23c   :  { %vm1111_vm14 = vweird.f32 %v3433_v12  ;;  %vm1125_vm8 = vweird.f32 %v5347_v40 }
 0x23d   :  { %v942_v7 = vadd.f32 %v3427_v56, %v941_v38  ;;  %v1107_v9 = vsub.f32 1.0, %v1106_v39  ;;  %v956_v38 = vmul.f32 %v5337_v44, %v955_v0  ;;  %vm1112_vm1 = vmor %vm1110_vm15, %vm1111_vm14  ;;  %v1117_v39 = vor.u32 1.1754944e-38, %v1116_v21 }
 0x23e   :  { %v964_v0 = vand.u32 2147483648, %v5319_v50  ;;  %v1131_v21 = vand.u32 2147483648, %v5347_v40 }
 0x23f   :  { %v946_v2 = vsel %vm945_vm12, %v3427_v56, %v942_v7  ;;  %v1108_v31 = vmul.f32 %v3433_v12, %v1107_v9  ;;  %v1032_v9 = vpop.f32.mrf.mxu0 }
 0x240   :  { %v951_v24 = vsel %vm948_vm13, %v950_v45, %v946_v2 }
 0x241   :  { %v969_v16 = vmul.f32 %v968_v35, %v951_v24  ;;  %v1109_v49 = vadd.f32 %v3433_v12, %v1108_v31  ;;  %v3435_v33 = vpop.eup %3434  ;;  %v957_v35 = vadd.f32 %v5337_v44, %v956_v38  ;;  %v1033_v24 = vadd.f32 %v1032_v9, %v4942_v59  ;;  %v5419_v9 = vld [vmem:[#allocation5 + $0xc8] sm:$0xff] }
 0x242   :  { %v1121_v42 = vmul.f32 %v3435_v33, %v5347_v40  ;;  %vm1126_vm7 = vweird.f32 %v3435_v33  ;;  %7373 = vst [vmem:[#allocation88_spill] sm:$0xff] %v5419_v9 }
 0x243   :  { %v970_v48 = vadd.f32 %v969_v16, %v866_v22  ;;  %v1113_v57 = vsel %vm1112_vm1, %v3433_v12, %v1109_v49  ;;  %v962_v49 = vand.u32 2147483647, %v5319_v50  ;;  %v961_v31 = vsel %vm960_vm5, %v5337_v44, %v957_v35  ;;  %vm1127_vm9 = vmor %vm1125_vm8, %vm1126_vm7  ;;  %v5439_v35 = vld [vmem:[#allocation5 + $0x50] sm:$0xff] }
 0x244   :  { %v1092_v7 = vpop.f32.mrf.mxu3  ;;  %v1118_v15 = vsel %vm1115_vm2, %v1117_v39, %v1113_v57  ;;  %v1122_v2 = vsub.f32 1.0, %v1121_v42  ;;  %v1129_v50 = vand.u32 2147483647, %v5347_v40  ;;  %v1132_v42 = vor.u32 1.1754944e-38, %v1131_v21  ;;  %7378 = vst [vmem:[#allocation103_spill] sm:$0xff] %v5439_v35  ;;  %v5484_v21 = vld [vmem:[#allocation7 + $0xa0] sm:$0xff] }
 0x245   :  { %3436 = vtanh.f32 %v970_v48  ;;  %v1135_v29 = vadd.f32 %v4936_v47, %v1092_v7  ;;  %v965_v47 = vor.u32 1.1754944e-38, %v964_v0  ;;  %vm963_vm6 = vcmp.eq.f32.partialorder %v962_v49, 8.507059e+37  ;;  %v5423_v7 = vld [vmem:[#allocation5 + $0xb0] sm:$0xff]  ;;  %v5443_v0 = vld [vmem:[#allocation5 + $0x38] sm:$0xff] }
 0x246   :  { %v1123_v22 = vmul.f32 %v3435_v33, %v1122_v2  ;;  %vm1130_vm10 = vcmp.eq.f32.partialorder %v1129_v50, 8.507059e+37  ;;  %7374 = vst [vmem:[#allocation99_spill] sm:$0xff] %v5423_v7  ;;  %v5431_v2 = vld [vmem:[#allocation5 + $0x80] sm:$0xff]  ;;  %v5456_v49 = vld [vmem:[#allocation7 + $0x178] sm:$0xff]  ;;  %v5487_v50 = vld [vmem:[#allocation7 + $0x88] sm:$0xff] }
 0x247   :  { %v1136_v16 = vmul.f32 %v1135_v29, %v1118_v15  ;;  %v966_v45 = vsel %vm963_vm6, %v965_v47, %v961_v31  ;;  %v5427_v15 = vld [vmem:[#allocation5 + $0x98] sm:$0xff]  ;;  %7376 = vst [vmem:[#allocation92_spill] sm:$0xff] %v5431_v2  ;;  %v5435_v29 = vld [vmem:[#allocation5 + $0x68] sm:$0xff]  ;;  %v5466_v31 = vld [vmem:[#allocation7 + $0x130] sm:$0xff] }
 0x248   :  { %v1124_v55 = vadd.f32 %v3435_v33, %v1123_v22  ;;  %7375 = vst [vmem:[#allocation100_spill] sm:$0xff] %v5427_v15  ;;  %v5460_v22 = vld [vmem:[#allocation7 + $0x160] sm:$0xff] }
 0x249   :  { %v1137_v30 = vadd.f32 %v1136_v16, %v1033_v24  ;;  %7377 = vst [vmem:[#allocation102_spill] sm:$0xff] %v5435_v29  ;;  %v5447_v24 = vld [vmem:[#allocation5 + $0x20] sm:$0xff]  ;;  %v5451_v16 = vld [vmem:[#allocation5 + $0x8] sm:$0xff] }
 0x24a   :  { %v1128_v44 = vsel %vm1127_vm9, %v3435_v33, %v1124_v55  ;;  %7379 = vst [vmem:[#allocation95_spill] sm:$0xff] %v5443_v0  ;;  %v5472_v47 = vld [vmem:[#allocation7 + $0x100] sm:$0xff]  ;;  %v5475_v55 = vld [vmem:[#allocation7 + $0xe8] sm:$0xff] }
 0x24b   :  { %v3437_v12 = vpop.eup %3436  ;;  %3438 = vtanh.f32 %v1137_v30  ;;  %7380 = vst [vmem:[#allocation98_spill] sm:$0xff] %v5447_v24  ;;  %v5463_v30 = vld [vmem:[#allocation7 + $0x148] sm:$0xff] }
 0x24c   :  { %v972_v56 = vsub.f32 %v4955_v23, %v3437_v12  ;;  %v1133_v23 = vsel %vm1130_vm10, %v1132_v42, %v1128_v44  ;;  %7381 = vst [vmem:[#allocation101_spill] sm:$0xff] %v5451_v16  ;;  %v5493_v44 = vld [vmem:[#allocation7 + $0x58] sm:$0xff]  ;;  %v5499_v42 = vld [vmem:[#allocation7 + $0x28] sm:$0xff] }
 0x24e   :  { %v973_v38 = vmul.f32 %v972_v56, %v966_v45  ;;  %v5478_v56 = vld [vmem:[#allocation7 + $0xd0] sm:$0xff]  ;;  %v5481_v45 = vld [vmem:[#allocation7 + $0xb8] sm:$0xff] }
 0x250   :  { %v5373_v39 = vadd.f32 %v3437_v12, %v973_v38  ;;  %v5469_v12 = vld [vmem:[#allocation7 + $0x118] sm:$0xff]  ;;  %v5490_v38 = vld [vmem:[#allocation7 + $0x70] sm:$0xff] }
 0x251   :  { %v3439_v48 = vpop.eup %3438 }
 0x252   :  { %v1139_v57 = vsub.f32 %v4985_v52, %v3439_v48  ;;  %1300 = vmatmul.f32.vlgmr.msrb.gmra.mxu1 %v5373_v39  ;;  %1320 = vmatmul.f32.vlgmr.msra.gmra.mxu2 %v5373_v39  ;;  %v5386_v52 = vld [vmem:[#allocation5 + $0x170] sm:$0xff] }
 0x253   :  { %1387 = vmatmul.f32.vlgmr.msra.gmra.mxu3 %v5373_v39  ;;  %1595 = vmatpush.msra.mxu2 %v4973_v14  ;;  %v5391_v14 = vld [vmem:[#allocation5 + $0x158] sm:$0xff] }
 0x254   :  { %v1140_v40 = vmul.f32 %v1139_v57, %v1133_v23  ;;  %1615 = vmatpush.msra.mxu3 %v4995_v51  ;;  %v5402_v51 = vld [vmem:[#allocation5 + $0x128] sm:$0xff]  ;;  %v5502_v57 = vld [vmem:[#allocation7 + $0x10] sm:$0xff]  ;;  %v7382_v23 = vld [vmem:[#allocation25_spill] sm:$0xff] }
 0x255   :  { %1596 = vmatpush.msra.mxu2 %v4980_v61  ;;  %v5397_v61 = vld [vmem:[#allocation5 + $0x140] sm:$0xff]  ;;  %7369 = vst [vmem:[#allocation94_spill] sm:$0xff] %v5402_v51 }
 0x256   :  { %v5382_v33 = vadd.f32 %v3439_v48, %v1140_v40  ;;  %1616 = vmatpush.msra.mxu3 %v5002_v27  ;;  %7368 = vst [vmem:[#allocation93_spill] sm:$0xff] %v5397_v61  ;;  %v5407_v27 = vld [vmem:[#allocation5 + $0x110] sm:$0xff]  ;;  %v5496_v48 = vld [vmem:[#allocation7 + $0x40] sm:$0xff]  ;;  %v7383_v40 = vld [vmem:[#allocation21_spill] sm:$0xff] }
 0x257   :  { %7370 = vst [vmem:[#allocation84_spill] sm:$0xff] %v5407_v27 }
 0x258   :  { %1175 = vmatmul.f32.vlgmr.msrb.gmra.mxu0 %v5382_v33 }
 0x259   :  { %1391 = vmatpush.msrb.mxu0 %v5386_v52 }
 0x25a   :  { %1427 = vmatmul.f32.vlgmr.msra.gmra.mxu1 %v5373_v39  ;;  %1447 = vmatmul.f32.vlgmr.msrb.gmra.mxu2 %v5382_v33 }
 0x25b   :  { %1392 = vmatpush.msrb.mxu0 %v5391_v14  ;;  %1467 = vmatmul.f32.vlgmr.msrb.gmra.mxu3 %v5382_v33 }
 0x25c   :  { %1641 = vmatpush.msrb.mxu3 %v5287_v5  ;;  %1635 = vmatpush.msrb.mxu2 %v5018_v1  ;;  %v5411_v1 = vld [vmem:[#allocation5 + $0xf8] sm:$0xff] }
 0x25d   :  { %1393 = vmatpush.msrb.mxu0 %v5397_v61  ;;  %7371 = vst [vmem:[#allocation96_spill] sm:$0xff] %v5411_v1 }
 0x25e   :  { %1642 = vmatpush.msrb.mxu3 %v5292_v63  ;;  %1636 = vmatpush.msrb.mxu2 %v5025_v20  ;;  %v5415_v20 = vld [vmem:[#allocation5 + $0xe0] sm:$0xff] }
 0x25f   :  { %1394 = vmatpush.msrb.mxu0 %v5402_v51  ;;  %7372 = vst [vmem:[#allocation97_spill] sm:$0xff] %v5415_v20 }
 0x260   :  { %1280 = vmatmul.f32.vlgmr.msra.gmra.mxu0 %v5373_v39  ;;  %1643 = vmatpush.msrb.mxu3 %v5295_v53 }
 0x261   :  { %1395 = vmatpush.msrb.mxu0 %v5407_v27 }
 0x262   :  { %1644 = vmatpush.msrb.mxu3 %v5299_v3 }
 0x263   :  { %1396 = vmatpush.msrb.mxu0 %v5411_v1 }
 0x264   :  { %1645 = vmatpush.msrb.mxu3 %v5302_v43 }
 0x265   :  { %1397 = vmatpush.msrb.mxu0 %v5415_v20 }
 0x266   :  { %1646 = vmatpush.msrb.mxu3 %v5306_v17 }
 0x267   :  { %1398 = vmatpush.msrb.mxu0 %v5419_v9 }
 0x268   :  { %1647 = vmatpush.msrb.mxu3 %v5309_v26 }
 0x269   :  { %1399 = vmatpush.msrb.mxu0 %v5423_v7 }
 0x26a   :  { %1648 = vmatpush.msrb.mxu3 %v5312_v19 }
 0x26b   :  { %1400 = vmatpush.msrb.mxu0 %v5427_v15 }
 0x26c   :  { %1649 = vmatpush.msrb.mxu3 %v5315_v28 }
 0x26d   :  { %1401 = vmatpush.msrb.mxu0 %v5431_v2 }
 0x26e   :  { %1650 = vmatpush.msrb.mxu3 %v5321_v10 }
 0x26f   :  { %1402 = vmatpush.msrb.mxu0 %v5435_v29 }
 0x270   :  { %1651 = vmatpush.msrb.mxu3 %v5324_v4 }
 0x271   :  { %1403 = vmatpush.msrb.mxu0 %v5439_v35 }
 0x272   :  { %1652 = vmatpush.msrb.mxu3 %v5328_v18 }
 0x273   :  { %1404 = vmatpush.msrb.mxu0 %v5443_v0 }
 0x274   :  { %1653 = vmatpush.msrb.mxu3 %v5331_v46 }
 0x275   :  { %1405 = vmatpush.msrb.mxu0 %v5447_v24 }
 0x276   :  { %1654 = vmatpush.msrb.mxu3 %v5334_v25 }
 0x277   :  { %1406 = vmatpush.msrb.mxu0 %v5451_v16 }
 0x278   :  { %1407 = vmatmul.f32.vlgmr.msrb.gmra.mxu0 %v5373_v39  ;;  %1655 = vmatpush.msrb.mxu3 %v5339_v13 }
 0x279   :  { %1471 = vmatpush.msra.mxu0 %v5456_v49 }
 0x27a   :  { %1656 = vmatpush.msrb.mxu3 %v5342_v58 }
 0x27b   :  { %1472 = vmatpush.msra.mxu0 %v5460_v22 }
 0x27d   :  { %1473 = vmatpush.msra.mxu0 %v5463_v30 }
 0x27f   :  { %1474 = vmatpush.msra.mxu0 %v5466_v31 }
 0x281   :  { %1475 = vmatpush.msra.mxu0 %v5469_v12 }
 0x283   :  { %1476 = vmatpush.msra.mxu0 %v5472_v47 }
 0x285   :  { %1477 = vmatpush.msra.mxu0 %v5475_v55 }
 0x287   :  { %1478 = vmatpush.msra.mxu0 %v5478_v56 }
 0x289   :  { %1479 = vmatpush.msra.mxu0 %v5481_v45 }
 0x28b   :  { %1480 = vmatpush.msra.mxu0 %v5484_v21 }
 0x28d   :  { %1481 = vmatpush.msra.mxu0 %v5487_v50 }
 0x28f   :  { %1482 = vmatpush.msra.mxu0 %v5490_v38 }
 0x291   :  { %1483 = vmatpush.msra.mxu0 %v5493_v44 }
 0x293   :  { %1484 = vmatpush.msra.mxu0 %v5496_v48 }
 0x295   :  { %1485 = vmatpush.msra.mxu0 %v5499_v42 }
 0x297   :  { %1486 = vmatpush.msra.mxu0 %v5502_v57 }
 0x298   :  { %1487 = vmatmul.f32.vlgmr.msra.gmra.mxu0 %v5382_v33 }
 0x299   :  { %1681 = vmatpush.msrb.mxu0 %v5033_v32  ;;  %v7384_v32 = vld [vmem:[#allocation34_spill] sm:$0xff] }
 0x29b   :  { %1682 = vmatpush.msrb.mxu0 %v5037_v34  ;;  %v7385_v34 = vld [vmem:[#allocation48_spill] sm:$0xff] }
 0x29d   :  { %1683 = vmatpush.msrb.mxu0 %v5041_v8  ;;  %v7386_v8 = vld [vmem:[#allocation49_spill] sm:$0xff] }
 0x29f   :  { %1684 = vmatpush.msrb.mxu0 %v5053_v11  ;;  %v7387_v11 = vld [vmem:[#allocation50_spill] sm:$0xff] }
 0x2a1   :  { %1685 = vmatpush.msrb.mxu0 %v5062_v36  ;;  %v7388_v36 = vld [vmem:[#allocation40_spill] sm:$0xff] }
 0x2a3   :  { %1686 = vmatpush.msrb.mxu0 %v5071_v41  ;;  %v3343_v41 = vld [vmem:[%s6797_s0 + $0x20] sm:$0xff] }
 0x2a4   :  { %3344 = vmatmul.msk.f32.vlgmr.msra.gmra.mxu2 %vm117_vm0, %v3343_v41  ;;  %3345 = vmatmul.msk.f32.vlgmr.msra.gmra.mxu3 %vm117_vm0, %v3343_v41 }
 0x2a5   :  { %1687 = vmatpush.msrb.mxu0 %v5080_v62  ;;  %v7389_v62 = vld [vmem:[#allocation59_spill] sm:$0xff]  ;;  %1768 = vmatpush.msra.mxu3 %v5386_v52 }
 0x2a7   :  { %1688 = vmatpush.msrb.mxu0 %v5089_v37  ;;  %v7390_v37 = vld [vmem:[#allocation15_spill] sm:$0xff]  ;;  %1769 = vmatpush.msra.mxu3 %v5391_v14 }
 0x2a8   :  { %1661 = vmatpush.msra.mxu2 %v7390_v37  ;;  %v7399_v37 = vld [vmem:[#allocation71_spill] sm:$0xff] }
 0x2a9   :  { %1689 = vmatpush.msrb.mxu0 %v5098_v54  ;;  %v7391_v54 = vld [vmem:[#allocation63_spill] sm:$0xff]  ;;  %1770 = vmatpush.msra.mxu3 %v5397_v61 }
 0x2ab   :  { %1690 = vmatpush.msrb.mxu0 %v7382_v23  ;;  %v7392_v23 = vld [vmem:[#allocation22_spill] sm:$0xff]  ;;  %1771 = vmatpush.msra.mxu3 %v5402_v51 }
 0x2ac   :  { %1662 = vmatpush.msra.mxu2 %v7392_v23  ;;  %v7401_v23 = vld [vmem:[#allocation77_spill] sm:$0xff] }
 0x2ad   :  { %1691 = vmatpush.msrb.mxu0 %v7383_v40  ;;  %v5533_v40 = vpop.f32.mrf.mxu2  ;;  %3346 = vmatmul.msk.f32.vlgmr.msrb.gmra.mxu2 %vm117_vm0, %v3343_v41  ;;  %v7403_v41 = vld [vmem:[#allocation75_spill] sm:$0xff] }
 0x2ae   :  { %1772 = vmatpush.msra.mxu3 %v5407_v27  ;;  %v7447_v27 = vld [vmem:[#allocation19_spill] sm:$0xff] }
 0x2af   :  { %1692 = vmatpush.msrb.mxu0 %v7384_v32  ;;  %v7393_v32 = vld [vmem:[#allocation69_spill] sm:$0xff] }
 0x2b0   :  { %1773 = vmatpush.msra.mxu3 %v5411_v1 }
 0x2b1   :  { %1693 = vmatpush.msrb.mxu0 %v7385_v34  ;;  %v7394_v34 = vld [vmem:[#allocation30_spill] sm:$0xff] }
 0x2b2   :  { %1663 = vmatpush.msra.mxu2 %v7394_v34  ;;  %1774 = vmatpush.msra.mxu3 %v5415_v20  ;;  %v7433_v20 = vld [vmem:[#allocation79_spill] sm:$0xff] }
 0x2b3   :  { %1694 = vmatpush.msrb.mxu0 %v7386_v8  ;;  %v7395_v8 = vld [vmem:[#allocation67_spill] sm:$0xff] }
 0x2b4   :  { %1775 = vmatpush.msra.mxu3 %v5419_v9 }
 0x2b5   :  { %1695 = vmatpush.msrb.mxu0 %v7387_v11  ;;  %v7396_v11 = vld [vmem:[#allocation23_spill] sm:$0xff]  ;;  %v1241_v34 = vpop.f32.mrf.mxu2 }
 0x2b6   :  { %1664 = vmatpush.msra.mxu2 %v7396_v11  ;;  %v7405_v11 = vld [vmem:[#allocation78_spill] sm:$0xff]  ;;  %1776 = vmatpush.msra.mxu3 %v5423_v7 }
 0x2b7   :  { %1696 = vmatpush.msrb.mxu0 %v7388_v36  ;;  %v7397_v36 = vld [vmem:[#allocation73_spill] sm:$0xff]  ;;  %v1551_v7 = vld [vmem:[#allocation8 + $0x160] sm:$0xff] }
 0x2b8   :  { %1777 = vmatpush.msra.mxu3 %v5427_v15 }
 0x2b9   :  { %1808 = vmatpush.msra.mxu0 %v7389_v62  ;;  %v7398_v62 = vld [vmem:[#allocation31_spill] sm:$0xff] }
 0x2ba   :  { %1665 = vmatpush.msra.mxu2 %v7398_v62  ;;  %v1554_v62 = vld [vmem:[#allocation8 + $0x178] sm:$0xff]  ;;  %1778 = vmatpush.msra.mxu3 %v5431_v2 }
 0x2bb   :  { %1809 = vmatpush.msra.mxu0 %v7391_v54  ;;  %v7400_v54 = vld [vmem:[#allocation24_spill] sm:$0xff]  ;;  %1555 = vmatpush.msrb.mxu1 %v1554_v62  ;;  %v7411_v62 = vld [vmem:[#allocation85_spill] sm:$0xff] }
 0x2bc   :  { %1666 = vmatpush.msra.mxu2 %v7400_v54  ;;  %v1196_v54 = vpop.f32.mrf.mxu1  ;;  %1779 = vmatpush.msra.mxu3 %v5435_v29 }
 0x2bd   :  { %1810 = vmatpush.msra.mxu0 %v7393_v32  ;;  %v7402_v32 = vld [vmem:[#allocation32_spill] sm:$0xff] }
 0x2be   :  { %1667 = vmatpush.msra.mxu2 %v7402_v32  ;;  %v1553_v32 = vld [vmem:[#allocation8 + $0x170] sm:$0xff]  ;;  %1780 = vmatpush.msra.mxu3 %v5439_v35  ;;  %v1548_v35 = vld [vmem:[#allocation8 + $0x148] sm:$0xff] }
 0x2bf   :  { %1811 = vmatpush.msra.mxu0 %v7395_v8  ;;  %v7404_v8 = vld [vmem:[#allocation42_spill] sm:$0xff]  ;;  %1556 = vmatpush.msrb.mxu1 %v1553_v32 }
 0x2c0   :  { %1668 = vmatpush.msra.mxu2 %v7404_v8  ;;  %v7410_v8 = vld [vmem:[#allocation36_spill] sm:$0xff]  ;;  %v7414_v32 = vld [vmem:[#allocation54_spill] sm:$0xff]  ;;  %1781 = vmatpush.msra.mxu3 %v5443_v0 }
 0x2c1   :  { %1812 = vmatpush.msra.mxu0 %v7397_v36  ;;  %v7406_v36 = vld [vmem:[#allocation26_spill] sm:$0xff]  ;;  %v7428_v0 = vld [vmem:[#allocation56_spill] sm:$0xff] }
 0x2c2   :  { %1669 = vmatpush.msra.mxu2 %v7406_v36  ;;  %v5563_v36 = vpop.f32.mrf.mxu2  ;;  %1782 = vmatpush.msra.mxu3 %v5447_v24  ;;  %v7427_v24 = vld [vmem:[#allocation70_spill] sm:$0xff] }
 0x2c3   :  { %1813 = vmatpush.msra.mxu0 %v7399_v37  ;;  %v7407_v37 = vld [vmem:[#allocation81_spill] sm:$0xff] }
 0x2c4   :  { %1783 = vmatpush.msra.mxu3 %v5451_v16  ;;  %v1544_v16 = vld [vmem:[#allocation8 + $0x128] sm:$0xff] }
 0x2c5   :  { %1814 = vmatpush.msra.mxu0 %v7401_v23  ;;  %v7408_v23 = vld [vmem:[#allocation45_spill] sm:$0xff] }
 0x2c6   :  { %1670 = vmatpush.msra.mxu2 %v7408_v23  ;;  %v7413_v23 = vld [vmem:[#allocation86_spill] sm:$0xff] }
 0x2c7   :  { %1815 = vmatpush.msra.mxu0 %v7403_v41  ;;  %v7409_v41 = vld [vmem:[#allocation82_spill] sm:$0xff] }
 0x2c8   :  { %1671 = vmatpush.msra.mxu2 %v7410_v8  ;;  %v7415_v8 = vld [vmem:[#allocation89_spill] sm:$0xff] }
 0x2c9   :  { %1816 = vmatpush.msra.mxu0 %v7405_v11  ;;  %v1552_v11 = vld [vmem:[#allocation8 + $0x168] sm:$0xff] }
 0x2ca   :  { %1557 = vmatpush.msrb.mxu1 %v1552_v11  ;;  %v7416_v11 = vld [vmem:[#allocation55_spill] sm:$0xff] }
 0x2cb   :  { %1817 = vmatpush.msra.mxu0 %v7407_v37  ;;  %v7412_v37 = vld [vmem:[#allocation53_spill] sm:$0xff] }
 0x2cc   :  { %1672 = vmatpush.msra.mxu2 %v7412_v37  ;;  %1558 = vmatpush.msrb.mxu1 %v1551_v7  ;;  %v7417_v37 = vld [vmem:[#allocation41_spill] sm:$0xff]  ;;  %v7418_v7 = vld [vmem:[#allocation90_spill] sm:$0xff] }
 0x2cd   :  { %1818 = vmatpush.msra.mxu0 %v7409_v41  ;;  %v1550_v41 = vld [vmem:[#allocation8 + $0x158] sm:$0xff]  ;;  %v1242_v15 = vadd.f32 %v1241_v34, %v7417_v37  ;;  %v1547_v34 = vld [vmem:[#allocation8 + $0x140] sm:$0xff]  ;;  %v7448_v37 = vld [vmem:[#allocation80_spill] sm:$0xff] }
 0x2ce   :  { %1673 = vmatpush.msra.mxu2 %v7414_v32  ;;  %1559 = vmatpush.msrb.mxu1 %v1550_v41  ;;  %v7420_v32 = vld [vmem:[#allocation61_spill] sm:$0xff] }
 0x2cf   :  { %1819 = vmatpush.msra.mxu0 %v7411_v62  ;;  %v1301_v2 = vpop.f32.mrf.mxu1  ;;  %v1549_v62 = vld [vmem:[#allocation8 + $0x150] sm:$0xff] }
 0x2d0   :  { %1674 = vmatpush.msra.mxu2 %v7416_v11  ;;  %1560 = vmatpush.msrb.mxu1 %v1549_v62  ;;  %v1325_v41 = vadd.f32 %v1301_v2, %v1242_v15  ;;  %v7422_v11 = vld [vmem:[#allocation62_spill] sm:$0xff]  ;;  %v7425_v15 = vld [vmem:[#allocation51_spill] sm:$0xff] }
 0x2d1   :  { %1820 = vmatpush.msra.mxu0 %v7413_v23  ;;  %v1222_v2 = vadd.f32 %v5533_v40, %v7425_v15  ;;  %v7449_v15 = vld [vmem:[#allocation33_spill] sm:$0xff] }
 0x2d2   :  { %1675 = vmatpush.msra.mxu2 %v7420_v32  ;;  %1561 = vmatpush.msrb.mxu1 %v1548_v35  ;;  %v7424_v32 = vld [vmem:[#allocation66_spill] sm:$0xff]  ;;  %v1545_v35 = vld [vmem:[#allocation8 + $0x130] sm:$0xff] }
 0x2d3   :  { %1821 = vmatpush.msra.mxu0 %v7415_v8  ;;  %v5580_v8 = vld [vmem:[#allocation7] sm:$0xff] }
 0x2d4   :  { %7421 = vst [vmem:[#allocation25_spill] sm:$0xff] %v5580_v8  ;;  %1676 = vmatpush.msra.mxu2 %v7422_v11  ;;  %1562 = vmatpush.msrb.mxu1 %v1547_v34 }
 0x2d5   :  { %v1176_v29 = vpop.f32.mrf.mxu0  ;;  %1822 = vmatpush.msra.mxu0 %v7418_v7  ;;  %v5585_v62 = vpop.f32.mrf.mxu2  ;;  %v3340_v7 = vmul.f32 -1.442695, %v1325_v41 }
 0x2d6   :  { %v5576_v23 = vadd.f32 %v1196_v54, %v1176_v29  ;;  %v7423_v29 = vld [vmem:[#allocation47_spill] sm:$0xff]  ;;  %v1546_v54 = vld [vmem:[#allocation8 + $0x138] sm:$0xff]  ;;  %v1388_v41 = vpop.f32.mrf.mxu3 }
 0x2d7   :  { %1823 = vmatpush.msra.mxu0 %v5580_v8  ;;  %1788 = vmatpush.msrb.mxu2 %v7423_v29  ;;  %3440 = vpow2.f32 %v3340_v7  ;;  %v1543_v29 = vld [vmem:[#allocation8 + $0x120] sm:$0xff]  ;;  %v7431_v7 = vld [vmem:[#allocation60_spill] sm:$0xff] }
 0x2d8   :  { %7419 = vst [vmem:[#allocation104_spill] sm:$0xff] %v5576_v23  ;;  %1563 = vmatpush.msrb.mxu1 %v1546_v54  ;;  %v7426_v23 = vld [vmem:[#allocation52_spill] sm:$0xff]  ;;  %v1542_v54 = vld [vmem:[#allocation8 + $0x118] sm:$0xff] }
 0x2d9   :  { %1789 = vmatpush.msrb.mxu2 %v7424_v32  ;;  %v7429_v32 = vld [vmem:[#allocation74_spill] sm:$0xff] }
 0x2da   :  { %1564 = vmatpush.msrb.mxu1 %v1545_v35 }
 0x2db   :  { %1790 = vmatpush.msrb.mxu2 %v7426_v23  ;;  %v7430_v23 = vld [vmem:[#allocation28_spill] sm:$0xff] }
 0x2dc   :  { %1565 = vmatpush.msrb.mxu1 %v1544_v16  ;;  %v1389_v35 = vadd.f32 %v1388_v41, %v7430_v23  ;;  %v1540_v16 = vld [vmem:[#allocation8 + $0x108] sm:$0xff]  ;;  %v7434_v41 = vld [vmem:[#allocation29_spill] sm:$0xff] }
 0x2dd   :  { %v1281_v8 = vpop.f32.mrf.mxu0  ;;  %1791 = vmatpush.msrb.mxu2 %v7427_v24  ;;  %v1448_v40 = vpop.f32.mrf.mxu2 }
 0x2de   :  { %v1324_v11 = vadd.f32 %v1281_v8, %v1222_v2  ;;  %1566 = vmatpush.msrb.mxu1 %v1543_v29  ;;  %v1541_v8 = vld [vmem:[#allocation8 + $0x110] sm:$0xff]  ;;  %v3441_v2 = vpop.eup %3440  ;;  %v1491_v24 = vadd.f32 %v1448_v40, %v1389_v35  ;;  %v7436_v40 = vld [vmem:[#allocation35_spill] sm:$0xff] }
 0x2df   :  { %1792 = vmatpush.msrb.mxu2 %v7428_v0  ;;  %v5598_v29 = vadd.f32 1.0, %v3441_v2  ;;  %v7437_v35 = vld [vmem:[#allocation83_spill] sm:$0xff]  ;;  %v7439_v2 = vld [vmem:[#allocation72_spill] sm:$0xff] }
 0x2e0   :  { %v3339_v34 = vmul.f32 -1.442695, %v1324_v11  ;;  %1567 = vmatpush.msrb.mxu1 %v1542_v54  ;;  %v7432_v11 = vld [vmem:[#allocation64_spill] sm:$0xff]  ;;  %v3341_v54 = vmul.f32 -1.442695, %v1491_v24  ;;  %v7441_v24 = vld [vmem:[#allocation87_spill] sm:$0xff] }
 0x2e1   :  { %1793 = vmatpush.msrb.mxu2 %v7429_v32  ;;  %v7435_v32 = vld [vmem:[#allocation68_spill] sm:$0xff]  ;;  %vm1354_vm1 = vweird.f32 %v5598_v29 }
 0x2e2   :  { %3442 = vpow2.f32 %v3339_v34  ;;  %1568 = vmatpush.msrb.mxu1 %v1541_v8  ;;  %v1539_v34 = vld [vmem:[#allocation8 + $0x100] sm:$0xff]  ;;  %v7438_v8 = vld [vmem:[#allocation16_spill] sm:$0xff] }
 0x2e3   :  { %1794 = vmatpush.msrb.mxu2 %v7431_v7  ;;  %v7440_v7 = vld [vmem:[#allocation37_spill] sm:$0xff] }
 0x2e4   :  { %1569 = vmatpush.msrb.mxu1 %v1540_v16 }
 0x2e5   :  { %1795 = vmatpush.msrb.mxu2 %v7432_v11 }
 0x2e6   :  { %1570 = vmatpush.msrb.mxu1 %v1539_v34  ;;  %v7443_v34 = vld [vmem:[#allocation76_spill] sm:$0xff] }
 0x2e7   :  { %1796 = vmatpush.msrb.mxu2 %v7433_v20 }
 0x2e8   :  { %v3443_v0 = vpop.eup %3442  ;;  %1748 = vmatpush.msra.mxu1 %v7434_v41 }
 0x2e9   :  { %v1332_v9 = vadd.f32 1.0, %v3443_v0  ;;  %1797 = vmatpush.msrb.mxu2 %v7435_v32  ;;  %v7442_v0 = vld [vmem:[#allocation17_spill] sm:$0xff] }
 0x2ea   :  { %1749 = vmatpush.msra.mxu1 %v7436_v40  ;;  %v7444_v40 = vld [vmem:[#allocation39_spill] sm:$0xff] }
 0x2eb   :  { %3444 = vrcp.f32 %v1332_v9  ;;  %1798 = vmatpush.msrb.mxu2 %v7437_v35  ;;  %v1345_v35 = vand.u32 2147483648, %v1332_v9  ;;  %v1343_v23 = vand.u32 2147483647, %v1332_v9  ;;  %vm1339_vm12 = vweird.f32 %v1332_v9 }
 0x2ec   :  { %3446 = vrcp.f32 %v5598_v29  ;;  %1750 = vmatpush.msra.mxu1 %v7438_v8 }
 0x2ed   :  { %3448 = vpow2.f32 %v3341_v54  ;;  %1799 = vmatpush.msrb.mxu2 %v7439_v2  ;;  %v7445_v2 = vld [vmem:[#allocation91_spill] sm:$0xff]  ;;  %vm1344_vm14 = vcmp.eq.f32.partialorder %v1343_v23, 8.507059e+37 }
 0x2ee   :  { %1751 = vmatpush.msra.mxu1 %v7440_v7 }
 0x2ef   :  { %1800 = vmatpush.msrb.mxu2 %v7441_v24  ;;  %v7446_v24 = vld [vmem:[#allocation18_spill] sm:$0xff] }
 0x2f0   :  { %1752 = vmatpush.msra.mxu1 %v7442_v0 }
 0x2f1   :  { %v3445_v20 = vpop.eup %3444  ;;  %1801 = vmatpush.msrb.mxu2 %v7443_v34  ;;  %v1468_v34 = vpop.f32.mrf.mxu3 }
 0x2f2   :  { %v3447_v16 = vpop.eup %3446  ;;  %v1335_v11 = vmul.f32 %v3445_v20, %v1332_v9  ;;  %1753 = vmatpush.msra.mxu1 %v7444_v40  ;;  %vm1340_vm11 = vweird.f32 %v3445_v20  ;;  %v1262_v9 = vadd.f32 %v5563_v36, %v4683_v60  ;;  %v1358_v36 = vand.u32 2147483647, %v5598_v29 }
 0x2f3   :  { %v3449_v41 = vpop.eup %3448  ;;  %v1350_v54 = vmul.f32 %v3447_v16, %v5598_v29  ;;  %1802 = vmatpush.msrb.mxu2 %v7445_v2  ;;  %vm1341_vm13 = vmor %vm1339_vm12, %vm1340_vm11  ;;  %v1346_v2 = vor.u32 1.1754944e-38, %v1345_v35  ;;  %v7452_v35 = vld [vmem:[#allocation46_spill] sm:$0xff]  ;;  %vm1355_vm15 = vweird.f32 %v3447_v16 }
 0x2f4   :  { %v1336_v32 = vsub.f32 1.0, %v1335_v11  ;;  %1754 = vmatpush.msra.mxu1 %v7447_v27  ;;  %v5617_v0 = vadd.f32 1.0, %v3449_v41  ;;  %v7450_v27 = vld [vmem:[#allocation44_spill] sm:$0xff]  ;;  %vm1356_vm2 = vmor %vm1354_vm1, %vm1355_vm15  ;;  %vm1359_vm3 = vcmp.eq.f32.partialorder %v1358_v36, 8.507059e+37 }
 0x2f5   :  { %v1408_v8 = vpop.f32.mrf.mxu0  ;;  %1803 = vmatpush.msrb.mxu2 %v7448_v37  ;;  %v1351_v51 = vsub.f32 1.0, %v1350_v54  ;;  %v7451_v37 = vld [vmem:[#allocation27_spill] sm:$0xff] }
 0x2f6   :  { %v1337_v7 = vmul.f32 %v3445_v20, %v1336_v32  ;;  %v1409_v1 = vadd.f32 %v1408_v8, %v7446_v24  ;;  %1755 = vmatpush.msra.mxu1 %v7449_v15  ;;  %v1364_v32 = vadd.f32 %v5353_v6, %v5585_v62  ;;  %3450 = vrcp.f32 %v5617_v0  ;;  %v7453_v6 = vld [vmem:[#allocation38_spill] sm:$0xff] }
 0x2f7   :  { %v1352_v15 = vmul.f32 %v3447_v16, %v1351_v51  ;;  %vm1506_vm5 = vweird.f32 %v5617_v0 }
 0x2f8   :  { %v1338_v11 = vadd.f32 %v3445_v20, %v1337_v7  ;;  %v1492_v40 = vadd.f32 %v1468_v34, %v1409_v1  ;;  %1756 = vmatpush.msra.mxu1 %v7450_v27  ;;  %v7454_v7 = vld [vmem:[#allocation57_spill] sm:$0xff] }
 0x2f9   :  { %v1353_v23 = vadd.f32 %v3447_v16, %v1352_v15 }
 0x2fa   :  { %v1342_v61 = vsel %vm1341_vm13, %v3445_v20, %v1338_v11  ;;  %v3342_v8 = vmul.f32 -1.442695, %v1492_v40  ;;  %1757 = vmatpush.msra.mxu1 %v7451_v37  ;;  %v1360_v20 = vand.u32 2147483648, %v5598_v29  ;;  %v7455_v11 = vld [vmem:[#allocation58_spill] sm:$0xff]  ;;  %v7457_v29 = vld [vmem:[#allocation65_spill] sm:$0xff] }
 0x2fb   :  { %v1347_v41 = vsel %vm1344_vm14, %v1346_v2, %v1342_v61  ;;  %v1357_v40 = vsel %vm1356_vm2, %v3447_v16, %v1353_v23  ;;  %v5660_v23 = vld [vmem:[%s6798_s1] sm:$0xff] }
 0x2fc   :  { %v1365_v1 = vmul.f32 %v1364_v32, %v1347_v41  ;;  %3452 = vpow2.f32 %v3342_v8  ;;  %1758 = vmatpush.msra.mxu1 %v7452_v35  ;;  %v3451_v62 = vpop.eup %3450  ;;  %v1361_v32 = vor.u32 1.1754944e-38, %v1360_v20  ;;  %v7456_v8 = vld [vmem:[#allocation43_spill] sm:$0xff] }
 0x2fd   :  { %v1502_v34 = vmul.f32 %v3451_v62, %v5617_v0  ;;  %vm1507_vm4 = vweird.f32 %v3451_v62 }
 0x2fe   :  { %v1366_v54 = vadd.f32 %v1365_v1, %v1262_v9  ;;  %1759 = vmatpush.msra.mxu1 %v7453_v6  ;;  %v1362_v41 = vsel %vm1359_vm3, %v1361_v32, %v1357_v40  ;;  %v1512_v6 = vand.u32 2147483648, %v5617_v0  ;;  %vm1508_vm6 = vmor %vm1506_vm5, %vm1507_vm4 }
 0x2ff   :  { %v1503_v9 = vsub.f32 1.0, %v1502_v34 }
 0x300   :  { %3454 = vtanh.f32 %v1366_v54  ;;  %1760 = vmatpush.msra.mxu1 %v7454_v7  ;;  %v1513_v36 = vor.u32 1.1754944e-38, %v1512_v6  ;;  %v5752_v6 = vld [vmem:[#allocation7 + $0xb0] sm:$0xff] }
 0x301   :  { %v1504_v15 = vmul.f32 %v3451_v62, %v1503_v9  ;;  %v5731_v9 = vld [vmem:[#allocation2 + $0x140] sm:$0xff] }
 0x302   :  { %v3453_v61 = vpop.eup %3452  ;;  %1761 = vmatpush.msra.mxu1 %v7455_v11 }
 0x303   :  { %v5634_v51 = vadd.f32 1.0, %v3453_v61  ;;  %v1505_v54 = vadd.f32 %v3451_v62, %v1504_v15  ;;  %v1428_v61 = vpop.f32.mrf.mxu1  ;;  %v5740_v15 = vld [vmem:[#allocation7 + $0xe0] sm:$0xff] }
 0x304   :  { %1762 = vmatpush.msra.mxu1 %v7456_v8 }
 0x305   :  { %3456 = vrcp.f32 %v5634_v51  ;;  %v1527_v32 = vand.u32 2147483648, %v5634_v51  ;;  %vm1521_vm9 = vweird.f32 %v5634_v51 }
 0x306   :  { %v3455_v2 = vpop.eup %3454  ;;  %1763 = vmatpush.msra.mxu1 %v7457_v29  ;;  %v5734_v29 = vld [vmem:[#allocation7 + $0xf8] sm:$0xff] }
 0x307   :  { %v1368_v27 = vsub.f32 %v5373_v39, %v3455_v2  ;;  %v5651_v39 = vld [vmem:[%s6798_s1 + $0x18] sm:$0xff] }
 0x309   :  { %v1369_v1 = vmul.f32 %v1368_v27, %v1362_v41  ;;  %v1528_v27 = vor.u32 1.1754944e-38, %v1527_v32  ;;  %v5794_v32 = vld [vmem:[#allocation7 + $0x8] sm:$0xff] }
 0x30a   :  { %7468 = vst [vmem:[#allocation69_spill] sm:$0xff] %v5794_v32 }
 0x30b   :  { %v5642_v37 = vadd.f32 %v3455_v2, %v1369_v1  ;;  %v3457_v16 = vpop.eup %3456  ;;  %v5737_v1 = vld [vmem:[#allocation2 + $0x128] sm:$0xff] }
 0x30c   :  { %v1517_v35 = vmul.f32 %v3457_v16, %v5634_v51  ;;  %vm1522_vm8 = vweird.f32 %v3457_v16 }
 0x30d   :  { %1657 = vmatmul.f32.vlgmr.msrb.gmra.mxu3 %v5642_v37  ;;  %1677 = vmatmul.f32.vlgmr.msra.gmra.mxu2 %v5642_v37  ;;  %vm1523_vm10 = vmor %vm1521_vm9, %vm1522_vm8 }
 0x30e   :  { %1697 = vmatmul.f32.vlgmr.msrb.gmra.mxu0 %v5642_v37  ;;  %1848 = vmatpush.msrb.mxu3 %v5456_v49  ;;  %v1510_v49 = vand.u32 2147483647, %v5617_v0  ;;  %v1518_v20 = vsub.f32 1.0, %v1517_v35  ;;  %v5749_v35 = vld [vmem:[#allocation2 + $0xf8] sm:$0xff] }
 0x30f   :  { %1972 = vmatpush.msrb.mxu0 %v5651_v39 }
 0x310   :  { %1849 = vmatpush.msrb.mxu3 %v5460_v22  ;;  %v1509_v22 = vsel %vm1508_vm6, %v3451_v62, %v1505_v54  ;;  %vm1511_vm7 = vcmp.eq.f32.partialorder %v1510_v49, 8.507059e+37  ;;  %v1519_v11 = vmul.f32 %v3457_v16, %v1518_v20  ;;  %v5746_v54 = vld [vmem:[#allocation7 + $0xc8] sm:$0xff]  ;;  %v5755_v49 = vld [vmem:[#allocation2 + $0xe0] sm:$0xff] }
 0x311   :  { %1973 = vmatpush.msrb.mxu0 %v5660_v23  ;;  %v1514_v62 = vsel %vm1511_vm7, %v1513_v36, %v1509_v22  ;;  %v5758_v22 = vld [vmem:[#allocation7 + $0x98] sm:$0xff]  ;;  %v5764_v20 = vld [vmem:[#allocation7 + $0x80] sm:$0xff]  ;;  %v5770_v36 = vld [vmem:[#allocation7 + $0x68] sm:$0xff] }
 0x312   :  { %1850 = vmatpush.msrb.mxu3 %v5463_v30  ;;  %v5672_v30 = vld [vmem:[%s6805_s8] ss:$0 sm:$0xff]  ;;  %v1520_v2 = vadd.f32 %v3457_v16, %v1519_v11  ;;  %7460 = vst [vmem:[#allocation48_spill] sm:$0xff] %v5770_v36  ;;  %v5785_v11 = vld [vmem:[#allocation2 + $0x68] sm:$0xff] }
 0x313   :  { %7465 = vst [vmem:[#allocation15_spill] sm:$0xff] %v5785_v11 }
 0x314   :  { %1851 = vmatpush.msrb.mxu3 %v5466_v31  ;;  %v1429_v31 = vadd.f32 %v1428_v61, %v4942_v59  ;;  %v5761_v61 = vld [vmem:[#allocation2 + $0xc8] sm:$0xff] }
 0x315   :  { %v1488_v7 = vpop.f32.mrf.mxu0  ;;  %1784 = vmatmul.f32.vlgmr.msra.gmra.mxu3 %v5642_v37  ;;  %1804 = vmatmul.f32.vlgmr.msrb.gmra.mxu2 %v5642_v37  ;;  %7458 = vst [vmem:[#allocation21_spill] sm:$0xff] %v5761_v61 }
 0x316   :  { %v1531_v0 = vadd.f32 %v5672_v30, %v1488_v7  ;;  %1852 = vmatpush.msrb.mxu3 %v5469_v12  ;;  %v1525_v12 = vand.u32 2147483647, %v5634_v51  ;;  %v5728_v51 = vld [vmem:[#allocation7 + $0x110] sm:$0xff] }
 0x317   :  { %v5767_v7 = vld [vmem:[#allocation2 + $0xb0] sm:$0xff] }
 0x318   :  { %v1532_v34 = vmul.f32 %v1531_v0, %v1514_v62  ;;  %1853 = vmatpush.msrb.mxu3 %v5472_v47  ;;  %v1524_v47 = vsel %vm1523_vm10, %v3457_v16, %v1520_v2  ;;  %vm1526_vm11 = vcmp.eq.f32.partialorder %v1525_v12, 8.507059e+37  ;;  %v5743_v16 = vld [vmem:[#allocation2 + $0x110] sm:$0xff]  ;;  %7459 = vst [vmem:[#allocation34_spill] sm:$0xff] %v5767_v7  ;;  %v5773_v0 = vld [vmem:[#allocation2 + $0x98] sm:$0xff] }
 0x319   :  { %7461 = vst [vmem:[#allocation49_spill] sm:$0xff] %v5773_v0  ;;  %v5776_v62 = vld [vmem:[#allocation7 + $0x50] sm:$0xff]  ;;  %v5797_v12 = vld [vmem:[#allocation2 + $0x38] sm:$0xff] }
 0x31a   :  { %v1533_v40 = vadd.f32 %v1532_v34, %v1429_v31  ;;  %1854 = vmatpush.msrb.mxu3 %v5475_v55  ;;  %7462 = vst [vmem:[#allocation50_spill] sm:$0xff] %v5776_v62  ;;  %v5779_v31 = vld [vmem:[#allocation2 + $0x80] sm:$0xff]  ;;  %v5782_v34 = vld [vmem:[#allocation7 + $0x38] sm:$0xff]  ;;  %v5791_v2 = vld [vmem:[#allocation2 + $0x50] sm:$0xff] }
 0x31b   :  { %7463 = vst [vmem:[#allocation40_spill] sm:$0xff] %v5779_v31 }
 0x31c   :  { %3458 = vtanh.f32 %v1533_v40  ;;  %1855 = vmatpush.msrb.mxu3 %v5478_v56  ;;  %v1529_v56 = vsel %vm1526_vm11, %v1528_v27, %v1524_v47  ;;  %7464 = vst [vmem:[#allocation59_spill] sm:$0xff] %v5782_v34  ;;  %v5788_v40 = vld [vmem:[#allocation7 + $0x20] sm:$0xff]  ;;  %v5813_v27 = vld [vmem:[%s6798_s1 + $0x8] sm:$0xff] }
 0x31d   :  { %7466 = vst [vmem:[#allocation63_spill] sm:$0xff] %v5788_v40  ;;  %v5804_v47 = vld [vmem:[%s6798_s1 + $0x20] sm:$0xff] }
 0x31e   :  { %1856 = vmatpush.msrb.mxu3 %v5481_v45  ;;  %7467 = vst [vmem:[#allocation22_spill] sm:$0xff] %v5791_v2 }
 0x31f   :  { %7469 = vst [vmem:[#allocation30_spill] sm:$0xff] %v5797_v12 }
 0x320   :  { %1857 = vmatpush.msrb.mxu3 %v5484_v21  ;;  %v5694_v21 = vld [vmem:[#allocation7 + $0x170] sm:$0xff]  ;;  %7470 = vst [vmem:[#allocation67_spill] sm:$0xff] %v5804_v47 }
 0x321   :  { %7472 = vst [vmem:[#allocation73_spill] sm:$0xff] %v5813_v27 }
 0x322   :  { %v3459_v8 = vpop.eup %3458  ;;  %1858 = vmatpush.msrb.mxu3 %v5487_v50  ;;  %v5704_v50 = vld [vmem:[#allocation7 + $0x158] sm:$0xff] }
 0x323   :  { %v1535_v55 = vsub.f32 %v5382_v33, %v3459_v8  ;;  %v5701_v33 = vld [vmem:[%s6798_s1 + $0x28] sm:$0xff] }
 0x324   :  { %1859 = vmatpush.msrb.mxu3 %v5490_v38  ;;  %v5712_v38 = vld [vmem:[%s6798_s1 + $0x10] sm:$0xff] }
 0x325   :  { %v1536_v41 = vmul.f32 %v1535_v55, %v1529_v56  ;;  %v5816_v55 = vld [vmem:[#allocation2 + $0x8] sm:$0xff]  ;;  %v5820_v56 = vld [vmem:[#allocation5 + $0x178] sm:$0xff] }
 0x326   :  { %1860 = vmatpush.msrb.mxu3 %v5493_v44  ;;  %v5715_v44 = vld [vmem:[#allocation7 + $0x140] sm:$0xff]  ;;  %7473 = vst [vmem:[#allocation31_spill] sm:$0xff] %v5816_v55 }
 0x327   :  { %v5689_v45 = vadd.f32 %v3459_v8, %v1536_v41  ;;  %v5807_v8 = vld [vmem:[#allocation2 + $0x20] sm:$0xff]  ;;  %7474 = vst [vmem:[#allocation71_spill] sm:$0xff] %v5820_v56 }
 0x328   :  { %1861 = vmatpush.msrb.mxu3 %v5496_v48  ;;  %v5718_v48 = vld [vmem:[#allocation2 + $0x170] sm:$0xff]  ;;  %7471 = vst [vmem:[#allocation23_spill] sm:$0xff] %v5807_v8  ;;  %v5824_v41 = vld [vmem:[#allocation5 + $0x160] sm:$0xff] }
 0x329   :  { %1571 = vmatmul.f32.vlgmr.msrb.gmra.mxu1 %v5689_v45  ;;  %1824 = vmatmul.f32.vlgmr.msra.gmra.mxu0 %v5689_v45  ;;  %7475 = vst [vmem:[#allocation24_spill] sm:$0xff] %v5824_v41 }
 0x32a   :  { %1828 = vmatpush.msrb.mxu1 %v5694_v21  ;;  %1862 = vmatpush.msrb.mxu3 %v5499_v42  ;;  %v5721_v42 = vld [vmem:[#allocation7 + $0x128] sm:$0xff] }
 0x32b   :  { %2012 = vmatpush.msra.mxu0 %v5701_v33 }
 0x32c   :  { %1829 = vmatpush.msrb.mxu1 %v5704_v50  ;;  %1863 = vmatpush.msrb.mxu3 %v5502_v57  ;;  %v5724_v57 = vld [vmem:[#allocation2 + $0x158] sm:$0xff] }
 0x32d   :  { %1864 = vmatmul.f32.vlgmr.msrb.gmra.mxu3 %v5689_v45  ;;  %2013 = vmatpush.msra.mxu0 %v5712_v38 }
 0x32e   :  { %1830 = vmatpush.msrb.mxu1 %v5715_v44  ;;  %2038 = vmatpush.msra.mxu3 %v5718_v48 }
 0x330   :  { %1831 = vmatpush.msrb.mxu1 %v5721_v42  ;;  %2039 = vmatpush.msra.mxu3 %v5724_v57 }
 0x331   :  { %1764 = vmatmul.f32.vlgmr.msra.gmra.mxu1 %v5642_v37 }
 0x332   :  { %1832 = vmatpush.msrb.mxu1 %v5728_v51  ;;  %2040 = vmatpush.msra.mxu3 %v5731_v9 }
 0x334   :  { %1833 = vmatpush.msrb.mxu1 %v5734_v29  ;;  %2041 = vmatpush.msra.mxu3 %v5737_v1 }
 0x336   :  { %1834 = vmatpush.msrb.mxu1 %v5740_v15  ;;  %2042 = vmatpush.msra.mxu3 %v5743_v16 }
 0x338   :  { %1835 = vmatpush.msrb.mxu1 %v5746_v54  ;;  %2043 = vmatpush.msra.mxu3 %v5749_v35 }
 0x33a   :  { %1836 = vmatpush.msrb.mxu1 %v5752_v6  ;;  %2044 = vmatpush.msra.mxu3 %v5755_v49 }
 0x33c   :  { %1837 = vmatpush.msrb.mxu1 %v5758_v22  ;;  %2045 = vmatpush.msra.mxu3 %v5761_v61 }
 0x33e   :  { %1838 = vmatpush.msrb.mxu1 %v5764_v20  ;;  %2046 = vmatpush.msra.mxu3 %v5767_v7  ;;  %v1916_v7 = vld [vmem:[#allocation8 + $0x180] sm:$0xff] }
 0x340   :  { %1839 = vmatpush.msrb.mxu1 %v5770_v36  ;;  %2047 = vmatpush.msra.mxu3 %v5773_v0  ;;  %v6011_v36 = vld [vmem:[#allocation5 + $0x120] sm:$0xff] }
 0x341   :  { %7519 = vst [vmem:[#allocation60_spill] sm:$0xff] %v6011_v36 }
 0x342   :  { %1840 = vmatpush.msrb.mxu1 %v5776_v62  ;;  %2048 = vmatpush.msra.mxu3 %v5779_v31  ;;  %v5969_v31 = vld [vmem:[#allocation7 + $0x150] sm:$0xff]  ;;  %v5978_v62 = vld [vmem:[#allocation7 + $0x138] sm:$0xff] }
 0x343   :  { %7508 = vst [vmem:[#allocation90_spill] sm:$0xff] %v5969_v31 }
 0x344   :  { %1841 = vmatpush.msrb.mxu1 %v5782_v34  ;;  %2049 = vmatpush.msra.mxu3 %v5785_v11  ;;  %v7506_v11 = vld [vmem:[#allocation101_spill] sm:$0xff]  ;;  %7511 = vst [vmem:[#allocation62_spill] sm:$0xff] %v5978_v62 }
 0x346   :  { %1842 = vmatpush.msrb.mxu1 %v5788_v40  ;;  %2050 = vmatpush.msra.mxu3 %v5791_v2  ;;  %v5959_v2 = vld [vmem:[#allocation2 + $0x10] sm:$0xff] }
 0x347   :  { %7505 = vst [vmem:[#allocation89_spill] sm:$0xff] %v5959_v2  ;;  %v7509_v40 = vld [vmem:[#allocation104_spill] sm:$0xff] }
 0x348   :  { %1843 = vmatpush.msrb.mxu1 %v5794_v32  ;;  %2051 = vmatpush.msra.mxu3 %v5797_v12  ;;  %v7497_v12 = vld [vmem:[#allocation88_spill] sm:$0xff] }
 0x349   :  { %1844 = vmatmul.f32.vlgmr.msrb.gmra.mxu1 %v5689_v45 }
 0x34a   :  { %1992 = vmatpush.msra.mxu1 %v5804_v47  ;;  %2052 = vmatpush.msra.mxu3 %v5807_v8  ;;  %v5828_v8 = vld [vmem:[#allocation5 + $0x148] sm:$0xff]  ;;  %v1918_v47 = vld [vmem:[#allocation8 + $0x190] sm:$0xff] }
 0x34b   :  { %7476 = vst [vmem:[#allocation77_spill] sm:$0xff] %v5828_v8 }
 0x34c   :  { %1993 = vmatpush.msra.mxu1 %v5813_v27  ;;  %2053 = vmatpush.msra.mxu3 %v5816_v55  ;;  %v5832_v55 = vld [vmem:[#allocation5 + $0x130] sm:$0xff]  ;;  %v7504_v27 = vld [vmem:[#allocation98_spill] sm:$0xff] }
 0x34d   :  { %7477 = vst [vmem:[#allocation32_spill] sm:$0xff] %v5832_v55 }
 0x34e   :  { %2018 = vmatpush.msrb.mxu1 %v5287_v5  ;;  %2165 = vmatpush.msrb.mxu3 %v5820_v56  ;;  %v5836_v5 = vld [vmem:[#allocation5 + $0x118] sm:$0xff]  ;;  %v5921_v56 = vld [vmem:[#allocation2 + $0xd0] sm:$0xff] }
 0x34f   :  { %7478 = vst [vmem:[#allocation75_spill] sm:$0xff] %v5836_v5 }
 0x350   :  { %2019 = vmatpush.msrb.mxu1 %v5292_v63  ;;  %2166 = vmatpush.msrb.mxu3 %v5824_v41  ;;  %v5840_v63 = vld [vmem:[#allocation5 + $0x100] sm:$0xff] }
 0x351   :  { %7479 = vst [vmem:[#allocation42_spill] sm:$0xff] %v5840_v63 }
 0x352   :  { %2020 = vmatpush.msrb.mxu1 %v5295_v53  ;;  %2167 = vmatpush.msrb.mxu3 %v5828_v8  ;;  %v5844_v53 = vld [vmem:[#allocation5 + $0xe8] sm:$0xff]  ;;  %v7495_v8 = vld [vmem:[#allocation96_spill] sm:$0xff] }
 0x353   :  { %7480 = vst [vmem:[#allocation78_spill] sm:$0xff] %v5844_v53 }
 0x354   :  { %2021 = vmatpush.msrb.mxu1 %v5299_v3  ;;  %2168 = vmatpush.msrb.mxu3 %v5832_v55  ;;  %v5848_v3 = vld [vmem:[#allocation5 + $0xd0] sm:$0xff]  ;;  %v5913_v55 = vld [vmem:[#allocation2 + $0x100] sm:$0xff] }
 0x355   :  { %7481 = vst [vmem:[#allocation26_spill] sm:$0xff] %v5848_v3 }
 0x356   :  { %2022 = vmatpush.msrb.mxu1 %v5302_v43  ;;  %2169 = vmatpush.msrb.mxu3 %v5836_v5  ;;  %v5852_v43 = vld [vmem:[#allocation5 + $0xb8] sm:$0xff]  ;;  %v7494_v5 = vld [vmem:[#allocation84_spill] sm:$0xff] }
 0x357   :  { %7482 = vst [vmem:[#allocation81_spill] sm:$0xff] %v5852_v43 }
 0x358   :  { %2023 = vmatpush.msrb.mxu1 %v5306_v17  ;;  %2170 = vmatpush.msrb.mxu3 %v5840_v63  ;;  %v5856_v17 = vld [vmem:[#allocation5 + $0xa0] sm:$0xff]  ;;  %v5909_v63 = vld [vmem:[#allocation2 + $0x118] sm:$0xff] }
 0x359   :  { %7483 = vst [vmem:[#allocation45_spill] sm:$0xff] %v5856_v17 }
 0x35a   :  { %2024 = vmatpush.msrb.mxu1 %v5309_v26  ;;  %2171 = vmatpush.msrb.mxu3 %v5844_v53  ;;  %v5860_v26 = vld [vmem:[#allocation5 + $0x88] sm:$0xff] }
 0x35b   :  { %7484 = vst [vmem:[#allocation82_spill] sm:$0xff] %v5860_v26 }
 0x35c   :  { %2025 = vmatpush.msrb.mxu1 %v5312_v19  ;;  %2172 = vmatpush.msrb.mxu3 %v5848_v3  ;;  %v5864_v19 = vld [vmem:[#allocation5 + $0x70] sm:$0xff] }
 0x35d   :  { %7485 = vst [vmem:[#allocation36_spill] sm:$0xff] %v5864_v19 }
 0x35e   :  { %2026 = vmatpush.msrb.mxu1 %v5315_v28  ;;  %2173 = vmatpush.msrb.mxu3 %v5852_v43  ;;  %v5868_v28 = vld [vmem:[#allocation5 + $0x58] sm:$0xff]  ;;  %v7492_v43 = vld [vmem:[#allocation51_spill] sm:$0xff] }
 0x35f   :  { %7486 = vst [vmem:[#allocation85_spill] sm:$0xff] %v5868_v28 }
 0x360   :  { %2027 = vmatpush.msrb.mxu1 %v5321_v10  ;;  %2174 = vmatpush.msrb.mxu3 %v5856_v17  ;;  %v5872_v10 = vld [vmem:[#allocation5 + $0x40] sm:$0xff] }
 0x361   :  { %7487 = vst [vmem:[#allocation53_spill] sm:$0xff] %v5872_v10  ;;  %v7491_v17 = vld [vmem:[#allocation94_spill] sm:$0xff] }
 0x362   :  { %2028 = vmatpush.msrb.mxu1 %v5324_v4  ;;  %2175 = vmatpush.msrb.mxu3 %v5860_v26  ;;  %v5876_v4 = vld [vmem:[#allocation5 + $0x28] sm:$0xff]  ;;  %v5902_v26 = vld [vmem:[#allocation2 + $0x130] sm:$0xff] }
 0x363   :  { %7488 = vst [vmem:[#allocation86_spill] sm:$0xff] %v5876_v4 }
 0x364   :  { %2029 = vmatpush.msrb.mxu1 %v5328_v18  ;;  %2176 = vmatpush.msrb.mxu3 %v5864_v19  ;;  %v5880_v18 = vld [vmem:[#allocation5 + $0x10] sm:$0xff]  ;;  %v1931_v19 = vld [vmem:[#allocation8 + $0x1f8] sm:$0xff] }
 0x365   :  { %7489 = vst [vmem:[#allocation54_spill] sm:$0xff] %v5880_v18  ;;  %1932 = vmatpush.msra.mxu2 %v1931_v19 }
 0x366   :  { %2030 = vmatpush.msrb.mxu1 %v5331_v46  ;;  %2177 = vmatpush.msrb.mxu3 %v5868_v28  ;;  %v1598_v46 = vpop.f32.mrf.mxu2  ;;  %v7490_v28 = vld [vmem:[#allocation93_spill] sm:$0xff] }
 0x367   :  { %v1599_v3 = vadd.f32 %v1598_v46, %v7492_v43  ;;  %v7496_v43 = vld [vmem:[#allocation97_spill] sm:$0xff] }
 0x368   :  { %2031 = vmatpush.msrb.mxu1 %v5334_v25  ;;  %2178 = vmatpush.msrb.mxu3 %v5872_v10  ;;  %v3351_v25 = vld [vmem:[%s6797_s0 + $0x28] sm:$0xff]  ;;  %v5894_v10 = vld [vmem:[#allocation2 + $0x160] sm:$0xff] }
 0x369   :  { %3352 = vmatmul.msk.f32.vlgmr.msrb.gmra.mxu0 %vm117_vm0, %v3351_v25  ;;  %3353 = vmatmul.msk.f32.vlgmr.msra.gmra.mxu1 %vm117_vm0, %v3351_v25 }
 0x36a   :  { %2032 = vmatpush.msrb.mxu1 %v5339_v13  ;;  %2179 = vmatpush.msrb.mxu3 %v5876_v4  ;;  %v5888_v13 = vld [vmem:[#allocation2 + $0x178] sm:$0xff] }
 0x36b   :  { %2058 = vmatpush.msrb.mxu0 %v5888_v13 }
 0x36c   :  { %2033 = vmatpush.msrb.mxu1 %v5342_v58  ;;  %2180 = vmatpush.msrb.mxu3 %v5880_v18  ;;  %v1618_v58 = vpop.f32.mrf.mxu3  ;;  %v5898_v18 = vld [vmem:[#allocation2 + $0x148] sm:$0xff] }
 0x36d   :  { %2059 = vmatpush.msrb.mxu0 %v5894_v10 }
 0x36e   :  { %2145 = vmatpush.msra.mxu1 %v5386_v52  ;;  %v5892_v4 = vpop.f32.mrf.mxu2  ;;  %v1930_v52 = vld [vmem:[#allocation8 + $0x1f0] sm:$0xff] }
 0x36f   :  { %2060 = vmatpush.msrb.mxu0 %v5898_v18  ;;  %1933 = vmatpush.msra.mxu2 %v1930_v52  ;;  %v1927_v52 = vld [vmem:[#allocation8 + $0x1d8] sm:$0xff] }
 0x370   :  { %2146 = vmatpush.msra.mxu1 %v5391_v14  ;;  %v7493_v14 = vld [vmem:[#allocation41_spill] sm:$0xff] }
 0x371   :  { %2061 = vmatpush.msrb.mxu0 %v5902_v26  ;;  %v1619_v53 = vadd.f32 %v1618_v58, %v7493_v14  ;;  %v5917_v14 = vld [vmem:[#allocation2 + $0xe8] sm:$0xff] }
 0x372   :  { %2147 = vmatpush.msra.mxu1 %v7490_v28  ;;  %3354 = vmatmul.msk.f32.vlgmr.msra.gmra.mxu0 %vm117_vm0, %v3351_v25  ;;  %v1929_v28 = vld [vmem:[#allocation8 + $0x1e8] sm:$0xff]  ;;  %v1928_v25 = vld [vmem:[#allocation8 + $0x1e0] sm:$0xff] }
 0x373   :  { %2062 = vmatpush.msrb.mxu0 %v5909_v63  ;;  %1934 = vmatpush.msra.mxu2 %v1929_v28  ;;  %v1926_v28 = vld [vmem:[#allocation8 + $0x1d0] sm:$0xff] }
 0x374   :  { %2148 = vmatpush.msra.mxu1 %v7491_v17 }
 0x375   :  { %2063 = vmatpush.msrb.mxu0 %v5913_v55  ;;  %1935 = vmatpush.msra.mxu2 %v1928_v25  ;;  %v5933_v25 = vld [vmem:[#allocation2 + $0x88] sm:$0xff] }
 0x376   :  { %2149 = vmatpush.msra.mxu1 %v7494_v5 }
 0x377   :  { %2064 = vmatpush.msrb.mxu0 %v5917_v14  ;;  %1936 = vmatpush.msra.mxu2 %v1927_v52 }
 0x378   :  { %2150 = vmatpush.msra.mxu1 %v7495_v8  ;;  %v5925_v8 = vld [vmem:[#allocation2 + $0xb8] sm:$0xff] }
 0x379   :  { %2065 = vmatpush.msrb.mxu0 %v5921_v56  ;;  %1937 = vmatpush.msra.mxu2 %v1926_v28  ;;  %v1922_v28 = vld [vmem:[#allocation8 + $0x1b0] sm:$0xff] }
 0x37a   :  { %2151 = vmatpush.msra.mxu1 %v7496_v43  ;;  %v5929_v43 = vld [vmem:[#allocation2 + $0xa0] sm:$0xff] }
 0x37b   :  { %2066 = vmatpush.msrb.mxu0 %v5925_v8 }
 0x37c   :  { %2152 = vmatpush.msra.mxu1 %v7497_v12  ;;  %v1923_v12 = vld [vmem:[#allocation8 + $0x1b8] sm:$0xff] }
 0x37d   :  { %2067 = vmatpush.msrb.mxu0 %v5929_v43 }
 0x37f   :  { %2068 = vmatpush.msrb.mxu0 %v5933_v25 }
 0x390   :  { %v1658_v17 = vpop.f32.mrf.mxu3  ;;  %v1678_v19 = vpop.f32.mrf.mxu2 }
 0x391   :  { %v1701_v46 = vadd.f32 %v1658_v17, %v1599_v3  ;;  %v1702_v58 = vadd.f32 %v1678_v19, %v1619_v53  ;;  %v1925_v53 = vld [vmem:[#allocation8 + $0x1c8] sm:$0xff]  ;;  %v1924_v17 = vld [vmem:[#allocation8 + $0x1c0] sm:$0xff]  ;;  %v7499_v19 = vld [vmem:[#allocation100_spill] sm:$0xff] }
 0x392   :  { %v7498_v3 = vld [vmem:[#allocation99_spill] sm:$0xff]  ;;  %1938 = vmatpush.msra.mxu2 %v1925_v53  ;;  %v7501_v53 = vld [vmem:[#allocation102_spill] sm:$0xff] }
 0x393   :  { %v3347_v5 = vmul.f32 -1.442695, %v1701_v46  ;;  %v3348_v41 = vmul.f32 -1.442695, %v1702_v58  ;;  %2153 = vmatpush.msra.mxu1 %v7498_v3  ;;  %v7500_v46 = vld [vmem:[#allocation92_spill] sm:$0xff] }
 0x394   :  { %1939 = vmatpush.msra.mxu2 %v1924_v17  ;;  %v5937_v58 = vld [vmem:[#allocation2 + $0x70] sm:$0xff]  ;;  %v1921_v17 = vld [vmem:[#allocation8 + $0x1a8] sm:$0xff] }
 0x395   :  { %3460 = vpow2.f32 %v3347_v5  ;;  %2154 = vmatpush.msra.mxu1 %v7499_v19  ;;  %2069 = vmatpush.msrb.mxu0 %v5937_v58  ;;  %v5945_v19 = vld [vmem:[#allocation2 + $0x58] sm:$0xff] }
 0x396   :  { %3462 = vpow2.f32 %v3348_v41  ;;  %1940 = vmatpush.msra.mxu2 %v1923_v12  ;;  %v5951_v12 = vld [vmem:[#allocation2 + $0x40] sm:$0xff] }
 0x397   :  { %2155 = vmatpush.msra.mxu1 %v7500_v46  ;;  %2070 = vmatpush.msrb.mxu0 %v5945_v19  ;;  %v7502_v46 = vld [vmem:[#allocation103_spill] sm:$0xff] }
 0x398   :  { %1941 = vmatpush.msra.mxu2 %v1922_v28  ;;  %v1919_v28 = vld [vmem:[#allocation8 + $0x198] sm:$0xff] }
 0x399   :  { %2156 = vmatpush.msra.mxu1 %v7501_v53  ;;  %2071 = vmatpush.msrb.mxu0 %v5951_v12  ;;  %v5955_v53 = vld [vmem:[#allocation2 + $0x28] sm:$0xff] }
 0x39a   :  { %1942 = vmatpush.msra.mxu2 %v1921_v17  ;;  %v5963_v17 = vld [vmem:[#allocation7 + $0x168] sm:$0xff] }
 0x39b   :  { %v3461_v41 = vpop.eup %3460  ;;  %2157 = vmatpush.msra.mxu1 %v7502_v46  ;;  %2072 = vmatpush.msrb.mxu0 %v5955_v53  ;;  %7507 = vst [vmem:[#allocation55_spill] sm:$0xff] %v5963_v17 }
 0x39c   :  { %v3463_v52 = vpop.eup %3462  ;;  %v5940_v5 = vadd.f32 1.0, %v3461_v41  ;;  %v1920_v41 = vld [vmem:[#allocation8 + $0x1a0] sm:$0xff] }
 0x39d   :  { %v5943_v3 = vadd.f32 1.0, %v3463_v52  ;;  %v7503_v52 = vld [vmem:[#allocation95_spill] sm:$0xff]  ;;  %1943 = vmatpush.msra.mxu2 %v1920_v41  ;;  %2073 = vmatpush.msrb.mxu0 %v5959_v2 }
 0x39e   :  { %3464 = vrcp.f32 %v5940_v5  ;;  %2158 = vmatpush.msra.mxu1 %v7503_v52  ;;  %v1722_v34 = vand.u32 2147483648, %v5940_v5  ;;  %vm1716_vm13 = vweird.f32 %v5940_v5 }
 0x39f   :  { %3466 = vrcp.f32 %v5943_v3  ;;  %1944 = vmatpush.msra.mxu2 %v1919_v28  ;;  %2185 = vmatpush.msra.mxu0 %v5963_v17  ;;  %vm1731_vm2 = vweird.f32 %v5943_v3 }
 0x3a0   :  { %2159 = vmatpush.msra.mxu1 %v7504_v27  ;;  %v1917_v27 = vld [vmem:[#allocation8 + $0x188] sm:$0xff] }
 0x3a1   :  { %1945 = vmatpush.msra.mxu2 %v1918_v47  ;;  %2186 = vmatpush.msra.mxu0 %v5969_v31  ;;  %v1720_v31 = vand.u32 2147483647, %v5940_v5 }
 0x3a2   :  { %2160 = vmatpush.msra.mxu1 %v7506_v11  ;;  %v1698_v11 = vpop.f32.mrf.mxu0 }
 0x3a3   :  { %1946 = vmatpush.msra.mxu2 %v1917_v27  ;;  %2187 = vmatpush.msra.mxu0 %v5978_v62  ;;  %v1723_v27 = vor.u32 1.1754944e-38, %v1722_v34  ;;  %v5989_v62 = vld [vmem:[#allocation5 + $0x150] sm:$0xff]  ;;  %vm1721_vm15 = vcmp.eq.f32.partialorder %v1720_v31, 8.507059e+37  ;;  %v6014_v31 = vld [vmem:[#allocation7 + $0xd8] sm:$0xff] }
 0x3a4   :  { %v3465_v46 = vpop.eup %3464  ;;  %7514 = vst [vmem:[#allocation52_spill] sm:$0xff] %v5989_v62 }
 0x3a5   :  { %v5966_v52 = vpop.eup %3466  ;;  %v1712_v41 = vmul.f32 %v3465_v46, %v5940_v5  ;;  %vm1717_vm12 = vweird.f32 %v3465_v46  ;;  %1947 = vmatpush.msra.mxu2 %v1916_v7  ;;  %v1639_v7 = vadd.f32 %v5892_v4, %v4683_v60  ;;  %v7518_v60 = vld [vmem:[#allocation28_spill] sm:$0xff] }
 0x3a6   :  { %v1572_v32 = vpop.f32.mrf.mxu1  ;;  %v1727_v17 = vmul.f32 %v5966_v52, %v5943_v3  ;;  %vm1718_vm14 = vmor %vm1716_vm13, %vm1717_vm12  ;;  %vm1732_vm1 = vweird.f32 %v5966_v52 }
 0x3a7   :  { %v1713_v28 = vsub.f32 1.0, %v1712_v41  ;;  %v5973_v0 = vadd.f32 %v1572_v32, %v7509_v40  ;;  %v5982_v41 = vld [vmem:[#allocation5 + $0x168] sm:$0xff]  ;;  %v5985_v40 = vld [vmem:[#allocation7 + $0x120] sm:$0xff]  ;;  %vm6040_vm3 = vmor %vm1731_vm2, %vm1732_vm1 }
 0x3a8   :  { %7512 = vst [vmem:[#allocation47_spill] sm:$0xff] %v5982_v41  ;;  %2125 = vmatpush.msrb.mxu2 %v5982_v41  ;;  %2188 = vmatpush.msra.mxu0 %v5985_v40 }
 0x3a9   :  { %7510 = vst [vmem:[#allocation61_spill] sm:$0xff] %v5973_v0  ;;  %v1714_v47 = vmul.f32 %v3465_v46, %v1713_v28  ;;  %v1728_v0 = vsub.f32 1.0, %v1727_v17  ;;  %v5992_v28 = vld [vmem:[#allocation7 + $0x108] sm:$0xff] }
 0x3aa   :  { %7513 = vst [vmem:[#allocation66_spill] sm:$0xff] %v5985_v40  ;;  %2126 = vmatpush.msrb.mxu2 %v5989_v62  ;;  %2189 = vmatpush.msra.mxu0 %v5992_v28  ;;  %v6003_v40 = vld [vmem:[#allocation5 + $0x138] sm:$0xff]  ;;  %v6006_v62 = vld [vmem:[#allocation7 + $0xf0] sm:$0xff]  ;;  %v1825_v61 = vpop.f32.mrf.mxu0 }
 0x3ab   :  { %v1715_v32 = vadd.f32 %v3465_v46, %v1714_v47  ;;  %7515 = vst [vmem:[#allocation70_spill] sm:$0xff] %v5992_v28  ;;  %v6000_v47 = vld [vmem:[%s6801_s4] ss:$0 sm:$0xff]  ;;  %v1729_v2 = vmul.f32 %v5966_v52, %v1728_v0 }
 0x3ac   :  { %7516 = vst [vmem:[#allocation56_spill] sm:$0xff] %v6000_v47  ;;  %v1741_v5 = vadd.f32 %v6000_v47, %v1698_v11  ;;  %2127 = vmatpush.msrb.mxu2 %v6003_v40  ;;  %2190 = vmatpush.msra.mxu0 %v6006_v62 }
 0x3ad   :  { %v1719_v34 = vsel %vm1718_vm14, %v3465_v46, %v1715_v32  ;;  %7517 = vst [vmem:[#allocation74_spill] sm:$0xff] %v6003_v40  ;;  %v6017_v32 = vld [vmem:[#allocation5 + $0x108] sm:$0xff] }
 0x3ae   :  { %v1724_v17 = vsel %vm1721_vm15, %v1723_v27, %v1719_v34  ;;  %v1765_v41 = vpop.f32.mrf.mxu1  ;;  %2128 = vmatpush.msrb.mxu2 %v6011_v36  ;;  %2191 = vmatpush.msra.mxu0 %v6014_v31  ;;  %7520 = vst [vmem:[#allocation64_spill] sm:$0xff] %v6017_v32  ;;  %v6020_v27 = vld [vmem:[#allocation7 + $0xc0] sm:$0xff]  ;;  %v6034_v34 = vld [vmem:[#allocation5 + $0xd8] sm:$0xff]  ;;  %v6062_v36 = vld [vmem:[#allocation5 + $0x90] sm:$0xff] }
 0x3af   :  { %v1742_v4 = vmul.f32 %v1741_v5, %v1724_v17  ;;  %v1766_v28 = vadd.f32 %v1765_v41, %v7518_v60  ;;  %v1730_v41 = vadd.f32 %v5966_v52, %v1729_v2  ;;  %v6025_v5 = vld [vmem:[#allocation5 + $0xf0] sm:$0xff]  ;;  %7522 = vst [vmem:[#allocation29_spill] sm:$0xff] %v6034_v34 }
 0x3b0   :  { %2129 = vmatpush.msrb.mxu2 %v6017_v32  ;;  %2192 = vmatpush.msra.mxu0 %v6020_v27  ;;  %7521 = vst [vmem:[#allocation79_spill] sm:$0xff] %v6025_v5  ;;  %v6037_v2 = vld [vmem:[#allocation7 + $0x90] sm:$0xff]  ;;  %v6057_v32 = vld [vmem:[#allocation7 + $0x60] sm:$0xff] }
 0x3b1   :  { %v1743_v46 = vadd.f32 %v1742_v4, %v1639_v7  ;;  %v1868_v11 = vadd.f32 %v1825_v61, %v1766_v28  ;;  %v6028_v7 = vld [vmem:[#allocation7 + $0xa8] sm:$0xff]  ;;  %v1737_v61 = vand.u32 2147483648, %v5943_v3  ;;  %v1735_v28 = vand.u32 2147483647, %v5943_v3  ;;  %v6050_v3 = vld [vmem:[#allocation7 + $0x78] sm:$0xff]  ;;  %7527 = vst [vmem:[#allocation83_spill] sm:$0xff] %v6062_v36 }
 0x3b2   :  { %2130 = vmatpush.msrb.mxu2 %v6025_v5  ;;  %2193 = vmatpush.msra.mxu0 %v6028_v7  ;;  %v1734_v4 = vsel %vm6040_vm3, %v5966_v52, %v1730_v41  ;;  %v6054_v5 = vld [vmem:[#allocation5 + $0xa8] sm:$0xff] }
 0x3b3   :  { %3468 = vtanh.f32 %v1743_v46  ;;  %v3349_v0 = vmul.f32 -1.442695, %v1868_v11  ;;  %v6047_v46 = vld [vmem:[#allocation5 + $0xc0] sm:$0xff]  ;;  %vm1736_vm4 = vcmp.eq.f32.partialorder %v1735_v28, 8.507059e+37  ;;  %7526 = vst [vmem:[#allocation35_spill] sm:$0xff] %v6054_v5  ;;  %v6071_v28 = vld [vmem:[#allocation5 + $0x78] sm:$0xff] }
 0x3b4   :  { %2131 = vmatpush.msrb.mxu2 %v6034_v34  ;;  %2194 = vmatpush.msra.mxu0 %v6037_v2  ;;  %7525 = vst [vmem:[#allocation68_spill] sm:$0xff] %v6047_v46 }
 0x3b5   :  { %3470 = vpow2.f32 %v3349_v0  ;;  %v1738_v0 = vor.u32 1.1754944e-38, %v1737_v61  ;;  %v6065_v61 = vld [vmem:[#allocation7 + $0x48] sm:$0xff]  ;;  %7528 = vst [vmem:[#allocation16_spill] sm:$0xff] %v6071_v28 }
 0x3b6   :  { %2132 = vmatpush.msrb.mxu2 %v6047_v46  ;;  %2195 = vmatpush.msra.mxu0 %v6050_v3 }
 0x3b7   :  { %v1739_v41 = vsel %vm1736_vm4, %v1738_v0, %v1734_v4  ;;  %v6074_v4 = vld [vmem:[#allocation7 + $0x30] sm:$0xff]  ;;  %v6083_v0 = vld [vmem:[#allocation5 + $0x60] sm:$0xff] }
 0x3b8   :  { %2133 = vmatpush.msrb.mxu2 %v6054_v5  ;;  %2196 = vmatpush.msra.mxu0 %v6057_v32  ;;  %7530 = vst [vmem:[#allocation37_spill] sm:$0xff] %v6083_v0 }
 0x3b9   :  { %v3469_v11 = vpop.eup %3468 }
 0x3ba   :  { %v1745_v34 = vsub.f32 %v5642_v37, %v3469_v11  ;;  %2134 = vmatpush.msrb.mxu2 %v6062_v36  ;;  %2197 = vmatpush.msra.mxu0 %v6065_v61  ;;  %v7533_v36 = vld [vmem:[#allocation25_spill] sm:$0xff] }
 0x3bb   :  { %v3471_v52 = vpop.eup %3470 }
 0x3bc   :  { %v1746_v17 = vmul.f32 %v1745_v34, %v1739_v41  ;;  %v6060_v46 = vadd.f32 1.0, %v3471_v52  ;;  %2135 = vmatpush.msrb.mxu2 %v6071_v28  ;;  %2198 = vmatpush.msra.mxu0 %v6074_v4  ;;  %v6080_v34 = vld [vmem:[#allocation7 + $0x178] sm:$0xff]  ;;  %v6089_v41 = vld [vmem:[#allocation7 + $0x160] sm:$0xff]  ;;  %v6092_v28 = vld [vmem:[#allocation5 + $0x48] sm:$0xff] }
 0x3bd   :  { %7529 = vst [vmem:[#allocation72_spill] sm:$0xff] %v6080_v34  ;;  %v6086_v52 = vld [vmem:[#allocation7 + $0x18] sm:$0xff] }
 0x3be   :  { %v6068_v37 = vadd.f32 %v3469_v11, %v1746_v17  ;;  %3472 = vrcp.f32 %v6060_v46  ;;  %v1785_v11 = vpop.f32.mrf.mxu3  ;;  %2136 = vmatpush.msrb.mxu2 %v6083_v0  ;;  %2199 = vmatpush.msra.mxu0 %v6086_v52  ;;  %7531 = vst [vmem:[#allocation87_spill] sm:$0xff] %v6089_v41  ;;  %v6098_v0 = vld [vmem:[#allocation7 + $0x148] sm:$0xff]  ;;  %vm1883_vm6 = vweird.f32 %v6060_v46 }
 0x3bf   :  { %7532 = vst [vmem:[#allocation17_spill] sm:$0xff] %v6092_v28  ;;  %v1786_v5 = vadd.f32 %v1785_v11, %v7446_v24  ;;  %v6112_v24 = vld [vmem:[#allocation7 + $0x118] sm:$0xff] }
 0x3c0   :  { %2034 = vmatmul.f32.vlgmr.msrb.gmra.mxu1 %v6068_v37  ;;  %2054 = vmatmul.f32.vlgmr.msra.gmra.mxu3 %v6068_v37  ;;  %7536 = vst [vmem:[#allocation91_spill] sm:$0xff] %v6112_v24 }
 0x3c1   :  { %2074 = vmatmul.f32.vlgmr.msrb.gmra.mxu0 %v6068_v37  ;;  %2225 = vmatpush.msrb.mxu1 %v6080_v34  ;;  %v6102_v34 = vld [vmem:[#allocation5 + $0x30] sm:$0xff] }
 0x3c2   :  { %2137 = vmatpush.msrb.mxu2 %v6092_v28  ;;  %2200 = vmatpush.msra.mxu0 %v7533_v36  ;;  %7534 = vst [vmem:[#allocation76_spill] sm:$0xff] %v6102_v34  ;;  %v6105_v28 = vld [vmem:[#allocation7 + $0x130] sm:$0xff] }
 0x3c3   :  { %2226 = vmatpush.msrb.mxu1 %v6089_v41  ;;  %7535 = vst [vmem:[#allocation39_spill] sm:$0xff] %v6105_v28 }
 0x3c4   :  { %v3473_v17 = vpop.eup %3472  ;;  %2349 = vmatpush.msrb.mxu0 %v5651_v39  ;;  %2138 = vmatpush.msrb.mxu2 %v6102_v34  ;;  %v1889_v39 = vand.u32 2147483648, %v6060_v46 }
 0x3c5   :  { %v1879_v40 = vmul.f32 %v3473_v17, %v6060_v46  ;;  %2227 = vmatpush.msrb.mxu1 %v6098_v0  ;;  %vm1884_vm5 = vweird.f32 %v3473_v17 }
 0x3c6   :  { %v1845_v60 = vpop.f32.mrf.mxu1  ;;  %2350 = vmatpush.msrb.mxu0 %v5660_v23  ;;  %vm1885_vm7 = vmor %vm1883_vm6, %vm1884_vm5 }
 0x3c7   :  { %v1880_v41 = vsub.f32 1.0, %v1879_v40  ;;  %v1869_v47 = vadd.f32 %v1845_v60, %v1786_v5  ;;  %2228 = vmatpush.msrb.mxu1 %v6105_v28  ;;  %v6115_v60 = vld [vmem:[#allocation5 + $0x18] sm:$0xff]  ;;  %v1887_v40 = vand.u32 2147483647, %v6060_v46  ;;  %v6120_v5 = vld [vmem:[#allocation7 + $0x100] sm:$0xff]  ;;  %v1805_v28 = vpop.f32.mrf.mxu2 }
 0x3c8   :  { %2161 = vmatmul.f32.vlgmr.msra.gmra.mxu1 %v6068_v37  ;;  %2181 = vmatmul.f32.vlgmr.msrb.gmra.mxu3 %v6068_v37  ;;  %7537 = vst [vmem:[#allocation19_spill] sm:$0xff] %v6115_v60 }
 0x3c9   :  { %v1881_v36 = vmul.f32 %v3473_v17, %v1880_v41  ;;  %v3350_v11 = vmul.f32 -1.442695, %v1869_v47  ;;  %2229 = vmatpush.msrb.mxu1 %v6112_v24  ;;  %2139 = vmatpush.msrb.mxu2 %v6115_v60  ;;  %7538 = vst [vmem:[#allocation80_spill] sm:$0xff] %v6120_v5  ;;  %v6123_v41 = vld [vmem:[#allocation5] sm:$0xff]  ;;  %v1865_v47 = vpop.f32.mrf.mxu3  ;;  %v1890_v24 = vor.u32 1.1754944e-38, %v1889_v39  ;;  %v6127_v60 = vld [vmem:[#allocation7 + $0xe8] sm:$0xff] }
 0x3ca   :  { %7539 = vst [vmem:[#allocation33_spill] sm:$0xff] %v6123_v41  ;;  %vm1888_vm8 = vcmp.eq.f32.partialorder %v1887_v40, 8.507059e+37  ;;  %v6144_v40 = vld [vmem:[#allocation7 + $0x70] sm:$0xff] }
 0x3cb   :  { %v1882_v23 = vadd.f32 %v3473_v17, %v1881_v36  ;;  %3474 = vpow2.f32 %v3350_v11  ;;  %2230 = vmatpush.msrb.mxu1 %v6120_v5  ;;  %2140 = vmatpush.msrb.mxu2 %v6123_v41  ;;  %v6130_v36 = vld [vmem:[#allocation7 + $0xd0] sm:$0xff]  ;;  %v1908_v11 = vadd.f32 %v5672_v30, %v1865_v47  ;;  %v6134_v41 = vld [vmem:[#allocation7 + $0xb8] sm:$0xff]  ;;  %7542 = vst [vmem:[#allocation46_spill] sm:$0xff] %v6144_v40 }
 0x3cc   :  { %v6147_v47 = vld [vmem:[#allocation7 + $0x58] sm:$0xff] }
 0x3cd   :  { %v1886_v34 = vsel %vm1885_vm7, %v3473_v17, %v1882_v23  ;;  %2231 = vmatpush.msrb.mxu1 %v6127_v60  ;;  %v6137_v23 = vld [vmem:[#allocation7 + $0xa0] sm:$0xff]  ;;  %7543 = vst [vmem:[#allocation38_spill] sm:$0xff] %v6147_v47 }
 0x3ce   :  { %v1891_v46 = vsel %vm1888_vm8, %v1890_v24, %v1886_v34  ;;  %7540 = vst [vmem:[#allocation44_spill] sm:$0xff] %v6137_v23  ;;  %v1806_v24 = vadd.f32 %v1805_v28, %v4942_v59  ;;  %v6141_v34 = vld [vmem:[#allocation7 + $0x88] sm:$0xff] }
 0x3cf   :  { %2232 = vmatpush.msrb.mxu1 %v6130_v36  ;;  %v1909_v17 = vmul.f32 %v1908_v11, %v1891_v46  ;;  %7541 = vst [vmem:[#allocation27_spill] sm:$0xff] %v6141_v34  ;;  %v6150_v11 = vld [vmem:[#allocation7 + $0x40] sm:$0xff]  ;;  %v6153_v59 = vld [vmem:[#allocation7 + $0x28] sm:$0xff] }
 0x3d0   :  { %7544 = vst [vmem:[#allocation57_spill] sm:$0xff] %v6150_v11 }
 0x3d1   :  { %v3475_v5 = vpop.eup %3474  ;;  %2233 = vmatpush.msrb.mxu1 %v6134_v41  ;;  %v1910_v30 = vadd.f32 %v1909_v17, %v1806_v24  ;;  %7545 = vst [vmem:[#allocation58_spill] sm:$0xff] %v6153_v59 }
 0x3d2   :  { %v1877_v39 = vadd.f32 1.0, %v3475_v5 }
 0x3d3   :  { %2234 = vmatpush.msrb.mxu1 %v6137_v23 }
 0x3d4   :  { %3476 = vrcp.f32 %v1877_v39  ;;  %v1904_v17 = vand.u32 2147483648, %v1877_v39  ;;  %vm1898_vm10 = vweird.f32 %v1877_v39 }
 0x3d5   :  { %2235 = vmatpush.msrb.mxu1 %v6141_v34  ;;  %3478 = vtanh.f32 %v1910_v30  ;;  %v6156_v34 = vld [vmem:[#allocation7 + $0x10] sm:$0xff] }
 0x3d6   :  { %7546 = vst [vmem:[#allocation43_spill] sm:$0xff] %v6156_v34 }
 0x3d7   :  { %2236 = vmatpush.msrb.mxu1 %v6144_v40  ;;  %v1902_v40 = vand.u32 2147483647, %v1877_v39 }
 0x3d9   :  { %2237 = vmatpush.msrb.mxu1 %v6147_v47  ;;  %vm1903_vm12 = vcmp.eq.f32.partialorder %v1902_v40, 8.507059e+37  ;;  %v7569_v40 = vld [vmem:[#allocation71_spill] sm:$0xff] }
 0x3da   :  { %v3477_v5 = vpop.eup %3476 }
 0x3db   :  { %v1894_v46 = vmul.f32 %v3477_v5, %v1877_v39  ;;  %2238 = vmatpush.msrb.mxu1 %v6150_v11  ;;  %vm1899_vm9 = vweird.f32 %v3477_v5  ;;  %v3479_v47 = vpop.eup %3478  ;;  %v1905_v11 = vor.u32 1.1754944e-38, %v1904_v17  ;;  %v7568_v39 = vld [vmem:[#allocation31_spill] sm:$0xff]  ;;  %v7572_v17 = vld [vmem:[#allocation77_spill] sm:$0xff] }
 0x3dc   :  { %vm1900_vm11 = vmor %vm1898_vm10, %vm1899_vm9 }
 0x3dd   :  { %v1895_v28 = vsub.f32 1.0, %v1894_v46  ;;  %2239 = vmatpush.msrb.mxu1 %v6153_v59  ;;  %v1912_v46 = vsub.f32 %v5689_v45, %v3479_v47  ;;  %v7547_v45 = vld [vmem:[#allocation48_spill] sm:$0xff] }
 0x3df   :  { %v1896_v24 = vmul.f32 %v3477_v5, %v1895_v28  ;;  %2240 = vmatpush.msrb.mxu1 %v6156_v34 }
 0x3e1   :  { %2435 = vmatpush.msra.mxu1 %v5888_v13  ;;  %v1897_v30 = vadd.f32 %v3477_v5, %v1896_v24  ;;  %v6253_v24 = vld [vmem:[#allocation2 + $0xf0] sm:$0xff] }
 0x3e2   :  { %7573 = vst [vmem:[#allocation93_spill] sm:$0xff] %v6253_v24 }
 0x3e3   :  { %2436 = vmatpush.msra.mxu1 %v5894_v10  ;;  %v1901_v59 = vsel %vm1900_vm11, %v3477_v5, %v1897_v30  ;;  %v7570_v5 = vld [vmem:[#allocation24_spill] sm:$0xff] }
 0x3e4   :  { %v1906_v28 = vsel %vm1903_vm12, %v1905_v11, %v1901_v59  ;;  %v3359_v59 = vld [vmem:[%s6797_s0 + $0x30] sm:$0xff]  ;;  %v6248_v11 = vld [vmem:[#allocation2 + $0x108] sm:$0xff] }
 0x3e5   :  { %2437 = vmatpush.msra.mxu1 %v5898_v18  ;;  %v1913_v23 = vmul.f32 %v1912_v46, %v1906_v28  ;;  %v6232_v18 = vld [vmem:[#allocation2 + $0x150] sm:$0xff]  ;;  %7571 = vst [vmem:[#allocation65_spill] sm:$0xff] %v6248_v11  ;;  %v6258_v46 = vld [vmem:[#allocation2 + $0xd8] sm:$0xff]  ;;  %v7576_v28 = vld [vmem:[#allocation75_spill] sm:$0xff] }
 0x3e6   :  { %v7574_v30 = vld [vmem:[#allocation32_spill] sm:$0xff]  ;;  %7575 = vst [vmem:[#allocation94_spill] sm:$0xff] %v6258_v46 }
 0x3e7   :  { %2438 = vmatpush.msra.mxu1 %v5902_v26  ;;  %v6164_v34 = vadd.f32 %v3479_v47, %v1913_v23  ;;  %v7567_v26 = vld [vmem:[#allocation23_spill] sm:$0xff]  ;;  %v6237_v23 = vld [vmem:[#allocation2 + $0x138] sm:$0xff]  ;;  %v6243_v47 = vld [vmem:[#allocation2 + $0x120] sm:$0xff] }
 0x3e9   :  { %2439 = vmatpush.msra.mxu1 %v5909_v63  ;;  %1948 = vmatmul.f32.vlgmr.msra.gmra.mxu2 %v6164_v34 }
 0x3ea   :  { %2201 = vmatmul.f32.vlgmr.msra.gmra.mxu0 %v6164_v34  ;;  %2205 = vmatpush.msra.mxu2 %v5694_v21  ;;  %v7548_v21 = vld [vmem:[#allocation21_spill] sm:$0xff] }
 0x3eb   :  { %2241 = vmatmul.f32.vlgmr.msrb.gmra.mxu1 %v6164_v34  ;;  %2389 = vmatpush.msra.mxu0 %v5701_v33  ;;  %v7549_v33 = vld [vmem:[#allocation89_spill] sm:$0xff] }
 0x3ec   :  { %2440 = vmatpush.msra.mxu1 %v5913_v55  ;;  %2206 = vmatpush.msra.mxu2 %v5704_v50  ;;  %v7550_v50 = vld [vmem:[#allocation50_spill] sm:$0xff] }
 0x3ed   :  { %2390 = vmatpush.msra.mxu0 %v5712_v38  ;;  %v7551_v38 = vld [vmem:[#allocation34_spill] sm:$0xff] }
 0x3ee   :  { %2441 = vmatpush.msra.mxu1 %v5917_v14  ;;  %2207 = vmatpush.msra.mxu2 %v5715_v44  ;;  %v7552_v44 = vld [vmem:[#allocation55_spill] sm:$0xff] }
 0x3f0   :  { %2442 = vmatpush.msra.mxu1 %v5921_v56  ;;  %2208 = vmatpush.msra.mxu2 %v5721_v42  ;;  %v7554_v42 = vld [vmem:[#allocation49_spill] sm:$0xff] }
 0x3f1   :  { %2141 = vmatmul.f32.vlgmr.msrb.gmra.mxu2 %v6068_v37 }
 0x3f2   :  { %3360 = vmatmul.msk.f32.vlgmr.msrb.gmra.mxu0 %vm117_vm0, %v3359_v59  ;;  %2209 = vmatpush.msra.mxu2 %v5728_v51  ;;  %v7556_v51 = vld [vmem:[#allocation63_spill] sm:$0xff] }
 0x3f3   :  { %2415 = vmatpush.msrb.mxu0 %v5718_v48  ;;  %2443 = vmatpush.msra.mxu1 %v5925_v8  ;;  %v7553_v48 = vld [vmem:[#allocation59_spill] sm:$0xff] }
 0x3f4   :  { %2210 = vmatpush.msra.mxu2 %v5734_v29  ;;  %v7558_v29 = vld [vmem:[#allocation62_spill] sm:$0xff] }
 0x3f5   :  { %2416 = vmatpush.msrb.mxu0 %v5724_v57  ;;  %2444 = vmatpush.msra.mxu1 %v5929_v43  ;;  %v7555_v57 = vld [vmem:[#allocation90_spill] sm:$0xff] }
 0x3f6   :  { %2211 = vmatpush.msra.mxu2 %v5740_v15  ;;  %v7560_v15 = vld [vmem:[#allocation15_spill] sm:$0xff] }
 0x3f7   :  { %2417 = vmatpush.msrb.mxu0 %v5731_v9  ;;  %2445 = vmatpush.msra.mxu1 %v5933_v25  ;;  %v7557_v9 = vld [vmem:[#allocation40_spill] sm:$0xff] }
 0x3f8   :  { %2212 = vmatpush.msra.mxu2 %v5746_v54  ;;  %v7562_v54 = vld [vmem:[#allocation67_spill] sm:$0xff] }
 0x3f9   :  { %2418 = vmatpush.msrb.mxu0 %v5737_v1  ;;  %2446 = vmatpush.msra.mxu1 %v5937_v58  ;;  %v7559_v1 = vld [vmem:[#allocation69_spill] sm:$0xff] }
 0x3fa   :  { %3362 = vmatmul.msk.f32.vlgmr.msra.gmra.mxu0 %vm117_vm0, %v3359_v59  ;;  %2213 = vmatpush.msra.mxu2 %v5752_v6  ;;  %v7564_v6 = vld [vmem:[#allocation70_spill] sm:$0xff] }
 0x3fb   :  { %2419 = vmatpush.msrb.mxu0 %v5743_v16  ;;  %2447 = vmatpush.msra.mxu1 %v5945_v19  ;;  %v7561_v16 = vld [vmem:[#allocation66_spill] sm:$0xff] }
 0x3fc   :  { %2214 = vmatpush.msra.mxu2 %v5758_v22  ;;  %v7566_v22 = vld [vmem:[#allocation30_spill] sm:$0xff] }
 0x3fd   :  { %2420 = vmatpush.msrb.mxu0 %v5749_v35  ;;  %2448 = vmatpush.msra.mxu1 %v5951_v12  ;;  %v7563_v35 = vld [vmem:[#allocation22_spill] sm:$0xff] }
 0x3fe   :  { %2215 = vmatpush.msra.mxu2 %v5764_v20  ;;  %v6227_v20 = vld [vmem:[#allocation2 + $0x168] sm:$0xff] }
 0x3ff   :  { %2421 = vmatpush.msrb.mxu0 %v5755_v49  ;;  %2449 = vmatpush.msra.mxu1 %v5955_v53  ;;  %v7565_v49 = vld [vmem:[#allocation73_spill] sm:$0xff] }
 0x400   :  { %2216 = vmatpush.msra.mxu2 %v7547_v45  ;;  %v7578_v45 = vld [vmem:[#allocation42_spill] sm:$0xff] }
 0x401   :  { %2422 = vmatpush.msrb.mxu0 %v7548_v21  ;;  %2450 = vmatpush.msra.mxu1 %v7549_v33  ;;  %v6268_v21 = vld [vmem:[#allocation2 + $0xa8] sm:$0xff] }
 0x402   :  { %2217 = vmatpush.msra.mxu2 %v7550_v50  ;;  %7579 = vst [vmem:[#allocation96_spill] sm:$0xff] %v6268_v21  ;;  %v7580_v50 = vld [vmem:[#allocation78_spill] sm:$0xff] }
 0x403   :  { %2423 = vmatpush.msrb.mxu0 %v7551_v38  ;;  %2562 = vmatpush.msrb.mxu1 %v7552_v44  ;;  %v6273_v38 = vld [vmem:[#allocation2 + $0x90] sm:$0xff] }
 0x404   :  { %2218 = vmatpush.msra.mxu2 %v7553_v48  ;;  %7581 = vst [vmem:[#allocation97_spill] sm:$0xff] %v6273_v38  ;;  %v7582_v48 = vld [vmem:[#allocation26_spill] sm:$0xff] }
 0x405   :  { %2424 = vmatpush.msrb.mxu0 %v7554_v42  ;;  %2563 = vmatpush.msrb.mxu1 %v7555_v57  ;;  %v6278_v42 = vld [vmem:[#allocation2 + $0x78] sm:$0xff] }
 0x406   :  { %2219 = vmatpush.msra.mxu2 %v7556_v51  ;;  %7583 = vst [vmem:[#allocation88_spill] sm:$0xff] %v6278_v42  ;;  %v7584_v51 = vld [vmem:[#allocation81_spill] sm:$0xff] }
 0x407   :  { %2425 = vmatpush.msrb.mxu0 %v7557_v9  ;;  %2564 = vmatpush.msrb.mxu1 %v7558_v29  ;;  %v6282_v9 = vld [vmem:[#allocation7] sm:$0xff] }
 0x408   :  { %2220 = vmatpush.msra.mxu2 %v7559_v1  ;;  %v6285_v1 = vld [vmem:[#allocation2 + $0x60] sm:$0xff] }
 0x409   :  { %2426 = vmatpush.msrb.mxu0 %v7560_v15  ;;  %2221 = vmatmul.f32.vlgmr.msra.gmra.mxu2 %v6164_v34  ;;  %7585 = vst [vmem:[#allocation99_spill] sm:$0xff] %v6285_v1  ;;  %v7586_v15 = vld [vmem:[#allocation45_spill] sm:$0xff] }
 0x40a   :  { %2565 = vmatpush.msrb.mxu1 %v7561_v16  ;;  %2369 = vmatpush.msrb.mxu2 %v7562_v54  ;;  %v6289_v54 = vld [vmem:[#allocation2 + $0x48] sm:$0xff] }
 0x40b   :  { %2427 = vmatpush.msrb.mxu0 %v7563_v35  ;;  %7587 = vst [vmem:[#allocation100_spill] sm:$0xff] %v6289_v54  ;;  %v7588_v35 = vld [vmem:[#allocation82_spill] sm:$0xff] }
 0x40c   :  { %2566 = vmatpush.msrb.mxu1 %v7564_v6  ;;  %2370 = vmatpush.msrb.mxu2 %v7565_v49  ;;  %v6293_v49 = vld [vmem:[#allocation2 + $0x30] sm:$0xff] }
 0x40d   :  { %2428 = vmatpush.msrb.mxu0 %v7566_v22  ;;  %7589 = vst [vmem:[#allocation92_spill] sm:$0xff] %v6293_v49  ;;  %v7590_v22 = vld [vmem:[#allocation36_spill] sm:$0xff] }
 0x40e   :  { %2395 = vmatpush.msra.mxu2 %v6227_v20  ;;  %2567 = vmatpush.msrb.mxu1 %v6006_v62 }
 0x40f   :  { %2429 = vmatpush.msrb.mxu0 %v7567_v26  ;;  %v6297_v26 = vld [vmem:[#allocation2 + $0x18] sm:$0xff] }
 0x410   :  { %2396 = vmatpush.msra.mxu2 %v6232_v18  ;;  %2568 = vmatpush.msrb.mxu1 %v6014_v31  ;;  %7591 = vst [vmem:[#allocation102_spill] sm:$0xff] %v6297_v26 }
 0x411   :  { %2430 = vmatpush.msrb.mxu0 %v7568_v39  ;;  %3361 = vmatmul.msk.f32.vlgmr.msrb.gmra.mxu2 %vm117_vm0, %v3359_v59  ;;  %v6263_v59 = vld [vmem:[#allocation2 + $0xc0] sm:$0xff]  ;;  %v7592_v39 = vld [vmem:[#allocation85_spill] sm:$0xff] }
 0x412   :  { %2397 = vmatpush.msra.mxu2 %v6237_v23  ;;  %2569 = vmatpush.msrb.mxu1 %v6020_v27  ;;  %7577 = vst [vmem:[#allocation84_spill] sm:$0xff] %v6263_v59 }
 0x413   :  { %2542 = vmatpush.msra.mxu0 %v7569_v40  ;;  %v6301_v40 = vld [vmem:[#allocation2] sm:$0xff] }
 0x414   :  { %2398 = vmatpush.msra.mxu2 %v6243_v47  ;;  %2570 = vmatpush.msrb.mxu1 %v6028_v7  ;;  %7593 = vst [vmem:[#allocation103_spill] sm:$0xff] %v6301_v40 }
 0x415   :  { %2543 = vmatpush.msra.mxu0 %v7570_v5  ;;  %v7594_v5 = vld [vmem:[#allocation53_spill] sm:$0xff] }
 0x416   :  { %2399 = vmatpush.msra.mxu2 %v6248_v11  ;;  %2571 = vmatpush.msrb.mxu1 %v6037_v2  ;;  %v2302_v11 = vld [vmem:[#allocation8 + $0x248] sm:$0xff] }
 0x417   :  { %2544 = vmatpush.msra.mxu0 %v7572_v17  ;;  %v6305_v17 = vld [vmem:[#allocation5 + $0x170] sm:$0xff] }
 0x418   :  { %2400 = vmatpush.msra.mxu2 %v6253_v24  ;;  %2572 = vmatpush.msrb.mxu1 %v6050_v3  ;;  %7595 = vst [vmem:[#allocation95_spill] sm:$0xff] %v6305_v17 }
 0x419   :  { %2545 = vmatpush.msra.mxu0 %v7574_v30  ;;  %v7596_v30 = vld [vmem:[#allocation86_spill] sm:$0xff] }
 0x41a   :  { %2401 = vmatpush.msra.mxu2 %v6258_v46  ;;  %2573 = vmatpush.msrb.mxu1 %v6057_v32 }
 0x41b   :  { %2546 = vmatpush.msra.mxu0 %v7576_v28  ;;  %v6309_v28 = vld [vmem:[#allocation5 + $0x158] sm:$0xff] }
 0x41c   :  { %2402 = vmatpush.msra.mxu2 %v6263_v59  ;;  %2574 = vmatpush.msrb.mxu1 %v6065_v61  ;;  %7597 = vst [vmem:[#allocation98_spill] sm:$0xff] %v6309_v28  ;;  %v2303_v59 = vld [vmem:[#allocation8 + $0x250] sm:$0xff] }
 0x41d   :  { %2547 = vmatpush.msra.mxu0 %v7578_v45  ;;  %v7598_v45 = vld [vmem:[#allocation54_spill] sm:$0xff] }
 0x41e   :  { %2403 = vmatpush.msra.mxu2 %v6268_v21  ;;  %2575 = vmatpush.msrb.mxu1 %v6074_v4  ;;  %v7616_v21 = vld [vmem:[#allocation56_spill] sm:$0xff] }
 0x41f   :  { %2548 = vmatpush.msra.mxu0 %v7580_v50  ;;  %v6313_v50 = vld [vmem:[#allocation5 + $0x140] sm:$0xff] }
 0x420   :  { %2404 = vmatpush.msra.mxu2 %v6273_v38  ;;  %2576 = vmatpush.msrb.mxu1 %v6086_v52  ;;  %7599 = vst [vmem:[#allocation101_spill] sm:$0xff] %v6313_v50 }
 0x421   :  { %2549 = vmatpush.msra.mxu0 %v7582_v48  ;;  %v6316_v48 = vld [vmem:[#allocation5 + $0x128] sm:$0xff] }
 0x422   :  { %2405 = vmatpush.msra.mxu2 %v6278_v42  ;;  %2577 = vmatpush.msrb.mxu1 %v6282_v9  ;;  %7600 = vst [vmem:[#allocation104_spill] sm:$0xff] %v6316_v48 }
 0x423   :  { %2550 = vmatpush.msra.mxu0 %v7584_v51  ;;  %v1995_v51 = vpop.f32.mrf.mxu1 }
 0x424   :  { %2406 = vmatpush.msra.mxu2 %v6285_v1 }
 0x425   :  { %2551 = vmatpush.msra.mxu0 %v7586_v15  ;;  %v6319_v15 = vld [vmem:[#allocation5 + $0x110] sm:$0xff] }
 0x426   :  { %2407 = vmatpush.msra.mxu2 %v6289_v54  ;;  %7601 = vst [vmem:[#allocation25_spill] sm:$0xff] %v6319_v15  ;;  %v2305_v54 = vld [vmem:[#allocation8 + $0x260] sm:$0xff] }
 0x427   :  { %2552 = vmatpush.msra.mxu0 %v7588_v35  ;;  %v6322_v35 = vld [vmem:[#allocation5 + $0xf8] sm:$0xff] }
 0x428   :  { %2408 = vmatpush.msra.mxu2 %v6293_v49  ;;  %7602 = vst [vmem:[#allocation48_spill] sm:$0xff] %v6322_v35  ;;  %v2306_v49 = vld [vmem:[#allocation8 + $0x268] sm:$0xff] }
 0x429   :  { %2553 = vmatpush.msra.mxu0 %v7590_v22  ;;  %v6325_v22 = vld [vmem:[#allocation5 + $0xe0] sm:$0xff] }
 0x42a   :  { %2409 = vmatpush.msra.mxu2 %v6297_v26  ;;  %7603 = vst [vmem:[#allocation21_spill] sm:$0xff] %v6325_v22  ;;  %v6345_v26 = vld [vmem:[#allocation5 + $0x50] sm:$0xff] }
 0x42b   :  { %2554 = vmatpush.msra.mxu0 %v7592_v39  ;;  %v1975_v39 = vpop.f32.mrf.mxu0  ;;  %7611 = vst [vmem:[#allocation49_spill] sm:$0xff] %v6345_v26 }
 0x42c   :  { %2410 = vmatpush.msra.mxu2 %v6301_v40  ;;  %v6339_v40 = vld [vmem:[#allocation5 + $0x80] sm:$0xff] }
 0x42d   :  { %2555 = vmatpush.msra.mxu0 %v7594_v5  ;;  %v7604_v5 = vld [vmem:[#allocation51_spill] sm:$0xff]  ;;  %7609 = vst [vmem:[#allocation55_spill] sm:$0xff] %v6339_v40 }
 0x42e   :  { %2522 = vmatpush.msrb.mxu2 %v6305_v17 }
 0x42f   :  { %2556 = vmatpush.msra.mxu0 %v7596_v30  ;;  %v1976_v30 = vadd.f32 %v1975_v39, %v7604_v5  ;;  %v6342_v39 = vld [vmem:[#allocation5 + $0x68] sm:$0xff] }
 0x430   :  { %2523 = vmatpush.msrb.mxu2 %v6309_v28  ;;  %v6335_v28 = vld [vmem:[#allocation5 + $0x98] sm:$0xff]  ;;  %7610 = vst [vmem:[#allocation59_spill] sm:$0xff] %v6342_v39 }
 0x431   :  { %2557 = vmatpush.msra.mxu0 %v7598_v45  ;;  %v6329_v45 = vld [vmem:[#allocation5 + $0xc8] sm:$0xff]  ;;  %7607 = vst [vmem:[#allocation34_spill] sm:$0xff] %v6335_v28 }
 0x432   :  { %2524 = vmatpush.msrb.mxu2 %v6313_v50  ;;  %7605 = vst [vmem:[#allocation89_spill] sm:$0xff] %v6329_v45 }
 0x434   :  { %2525 = vmatpush.msrb.mxu2 %v6316_v48  ;;  %v6332_v48 = vld [vmem:[#allocation5 + $0xb0] sm:$0xff] }
 0x435   :  { %7606 = vst [vmem:[#allocation50_spill] sm:$0xff] %v6332_v48 }
 0x436   :  { %2526 = vmatpush.msrb.mxu2 %v6319_v15 }
 0x438   :  { %2527 = vmatpush.msrb.mxu2 %v6322_v35  ;;  %v7608_v35 = vld [vmem:[#allocation41_spill] sm:$0xff] }
 0x439   :  { %v1996_v17 = vadd.f32 %v1995_v51, %v7608_v35  ;;  %v6351_v51 = vld [vmem:[#allocation5 + $0x20] sm:$0xff]  ;;  %v2304_v35 = vld [vmem:[#allocation8 + $0x258] sm:$0xff] }
 0x43a   :  { %2528 = vmatpush.msrb.mxu2 %v6325_v22  ;;  %7613 = vst [vmem:[#allocation63_spill] sm:$0xff] %v6351_v51 }
 0x43c   :  { %2529 = vmatpush.msrb.mxu2 %v6329_v45 }
 0x43d   :  { %v2035_v15 = vpop.f32.mrf.mxu1 }
 0x43e   :  { %2530 = vmatpush.msrb.mxu2 %v6332_v48  ;;  %v2078_v50 = vadd.f32 %v2035_v15, %v1976_v30  ;;  %v6348_v30 = vld [vmem:[#allocation5 + $0x38] sm:$0xff] }
 0x43f   :  { %7612 = vst [vmem:[#allocation90_spill] sm:$0xff] %v6348_v30 }
 0x440   :  { %2531 = vmatpush.msrb.mxu2 %v6335_v28  ;;  %v3355_v22 = vmul.f32 -1.442695, %v2078_v50 }
 0x442   :  { %2532 = vmatpush.msrb.mxu2 %v6339_v40  ;;  %3480 = vpow2.f32 %v3355_v22  ;;  %v6354_v40 = vld [vmem:[#allocation5 + $0x8] sm:$0xff] }
 0x443   :  { %v2055_v45 = vpop.f32.mrf.mxu3  ;;  %7614 = vst [vmem:[#allocation40_spill] sm:$0xff] %v6354_v40 }
 0x444   :  { %2533 = vmatpush.msrb.mxu2 %v6342_v39  ;;  %v2079_v48 = vadd.f32 %v2055_v45, %v1996_v17  ;;  %v2015_v17 = vpop.f32.mrf.mxu0  ;;  %v2308_v45 = vld [vmem:[#allocation8 + $0x278] sm:$0xff] }
 0x445   :  { %2309 = vmatpush.msra.mxu3 %v2308_v45 }
 0x446   :  { %2534 = vmatpush.msrb.mxu2 %v6345_v26  ;;  %v3356_v15 = vmul.f32 -1.442695, %v2079_v48  ;;  %v2307_v48 = vld [vmem:[#allocation8 + $0x270] sm:$0xff] }
 0x447   :  { %2310 = vmatpush.msra.mxu3 %v2307_v48 }
 0x448   :  { %2535 = vmatpush.msrb.mxu2 %v6348_v30  ;;  %v3481_v50 = vpop.eup %3480  ;;  %3482 = vpow2.f32 %v3356_v15 }
 0x449   :  { %v2086_v22 = vadd.f32 1.0, %v3481_v50  ;;  %2311 = vmatpush.msra.mxu3 %v2306_v49 }
 0x44a   :  { %2536 = vmatpush.msrb.mxu2 %v6351_v51 }
 0x44b   :  { %3484 = vrcp.f32 %v2086_v22  ;;  %v2099_v5 = vand.u32 2147483648, %v2086_v22  ;;  %v2097_v51 = vand.u32 2147483647, %v2086_v22  ;;  %2312 = vmatpush.msra.mxu3 %v2305_v54  ;;  %vm2093_vm14 = vweird.f32 %v2086_v22 }
 0x44c   :  { %2537 = vmatpush.msrb.mxu2 %v6354_v40  ;;  %v2075_v1 = vpop.f32.mrf.mxu0 }
 0x44d   :  { %v2100_v38 = vor.u32 1.1754944e-38, %v2099_v5  ;;  %2313 = vmatpush.msra.mxu3 %v2304_v35  ;;  %vm2098_vm1 = vcmp.eq.f32.partialorder %v2097_v51, 8.507059e+37  ;;  %v2118_v49 = vadd.f32 %v7616_v21, %v2075_v1  ;;  %v2299_v35 = vld [vmem:[#allocation8 + $0x230] sm:$0xff] }
 0x44e   :  { %v3483_v26 = vpop.eup %3482 }
 0x44f   :  { %v2087_v39 = vadd.f32 1.0, %v3483_v26  ;;  %v7615_v26 = vld [vmem:[#allocation105_spill] sm:$0xff]  ;;  %2314 = vmatpush.msra.mxu3 %v2303_v59 }
 0x450   :  { %v2016_v48 = vadd.f32 %v2015_v17, %v7615_v26  ;;  %v2300_v17 = vld [vmem:[#allocation8 + $0x238] sm:$0xff] }
 0x451   :  { %v3485_v30 = vpop.eup %3484  ;;  %3486 = vrcp.f32 %v2087_v39  ;;  %2315 = vmatpush.msra.mxu3 %v2302_v11  ;;  %vm2108_vm3 = vweird.f32 %v2087_v39  ;;  %v2112_v21 = vand.u32 2147483647, %v2087_v39  ;;  %v2297_v11 = vld [vmem:[#allocation8 + $0x220] sm:$0xff] }
 0x452   :  { %v2089_v15 = vmul.f32 %v3485_v30, %v2086_v22  ;;  %vm2094_vm13 = vweird.f32 %v3485_v30 }
 0x453   :  { %vm2095_vm15 = vmor %vm2093_vm14, %vm2094_vm13  ;;  %vm2113_vm5 = vcmp.eq.f32.partialorder %v2112_v21, 8.507059e+37 }
 0x454   :  { %v2090_v28 = vsub.f32 1.0, %v2089_v15 }
 0x456   :  { %v2091_v50 = vmul.f32 %v3485_v30, %v2090_v28 }
 0x457   :  { %v3487_v40 = vpop.eup %3486 }
 0x458   :  { %v2092_v42 = vadd.f32 %v3485_v30, %v2091_v50  ;;  %v2104_v45 = vmul.f32 %v3487_v40, %v2087_v39  ;;  %v2301_v50 = vld [vmem:[#allocation8 + $0x240] sm:$0xff]  ;;  %vm2109_vm2 = vweird.f32 %v3487_v40 }
 0x459   :  { %2316 = vmatpush.msra.mxu3 %v2301_v50  ;;  %vm2110_vm4 = vmor %vm2108_vm3, %vm2109_vm2  ;;  %v3848_v50 = vld [vmem:[%s6798_s1] sm:$0xff] }
 0x45a   :  { %v2096_v15 = vsel %vm2095_vm15, %v3485_v30, %v2092_v42  ;;  %v2105_v28 = vsub.f32 1.0, %v2104_v45  ;;  %v2114_v42 = vand.u32 2147483648, %v2087_v39  ;;  %v2296_v30 = vld [vmem:[#allocation8 + $0x218] sm:$0xff]  ;;  %v2295_v45 = vld [vmem:[#allocation8 + $0x210] sm:$0xff] }
 0x45b   :  { %v2101_v46 = vsel %vm2098_vm1, %v2100_v38, %v2096_v15  ;;  %2317 = vmatpush.msra.mxu3 %v2300_v17  ;;  %v2298_v38 = vld [vmem:[#allocation8 + $0x228] sm:$0xff]  ;;  %v7621_v17 = vld [vmem:[#allocation52_spill] sm:$0xff] }
 0x45c   :  { %v2119_v24 = vmul.f32 %v2118_v49, %v2101_v46  ;;  %v2106_v54 = vmul.f32 %v3487_v40, %v2105_v28  ;;  %v2115_v1 = vor.u32 1.1754944e-38, %v2114_v42  ;;  %v2294_v15 = vld [vmem:[#allocation8 + $0x208] sm:$0xff]  ;;  %v7617_v49 = vld [vmem:[#allocation61_spill] sm:$0xff] }
 0x45d   :  { %2318 = vmatpush.msra.mxu3 %v2299_v35  ;;  %v3847_v28 = vld [vmem:[%s6798_s1 + $0x18] sm:$0xff]  ;;  %v7622_v35 = vld [vmem:[#allocation28_spill] sm:$0xff] }
 0x45e   :  { %v2120_v22 = vadd.f32 %v2119_v24, %v2016_v48  ;;  %v2107_v26 = vadd.f32 %v3487_v40, %v2106_v54  ;;  %v7619_v54 = vld [vmem:[#allocation47_spill] sm:$0xff] }
 0x45f   :  { %2319 = vmatpush.msra.mxu3 %v2298_v38 }
 0x460   :  { %3488 = vtanh.f32 %v2120_v22  ;;  %v2111_v59 = vsel %vm2110_vm4, %v3487_v40, %v2107_v26  ;;  %v7618_v26 = vld [vmem:[#allocation72_spill] sm:$0xff]  ;;  %v7620_v22 = vld [vmem:[#allocation87_spill] sm:$0xff] }
 0x461   :  { %2320 = vmatpush.msra.mxu3 %v2297_v11  ;;  %v2116_v5 = vsel %vm2113_vm5, %v2115_v1, %v2111_v59  ;;  %v7623_v59 = vld [vmem:[#allocation74_spill] sm:$0xff]  ;;  %v7625_v11 = vld [vmem:[#allocation60_spill] sm:$0xff] }
 0x463   :  { %2321 = vmatpush.msra.mxu3 %v2296_v30  ;;  %v7627_v30 = vld [vmem:[#allocation64_spill] sm:$0xff] }
 0x465   :  { %2322 = vmatpush.msra.mxu3 %v2295_v45  ;;  %v7630_v45 = vld [vmem:[#allocation29_spill] sm:$0xff] }
 0x466   :  { %v3489_v46 = vpop.eup %3488 }
 0x467   :  { %v2122_v24 = vsub.f32 %v6068_v37, %v3489_v46  ;;  %2323 = vmatpush.msra.mxu3 %v2294_v15  ;;  %v2293_v37 = vld [vmem:[#allocation8 + $0x200] sm:$0xff]  ;;  %v2202_v38 = vpop.f32.mrf.mxu0 }
 0x469   :  { %v2123_v51 = vmul.f32 %v2122_v24, %v2116_v5  ;;  %2324 = vmatpush.msra.mxu3 %v2293_v37  ;;  %v7626_v24 = vld [vmem:[#allocation91_spill] sm:$0xff] }
 0x46a   :  { %v7632_v37 = vld [vmem:[#allocation35_spill] sm:$0xff] }
 0x46b   :  { %v6360_v48 = vadd.f32 %v3489_v46, %v2123_v51  ;;  %2502 = vmatpush.msrb.mxu3 %v7619_v54  ;;  %v7624_v46 = vld [vmem:[#allocation39_spill] sm:$0xff] }
 0x46c   :  { %v1949_v39 = vpop.f32.mrf.mxu2  ;;  %v7629_v51 = vld [vmem:[#allocation79_spill] sm:$0xff] }
 0x46d   :  { %v6363_v40 = vadd.f32 %v1949_v39, %v7617_v49  ;;  %2411 = vmatmul.f32.vlgmr.msra.gmra.mxu2 %v6360_v48  ;;  %2431 = vmatmul.f32.vlgmr.msrb.gmra.mxu0 %v6360_v48  ;;  %v7631_v39 = vld [vmem:[#allocation68_spill] sm:$0xff]  ;;  %v7635_v54 = vld [vmem:[#allocation27_spill] sm:$0xff] }
 0x46e   :  { %2451 = vmatmul.f32.vlgmr.msra.gmra.mxu1 %v6360_v48  ;;  %2602 = vmatpush.msra.mxu2 %v7618_v26  ;;  %v7633_v26 = vld [vmem:[#allocation44_spill] sm:$0xff] }
 0x46f   :  { %2726 = vmatpush.msra.mxu1 %v3847_v28  ;;  %2503 = vmatpush.msrb.mxu3 %v7621_v17  ;;  %v7634_v28 = vld [vmem:[#allocation83_spill] sm:$0xff]  ;;  %v7639_v17 = vld [vmem:[#allocation38_spill] sm:$0xff] }
 0x470   :  { %2603 = vmatpush.msra.mxu2 %v7620_v22  ;;  %v7637_v22 = vld [vmem:[#allocation46_spill] sm:$0xff] }
 0x471   :  { %2727 = vmatpush.msra.mxu1 %v3848_v50  ;;  %2504 = vmatpush.msrb.mxu3 %v7623_v59  ;;  %v7638_v50 = vld [vmem:[#allocation37_spill] sm:$0xff] }
 0x472   :  { %2604 = vmatpush.msra.mxu2 %v6098_v0  ;;  %v7628_v0 = vld [vmem:[#allocation80_spill] sm:$0xff] }
 0x473   :  { %2505 = vmatpush.msrb.mxu3 %v7625_v11  ;;  %v7643_v11 = vld [vmem:[#allocation76_spill] sm:$0xff] }
 0x474   :  { %v2142_v42 = vpop.f32.mrf.mxu2  ;;  %2605 = vmatpush.msra.mxu2 %v7624_v46 }
 0x475   :  { %v2143_v21 = vadd.f32 %v2142_v42, %v7622_v35  ;;  %2538 = vmatmul.f32.vlgmr.msrb.gmra.mxu2 %v6360_v48  ;;  %2558 = vmatmul.f32.vlgmr.msra.gmra.mxu0 %v6360_v48  ;;  %v7640_v42 = vld [vmem:[#allocation17_spill] sm:$0xff] }
 0x476   :  { %2606 = vmatpush.msra.mxu2 %v7626_v24  ;;  %2506 = vmatpush.msrb.mxu3 %v7627_v30  ;;  %v7644_v24 = vld [vmem:[#allocation58_spill] sm:$0xff] }
 0x477   :  { %v2245_v1 = vadd.f32 %v2202_v38, %v2143_v21  ;;  %v7641_v21 = vld [vmem:[#allocation57_spill] sm:$0xff]  ;;  %v7642_v38 = vld [vmem:[#allocation18_spill] sm:$0xff] }
 0x478   :  { %2607 = vmatpush.msra.mxu2 %v7628_v0  ;;  %2507 = vmatpush.msrb.mxu3 %v7629_v51  ;;  %v7645_v0 = vld [vmem:[#allocation19_spill] sm:$0xff] }
 0x479   :  { %v3357_v5 = vmul.f32 -1.442695, %v2245_v1  ;;  %v7646_v51 = vld [vmem:[#allocation43_spill] sm:$0xff] }
 0x47a   :  { %2608 = vmatpush.msra.mxu2 %v6127_v60  ;;  %2508 = vmatpush.msrb.mxu3 %v7630_v45  ;;  %v7636_v60 = vld [vmem:[#allocation16_spill] sm:$0xff] }
 0x47b   :  { %3490 = vpow2.f32 %v3357_v5 }
 0x47c   :  { %2609 = vmatpush.msra.mxu2 %v6130_v36  ;;  %2509 = vmatpush.msrb.mxu3 %v7631_v39  ;;  %v2162_v36 = vpop.f32.mrf.mxu1 }
 0x47d   :  { %v2163_v59 = vadd.f32 %v2162_v36, %v7642_v38  ;;  %v3849_v36 = vld [vmem:[#allocation2 + $0x148] sm:$0xff] }
 0x47e   :  { %2610 = vmatpush.msra.mxu2 %v6134_v41  ;;  %2510 = vmatpush.msrb.mxu3 %v7632_v37 }
 0x480   :  { %2611 = vmatpush.msra.mxu2 %v7633_v26  ;;  %2511 = vmatpush.msrb.mxu3 %v7634_v28  ;;  %v7647_v26 = vld [vmem:[#allocation33_spill] sm:$0xff] }
 0x481   :  { %v3491_v15 = vpop.eup %3490 }
 0x482   :  { %v2253_v49 = vadd.f32 1.0, %v3491_v15  ;;  %2612 = vmatpush.msra.mxu2 %v7635_v54  ;;  %2512 = vmatpush.msrb.mxu3 %v7636_v60 }
 0x484   :  { %3492 = vrcp.f32 %v2253_v49  ;;  %2613 = vmatpush.msra.mxu2 %v7637_v22  ;;  %2513 = vmatpush.msrb.mxu3 %v7638_v50  ;;  %v2266_v39 = vand.u32 2147483648, %v2253_v49  ;;  %v2264_v37 = vand.u32 2147483647, %v2253_v49  ;;  %vm2260_vm7 = vweird.f32 %v2253_v49  ;;  %v2242_v54 = vpop.f32.mrf.mxu1 }
 0x486   :  { %2614 = vmatpush.msra.mxu2 %v7639_v17  ;;  %2514 = vmatpush.msrb.mxu3 %v7640_v42  ;;  %v2267_v22 = vor.u32 1.1754944e-38, %v2266_v39  ;;  %vm2265_vm9 = vcmp.eq.f32.partialorder %v2264_v37, 8.507059e+37  ;;  %v3850_v17 = vld [vmem:[#allocation2 + $0x130] sm:$0xff]  ;;  %v6472_v39 = vld [vmem:[#allocation7 + $0xc8] sm:$0xff]  ;;  %v3874_v37 = vld [vmem:[#allocation2 + $0x140] sm:$0xff] }
 0x488   :  { %2615 = vmatpush.msra.mxu2 %v7641_v21  ;;  %2515 = vmatpush.msrb.mxu3 %v7643_v11  ;;  %v2182_v21 = vpop.f32.mrf.mxu3 }
 0x48a   :  { %v3493_v41 = vpop.eup %3492  ;;  %2616 = vmatpush.msra.mxu2 %v7644_v24  ;;  %2516 = vmatpush.msrb.mxu3 %v7645_v0 }
 0x48b   :  { %v2256_v46 = vmul.f32 %v3493_v41, %v2253_v49  ;;  %vm2261_vm6 = vweird.f32 %v3493_v41 }
 0x48c   :  { %v2222_v1 = vpop.f32.mrf.mxu2  ;;  %2617 = vmatpush.msra.mxu2 %v7646_v51  ;;  %2517 = vmatpush.msrb.mxu3 %v7647_v26  ;;  %vm2262_vm8 = vmor %vm2260_vm7, %vm2261_vm6  ;;  %v2352_v26 = vpop.f32.mrf.mxu0 }
 0x48d   :  { %v2257_v5 = vsub.f32 1.0, %v2256_v46  ;;  %v2246_v30 = vadd.f32 %v2222_v1, %v2163_v59  ;;  %v7648_v59 = vld [vmem:[#allocation20_spill] sm:$0xff] }
 0x48e   :  { %2812 = vmatpush.msrb.mxu2 %v5888_v13  ;;  %v6415_v13 = vld [vmem:[%s6805_s8] ss:$0 sm:$0xff]  ;;  %v2183_v46 = vadd.f32 %v2182_v21, %v7648_v59 }
 0x48f   :  { %v2258_v45 = vmul.f32 %v3493_v41, %v2257_v5  ;;  %v3358_v15 = vmul.f32 -1.442695, %v2246_v30  ;;  %v2285_v49 = vadd.f32 %v6415_v13, %v2242_v54  ;;  %v3877_v54 = vld [vmem:[#allocation2 + $0xf8] sm:$0xff]  ;;  %v3882_v21 = vld [vmem:[#allocation2 + $0x80] sm:$0xff] }
 0x490   :  { %2813 = vmatpush.msrb.mxu2 %v5894_v10 }
 0x491   :  { %v2259_v28 = vadd.f32 %v3493_v41, %v2258_v45  ;;  %3494 = vpow2.f32 %v3358_v15  ;;  %v3873_v15 = vld [vmem:[#allocation2 + $0x158] sm:$0xff] }
 0x492   :  { %2814 = vmatpush.msrb.mxu2 %v3849_v36  ;;  %v7651_v36 = vld [vmem:[#allocation94_spill] sm:$0xff] }
 0x493   :  { %v2263_v60 = vsel %vm2262_vm8, %v3493_v41, %v2259_v28  ;;  %v3875_v28 = vld [vmem:[#allocation2 + $0x128] sm:$0xff] }
 0x494   :  { %v2268_v50 = vsel %vm2265_vm9, %v2267_v22, %v2263_v60  ;;  %2815 = vmatpush.msrb.mxu2 %v3850_v17  ;;  %v3878_v60 = vld [vmem:[#allocation2 + $0xe0] sm:$0xff]  ;;  %v3879_v22 = vld [vmem:[#allocation2 + $0xc8] sm:$0xff]  ;;  %v7652_v17 = vld [vmem:[#allocation84_spill] sm:$0xff] }
 0x495   :  { %v2286_v41 = vmul.f32 %v2285_v49, %v2268_v50  ;;  %v3880_v50 = vld [vmem:[#allocation2 + $0xb0] sm:$0xff]  ;;  %v3881_v49 = vld [vmem:[#allocation2 + $0x98] sm:$0xff] }
 0x496   :  { %2816 = vmatpush.msrb.mxu2 %v5909_v63 }
 0x497   :  { %v3495_v42 = vpop.eup %3494  ;;  %v2287_v1 = vadd.f32 %v2286_v41, %v2183_v46  ;;  %v3883_v41 = vld [vmem:[#allocation2 + $0x68] sm:$0xff]  ;;  %v7655_v46 = vld [vmem:[#allocation41_spill] sm:$0xff] }
 0x498   :  { %v2254_v10 = vadd.f32 1.0, %v3495_v42  ;;  %2817 = vmatpush.msrb.mxu2 %v5913_v55  ;;  %v2372_v42 = vpop.f32.mrf.mxu2 }
 0x49a   :  { %3496 = vrcp.f32 %v2254_v10  ;;  %2818 = vmatpush.msrb.mxu2 %v5917_v14  ;;  %v2281_v5 = vand.u32 2147483648, %v2254_v10  ;;  %v2279_v30 = vand.u32 2147483647, %v2254_v10  ;;  %vm2275_vm11 = vweird.f32 %v2254_v10 }
 0x49b   :  { %3498 = vtanh.f32 %v2287_v1  ;;  %v2373_v1 = vadd.f32 %v2372_v42, %v7655_v46  ;;  %v7668_v42 = vld [vmem:[#allocation48_spill] sm:$0xff] }
 0x49c   :  { %2819 = vmatpush.msrb.mxu2 %v5921_v56  ;;  %v2282_v56 = vor.u32 1.1754944e-38, %v2281_v5  ;;  %vm2280_vm13 = vcmp.eq.f32.partialorder %v2279_v30, 8.507059e+37 }
 0x49e   :  { %2820 = vmatpush.msrb.mxu2 %v5925_v8 }
 0x4a0   :  { %v3497_v11 = vpop.eup %3496  ;;  %2821 = vmatpush.msrb.mxu2 %v5929_v43 }
 0x4a1   :  { %v2271_v24 = vmul.f32 %v3497_v11, %v2254_v10  ;;  %vm2276_vm10 = vweird.f32 %v3497_v11  ;;  %v3499_v14 = vpop.eup %3498  ;;  %v7654_v10 = vld [vmem:[#allocation97_spill] sm:$0xff] }
 0x4a2   :  { %2822 = vmatpush.msrb.mxu2 %v5933_v25  ;;  %vm2277_vm12 = vmor %vm2275_vm11, %vm2276_vm10  ;;  %v2289_v43 = vsub.f32 %v6164_v34, %v3499_v14  ;;  %v6451_v34 = vld [vmem:[#allocation7 + $0x140] sm:$0xff] }
 0x4a3   :  { %v2272_v63 = vsub.f32 1.0, %v2271_v24  ;;  %v3884_v24 = vld [vmem:[#allocation2 + $0x50] sm:$0xff] }
 0x4a4   :  { %2823 = vmatpush.msrb.mxu2 %v5937_v58  ;;  %v6436_v58 = vld [vmem:[#allocation7 + $0x170] sm:$0xff] }
 0x4a5   :  { %v2273_v55 = vmul.f32 %v3497_v11, %v2272_v63  ;;  %v7657_v63 = vld [vmem:[#allocation99_spill] sm:$0xff] }
 0x4a6   :  { %2824 = vmatpush.msrb.mxu2 %v5945_v19  ;;  %v3853_v19 = vld [vmem:[%s6798_s1 + $0x28] sm:$0xff] }
 0x4a7   :  { %v2274_v0 = vadd.f32 %v3497_v11, %v2273_v55  ;;  %v3885_v55 = vld [vmem:[#allocation2 + $0x38] sm:$0xff] }
 0x4a8   :  { %2825 = vmatpush.msrb.mxu2 %v5951_v12  ;;  %v6444_v12 = vld [vmem:[#allocation7 + $0x158] sm:$0xff] }
 0x4a9   :  { %v2278_v8 = vsel %vm2277_vm12, %v3497_v11, %v2274_v0  ;;  %v7656_v11 = vld [vmem:[#allocation88_spill] sm:$0xff]  ;;  %v3886_v0 = vld [vmem:[#allocation2 + $0x20] sm:$0xff] }
 0x4aa   :  { %v2283_v25 = vsel %vm2280_vm13, %v2282_v56, %v2278_v8  ;;  %2826 = vmatpush.msrb.mxu2 %v5955_v53  ;;  %v3855_v53 = vld [vmem:[%s6798_s1 + $0x10] sm:$0xff]  ;;  %v7659_v56 = vld [vmem:[#allocation51_spill] sm:$0xff] }
 0x4ab   :  { %v2290_v51 = vmul.f32 %v2289_v43, %v2283_v25  ;;  %v2353_v8 = vadd.f32 %v2352_v26, %v7659_v56  ;;  %v7660_v43 = vld [vmem:[#allocation92_spill] sm:$0xff]  ;;  %v6548_v26 = vld [vmem:[#allocation5 + $0x148] sm:$0xff] }
 0x4ac   :  { %2827 = vmatpush.msrb.mxu2 %v7549_v33  ;;  %v6455_v33 = vld [vmem:[#allocation7 + $0x128] sm:$0xff] }
 0x4ad   :  { %v6431_v45 = vadd.f32 %v3499_v14, %v2290_v51  ;;  %v7658_v14 = vld [vmem:[#allocation100_spill] sm:$0xff]  ;;  %v3887_v51 = vld [vmem:[#allocation2 + $0x8] sm:$0xff] }
 0x4af   :  { %2325 = vmatmul.f32.vlgmr.msra.gmra.mxu3 %v6431_v45  ;;  %2578 = vmatmul.f32.vlgmr.msrb.gmra.mxu1 %v6431_v45 }
 0x4b0   :  { %2582 = vmatpush.msra.mxu3 %v6436_v58  ;;  %2618 = vmatmul.f32.vlgmr.msra.gmra.mxu2 %v6431_v45 }
 0x4b1   :  { %2766 = vmatpush.msrb.mxu1 %v3853_v19  ;;  %2939 = vmatpush.msra.mxu2 %v7552_v44  ;;  %v6460_v44 = vld [vmem:[#allocation7 + $0x110] sm:$0xff]  ;;  %v7661_v19 = vld [vmem:[#allocation102_spill] sm:$0xff] }
 0x4b2   :  { %2583 = vmatpush.msra.mxu3 %v6444_v12 }
 0x4b3   :  { %2767 = vmatpush.msrb.mxu1 %v3855_v53  ;;  %2940 = vmatpush.msra.mxu2 %v7555_v57  ;;  %v6464_v57 = vld [vmem:[#allocation7 + $0xf8] sm:$0xff] }
 0x4b4   :  { %2584 = vmatpush.msra.mxu3 %v6451_v34  ;;  %v6540_v53 = vld [vmem:[#allocation5 + $0x178] sm:$0xff] }
 0x4b5   :  { %2941 = vmatpush.msra.mxu2 %v7558_v29  ;;  %v6468_v29 = vld [vmem:[#allocation7 + $0xe0] sm:$0xff] }
 0x4b6   :  { %2585 = vmatpush.msra.mxu3 %v6455_v33 }
 0x4b7   :  { %2518 = vmatmul.f32.vlgmr.msrb.gmra.mxu3 %v6360_v48  ;;  %2942 = vmatpush.msra.mxu2 %v7561_v16  ;;  %v6476_v16 = vld [vmem:[#allocation7 + $0xb0] sm:$0xff] }
 0x4b8   :  { %2586 = vmatpush.msra.mxu3 %v6460_v44 }
 0x4b9   :  { %2943 = vmatpush.msra.mxu2 %v7564_v6  ;;  %v6480_v6 = vld [vmem:[#allocation7 + $0x98] sm:$0xff] }
 0x4ba   :  { %2587 = vmatpush.msra.mxu3 %v6464_v57 }
 0x4bb   :  { %2944 = vmatpush.msra.mxu2 %v6006_v62  ;;  %v6484_v62 = vld [vmem:[#allocation7 + $0x80] sm:$0xff] }
 0x4bc   :  { %2588 = vmatpush.msra.mxu3 %v6468_v29 }
 0x4bd   :  { %2945 = vmatpush.msra.mxu2 %v6014_v31  ;;  %v6488_v31 = vld [vmem:[#allocation7 + $0x68] sm:$0xff] }
 0x4be   :  { %2589 = vmatpush.msra.mxu3 %v6472_v39 }
 0x4bf   :  { %2946 = vmatpush.msra.mxu2 %v6020_v27  ;;  %v6492_v27 = vld [vmem:[#allocation7 + $0x50] sm:$0xff] }
 0x4c0   :  { %2590 = vmatpush.msra.mxu3 %v6476_v16 }
 0x4c1   :  { %2947 = vmatpush.msra.mxu2 %v6028_v7  ;;  %v6496_v7 = vld [vmem:[#allocation7 + $0x38] sm:$0xff] }
 0x4c2   :  { %2591 = vmatpush.msra.mxu3 %v6480_v6 }
 0x4c3   :  { %2948 = vmatpush.msra.mxu2 %v6037_v2  ;;  %v6500_v2 = vld [vmem:[#allocation7 + $0x20] sm:$0xff] }
 0x4c4   :  { %2592 = vmatpush.msra.mxu3 %v6484_v62 }
 0x4c5   :  { %2949 = vmatpush.msra.mxu2 %v6050_v3  ;;  %v6504_v3 = vld [vmem:[#allocation7 + $0x8] sm:$0xff] }
 0x4c6   :  { %2593 = vmatpush.msra.mxu3 %v6488_v31 }
 0x4c7   :  { %2950 = vmatpush.msra.mxu2 %v6057_v32  ;;  %v3367_v32 = vld [vmem:[%s6797_s0 + $0x38] sm:$0xff] }
 0x4c8   :  { %2594 = vmatpush.msra.mxu3 %v6492_v27  ;;  %3368 = vmatmul.msk.f32.vlgmr.msra.gmra.mxu1 %vm117_vm0, %v3367_v32 }
 0x4c9   :  { %2951 = vmatpush.msra.mxu2 %v6065_v61  ;;  %v3870_v61 = vld [vmem:[%s6798_s1 + $0x20] sm:$0xff] }
 0x4ca   :  { %2595 = vmatpush.msra.mxu3 %v6496_v7 }
 0x4cb   :  { %2952 = vmatpush.msra.mxu2 %v6074_v4  ;;  %v3871_v4 = vld [vmem:[#allocation2 + $0x170] sm:$0xff] }
 0x4cc   :  { %2596 = vmatpush.msra.mxu3 %v6500_v2  ;;  %2792 = vmatpush.msra.mxu1 %v3871_v4  ;;  %v7662_v4 = vld [vmem:[#allocation103_spill] sm:$0xff] }
 0x4cd   :  { %2953 = vmatpush.msra.mxu2 %v6086_v52  ;;  %v3872_v52 = vld [vmem:[%s6798_s1 + $0x8] sm:$0xff] }
 0x4ce   :  { %2597 = vmatpush.msra.mxu3 %v6504_v3  ;;  %2793 = vmatpush.msra.mxu1 %v3873_v15  ;;  %v7663_v15 = vld [vmem:[#allocation95_spill] sm:$0xff] }
 0x4cf   :  { %2598 = vmatmul.f32.vlgmr.msra.gmra.mxu3 %v6431_v45  ;;  %2954 = vmatpush.msra.mxu2 %v6282_v9  ;;  %v3876_v9 = vld [vmem:[#allocation2 + $0x110] sm:$0xff] }
 0x4d0   :  { %2746 = vmatpush.msrb.mxu3 %v3870_v61  ;;  %2794 = vmatpush.msra.mxu1 %v3874_v37 }
 0x4d1   :  { %3370 = vmatmul.msk.f32.vlgmr.msrb.gmra.mxu1 %vm117_vm0, %v3367_v32 }
 0x4d2   :  { %2747 = vmatpush.msrb.mxu3 %v3872_v52  ;;  %2795 = vmatpush.msra.mxu1 %v3875_v28  ;;  %v6544_v52 = vld [vmem:[#allocation5 + $0x160] sm:$0xff] }
 0x4d3   :  { %v7664_v28 = vld [vmem:[#allocation98_spill] sm:$0xff] }
 0x4d4   :  { %2772 = vmatpush.msra.mxu3 %v6227_v20  ;;  %2796 = vmatpush.msra.mxu1 %v3876_v9  ;;  %v7649_v20 = vld [vmem:[#allocation65_spill] sm:$0xff]  ;;  %v6552_v9 = vld [vmem:[#allocation5 + $0x130] sm:$0xff] }
 0x4d6   :  { %2773 = vmatpush.msra.mxu3 %v6232_v18  ;;  %2797 = vmatpush.msra.mxu1 %v3877_v54  ;;  %v7650_v18 = vld [vmem:[#allocation93_spill] sm:$0xff] }
 0x4d7   :  { %3369 = vmatmul.msk.f32.vlgmr.msrb.gmra.mxu3 %vm117_vm0, %v3367_v32  ;;  %v7665_v54 = vld [vmem:[#allocation101_spill] sm:$0xff] }
 0x4d8   :  { %2774 = vmatpush.msra.mxu3 %v6237_v23  ;;  %2798 = vmatpush.msra.mxu1 %v3878_v60  ;;  %v6528_v23 = vpop.f32.mrf.mxu0 }
 0x4da   :  { %2775 = vmatpush.msra.mxu3 %v6243_v47  ;;  %2799 = vmatpush.msra.mxu1 %v3879_v22  ;;  %v7653_v47 = vld [vmem:[#allocation96_spill] sm:$0xff]  ;;  %v6560_v22 = vld [vmem:[#allocation5 + $0x100] sm:$0xff] }
 0x4dc   :  { %2776 = vmatpush.msra.mxu3 %v7649_v20  ;;  %2800 = vmatpush.msra.mxu1 %v3880_v50  ;;  %v6556_v20 = vld [vmem:[#allocation5 + $0x118] sm:$0xff] }
 0x4de   :  { %2777 = vmatpush.msra.mxu3 %v7650_v18  ;;  %2801 = vmatpush.msra.mxu1 %v3881_v49  ;;  %v7666_v18 = vld [vmem:[#allocation104_spill] sm:$0xff]  ;;  %v6566_v49 = vld [vmem:[#allocation5 + $0xe8] sm:$0xff] }
 0x4e0   :  { %2778 = vmatpush.msra.mxu3 %v7651_v36  ;;  %2802 = vmatpush.msra.mxu1 %v3882_v21  ;;  %v7667_v36 = vld [vmem:[#allocation25_spill] sm:$0xff]  ;;  %v6570_v21 = vld [vmem:[#allocation5 + $0xd0] sm:$0xff] }
 0x4e2   :  { %2779 = vmatpush.msra.mxu3 %v7652_v17  ;;  %2803 = vmatpush.msra.mxu1 %v3883_v41  ;;  %v6575_v41 = vld [vmem:[#allocation5 + $0xb8] sm:$0xff] }
 0x4e4   :  { %2780 = vmatpush.msra.mxu3 %v7653_v47  ;;  %2804 = vmatpush.msra.mxu1 %v3884_v24  ;;  %v7671_v24 = vld [vmem:[#allocation50_spill] sm:$0xff] }
 0x4e6   :  { %2781 = vmatpush.msra.mxu3 %v7654_v10  ;;  %2805 = vmatpush.msra.mxu1 %v3885_v55  ;;  %v7669_v10 = vld [vmem:[#allocation21_spill] sm:$0xff]  ;;  %v7672_v55 = vld [vmem:[#allocation34_spill] sm:$0xff] }
 0x4e8   :  { %2782 = vmatpush.msra.mxu3 %v7656_v11  ;;  %2806 = vmatpush.msra.mxu1 %v3886_v0  ;;  %v6579_v11 = vld [vmem:[#allocation5 + $0xa0] sm:$0xff]  ;;  %v6587_v0 = vld [vmem:[#allocation5 + $0x70] sm:$0xff] }
 0x4ea   :  { %2783 = vmatpush.msra.mxu3 %v7657_v63  ;;  %v2432_v5 = vpop.f32.mrf.mxu0  ;;  %2807 = vmatpush.msra.mxu1 %v3887_v51  ;;  %v6583_v63 = vld [vmem:[#allocation5 + $0x88] sm:$0xff] }
 0x4eb   :  { %v2456_v30 = vadd.f32 %v2432_v5, %v2373_v1  ;;  %v7670_v1 = vld [vmem:[#allocation89_spill] sm:$0xff] }
 0x4ec   :  { %2784 = vmatpush.msra.mxu3 %v7658_v14  ;;  %2919 = vmatpush.msrb.mxu1 %v6540_v53 }
 0x4ed   :  { %v3364_v25 = vmul.f32 -1.442695, %v2456_v30 }
 0x4ee   :  { %2785 = vmatpush.msra.mxu3 %v7660_v43  ;;  %2920 = vmatpush.msrb.mxu1 %v6544_v52 }
 0x4ef   :  { %3500 = vpow2.f32 %v3364_v25  ;;  %v6591_v25 = vld [vmem:[#allocation5 + $0x58] sm:$0xff] }
 0x4f0   :  { %2786 = vmatpush.msra.mxu3 %v7661_v19  ;;  %v2412_v32 = vpop.f32.mrf.mxu2  ;;  %2921 = vmatpush.msrb.mxu1 %v6548_v26 }
 0x4f1   :  { %v2455_v61 = vadd.f32 %v2412_v32, %v2353_v8  ;;  %v7673_v8 = vld [vmem:[#allocation55_spill] sm:$0xff] }
 0x4f2   :  { %2787 = vmatpush.msra.mxu3 %v7662_v4  ;;  %2922 = vmatpush.msrb.mxu1 %v6552_v9  ;;  %v7674_v32 = vld [vmem:[#allocation59_spill] sm:$0xff] }
 0x4f3   :  { %v3363_v37 = vmul.f32 -1.442695, %v2455_v61 }
 0x4f4   :  { %2899 = vmatpush.msrb.mxu3 %v7663_v15  ;;  %2923 = vmatpush.msrb.mxu1 %v6556_v20  ;;  %v6596_v15 = vld [vmem:[#allocation5 + $0x40] sm:$0xff] }
 0x4f5   :  { %3502 = vpow2.f32 %v3363_v37  ;;  %v3501_v60 = vpop.eup %3500  ;;  %v2452_v37 = vpop.f32.mrf.mxu1 }
 0x4f6   :  { %2900 = vmatpush.msrb.mxu3 %v7664_v28  ;;  %2924 = vmatpush.msrb.mxu1 %v6560_v22  ;;  %v6564_v17 = vadd.f32 1.0, %v3501_v60  ;;  %v7675_v28 = vld [vmem:[#allocation49_spill] sm:$0xff]  ;;  %v6600_v60 = vld [vmem:[#allocation5 + $0x28] sm:$0xff] }
 0x4f8   :  { %2901 = vmatpush.msrb.mxu3 %v7665_v54  ;;  %2925 = vmatpush.msrb.mxu1 %v6566_v49  ;;  %vm2485_vm3 = vweird.f32 %v6564_v17 }
 0x4fa   :  { %2902 = vmatpush.msrb.mxu3 %v7666_v18  ;;  %2926 = vmatpush.msrb.mxu1 %v6570_v21 }
 0x4fb   :  { %v3503_v50 = vpop.eup %3502 }
 0x4fc   :  { %2903 = vmatpush.msrb.mxu3 %v7667_v36  ;;  %v2463_v47 = vadd.f32 1.0, %v3503_v50  ;;  %2927 = vmatpush.msrb.mxu1 %v6575_v41  ;;  %v7676_v50 = vld [vmem:[#allocation90_spill] sm:$0xff] }
 0x4fe   :  { %2904 = vmatpush.msrb.mxu3 %v7668_v42  ;;  %3504 = vrcp.f32 %v2463_v47  ;;  %2928 = vmatpush.msrb.mxu1 %v6579_v11  ;;  %v2476_v19 = vand.u32 2147483648, %v2463_v47  ;;  %v2474_v4 = vand.u32 2147483647, %v2463_v47  ;;  %vm2470_vm14 = vweird.f32 %v2463_v47  ;;  %v7677_v42 = vld [vmem:[#allocation105_spill] sm:$0xff] }
 0x4ff   :  { %3506 = vrcp.f32 %v6564_v17 }
 0x500   :  { %2905 = vmatpush.msrb.mxu3 %v7669_v10  ;;  %2929 = vmatpush.msrb.mxu1 %v6583_v63  ;;  %v2477_v36 = vor.u32 1.1754944e-38, %v2476_v19  ;;  %v2393_v10 = vadd.f32 %v6528_v23, %v7677_v42  ;;  %vm2475_vm1 = vcmp.eq.f32.partialorder %v2474_v4, 8.507059e+37  ;;  %v7680_v19 = vld [vmem:[#allocation40_spill] sm:$0xff]  ;;  %v2489_v4 = vand.u32 2147483647, %v6564_v17  ;;  %v6661_v42 = vld [vmem:[#allocation7 + $0x88] sm:$0xff] }
 0x501   :  { %7687 = vst [vmem:[#allocation73_spill] sm:$0xff] %v6661_v42 }
 0x502   :  { %2906 = vmatpush.msrb.mxu3 %v7670_v1  ;;  %2930 = vmatpush.msrb.mxu1 %v6587_v0  ;;  %v6609_v1 = vld [vmem:[%s6801_s4] ss:$0 sm:$0xff]  ;;  %vm2490_vm5 = vcmp.eq.f32.partialorder %v2489_v4, 8.507059e+37  ;;  %v6637_v4 = vld [vmem:[#allocation7 + $0x130] sm:$0xff] }
 0x503   :  { %7678 = vst [vmem:[#allocation62_spill] sm:$0xff] %v6609_v1 }
 0x504   :  { %2907 = vmatpush.msrb.mxu3 %v7671_v24  ;;  %v3505_v5 = vpop.eup %3504  ;;  %2931 = vmatpush.msrb.mxu1 %v6591_v25  ;;  %v2495_v24 = vadd.f32 %v6609_v1, %v2452_v37  ;;  %v3922_v1 = vld [vmem:[#allocation5 + $0xa8] sm:$0xff] }
 0x505   :  { %v3507_v30 = vpop.eup %3506  ;;  %v2466_v14 = vmul.f32 %v3505_v5, %v2463_v47  ;;  %vm2471_vm0 = vweird.f32 %v3505_v5 }
 0x506   :  { %2908 = vmatpush.msrb.mxu3 %v7672_v55  ;;  %v2481_v51 = vmul.f32 %v3507_v30, %v6564_v17  ;;  %2932 = vmatpush.msrb.mxu1 %v6596_v15  ;;  %vm2472_vm15 = vmor %vm2470_vm14, %vm2471_vm0  ;;  %v6612_v55 = vld [vmem:[#allocation5 + $0x10] sm:$0xff]  ;;  %vm2486_vm2 = vweird.f32 %v3507_v30 }
 0x507   :  { %v2467_v43 = vsub.f32 1.0, %v2466_v14  ;;  %vm2487_vm4 = vmor %vm2485_vm3, %vm2486_vm2 }
 0x508   :  { %2909 = vmatpush.msrb.mxu3 %v7673_v8  ;;  %2933 = vmatpush.msrb.mxu1 %v6600_v60  ;;  %v2482_v18 = vsub.f32 1.0, %v2481_v51  ;;  %v7679_v8 = vld [vmem:[#allocation63_spill] sm:$0xff] }
 0x509   :  { %v2468_v61 = vmul.f32 %v3505_v5, %v2467_v43 }
 0x50a   :  { %2910 = vmatpush.msrb.mxu3 %v7674_v32  ;;  %2934 = vmatpush.msrb.mxu1 %v6612_v55  ;;  %v2483_v51 = vmul.f32 %v3507_v30, %v2482_v18 }
 0x50b   :  { %v2469_v54 = vadd.f32 %v3505_v5, %v2468_v61  ;;  %v2685_v61 = vld [vmem:[#allocation8 + $0x2f8] sm:$0xff] }
 0x50c   :  { %2911 = vmatpush.msrb.mxu3 %v7675_v28  ;;  %v2484_v32 = vadd.f32 %v3507_v30, %v2483_v51  ;;  %v2684_v28 = vld [vmem:[#allocation8 + $0x2f0] sm:$0xff]  ;;  %2686 = vmatpush.msrb.mxu0 %v2685_v61  ;;  %v2678_v51 = vld [vmem:[#allocation8 + $0x2c0] sm:$0xff]  ;;  %v6632_v61 = vld [vmem:[#allocation7 + $0x148] sm:$0xff] }
 0x50d   :  { %v2473_v47 = vsel %vm2472_vm15, %v3505_v5, %v2469_v54  ;;  %v2491_v5 = vand.u32 2147483648, %v6564_v17  ;;  %v2680_v17 = vld [vmem:[#allocation8 + $0x2d0] sm:$0xff] }
 0x50e   :  { %2912 = vmatpush.msrb.mxu3 %v7676_v50  ;;  %v2478_v14 = vsel %vm2475_vm1, %v2477_v36, %v2473_v47  ;;  %2687 = vmatpush.msrb.mxu0 %v2684_v28  ;;  %v2488_v37 = vsel %vm2487_vm4, %v3507_v30, %v2484_v32  ;;  %v2683_v50 = vld [vmem:[#allocation8 + $0x2e8] sm:$0xff]  ;;  %v2682_v47 = vld [vmem:[#allocation8 + $0x2e0] sm:$0xff]  ;;  %v2677_v32 = vld [vmem:[#allocation8 + $0x2b8] sm:$0xff] }
 0x50f   :  { %v2496_v43 = vmul.f32 %v2495_v24, %v2478_v14  ;;  %v2492_v18 = vor.u32 1.1754944e-38, %v2491_v5  ;;  %v2679_v30 = vld [vmem:[#allocation8 + $0x2c8] sm:$0xff]  ;;  %v3910_v28 = vld [vmem:[#allocation5 + $0x138] sm:$0xff]  ;;  %v2676_v5 = vld [vmem:[#allocation8 + $0x2b0] sm:$0xff] }
 0x510   :  { %2913 = vmatpush.msrb.mxu3 %v7679_v8  ;;  %2688 = vmatpush.msrb.mxu0 %v2683_v50  ;;  %v2681_v8 = vld [vmem:[#allocation8 + $0x2d8] sm:$0xff]  ;;  %v3914_v50 = vld [vmem:[#allocation5 + $0x108] sm:$0xff] }
 0x511   :  { %v2497_v23 = vadd.f32 %v2496_v43, %v2393_v10  ;;  %v2493_v10 = vsel %vm2490_vm5, %v2492_v18, %v2488_v37  ;;  %v3906_v43 = vld [vmem:[#allocation5 + $0x168] sm:$0xff]  ;;  %v6640_v18 = vld [vmem:[#allocation7 + $0x118] sm:$0xff] }
 0x512   :  { %2914 = vmatpush.msrb.mxu3 %v7680_v19  ;;  %2689 = vmatpush.msrb.mxu0 %v2682_v47  ;;  %v6629_v19 = vld [vmem:[#allocation7 + $0x160] sm:$0xff]  ;;  %v2675_v37 = vld [vmem:[#allocation8 + $0x2a8] sm:$0xff]  ;;  %v3916_v47 = vld [vmem:[#allocation5 + $0xf0] sm:$0xff] }
 0x513   :  { %3508 = vtanh.f32 %v2497_v23  ;;  %v3908_v23 = vld [vmem:[#allocation5 + $0x150] sm:$0xff] }
 0x514   :  { %2690 = vmatpush.msrb.mxu0 %v2681_v8  ;;  %v6646_v8 = vld [vmem:[#allocation7 + $0xe8] sm:$0xff] }
 0x515   :  { %7682 = vst [vmem:[#allocation15_spill] sm:$0xff] %v6646_v8 }
 0x516   :  { %2691 = vmatpush.msrb.mxu0 %v2680_v17  ;;  %v2672_v17 = vld [vmem:[#allocation8 + $0x290] sm:$0xff] }
 0x518   :  { %2692 = vmatpush.msrb.mxu0 %v2679_v30  ;;  %v3918_v30 = vld [vmem:[#allocation5 + $0xd8] sm:$0xff] }
 0x519   :  { %v3509_v54 = vpop.eup %3508 }
 0x51a   :  { %v2499_v36 = vsub.f32 %v6360_v48, %v3509_v54  ;;  %v6626_v48 = vld [vmem:[#allocation7 + $0x178] sm:$0xff]  ;;  %2693 = vmatpush.msrb.mxu0 %v2678_v51  ;;  %v6649_v51 = vld [vmem:[#allocation7 + $0xd0] sm:$0xff] }
 0x51b   :  { %7683 = vst [vmem:[#allocation66_spill] sm:$0xff] %v6649_v51 }
 0x51c   :  { %v2500_v24 = vmul.f32 %v2499_v36, %v2493_v10  ;;  %2694 = vmatpush.msrb.mxu0 %v2677_v32  ;;  %v2674_v36 = vld [vmem:[#allocation8 + $0x2a0] sm:$0xff] }
 0x51d   :  { %v6643_v10 = vld [vmem:[#allocation7 + $0x100] sm:$0xff] }
 0x51e   :  { %v6621_v14 = vadd.f32 %v3509_v54, %v2500_v24  ;;  %2695 = vmatpush.msrb.mxu0 %v2676_v5  ;;  %v3912_v54 = vld [vmem:[#allocation5 + $0x120] sm:$0xff]  ;;  %7681 = vst [vmem:[#allocation69_spill] sm:$0xff] %v6643_v10  ;;  %v2673_v24 = vld [vmem:[#allocation8 + $0x298] sm:$0xff]  ;;  %v2671_v5 = vld [vmem:[#allocation8 + $0x288] sm:$0xff] }
 0x520   :  { %2788 = vmatmul.f32.vlgmr.msra.gmra.mxu3 %v6621_v14  ;;  %2808 = vmatmul.f32.vlgmr.msra.gmra.mxu1 %v6621_v14 }
 0x521   :  { %2828 = vmatmul.f32.vlgmr.msrb.gmra.mxu2 %v6621_v14  ;;  %2979 = vmatpush.msra.mxu3 %v6626_v48 }
 0x522   :  { %3084 = vmatpush.msrb.mxu2 %v3906_v43  ;;  %2696 = vmatpush.msrb.mxu0 %v2675_v37  ;;  %v3920_v37 = vld [vmem:[#allocation5 + $0xc0] sm:$0xff] }
 0x523   :  { %2980 = vmatpush.msra.mxu3 %v6629_v19 }
 0x524   :  { %3085 = vmatpush.msrb.mxu2 %v3908_v23  ;;  %2697 = vmatpush.msrb.mxu0 %v2674_v36 }
 0x525   :  { %2981 = vmatpush.msra.mxu3 %v6632_v61 }
 0x526   :  { %3086 = vmatpush.msrb.mxu2 %v3910_v28  ;;  %2698 = vmatpush.msrb.mxu0 %v2673_v24  ;;  %v6655_v24 = vld [vmem:[#allocation7 + $0xb8] sm:$0xff] }
 0x527   :  { %2982 = vmatpush.msra.mxu3 %v6637_v4  ;;  %7685 = vst [vmem:[#allocation22_spill] sm:$0xff] %v6655_v24 }
 0x528   :  { %2915 = vmatmul.f32.vlgmr.msrb.gmra.mxu3 %v6621_v14  ;;  %2935 = vmatmul.f32.vlgmr.msrb.gmra.mxu1 %v6621_v14 }
 0x529   :  { %3087 = vmatpush.msrb.mxu2 %v3912_v54  ;;  %2983 = vmatpush.msra.mxu3 %v6640_v18 }
 0x52a   :  { %2699 = vmatpush.msrb.mxu0 %v2672_v17  ;;  %v6658_v17 = vld [vmem:[#allocation7 + $0xa0] sm:$0xff] }
 0x52b   :  { %3088 = vmatpush.msrb.mxu2 %v3914_v50  ;;  %2984 = vmatpush.msra.mxu3 %v6643_v10  ;;  %7686 = vst [vmem:[#allocation70_spill] sm:$0xff] %v6658_v17  ;;  %v6674_v10 = vld [vmem:[#allocation7 + $0x28] sm:$0xff] }
 0x52c   :  { %2700 = vmatpush.msrb.mxu0 %v2671_v5 }
 0x52d   :  { %3089 = vmatpush.msrb.mxu2 %v3916_v47  ;;  %2985 = vmatpush.msra.mxu3 %v6646_v8  ;;  %v2670_v8 = vld [vmem:[#allocation8 + $0x280] sm:$0xff] }
 0x52e   :  { %2701 = vmatpush.msrb.mxu0 %v2670_v8  ;;  %v3928_v8 = vld [vmem:[#allocation5 + $0x60] sm:$0xff] }
 0x52f   :  { %3090 = vmatpush.msrb.mxu2 %v3918_v30  ;;  %2986 = vmatpush.msra.mxu3 %v6649_v51  ;;  %v3924_v51 = vld [vmem:[#allocation5 + $0x90] sm:$0xff] }
 0x530   :  { %2879 = vmatpush.msra.mxu0 %v3906_v43  ;;  %v6668_v43 = vld [vmem:[#allocation7 + $0x58] sm:$0xff] }
 0x531   :  { %3091 = vmatpush.msrb.mxu2 %v3920_v37  ;;  %2987 = vmatpush.msra.mxu3 %v6655_v24  ;;  %v6671_v24 = vld [vmem:[#allocation7 + $0x40] sm:$0xff] }
 0x532   :  { %v2326_v32 = vpop.f32.mrf.mxu3  ;;  %2880 = vmatpush.msra.mxu0 %v3908_v23 }
 0x533   :  { %v6653_v36 = vadd.f32 %v2326_v32, %v6363_v40  ;;  %3092 = vmatpush.msrb.mxu2 %v3922_v1  ;;  %2988 = vmatpush.msra.mxu3 %v6658_v17  ;;  %v3926_v40 = vld [vmem:[#allocation5 + $0x78] sm:$0xff]  ;;  %v6664_v32 = vld [vmem:[#allocation7 + $0x70] sm:$0xff]  ;;  %v2579_v17 = vpop.f32.mrf.mxu1 }
 0x534   :  { %7688 = vst [vmem:[#allocation30_spill] sm:$0xff] %v6664_v32  ;;  %2881 = vmatpush.msra.mxu0 %v3910_v28 }
 0x535   :  { %7684 = vst [vmem:[#allocation67_spill] sm:$0xff] %v6653_v36  ;;  %3093 = vmatpush.msrb.mxu2 %v3924_v51  ;;  %2989 = vmatpush.msra.mxu3 %v6661_v42  ;;  %v3930_v42 = vld [vmem:[#allocation5 + $0x48] sm:$0xff] }
 0x536   :  { %2882 = vmatpush.msra.mxu0 %v3912_v54  ;;  %v6677_v54 = vld [vmem:[#allocation7 + $0x10] sm:$0xff] }
 0x537   :  { %3094 = vmatpush.msrb.mxu2 %v3926_v40  ;;  %2990 = vmatpush.msra.mxu3 %v6664_v32  ;;  %v3932_v32 = vld [vmem:[#allocation5 + $0x30] sm:$0xff] }
 0x538   :  { %2883 = vmatpush.msra.mxu0 %v3914_v50 }
 0x539   :  { %3095 = vmatpush.msrb.mxu2 %v3928_v8  ;;  %2991 = vmatpush.msra.mxu3 %v6668_v43 }
 0x53a   :  { %v2519_v5 = vpop.f32.mrf.mxu3  ;;  %2884 = vmatpush.msra.mxu0 %v3916_v47 }
 0x53b   :  { %v2520_v36 = vadd.f32 %v2519_v5, %v7622_v35  ;;  %3096 = vmatpush.msrb.mxu2 %v3930_v42  ;;  %2992 = vmatpush.msra.mxu3 %v6671_v24  ;;  %v3934_v5 = vld [vmem:[#allocation5 + $0x18] sm:$0xff] }
 0x53c   :  { %2885 = vmatpush.msra.mxu0 %v3918_v30 }
 0x53d   :  { %v2622_v23 = vadd.f32 %v2579_v17, %v2520_v36  ;;  %3097 = vmatpush.msrb.mxu2 %v3932_v32  ;;  %2993 = vmatpush.msra.mxu3 %v6674_v10  ;;  %v3936_v36 = vld [vmem:[#allocation5] sm:$0xff] }
 0x53e   :  { %2886 = vmatpush.msra.mxu0 %v3920_v37 }
 0x53f   :  { %v3365_v28 = vmul.f32 -1.442695, %v2622_v23  ;;  %3098 = vmatpush.msrb.mxu2 %v3934_v5  ;;  %2994 = vmatpush.msra.mxu3 %v6677_v54 }
 0x540   :  { %2887 = vmatpush.msra.mxu0 %v3922_v1 }
 0x541   :  { %3510 = vpow2.f32 %v3365_v28  ;;  %3124 = vmatpush.msrb.mxu3 %v6540_v53  ;;  %3099 = vmatpush.msrb.mxu2 %v3936_v36  ;;  %v2539_v53 = vpop.f32.mrf.mxu2 }
 0x542   :  { %2888 = vmatpush.msra.mxu0 %v3924_v51 }
 0x543   :  { %3125 = vmatpush.msrb.mxu3 %v6544_v52 }
 0x544   :  { %2889 = vmatpush.msra.mxu0 %v3926_v40 }
 0x545   :  { %3126 = vmatpush.msrb.mxu3 %v6548_v26  ;;  %v2540_v26 = vadd.f32 %v2539_v53, %v7642_v38 }
 0x546   :  { %2890 = vmatpush.msra.mxu0 %v3928_v8  ;;  %v2559_v8 = vpop.f32.mrf.mxu0 }
 0x547   :  { %v3511_v50 = vpop.eup %3510  ;;  %3127 = vmatpush.msrb.mxu3 %v6552_v9  ;;  %v2560_v28 = vadd.f32 %v2559_v8, %v7648_v59 }
 0x548   :  { %v2630_v47 = vadd.f32 1.0, %v3511_v50  ;;  %2891 = vmatpush.msra.mxu0 %v3930_v42 }
 0x549   :  { %3128 = vmatpush.msrb.mxu3 %v6556_v20  ;;  %v2619_v37 = vpop.f32.mrf.mxu2 }
 0x54a   :  { %3512 = vrcp.f32 %v2630_v47  ;;  %2892 = vmatpush.msra.mxu0 %v3932_v32  ;;  %v2643_v42 = vand.u32 2147483648, %v2630_v47  ;;  %v2641_v51 = vand.u32 2147483647, %v2630_v47  ;;  %vm2637_vm7 = vweird.f32 %v2630_v47 }
 0x54b   :  { %3129 = vmatpush.msrb.mxu3 %v6560_v22  ;;  %v2662_v40 = vadd.f32 %v6415_v13, %v2619_v37  ;;  %v3949_v37 = vld [vmem:[#allocation5 + $0x50] sm:$0xff] }
 0x54c   :  { %2893 = vmatpush.msra.mxu0 %v3934_v5  ;;  %v2644_v17 = vor.u32 1.1754944e-38, %v2643_v42  ;;  %vm2642_vm9 = vcmp.eq.f32.partialorder %v2641_v51, 8.507059e+37  ;;  %v3947_v42 = vld [vmem:[#allocation5 + $0x80] sm:$0xff] }
 0x54d   :  { %3130 = vmatpush.msrb.mxu3 %v6566_v49 }
 0x54e   :  { %2894 = vmatpush.msra.mxu0 %v3936_v36 }
 0x54f   :  { %3131 = vmatpush.msrb.mxu3 %v6570_v21 }
 0x550   :  { %v3513_v52 = vpop.eup %3512 }
 0x551   :  { %v2633_v1 = vmul.f32 %v3513_v52, %v2630_v47  ;;  %3132 = vmatpush.msrb.mxu3 %v6575_v41  ;;  %vm2638_vm6 = vweird.f32 %v3513_v52 }
 0x552   :  { %v2599_v30 = vpop.f32.mrf.mxu3  ;;  %vm2639_vm8 = vmor %vm2637_vm7, %vm2638_vm6 }
 0x553   :  { %v2634_v9 = vsub.f32 1.0, %v2633_v1  ;;  %v2623_v20 = vadd.f32 %v2599_v30, %v2540_v26  ;;  %3133 = vmatpush.msrb.mxu3 %v6579_v11 }
 0x555   :  { %v2635_v22 = vmul.f32 %v3513_v52, %v2634_v9  ;;  %v3366_v49 = vmul.f32 -1.442695, %v2623_v20  ;;  %3134 = vmatpush.msrb.mxu3 %v6583_v63  ;;  %v3944_v9 = vld [vmem:[#allocation5 + $0xc8] sm:$0xff]  ;;  %v3945_v20 = vld [vmem:[#allocation5 + $0xb0] sm:$0xff] }
 0x557   :  { %v2636_v21 = vadd.f32 %v3513_v52, %v2635_v22  ;;  %3514 = vpow2.f32 %v3366_v49  ;;  %3135 = vmatpush.msrb.mxu3 %v6587_v0  ;;  %v3946_v22 = vld [vmem:[#allocation5 + $0x98] sm:$0xff] }
 0x559   :  { %v2640_v41 = vsel %vm2639_vm8, %v3513_v52, %v2636_v21  ;;  %3136 = vmatpush.msrb.mxu3 %v6591_v25 }
 0x55a   :  { %v2645_v11 = vsel %vm2642_vm9, %v2644_v17, %v2640_v41  ;;  %v3950_v17 = vld [vmem:[#allocation5 + $0x38] sm:$0xff] }
 0x55b   :  { %3137 = vmatpush.msrb.mxu3 %v6596_v15  ;;  %v2663_v23 = vmul.f32 %v2662_v40, %v2645_v11  ;;  %v3951_v11 = vld [vmem:[#allocation5 + $0x20] sm:$0xff]  ;;  %v3952_v40 = vld [vmem:[#allocation5 + $0x8] sm:$0xff] }
 0x55d   :  { %v3515_v32 = vpop.eup %3514  ;;  %3138 = vmatpush.msrb.mxu3 %v6600_v60  ;;  %v2664_v0 = vadd.f32 %v2663_v23, %v2560_v28 }
 0x55e   :  { %v2631_v63 = vadd.f32 1.0, %v3515_v32 }
 0x55f   :  { %3139 = vmatpush.msrb.mxu3 %v6612_v55 }
 0x560   :  { %3516 = vrcp.f32 %v2631_v63  ;;  %v2658_v50 = vand.u32 2147483648, %v2631_v63  ;;  %v2656_v15 = vand.u32 2147483647, %v2631_v63  ;;  %vm2652_vm11 = vweird.f32 %v2631_v63 }
 0x561   :  { %3518 = vtanh.f32 %v2664_v0 }
 0x562   :  { %v2659_v52 = vor.u32 1.1754944e-38, %v2658_v50  ;;  %vm2657_vm13 = vcmp.eq.f32.partialorder %v2656_v15, 8.507059e+37  ;;  %v7690_v15 = vld [vmem:[#allocation105_spill] sm:$0xff] }
 0x566   :  { %v3517_v5 = vpop.eup %3516 }
 0x567   :  { %v2648_v25 = vmul.f32 %v3517_v5, %v2631_v63  ;;  %vm2653_vm10 = vweird.f32 %v3517_v5  ;;  %v3519_v47 = vpop.eup %3518 }
 0x568   :  { %vm2654_vm12 = vmor %vm2652_vm11, %vm2653_vm10  ;;  %v2666_v26 = vsub.f32 %v6431_v45, %v3519_v47  ;;  %v2729_v45 = vpop.f32.mrf.mxu1 }
 0x569   :  { %v2649_v36 = vsub.f32 1.0, %v2648_v25 }
 0x56b   :  { %v2650_v13 = vmul.f32 %v3517_v5, %v2649_v36 }
 0x56d   :  { %v2651_v53 = vadd.f32 %v3517_v5, %v2650_v13  ;;  %v7689_v13 = vld [vmem:[#allocation69_spill] sm:$0xff] }
 0x56f   :  { %v2655_v60 = vsel %vm2654_vm12, %v3517_v5, %v2651_v53  ;;  %v7691_v53 = vld [vmem:[#allocation62_spill] sm:$0xff] }
 0x570   :  { %v2660_v1 = vsel %vm2657_vm13, %v2659_v52, %v2655_v60  ;;  %v7692_v60 = vld [vmem:[#allocation15_spill] sm:$0xff] }
 0x571   :  { %v2667_v55 = vmul.f32 %v2666_v26, %v2660_v1 }
 0x573   :  { %v6700_v30 = vadd.f32 %v3519_v47, %v2667_v55 }
 0x575   :  { %2702 = vmatmul.f32.vlgmr.msrb.gmra.mxu0 %v6700_v30  ;;  %2955 = vmatmul.f32.vlgmr.msra.gmra.mxu2 %v6700_v30 }
 0x576   :  { %2959 = vmatpush.msrb.mxu0 %v6436_v58  ;;  %2995 = vmatmul.f32.vlgmr.msra.gmra.mxu3 %v6700_v30 }
 0x577   :  { %3164 = vmatpush.msra.mxu2 %v6436_v58  ;;  %v6735_v58 = vpop.f32.mrf.mxu1 }
 0x578   :  { %2960 = vmatpush.msrb.mxu0 %v6444_v12 }
 0x579   :  { %3165 = vmatpush.msra.mxu2 %v6444_v12  ;;  %v3937_v12 = vld [vmem:[#allocation5 + $0x170] sm:$0xff] }
 0x57a   :  { %2961 = vmatpush.msrb.mxu0 %v6451_v34 }
 0x57b   :  { %3166 = vmatpush.msra.mxu2 %v6451_v34  ;;  %v2749_v34 = vpop.f32.mrf.mxu3 }
 0x57c   :  { %2962 = vmatpush.msrb.mxu0 %v6455_v33 }
 0x57d   :  { %2895 = vmatmul.f32.vlgmr.msra.gmra.mxu0 %v6621_v14  ;;  %3167 = vmatpush.msra.mxu2 %v6455_v33  ;;  %v3938_v33 = vld [vmem:[#allocation5 + $0x158] sm:$0xff] }
 0x57e   :  { %2963 = vmatpush.msrb.mxu0 %v6460_v44 }
 0x57f   :  { %3168 = vmatpush.msra.mxu2 %v6460_v44  ;;  %v2750_v44 = vadd.f32 %v2749_v34, %v7655_v46  ;;  %v7695_v34 = vld [vmem:[#allocation70_spill] sm:$0xff] }
 0x580   :  { %2964 = vmatpush.msrb.mxu0 %v6464_v57 }
 0x581   :  { %3169 = vmatpush.msra.mxu2 %v6464_v57  ;;  %v3939_v57 = vld [vmem:[#allocation5 + $0x140] sm:$0xff] }
 0x582   :  { %2965 = vmatpush.msrb.mxu0 %v6468_v29 }
 0x583   :  { %3170 = vmatpush.msra.mxu2 %v6468_v29  ;;  %v3940_v29 = vld [vmem:[#allocation5 + $0x128] sm:$0xff] }
 0x584   :  { %2966 = vmatpush.msrb.mxu0 %v6472_v39 }
 0x585   :  { %3171 = vmatpush.msra.mxu2 %v6472_v39 }
 0x586   :  { %2967 = vmatpush.msrb.mxu0 %v6476_v16 }
 0x587   :  { %3172 = vmatpush.msra.mxu2 %v6476_v16 }
 0x588   :  { %2968 = vmatpush.msrb.mxu0 %v6480_v6 }
 0x589   :  { %3173 = vmatpush.msra.mxu2 %v6480_v6  ;;  %v3941_v6 = vld [vmem:[#allocation5 + $0x110] sm:$0xff] }
 0x58a   :  { %2969 = vmatpush.msrb.mxu0 %v6484_v62 }
 0x58b   :  { %3174 = vmatpush.msra.mxu2 %v6484_v62  ;;  %v2730_v62 = vadd.f32 %v2729_v45, %v7659_v56  ;;  %v3948_v56 = vld [vmem:[#allocation5 + $0x68] sm:$0xff]  ;;  %v7694_v45 = vld [vmem:[#allocation22_spill] sm:$0xff] }
 0x58c   :  { %2970 = vmatpush.msrb.mxu0 %v6488_v31 }
 0x58d   :  { %3175 = vmatpush.msra.mxu2 %v6488_v31  ;;  %v3942_v31 = vld [vmem:[#allocation5 + $0xf8] sm:$0xff] }
 0x58e   :  { %2971 = vmatpush.msrb.mxu0 %v6492_v27 }
 0x58f   :  { %3176 = vmatpush.msra.mxu2 %v6492_v27 }
 0x590   :  { %2972 = vmatpush.msrb.mxu0 %v6496_v7 }
 0x591   :  { %3177 = vmatpush.msra.mxu2 %v6496_v7  ;;  %v3943_v7 = vld [vmem:[#allocation5 + $0xe0] sm:$0xff] }
 0x592   :  { %2973 = vmatpush.msrb.mxu0 %v6500_v2 }
 0x593   :  { %3178 = vmatpush.msra.mxu2 %v6500_v2 }
 0x594   :  { %2974 = vmatpush.msrb.mxu0 %v6504_v3 }
 0x595   :  { %2975 = vmatmul.f32.vlgmr.msrb.gmra.mxu0 %v6700_v30  ;;  %3179 = vmatpush.msra.mxu2 %v6504_v3 }
 0x596   :  { %3104 = vmatpush.msra.mxu0 %v3937_v12 }
 0x598   :  { %3105 = vmatpush.msra.mxu0 %v3938_v33 }
 0x59a   :  { %3106 = vmatpush.msra.mxu0 %v3939_v57 }
 0x59c   :  { %3107 = vmatpush.msra.mxu0 %v3940_v29  ;;  %v7697_v29 = vld [vmem:[#allocation30_spill] sm:$0xff] }
 0x59d   :  { %v2809_v39 = vpop.f32.mrf.mxu1 }
 0x59e   :  { %v2833_v16 = vadd.f32 %v2809_v39, %v2750_v44  ;;  %3108 = vmatpush.msra.mxu0 %v3941_v6  ;;  %v7696_v44 = vld [vmem:[#allocation73_spill] sm:$0xff] }
 0x5a0   :  { %3109 = vmatpush.msra.mxu0 %v3942_v31  ;;  %v3372_v27 = vmul.f32 -1.442695, %v2833_v16 }
 0x5a2   :  { %3110 = vmatpush.msra.mxu0 %v3943_v7  ;;  %3520 = vpow2.f32 %v3372_v27  ;;  %v3062_v7 = vld [vmem:[#allocation8 + $0x378] sm:$0xff] }
 0x5a3   :  { %v2789_v2 = vpop.f32.mrf.mxu3  ;;  %3063 = vmatpush.msra.mxu1 %v3062_v7 }
 0x5a4   :  { %v2832_v3 = vadd.f32 %v2789_v2, %v2730_v62  ;;  %3111 = vmatpush.msra.mxu0 %v3944_v9  ;;  %v2829_v36 = vpop.f32.mrf.mxu2  ;;  %v3061_v2 = vld [vmem:[#allocation8 + $0x370] sm:$0xff] }
 0x5a5   :  { %3064 = vmatpush.msra.mxu1 %v3061_v2  ;;  %v3057_v9 = vld [vmem:[#allocation8 + $0x350] sm:$0xff]  ;;  %v2936_v2 = vpop.f32.mrf.mxu1 }
 0x5a6   :  { %v3371_v46 = vmul.f32 -1.442695, %v2832_v3  ;;  %3112 = vmatpush.msra.mxu0 %v3945_v20  ;;  %v3060_v3 = vld [vmem:[#allocation8 + $0x368] sm:$0xff]  ;;  %v3053_v20 = vld [vmem:[#allocation8 + $0x330] sm:$0xff] }
 0x5a7   :  { %3065 = vmatpush.msra.mxu1 %v3060_v3 }
 0x5a8   :  { %3522 = vpow2.f32 %v3371_v46  ;;  %3113 = vmatpush.msra.mxu0 %v3946_v22  ;;  %v3521_v49 = vpop.eup %3520  ;;  %v3054_v46 = vld [vmem:[#allocation8 + $0x338] sm:$0xff]  ;;  %v3052_v22 = vld [vmem:[#allocation8 + $0x328] sm:$0xff] }
 0x5a9   :  { %v2841_v21 = vadd.f32 1.0, %v3521_v49 }
 0x5aa   :  { %3114 = vmatpush.msra.mxu0 %v3947_v42  ;;  %v7698_v42 = vld [vmem:[#allocation67_spill] sm:$0xff] }
 0x5ab   :  { %vm2862_vm3 = vweird.f32 %v2841_v21  ;;  %v2866_v33 = vand.u32 2147483647, %v2841_v21 }
 0x5ac   :  { %3115 = vmatpush.msra.mxu0 %v3948_v56  ;;  %v3051_v56 = vld [vmem:[#allocation8 + $0x320] sm:$0xff] }
 0x5ad   :  { %vm2867_vm5 = vcmp.eq.f32.partialorder %v2866_v33, 8.507059e+37 }
 0x5ae   :  { %v3523_v51 = vpop.eup %3522  ;;  %3116 = vmatpush.msra.mxu0 %v3949_v37 }
 0x5af   :  { %v2840_v41 = vadd.f32 1.0, %v3523_v51  ;;  %v3050_v51 = vld [vmem:[#allocation8 + $0x318] sm:$0xff] }
 0x5b0   :  { %3117 = vmatpush.msra.mxu0 %v3950_v17 }
 0x5b1   :  { %3524 = vrcp.f32 %v2840_v41  ;;  %v2853_v0 = vand.u32 2147483648, %v2840_v41  ;;  %v2851_v25 = vand.u32 2147483647, %v2840_v41  ;;  %vm2847_vm14 = vweird.f32 %v2840_v41 }
 0x5b2   :  { %3526 = vrcp.f32 %v2841_v21  ;;  %3118 = vmatpush.msra.mxu0 %v3951_v11 }
 0x5b3   :  { %vm2852_vm1 = vcmp.eq.f32.partialorder %v2851_v25, 8.507059e+37 }
 0x5b4   :  { %3119 = vmatpush.msra.mxu0 %v3952_v40  ;;  %v3047_v40 = vld [vmem:[#allocation8 + $0x300] sm:$0xff] }
 0x5b6   :  { %3184 = vmatpush.msrb.mxu0 %v6626_v48 }
 0x5b7   :  { %v3525_v32 = vpop.eup %3524 }
 0x5b8   :  { %3185 = vmatpush.msrb.mxu0 %v6629_v19  ;;  %v3527_v8 = vpop.eup %3526  ;;  %v2843_v63 = vmul.f32 %v3525_v32, %v2840_v41  ;;  %vm2848_vm0 = vweird.f32 %v3525_v32  ;;  %v2854_v19 = vor.u32 1.1754944e-38, %v2853_v0  ;;  %v3048_v41 = vld [vmem:[#allocation8 + $0x308] sm:$0xff]  ;;  %v3956_v0 = vld [vmem:[#allocation7 + $0x120] sm:$0xff] }
 0x5b9   :  { %v2858_v28 = vmul.f32 %v3527_v8, %v2841_v21  ;;  %vm2849_vm15 = vmor %vm2847_vm14, %vm2848_vm0  ;;  %vm2863_vm2 = vweird.f32 %v3527_v8 }
 0x5ba   :  { %3186 = vmatpush.msrb.mxu0 %v6632_v61  ;;  %v2844_v23 = vsub.f32 1.0, %v2843_v63  ;;  %v2770_v61 = vadd.f32 %v6735_v58, %v7690_v15  ;;  %v2868_v58 = vand.u32 2147483648, %v2841_v21  ;;  %vm2864_vm4 = vmor %vm2862_vm3, %vm2863_vm2  ;;  %v3049_v21 = vld [vmem:[#allocation8 + $0x310] sm:$0xff]  ;;  %v3961_v15 = vld [vmem:[#allocation7 + $0xa8] sm:$0xff] }
 0x5bb   :  { %v2859_v48 = vsub.f32 1.0, %v2858_v28  ;;  %v3955_v28 = vld [vmem:[#allocation7 + $0x138] sm:$0xff] }
 0x5bc   :  { %3187 = vmatpush.msrb.mxu0 %v6637_v4  ;;  %v2845_v5 = vmul.f32 %v3525_v32, %v2844_v23  ;;  %v2872_v4 = vadd.f32 %v7691_v53, %v2829_v36  ;;  %v2869_v16 = vor.u32 1.1754944e-38, %v2868_v58  ;;  %v3954_v23 = vld [vmem:[#allocation7 + $0x150] sm:$0xff]  ;;  %v3965_v58 = vld [vmem:[#allocation7 + $0x48] sm:$0xff] }
 0x5bd   :  { %v2860_v1 = vmul.f32 %v3527_v8, %v2859_v48  ;;  %v3959_v48 = vld [vmem:[#allocation7 + $0xd8] sm:$0xff] }
 0x5be   :  { %3188 = vmatpush.msrb.mxu0 %v6640_v18  ;;  %v2846_v50 = vadd.f32 %v3525_v32, %v2845_v5  ;;  %v7693_v18 = vld [vmem:[#allocation66_spill] sm:$0xff]  ;;  %v3957_v5 = vld [vmem:[#allocation7 + $0x108] sm:$0xff] }
 0x5bf   :  { %v2861_v12 = vadd.f32 %v3527_v8, %v2860_v1 }
 0x5c0   :  { %3189 = vmatpush.msrb.mxu0 %v7689_v13  ;;  %v2850_v47 = vsel %vm2849_vm15, %v3525_v32, %v2846_v50  ;;  %v3958_v50 = vld [vmem:[#allocation7 + $0xf0] sm:$0xff]  ;;  %v2916_v13 = vpop.f32.mrf.mxu3 }
 0x5c1   :  { %v2855_v52 = vsel %vm2852_vm1, %v2854_v19, %v2850_v47  ;;  %v2865_v57 = vsel %vm2864_vm4, %v3527_v8, %v2861_v12  ;;  %v3953_v8 = vld [vmem:[#allocation7 + $0x168] sm:$0xff]  ;;  %v3960_v19 = vld [vmem:[#allocation7 + $0xc0] sm:$0xff]  ;;  %v3962_v47 = vld [vmem:[#allocation7 + $0x90] sm:$0xff]  ;;  %v2917_v53 = vadd.f32 %v2916_v13, %v7642_v38 }
 0x5c2   :  { %3190 = vmatpush.msrb.mxu0 %v7692_v60  ;;  %v2873_v26 = vmul.f32 %v2872_v4, %v2855_v52  ;;  %v2870_v62 = vsel %vm2867_vm5, %v2869_v16, %v2865_v57  ;;  %v3963_v60 = vld [vmem:[#allocation7 + $0x78] sm:$0xff] }
 0x5c3   :  { %v3967_v16 = vld [vmem:[#allocation7 + $0x18] sm:$0xff] }
 0x5c4   :  { %3191 = vmatpush.msrb.mxu0 %v7693_v18  ;;  %v2874_v55 = vadd.f32 %v2873_v26, %v2770_v61  ;;  %v3964_v18 = vld [vmem:[#allocation7 + $0x60] sm:$0xff] }
 0x5c6   :  { %3192 = vmatpush.msrb.mxu0 %v7694_v45  ;;  %3528 = vtanh.f32 %v2874_v55 }
 0x5c8   :  { %3193 = vmatpush.msrb.mxu0 %v7695_v34 }
 0x5ca   :  { %3194 = vmatpush.msrb.mxu0 %v7696_v44  ;;  %v3966_v44 = vld [vmem:[#allocation7 + $0x30] sm:$0xff] }
 0x5cc   :  { %3195 = vmatpush.msrb.mxu0 %v7697_v29  ;;  %v3529_v39 = vpop.eup %3528 }
 0x5cd   :  { %v2876_v6 = vsub.f32 %v6621_v14, %v3529_v39  ;;  %v3059_v14 = vld [vmem:[#allocation8 + $0x360] sm:$0xff] }
 0x5ce   :  { %3196 = vmatpush.msrb.mxu0 %v6668_v43  ;;  %3066 = vmatpush.msra.mxu1 %v3059_v14  ;;  %v3058_v43 = vld [vmem:[#allocation8 + $0x358] sm:$0xff] }
 0x5cf   :  { %v2877_v31 = vmul.f32 %v2876_v6, %v2870_v62  ;;  %v6771_v62 = vld [vmem:[%s6805_s8] ss:$0 sm:$0xff] }
 0x5d0   :  { %3197 = vmatpush.msrb.mxu0 %v6671_v24  ;;  %3067 = vmatpush.msra.mxu1 %v3058_v43  ;;  %v3056_v24 = vld [vmem:[#allocation8 + $0x348] sm:$0xff]  ;;  %v2937_v43 = vadd.f32 %v2936_v2, %v7648_v59 }
 0x5d1   :  { %v2878_v27 = vadd.f32 %v3529_v39, %v2877_v31 }
 0x5d2   :  { %3198 = vmatpush.msrb.mxu0 %v6674_v10  ;;  %3068 = vmatpush.msra.mxu1 %v3057_v9  ;;  %v3055_v10 = vld [vmem:[#allocation8 + $0x340] sm:$0xff] }
 0x5d3   :  { %3100 = vmatmul.f32.vlgmr.msrb.gmra.mxu2 %v2878_v27  ;;  %3120 = vmatmul.f32.vlgmr.msra.gmra.mxu0 %v2878_v27 }
 0x5d4   :  { %3140 = vmatmul.f32.vlgmr.msrb.gmra.mxu3 %v2878_v27  ;;  %3199 = vmatpush.msrb.mxu0 %v6677_v54  ;;  %v3969_v27 = vld [vmem:[#allocation7] sm:$0xff] }
 0x5d5   :  { %3069 = vmatpush.msra.mxu1 %v3056_v24 }
 0x5d7   :  { %3070 = vmatpush.msra.mxu1 %v3055_v10 }
 0x5d9   :  { %3071 = vmatpush.msra.mxu1 %v3054_v46 }
 0x5db   :  { %3072 = vmatpush.msra.mxu1 %v3053_v20 }
 0x5dd   :  { %3073 = vmatpush.msra.mxu1 %v3052_v22 }
 0x5df   :  { %3074 = vmatpush.msra.mxu1 %v3051_v56 }
 0x5e1   :  { %3075 = vmatpush.msra.mxu1 %v3050_v51 }
 0x5e3   :  { %3076 = vmatpush.msra.mxu1 %v3049_v21 }
 0x5e5   :  { %3077 = vmatpush.msra.mxu1 %v3048_v41 }
 0x5e7   :  { %3078 = vmatpush.msra.mxu1 %v3047_v40  ;;  %v3267_v40 = vld [vmem:[#allocation8 + $0x3f8] sm:$0xff] }
 0x5e8   :  { %3268 = vmatpush.msra.mxu3 %v3267_v40 }
 0x5e9   :  { %3144 = vmatpush.msrb.mxu1 %v3953_v8  ;;  %v3265_v8 = vld [vmem:[#allocation8 + $0x3e8] sm:$0xff] }
 0x5eb   :  { %3145 = vmatpush.msrb.mxu1 %v3954_v23 }
 0x5ed   :  { %3146 = vmatpush.msrb.mxu1 %v3955_v28 }
 0x5ef   :  { %3147 = vmatpush.msrb.mxu1 %v3956_v0  ;;  %v3263_v0 = vld [vmem:[#allocation8 + $0x3d8] sm:$0xff] }
 0x5f1   :  { %3148 = vmatpush.msrb.mxu1 %v3957_v5 }
 0x5f2   :  { %v2703_v54 = vpop.f32.mrf.mxu0 }
 0x5f3   :  { %v6764_v49 = vadd.f32 %v2703_v54, %v7698_v42  ;;  %3149 = vmatpush.msrb.mxu1 %v3958_v50  ;;  %v3261_v50 = vld [vmem:[#allocation8 + $0x3c8] sm:$0xff] }
 0x5f5   :  { %3150 = vmatpush.msrb.mxu1 %v3959_v48  ;;  %v3260_v48 = vld [vmem:[#allocation8 + $0x3c0] sm:$0xff] }
 0x5f7   :  { %3151 = vmatpush.msrb.mxu1 %v3960_v19 }
 0x5f8   :  { %v2956_v11 = vpop.f32.mrf.mxu2 }
 0x5f9   :  { %3152 = vmatpush.msrb.mxu1 %v3961_v15  ;;  %v2996_v57 = vpop.f32.mrf.mxu3 }
 0x5fa   :  { %v2896_v37 = vpop.f32.mrf.mxu0  ;;  %v3039_v31 = vadd.f32 %v6771_v62, %v2996_v57 }
 0x5fb   :  { %v2897_v17 = vadd.f32 %v2896_v37, %v7622_v35  ;;  %3153 = vmatpush.msrb.mxu1 %v3962_v47 }
 0x5fd   :  { %v2999_v32 = vadd.f32 %v2956_v11, %v2897_v17  ;;  %3154 = vmatpush.msrb.mxu1 %v3963_v60  ;;  %v3257_v60 = vld [vmem:[#allocation8 + $0x3a8] sm:$0xff] }
 0x5ff   :  { %v3373_v63 = vmul.f32 -1.442695, %v2999_v32  ;;  %3155 = vmatpush.msrb.mxu1 %v3964_v18  ;;  %v3266_v32 = vld [vmem:[#allocation8 + $0x3f0] sm:$0xff] }
 0x600   :  { %3269 = vmatpush.msra.mxu3 %v3266_v32  ;;  %v3254_v18 = vld [vmem:[#allocation8 + $0x390] sm:$0xff] }
 0x601   :  { %3530 = vpow2.f32 %v3373_v63  ;;  %3156 = vmatpush.msrb.mxu1 %v3965_v58 }
 0x602   :  { %3270 = vmatpush.msra.mxu3 %v3265_v8 }
 0x603   :  { %3157 = vmatpush.msrb.mxu1 %v3966_v44 }
 0x605   :  { %3158 = vmatpush.msrb.mxu1 %v3967_v16 }
 0x607   :  { %v3531_v25 = vpop.eup %3530  ;;  %3159 = vmatpush.msrb.mxu1 %v3969_v27 }
 0x608   :  { %v3007_v36 = vadd.f32 1.0, %v3531_v25  ;;  %v3262_v25 = vld [vmem:[#allocation8 + $0x3d0] sm:$0xff] }
 0x60a   :  { %3532 = vrcp.f32 %v3007_v36  ;;  %v3020_v45 = vand.u32 2147483648, %v3007_v36  ;;  %v3018_v34 = vand.u32 2147483647, %v3007_v36  ;;  %vm3014_vm7 = vweird.f32 %v3007_v36 }
 0x60c   :  { %v3021_v39 = vor.u32 1.1754944e-38, %v3020_v45  ;;  %vm3019_vm9 = vcmp.eq.f32.partialorder %v3018_v34, 8.507059e+37  ;;  %v3253_v45 = vld [vmem:[#allocation8 + $0x388] sm:$0xff]  ;;  %v3252_v34 = vld [vmem:[#allocation8 + $0x380] sm:$0xff] }
 0x610   :  { %v3533_v61 = vpop.eup %3532 }
 0x611   :  { %v3010_v4 = vmul.f32 %v3533_v61, %v3007_v36  ;;  %vm3015_vm6 = vweird.f32 %v3533_v61 }
 0x612   :  { %v2976_v52 = vpop.f32.mrf.mxu0  ;;  %vm3016_vm8 = vmor %vm3014_vm7, %vm3015_vm6 }
 0x613   :  { %v3011_v26 = vsub.f32 1.0, %v3010_v4  ;;  %v3000_v1 = vadd.f32 %v2976_v52, %v2917_v53  ;;  %v3258_v4 = vld [vmem:[#allocation8 + $0x3b0] sm:$0xff] }
 0x615   :  { %v3012_v55 = vmul.f32 %v3533_v61, %v3011_v26  ;;  %v3374_v12 = vmul.f32 -1.442695, %v3000_v1  ;;  %v3255_v26 = vld [vmem:[#allocation8 + $0x398] sm:$0xff] }
 0x617   :  { %v3013_v33 = vadd.f32 %v3533_v61, %v3012_v55  ;;  %3534 = vpow2.f32 %v3374_v12 }
 0x619   :  { %v3017_v29 = vsel %vm3016_vm8, %v3533_v61, %v3013_v33  ;;  %v3259_v61 = vld [vmem:[#allocation8 + $0x3b8] sm:$0xff] }
 0x61a   :  { %v3022_v6 = vsel %vm3019_vm9, %v3021_v39, %v3017_v29 }
 0x61b   :  { %v3040_v14 = vmul.f32 %v3039_v31, %v3022_v6 }
 0x61d   :  { %v3535_v7 = vpop.eup %3534  ;;  %v3041_v9 = vadd.f32 %v3040_v14, %v2937_v43 }
 0x61e   :  { %v3008_v3 = vadd.f32 1.0, %v3535_v7 }
 0x620   :  { %3536 = vrcp.f32 %v3008_v3  ;;  %v3035_v20 = vand.u32 2147483648, %v3008_v3  ;;  %v3033_v22 = vand.u32 2147483647, %v3008_v3  ;;  %vm3029_vm11 = vweird.f32 %v3008_v3 }
 0x621   :  { %3538 = vtanh.f32 %v3041_v9 }
 0x622   :  { %v3036_v51 = vor.u32 1.1754944e-38, %v3035_v20  ;;  %vm3034_vm13 = vcmp.eq.f32.partialorder %v3033_v22, 8.507059e+37 }
 0x626   :  { %v3537_v24 = vpop.eup %3536 }
 0x627   :  { %v3025_v10 = vmul.f32 %v3537_v24, %v3008_v3  ;;  %vm3030_vm10 = vweird.f32 %v3537_v24  ;;  %v3539_v42 = vpop.eup %3538 }
 0x628   :  { %vm3031_vm12 = vmor %vm3029_vm11, %vm3030_vm10  ;;  %v3043_v37 = vsub.f32 %v6700_v30, %v3539_v42  ;;  %v3264_v30 = vld [vmem:[#allocation8 + $0x3e0] sm:$0xff] }
 0x629   :  { %v3026_v46 = vsub.f32 1.0, %v3025_v10  ;;  %3271 = vmatpush.msra.mxu3 %v3264_v30 }
 0x62b   :  { %v3027_v54 = vmul.f32 %v3537_v24, %v3026_v46  ;;  %3272 = vmatpush.msra.mxu3 %v3263_v0 }
 0x62d   :  { %v3028_v56 = vadd.f32 %v3537_v24, %v3027_v54  ;;  %3273 = vmatpush.msra.mxu3 %v3262_v25 }
 0x62f   :  { %v3032_v21 = vsel %vm3031_vm12, %v3537_v24, %v3028_v56  ;;  %3274 = vmatpush.msra.mxu3 %v3261_v50 }
 0x630   :  { %v3037_v41 = vsel %vm3034_vm13, %v3036_v51, %v3032_v21 }
 0x631   :  { %v3044_v17 = vmul.f32 %v3043_v37, %v3037_v41  ;;  %3275 = vmatpush.msra.mxu3 %v3260_v48 }
 0x633   :  { %v6776_v11 = vadd.f32 %v3539_v42, %v3044_v17  ;;  %3276 = vmatpush.msra.mxu3 %v3259_v61 }
 0x635   :  { %3079 = vmatmul.f32.vlgmr.msra.gmra.mxu1 %v6776_v11  ;;  %3180 = vmatmul.f32.vlgmr.msra.gmra.mxu2 %v6776_v11 }
 0x636   :  { %3200 = vmatmul.f32.vlgmr.msrb.gmra.mxu0 %v6776_v11  ;;  %3277 = vmatpush.msra.mxu3 %v3258_v4 }
 0x638   :  { %3278 = vmatpush.msra.mxu3 %v3257_v60 }
 0x63d   :  { %3160 = vmatmul.f32.vlgmr.msrb.gmra.mxu1 %v6776_v11 }
 0x650   :  { %v3121_v5 = vpop.f32.mrf.mxu0 }
 0x651   :  { %v3122_v36 = vadd.f32 %v3121_v5, %v7642_v38  ;;  %v3256_v38 = vld [vmem:[#allocation8 + $0x3a0] sm:$0xff] }
 0x652   :  { %3279 = vmatpush.msra.mxu3 %v3256_v38 }
 0x654   :  { %3280 = vmatpush.msra.mxu3 %v3255_v26 }
 0x656   :  { %v3101_v63 = vpop.f32.mrf.mxu2  ;;  %3281 = vmatpush.msra.mxu3 %v3254_v18 }
 0x657   :  { %v3102_v13 = vadd.f32 %v3101_v63, %v7622_v35  ;;  %v3141_v7 = vpop.f32.mrf.mxu3 }
 0x658   :  { %3282 = vmatpush.msra.mxu3 %v3253_v45  ;;  %v3142_v24 = vadd.f32 %v3141_v7, %v7648_v59  ;;  %v3389_v59 = vld [vmem:[%s6807_s10] ss:$0 sm:$0xff] }
 0x65a   :  { %3283 = vmatpush.msra.mxu3 %v3252_v34 }
 0x6b2   :  { %v3080_v23 = vpop.f32.mrf.mxu1 }
 0x6b3   :  { %v6783_v28 = vadd.f32 %v3080_v23, %v6764_v49  ;;  %v3201_v31 = vpop.f32.mrf.mxu0 }
 0x6b4   :  { %v3244_v14 = vadd.f32 %v6771_v62, %v3201_v31 }
 0x6b8   :  { %v3181_v19 = vpop.f32.mrf.mxu2 }
 0x6b9   :  { %v3205_v15 = vadd.f32 %v3181_v19, %v3122_v36 }
 0x6ba   :  { %v3161_v47 = vpop.f32.mrf.mxu1 }
 0x6bb   :  { %v3376_v53 = vmul.f32 -1.442695, %v3205_v15  ;;  %v3204_v49 = vadd.f32 %v3161_v47, %v3102_v13 }
 0x6bd   :  { %3540 = vpow2.f32 %v3376_v53  ;;  %v3375_v52 = vmul.f32 -1.442695, %v3204_v49 }
 0x6bf   :  { %3542 = vpow2.f32 %v3375_v52 }
 0x6c3   :  { %v3541_v1 = vpop.eup %3540 }
 0x6c4   :  { %v3213_v55 = vadd.f32 1.0, %v3541_v1 }
 0x6c5   :  { %v3543_v35 = vpop.eup %3542 }
 0x6c6   :  { %v3212_v12 = vadd.f32 1.0, %v3543_v35  ;;  %v3240_v22 = vand.u32 2147483648, %v3213_v55  ;;  %vm3234_vm3 = vweird.f32 %v3213_v55  ;;  %v3238_v42 = vand.u32 2147483647, %v3213_v55 }
 0x6c8   :  { %3544 = vrcp.f32 %v3212_v12  ;;  %v3225_v39 = vand.u32 2147483648, %v3212_v12  ;;  %v3223_v6 = vand.u32 2147483647, %v3212_v12  ;;  %vm3219_vm14 = vweird.f32 %v3212_v12 }
 0x6c9   :  { %3546 = vrcp.f32 %v3213_v55  ;;  %v3241_v21 = vor.u32 1.1754944e-38, %v3240_v22  ;;  %vm3239_vm5 = vcmp.eq.f32.partialorder %v3238_v42, 8.507059e+37 }
 0x6ca   :  { %v3226_v3 = vor.u32 1.1754944e-38, %v3225_v39  ;;  %vm3224_vm1 = vcmp.eq.f32.partialorder %v3223_v6, 8.507059e+37 }
 0x6ce   :  { %v3545_v58 = vpop.eup %3544 }
 0x6cf   :  { %v3547_v33 = vpop.eup %3546  ;;  %v3215_v44 = vmul.f32 %v3545_v58, %v3212_v12  ;;  %vm3220_vm0 = vweird.f32 %v3545_v58 }
 0x6d0   :  { %v3230_v29 = vmul.f32 %v3547_v33, %v3213_v55  ;;  %vm3221_vm15 = vmor %vm3219_vm14, %vm3220_vm0  ;;  %vm3235_vm2 = vweird.f32 %v3547_v33 }
 0x6d1   :  { %v3216_v57 = vsub.f32 1.0, %v3215_v44  ;;  %vm3236_vm4 = vmor %vm3234_vm3, %vm3235_vm2 }
 0x6d2   :  { %v3231_v2 = vsub.f32 1.0, %v3230_v29 }
 0x6d3   :  { %v3217_v16 = vmul.f32 %v3545_v58, %v3216_v57 }
 0x6d4   :  { %v3232_v46 = vmul.f32 %v3547_v33, %v3231_v2 }
 0x6d5   :  { %v3218_v27 = vadd.f32 %v3545_v58, %v3217_v16 }
 0x6d6   :  { %v3233_v54 = vadd.f32 %v3547_v33, %v3232_v46 }
 0x6d7   :  { %v3222_v43 = vsel %vm3221_vm15, %v3545_v58, %v3218_v27 }
 0x6d8   :  { %v3227_v9 = vsel %vm3224_vm1, %v3226_v3, %v3222_v43  ;;  %v3237_v56 = vsel %vm3236_vm4, %v3547_v33, %v3233_v54 }
 0x6d9   :  { %v3245_v10 = vmul.f32 %v3244_v14, %v3227_v9  ;;  %v3242_v37 = vsel %vm3239_vm5, %v3241_v21, %v3237_v56 }
 0x6db   :  { %v3246_v20 = vadd.f32 %v3245_v10, %v3142_v24 }
 0x6dd   :  { %3548 = vtanh.f32 %v3246_v20 }
 0x6e3   :  { %v3549_v51 = vpop.eup %3548 }
 0x6e4   :  { %v3248_v62 = vsub.f32 %v6776_v11, %v3549_v51 }
 0x6e6   :  { %v3249_v41 = vmul.f32 %v3248_v62, %v3242_v37 }
 0x6e8   :  { %v3250_v17 = vadd.f32 %v3549_v51, %v3249_v41 }
 0x6ea   :  { %3284 = vmatmul.f32.vlgmr.msra.gmra.mxu3 %v3250_v17 }
 0x76d   :  { %v3285_v40 = vpop.f32.mrf.mxu3 }
 0x76e   :  { %v3288_v32 = vadd.f32 %v3285_v40, %v6783_v28 }
 0x770   :  { %v3293_v8 = vadd.f32 %v3389_v59, %v3288_v32 }
 0x772   :  { %3294 = vst [vmem:[#allocation10] sm:$0xff] %v3293_v8 }
 0x773   :  { %3305 = dma.vmem_to_hbm [thread:$0]  %s3301_s26, 128, %s3303_s29, [#allocation4]  }
 0x774   :  { %4096 = dma.done.wait [#allocation4], 128  }
 0x775   :  { %4097 = vsyncadd [#allocation4], 4294967168 }
 0x776   :  { %3310 = vsyncpa [#allocation3], 1 }
 0x777   :  { %3311 = vsyncpa [#allocation6], 1 }
 0x778   :  { %3312 = vsyncpa [#allocation9], 1 }
 0x779   :  { %3313 = vsyncpa [#allocation4], 1 }

</bundles_post_ra>
